<compile_context>
chip_gen: v6e
topology: v6e:2x2x1
jax: 0.10.0
libtpu: 0.0.40
codegen_flags: <defaults>
</compile_context>

<pallas_src>
import functools

import numpy as np
import jax
import jax.numpy as jnp
from jax.experimental import pallas as pl
from jax.experimental.pallas import tpu as pltpu

LEAKY_SLOPE = 0.01
IN_EPS = 1e-5

# MXU operand dtype (accumulation stays f32). Set to jnp.float32 for bit-exact
# f32 reference numerics.
MXU_DTYPE = jnp.bfloat16


# ---------------------------------------------------------------------------
# Compiler params (explicit scoped-VMEM budget, per review)
# ---------------------------------------------------------------------------
@functools.lru_cache(maxsize=None)
def _vmem_limit_bytes():
    try:
        cap = int(pltpu.get_tpu_info().vmem_capacity_bytes)
        return min((cap * 3) // 4, 96 * 1024 * 1024)   # ~96 MiB v5e/v6e, ~48 MiB v7x
    except Exception:
        return 48 * 1024 * 1024


def _compiler_params(dim_sem):
    return pltpu.CompilerParams(dimension_semantics=dim_sem,
                                vmem_limit_bytes=_vmem_limit_bytes())


# ---------------------------------------------------------------------------
# Kernels
# ---------------------------------------------------------------------------
def _upblock_kernel(x_ref, skip_ref, wct_ref, bct_ref, wconv_ref, bc_ref,
                    g_ref, bt_ref, whT_ref, bh_ref, rh_ref, rwT_ref,
                    xout_ref, ds_ref, pad_ref):
    """One full decoder level for one batch element (everything stays in VMEM).

    x:     (1, h, w, Cin)       deepest features (NHWC)
    skip:  (1, 2h, 2w, Cs)      skip features (NHWC)
    wct:   (Cin, 4*Cs) bf16     ConvTranspose2d weight, column block t = dy*2+dx
    bct:   (1, 4*Cs)            its bias tiled over the 4 parities
    wconv: (3, 6*Cs, Cs) bf16   3x3 conv weight, per-ky im2col layout,
                                rows ordered (kx, [up 0:Cs | skip Cs:2Cs])
    whT:   (Cs, n_cls), bh: (n_cls,1,1)   1x1 deep-supervision head
    rh:    (Hout, 2h), rwT: (2w, Wout)    bilinear(align_corners=True) matrices
    pad:   (2h+2, 2w+2, 2*Cs) f32 VMEM scratch (merged up|skip halo buffer)
    outputs: xout (1,2h,2w,Cs) NHWC,  ds (1,n_cls,Hout,Wout) NCHW (resized)
    """
    _, h, w, Cin = x_ref.shape
    Cs = xout_ref.shape[3]
    H2, W2 = 2 * h, 2 * w
    n_cls = ds_ref.shape[1]

    # ---- ConvTranspose2d(k=2, s=2): ONE MXU dot covering all 4 output parities ----
    x_flat = x_ref[...].reshape(h * w, Cin).astype(MXU_DTYPE)
    a = jnp.dot(x_flat, wct_ref[...], preferred_element_type=jnp.float32)
    a = (a + bct_ref[...]).reshape(h, w, 4 * Cs)
    s = [a[:, :, t * Cs:(t + 1) * Cs] for t in range(4)]       # t = dy*2 + dx

    # ---- 2x2 interleave entirely in VMEM (no HBM round trip) ----
    def _w_interleave(a0, a1):                                  # -> (h, 2w, Cs)
        z = jnp.concatenate([a0[:, :, None, :], a1[:, :, None, :]], axis=2)
        return z.reshape(h, W2, Cs)

    r0 = _w_interleave(s[0], s[1])                              # even output rows
    r1 = _w_interleave(s[2], s[3])                              # odd  output rows
    up = jnp.concatenate([r0[:, None], r1[:, None]], axis=1).reshape(H2, W2, Cs)
    # TODO(synk): drop the `up` temporary via two leading-dim strided stores
    #   (pl.ds(1, h, 2) / pl.ds(2, h, 2)) once strided ref stores are validated.

    # ---- merged zero-padded (halo=1) scratch: [..., :Cs]=up, [..., Cs:]=skip ----
    # Zero ONLY the 1-element halo border; the interior is fully rewritten below.
    zrow = jnp.zeros((1, W2 + 2, 2 * Cs), jnp.float32)
    zcol = jnp.zeros((H2 + 2, 1, 2 * Cs), jnp.float32)
    pad_ref[pl.ds(0, 1), :, :] = zrow
    pad_ref[pl.ds(H2 + 1, 1), :, :] = zrow
    pad_ref[:, pl.ds(0, 1), :] = zcol
    pad_ref[:, pl.ds(W2 + 1, 1), :] = zcol
    pad_ref[pl.ds(1, H2), pl.ds(1, W2), pl.ds(0, Cs)] = up
    pad_ref[pl.ds(1, H2), pl.ds(1, W2), pl.ds(Cs, Cs)] = skip_ref[0]

    # ---- 3x3 conv (pad=1): per-ky im2col patch -> 3 MXU dots with K = 6*Cs ----
    acc = jnp.zeros((H2 * W2, Cs), jnp.float32) + bc_ref[...]
    for ky in range(3):
        patch = jnp.concatenate(
            [pad_ref[pl.ds(ky, H2), pl.ds(kx, W2), :] for kx in range(3)], axis=-1)
        patch = patch.reshape(H2 * W2, 6 * Cs).astype(MXU_DTYPE)
        acc = acc + jnp.dot(patch, wconv_ref[ky], preferred_element_type=jnp.float32)

    # ---- InstanceNorm2d (per-sample/channel, biased var) + LeakyReLU, all f32 ----
    mean = jnp.mean(acc, axis=0, keepdims=True)
    var = jnp.mean(jnp.square(acc - mean), axis=0, keepdims=True)
    y = (acc - mean) * jax.lax.rsqrt(var + IN_EPS)
    y = y * g_ref[...] + bt_ref[...]
    y = jnp.where(y >= 0.0, y, LEAKY_SLOPE * y)
    xout_ref[...] = y.reshape(1, H2, W2, Cs)

    # ---- 1x1 deep-supervision head (one MXU dot) + bilinear resize -> NCHW ----
    z = jnp.dot(y, whT_ref[...], preferred_element_type=jnp.float32)   # (H2*W2, n_cls)
    z3 = z.reshape(H2, W2, n_cls)
    rh = rh_ref[...]
    rwT = rwT_ref[...]
    # TODO(synk): for large n_cls batch the rh contraction across classes
    #   (reshape to (H2, W2*n_cls)); per-class dots are fine for n_cls ~ 2.
    for c in range(n_cls):
        zc = jnp.dot(rh, z3[:, :, c], preferred_element_type=jnp.float32)   # (Hout, W2)
        zc = jnp.dot(zc, rwT, preferred_element_type=jnp.float32)           # (Hout, Wout)
        # bias after resize == bias before resize (interp weights sum to 1)
        ds_ref[0, c] = zc + bh_ref[c]


def _final_head_kernel(x_ref, wT_ref, b_ref, o_ref):
    # x: (1, th, W, C) NHWC row tile,  wT: (C, n_cls),  b: (n_cls, 1, 1)
    # o: (1, n_cls, th, W) NCHW  (no transpose needed outside)
    _, th, W, C = x_ref.shape
    n_cls = o_ref.shape[1]
    z = jnp.dot(x_ref[...].reshape(th * W, C), wT_ref[...],
                preferred_element_type=jnp.float32)            # (th*W, n_cls) on MXU
    z3 = z.reshape(th, W, n_cls)
    for c in range(n_cls):
        o_ref[0, c] = z3[:, :, c] + b_ref[c]


# ---------------------------------------------------------------------------
# Wrappers (pallas_call + BlockSpecs)
# ---------------------------------------------------------------------------
def _make_resize_matrix(n_in, n_out):
    """Row-interpolation matrix for bilinear, align_corners=True."""
    R = np.zeros((n_out, n_in), dtype=np.float32)
    if n_out == 1:
        src = np.zeros((1,), dtype=np.float64)
    else:
        src = np.arange(n_out, dtype=np.float64) * (n_in - 1) / (n_out - 1)
    p0 = np.clip(np.floor(src).astype(np.int64), 0, n_in - 1)
    p1 = np.clip(p0 + 1, 0, n_in - 1)
    frac = (src - p0).astype(np.float32)
    R[np.arange(n_out), p0] += (1.0 - frac)
    R[np.arange(n_out), p1] += frac
    return jnp.asarray(R)


def fused_up_block(x, skip, p, Hout, Wout):
    """One decoder level as a single pallas_call.
    x: (B,h,w,Cin) NHWC, skip: (B,2h,2w,Cs) NHWC.
    Returns (x_out (B,2h,2w,Cs) NHWC, ds (B,n_cls,Hout,Wout) NCHW)."""
    B, h, w, Cin = x.shape
    Cs = skip.shape[3]
    H2, W2 = 2 * h, 2 * w
    n_cls = p["head_wT"].shape[1]
    rh = _make_resize_matrix(H2, Hout)          # (Hout, 2h)
    rwT = _make_resize_matrix(W2, Wout).T       # (2w, Wout)

    in_specs = [
        pl.BlockSpec((1, h, w, Cin), lambda i: (i, 0, 0, 0)),
        pl.BlockSpec((1, H2, W2, Cs), lambda i: (i, 0, 0, 0)),
        pl.BlockSpec((Cin, 4 * Cs), lambda i: (0, 0)),
        pl.BlockSpec((1, 4 * Cs), lambda i: (0, 0)),
        pl.BlockSpec((3, 6 * Cs, Cs), lambda i: (0, 0, 0)),
        pl.BlockSpec((1, Cs), lambda i: (0, 0)),
        pl.BlockSpec((1, Cs), lambda i: (0, 0)),
        pl.BlockSpec((1, Cs), lambda i: (0, 0)),
        pl.BlockSpec((Cs, n_cls), lambda i: (0, 0)),
        pl.BlockSpec((n_cls, 1, 1), lambda i: (0, 0, 0)),
        pl.BlockSpec((Hout, H2), lambda i: (0, 0)),
        pl.BlockSpec((W2, Wout), lambda i: (0, 0)),
    ]
    out_specs = [
        pl.BlockSpec((1, H2, W2, Cs), lambda i: (i, 0, 0, 0)),
        pl.BlockSpec((1, n_cls, Hout, Wout), lambda i: (i, 0, 0, 0)),
    ]
    out_shape = (
        jax.ShapeDtypeStruct((B, H2, W2, Cs), jnp.float32),
        jax.ShapeDtypeStruct((B, n_cls, Hout, Wout), jnp.float32),
    )
    scratch = [pltpu.VMEM((H2 + 2, W2 + 2, 2 * Cs), jnp.float32)]   # merged halo buffer
    return pl.pallas_call(
        _upblock_kernel,
        out_shape=out_shape,
        grid=(B,),
        in_specs=in_specs,
        out_specs=out_specs,
        scratch_shapes=scratch,
        compiler_params=_compiler_params(("parallel",)),
    )(x, skip, p["ct_w"], p["ct_b"], p["conv_w"], p["c_b"],
      p["gamma"], p["beta"], p["head_wT"], p["head_b"], rh, rwT)


def _pick_row_tile(H, W, C, budget_bytes=2 << 20):
    """Largest power-of-two row tile (multiple of 8) under a per-block byte budget."""
    th = H
    while th % 2 == 0 and (th // 2) % 8 == 0 and th * W * C * 4 > budget_bytes:
        th //= 2
    return th


def final_head(x, p):
    """Final Conv2d(k=1) head, NHWC input -> NCHW output, row-tiled MXU dot."""
    B, H, W, C = x.shape
    n_cls = p["wT"].shape[1]
    th = _pick_row_tile(H, W, C)
    return pl.pallas_call(
        _final_head_kernel,
        out_shape=jax.ShapeDtypeStruct((B, n_cls, H, W), jnp.float32),
        grid=(B, H // th),
        in_specs=[
            pl.BlockSpec((1, th, W, C), lambda i, j: (i, j, 0, 0)),
            pl.BlockSpec((C, n_cls), lambda i, j: (0, 0)),
            pl.BlockSpec((n_cls, 1, 1), lambda i, j: (0, 0, 0)),
        ],
        out_specs=pl.BlockSpec((1, n_cls, th, W), lambda i, j: (i, 0, j, 0)),
        compiler_params=_compiler_params(("parallel", "parallel")),
    )(x, p["wT"], p["b"])


# ---------------------------------------------------------------------------
# Parameter init (deterministic, synthetic) — mirrors ResEncUNetDecoder.__init__.
# All kernel-friendly weight layouts are precomputed here (once).
# ---------------------------------------------------------------------------
def init_decoder_params(key, channels, output_channels=2):
    rev = channels[::-1]
    params = {"levels": []}
    for skip_c, in_c in zip(rev[1:], rev[:-1]):
        key, *ks = jax.random.split(key, 9)
        # UpBlock.conv_transpose: ConvTranspose2d(in_c -> skip_c, k=2, s=2)
        ct_w_t = 0.1 * jax.random.normal(ks[0], (in_c, skip_c, 2, 2), jnp.float32)
        ct_b = 0.05 * jax.random.normal(ks[1], (skip_c,), jnp.float32)
        # UpBlock.conv: Conv2d(2*skip_c -> skip_c, k=3, p=1) + IN(affine) + LeakyReLU
        cw_t = 0.1 * jax.random.normal(ks[2], (skip_c, 2 * skip_c, 3, 3), jnp.float32)
        conv_b = 0.05 * jax.random.normal(ks[3], (skip_c,), jnp.float32)
        gamma = 1.0 + 0.1 * jax.random.normal(ks[4], (skip_c,), jnp.float32)
        beta = 0.05 * jax.random.normal(ks[5], (skip_c,), jnp.float32)
        # out_block: Conv2d(skip_c -> output_channels, k=1)
        ow_t = 0.1 * jax.random.normal(ks[6], (output_channels, skip_c, 1, 1), jnp.float32)
        ob = 0.05 * jax.random.normal(ks[7], (output_channels,), jnp.float32)

        # ---- precomputed kernel layouts (done once, not per forward) ----
        # ConvTranspose as one (Cin, 4*Cs) matmul weight; column block t = dy*2+dx.
        ct_w = jnp.transpose(ct_w_t, (0, 2, 3, 1)).reshape(in_c, 4 * skip_c).astype(MXU_DTYPE)
        ct_bias = jnp.tile(ct_b, 4).reshape(1, 4 * skip_c)
        # 3x3 conv on cat([up, skip]) as (3, 6*Cs, Cs): per-ky im2col weight,
        # rows ordered (kx, cin) with cin = [up 0:Cs | skip Cs:2Cs].
        conv_w = jnp.transpose(cw_t, (2, 3, 1, 0)).reshape(3, 6 * skip_c, skip_c).astype(MXU_DTYPE)

        params["levels"].append(dict(
            ct_w=ct_w, ct_b=ct_bias,
            conv_w=conv_w, c_b=conv_b.reshape(1, skip_c),
            gamma=gamma.reshape(1, skip_c), beta=beta.reshape(1, skip_c),
            head_wT=jnp.transpose(ow_t[:, :, 0, 0]),            # (skip_c, n_cls)
            head_b=ob.reshape(output_channels, 1, 1)))
    # self.out: Conv2d(rev[-1] -> output_channels, k=1)
    key, k1, k2 = jax.random.split(key, 3)
    fw_t = 0.1 * jax.random.normal(k1, (output_channels, rev[-1], 1, 1), jnp.float32)
    fb = 0.05 * jax.random.normal(k2, (output_channels,), jnp.float32)
    params["out"] = dict(wT=jnp.transpose(fw_t[:, :, 0, 0]),
                         b=fb.reshape(output_channels, 1, 1))
    return params


# ---------------------------------------------------------------------------
# Decoder forward (training-mode semantics: full list of deep-supervision outs)
# ---------------------------------------------------------------------------
def decoder_forward(params, x_nchw, skips_nchw):
    # NCHW -> NHWC exactly once at the decoder boundary; the kernels emit the
    # (tiny) deep-supervision / final outputs directly in NCHW.
    to_nhwc = lambda a: jnp.transpose(a, (0, 2, 3, 1))
    x = to_nhwc(x_nchw)
    skips = [to_nhwc(s) for s in skips_nchw]
    Hout, Wout = skips_nchw[0].shape[-2:]

    outs = []
    for p in params["levels"]:
        skip = skips.pop()
        x, ds = fused_up_block(x, skip, p, Hout, Wout)   # one pallas_call / level
        outs.append(ds)                                   # already resized, NCHW
    outs.append(final_head(x, params["out"]))
    # training=True (module default) -> list; eval would return outs[-1]
    return outs


# ---------------------------------------------------------------------------
if __name__ == "__main__":
    # Encoder config implied by the module: channels per resolution level.
    channels = [4, 8, 16]          # encoder.channels
    output_channels = 2
    B, H, W = 2, 16, 16

    key = jax.random.PRNGKey(0)
    kx, ks0, ks1, kp = jax.random.split(key, 4)

    # Bottleneck x: deepest features; skips: stem output + stage-0 output.
    x = jax.random.normal(kx, (B, channels[-1], H // 4, W // 4), jnp.float32)
    skips = [
        jax.random.normal(ks0, (B, channels[0], H, W), jnp.float32),
        jax.random.normal(ks1, (B, channels[1], H // 2, W // 2), jnp.float32),
    ]

    params = init_decoder_params(kp, channels, output_channels)
    outs = jax.jit(decoder_forward)(params, x, skips)

    for o in outs:
        jax.block_until_ready(o)
    # shapes: 3 x (B, 2, 16, 16)
    assert all(o.shape == (B, output_channels, H, W) for o in outs)
    print("KERNEL_OK")
</pallas_src>

<mosaic_0001>
module attributes {stable_mosaic.version = 11 : i64} {
  func.func @_final_head_kernel(%arg0: i32, %arg1: i32, %arg2: memref<1x16x16x4xf32, #tpu.memory_space<vmem>>, %arg3: memref<4x2xf32, #tpu.memory_space<vmem>>, %arg4: memref<2x1x1xf32, #tpu.memory_space<vmem>>, %arg5: memref<1x2x16x16xf32, #tpu.memory_space<vmem>>) attributes {dimension_semantics = [#tpu.dimension_semantics<parallel>, #tpu.dimension_semantics<parallel>], iteration_bounds = array<i64: 2, 1>, scalar_prefetch = 0 : i64, scratch_operands = 0 : i64, tpu.core_type = #tpu.core_type<tc>, window_params = [{transform_indices = @transform_0, window_bounds = array<i64: 1, 16, 16, 4>}, {pipeline_mode = #tpu.pipeline_mode<synchronous>, transform_indices = @transform_1, window_bounds = array<i64: 4, 2>}, {pipeline_mode = #tpu.pipeline_mode<synchronous>, transform_indices = @transform_2, window_bounds = array<i64: 2, 1, 1>}, {transform_indices = @transform_3, window_bounds = array<i64: 1, 2, 16, 16>}]} {
    %c0 = arith.constant 0 : index
    %c0_0 = arith.constant 0 : index
    %c0_1 = arith.constant 0 : index
    %c0_2 = arith.constant 0 : index
    %0 = vector.load %arg2[%c0, %c0_0, %c0_1, %c0_2] : memref<1x16x16x4xf32, #tpu.memory_space<vmem>>, vector<1x16x16x4xf32>
    %1 = vector.shape_cast %0 : vector<1x16x16x4xf32> to vector<256x4xf32>
    %c0_3 = arith.constant 0 : index
    %c0_4 = arith.constant 0 : index
    %2 = vector.load %arg3[%c0_3, %c0_4] : memref<4x2xf32, #tpu.memory_space<vmem>>, vector<4x2xf32>
    %cst = arith.constant dense<0.000000e+00> : vector<256x2xf32>
    %3 = tpu.matmul %1, %2, %cst {dimension_numbers = #tpu.dot_dimension_numbers<[1], [0], [0], [1], [0, 0, 1, 1], [], []>} : vector<256x4xf32>, vector<4x2xf32>, vector<256x2xf32> -> vector<256x2xf32>
    %4 = vector.shape_cast %3 : vector<256x2xf32> to vector<16x16x2xf32>
    %5 = vector.extract_strided_slice %4 {offsets = [0, 0, 0], sizes = [16, 16, 1], strides = [1, 1, 1]} : vector<16x16x2xf32> to vector<16x16x1xf32>
    %6 = vector.shape_cast %5 : vector<16x16x1xf32> to vector<16x16xf32>
    %c0_5 = arith.constant 0 : index
    %c0_6 = arith.constant 0 : index
    %c0_7 = arith.constant 0 : index
    %7 = vector.load %arg4[%c0_5, %c0_6, %c0_7] : memref<2x1x1xf32, #tpu.memory_space<vmem>>, vector<1x1x1xf32>
    %8 = vector.shape_cast %7 : vector<1x1x1xf32> to vector<1x1xf32>
    %9 = vector.broadcast %8 : vector<1x1xf32> to vector<16x16xf32>
    %10 = arith.addf %6, %9 : vector<16x16xf32>
    %c0_8 = arith.constant 0 : index
    %c0_9 = arith.constant 0 : index
    %c0_10 = arith.constant 0 : index
    %c0_11 = arith.constant 0 : index
    %11 = vector.load %arg5[%c0_8, %c0_9, %c0_10, %c0_11] : memref<1x2x16x16xf32, #tpu.memory_space<vmem>>, vector<1x1x16x16xf32>
    %12 = vector.shape_cast %11 : vector<1x1x16x16xf32> to vector<16x16xf32>
    %13 = vector.shape_cast %10 : vector<16x16xf32> to vector<1x1x16x16xf32>
    tpu.vector_store %arg5[%c0_8, %c0_9, %c0_10, %c0_11], %13 {strides = array<i32>} : memref<1x2x16x16xf32, #tpu.memory_space<vmem>>, vector<1x1x16x16xf32>,
    %14 = vector.extract_strided_slice %4 {offsets = [0, 0, 1], sizes = [16, 16, 1], strides = [1, 1, 1]} : vector<16x16x2xf32> to vector<16x16x1xf32>
    %15 = vector.shape_cast %14 : vector<16x16x1xf32> to vector<16x16xf32>
    %c1 = arith.constant 1 : index
    %c0_12 = arith.constant 0 : index
    %c0_13 = arith.constant 0 : index
    %16 = vector.load %arg4[%c1, %c0_12, %c0_13] : memref<2x1x1xf32, #tpu.memory_space<vmem>>, vector<1x1x1xf32>
    %17 = vector.shape_cast %16 : vector<1x1x1xf32> to vector<1x1xf32>
    %18 = vector.broadcast %17 : vector<1x1xf32> to vector<16x16xf32>
    %19 = arith.addf %15, %18 : vector<16x16xf32>
    %c0_14 = arith.constant 0 : index
    %c1_15 = arith.constant 1 : index
    %c0_16 = arith.constant 0 : index
    %c0_17 = arith.constant 0 : index
    %20 = vector.load %arg5[%c0_14, %c1_15, %c0_16, %c0_17] : memref<1x2x16x16xf32, #tpu.memory_space<vmem>>, vector<1x1x16x16xf32>
    %21 = vector.shape_cast %20 : vector<1x1x16x16xf32> to vector<16x16xf32>
    %22 = vector.shape_cast %19 : vector<16x16xf32> to vector<1x1x16x16xf32>
    tpu.vector_store %arg5[%c0_14, %c1_15, %c0_16, %c0_17], %22 {strides = array<i32>} : memref<1x2x16x16xf32, #tpu.memory_space<vmem>>, vector<1x1x16x16xf32>,
    return
  }
  func.func @transform_0(%arg0: i32, %arg1: i32) -> (i32, i32, i32, i32) {
    %c0_i32 = arith.constant 0 : i32
    %c0_i32_0 = arith.constant 0 : i32
    %c0_i32_1 = arith.constant 0 : i32
    return %arg0, %arg1, %c0_i32, %c0_i32_0 : i32, i32, i32, i32
  }
  func.func @transform_1(%arg0: i32, %arg1: i32) -> (i32, i32) {
    %c0_i32 = arith.constant 0 : i32
    %c0_i32_0 = arith.constant 0 : i32
    %c0_i32_1 = arith.constant 0 : i32
    return %c0_i32, %c0_i32_0 : i32, i32
  }
  func.func @transform_2(%arg0: i32, %arg1: i32) -> (i32, i32, i32) {
    %c0_i32 = arith.constant 0 : i32
    %c0_i32_0 = arith.constant 0 : i32
    %c0_i32_1 = arith.constant 0 : i32
    %c0_i32_2 = arith.constant 0 : i32
    return %c0_i32, %c0_i32_0, %c0_i32_1 : i32, i32, i32
  }
  func.func @transform_3(%arg0: i32, %arg1: i32) -> (i32, i32, i32, i32) {
    %c0_i32 = arith.constant 0 : i32
    %c0_i32_0 = arith.constant 0 : i32
    %c0_i32_1 = arith.constant 0 : i32
    return %arg0, %c0_i32, %arg1, %c0_i32_0 : i32, i32, i32, i32
  }
}

module attributes {stable_mosaic.version = 11 : i64} {
  func.func @_upblock_kernel(%arg0: i32, %arg1: memref<1x4x4x16xf32, #tpu.memory_space<vmem>>, %arg2: memref<1x8x8x8xf32, #tpu.memory_space<vmem>>, %arg3: memref<16x32xbf16, #tpu.memory_space<vmem>>, %arg4: memref<1x32xf32, #tpu.memory_space<vmem>>, %arg5: memref<3x48x8xbf16, #tpu.memory_space<vmem>>, %arg6: memref<1x8xf32, #tpu.memory_space<vmem>>, %arg7: memref<1x8xf32, #tpu.memory_space<vmem>>, %arg8: memref<1x8xf32, #tpu.memory_space<vmem>>, %arg9: memref<8x2xf32, #tpu.memory_space<vmem>>, %arg10: memref<2x1x1xf32, #tpu.memory_space<vmem>>, %arg11: memref<16x8xf32, #tpu.memory_space<vmem>>, %arg12: memref<8x16xf32, #tpu.memory_space<vmem>>, %arg13: memref<1x8x8x8xf32, #tpu.memory_space<vmem>>, %arg14: memref<1x2x16x16xf32, #tpu.memory_space<vmem>>, %arg15: memref<10x10x16xf32, #tpu.memory_space<vmem>>) attributes {dimension_semantics = [#tpu.dimension_semantics<parallel>], iteration_bounds = array<i64: 2>, scalar_prefetch = 0 : i64, scratch_operands = 1 : i64, tpu.core_type = #tpu.core_type<tc>, window_params = [{transform_indices = @transform_0, window_bounds = array<i64: 1, 4, 4, 16>}, {transform_indices = @transform_1, window_bounds = array<i64: 1, 8, 8, 8>}, {pipeline_mode = #tpu.pipeline_mode<synchronous>, transform_indices = @transform_2, window_bounds = array<i64: 16, 32>}, {pipeline_mode = #tpu.pipeline_mode<synchronous>, transform_indices = @transform_3, window_bounds = array<i64: 1, 32>}, {pipeline_mode = #tpu.pipeline_mode<synchronous>, transform_indices = @transform_4, window_bounds = array<i64: 3, 48, 8>}, {pipeline_mode = #tpu.pipeline_mode<synchronous>, transform_indices = @transform_5, window_bounds = array<i64: 1, 8>}, {pipeline_mode = #tpu.pipeline_mode<synchronous>, transform_indices = @transform_6, window_bounds = array<i64: 1, 8>}, {pipeline_mode = #tpu.pipeline_mode<synchronous>, transform_indices = @transform_7, window_bounds = array<i64: 1, 8>}, {pipeline_mode = #tpu.pipeline_mode<synchronous>, transform_indices = @transform_8, window_bounds = array<i64: 8, 2>}, {pipeline_mode = #tpu.pipeline_mode<synchronous>, transform_indices = @transform_9, window_bounds = array<i64: 2, 1, 1>}, {pipeline_mode = #tpu.pipeline_mode<synchronous>, transform_indices = @transform_10, window_bounds = array<i64: 16, 8>}, {pipeline_mode = #tpu.pipeline_mode<synchronous>, transform_indices = @transform_11, window_bounds = array<i64: 8, 16>}, {transform_indices = @transform_12, window_bounds = array<i64: 1, 8, 8, 8>}, {transform_indices = @transform_13, window_bounds = array<i64: 1, 2, 16, 16>}]} {
    %c0 = arith.constant 0 : index
    %c0_0 = arith.constant 0 : index
    %c0_1 = arith.constant 0 : index
    %c0_2 = arith.constant 0 : index
    %0 = vector.load %arg1[%c0, %c0_0, %c0_1, %c0_2] : memref<1x4x4x16xf32, #tpu.memory_space<vmem>>, vector<1x4x4x16xf32>
    %1 = vector.shape_cast %0 : vector<1x4x4x16xf32> to vector<16x16xf32>
    %2 = arith.truncf %1 : vector<16x16xf32> to vector<16x16xbf16>
    %c0_3 = arith.constant 0 : index
    %c0_4 = arith.constant 0 : index
    %3 = vector.load %arg3[%c0_3, %c0_4] : memref<16x32xbf16, #tpu.memory_space<vmem>>, vector<16x32xbf16>
    %cst = arith.constant dense<0.000000e+00> : vector<16x32xf32>
    %4 = tpu.matmul %2, %3, %cst {dimension_numbers = #tpu.dot_dimension_numbers<[1], [0], [0], [1], [0, 0, 1, 1], [], []>} : vector<16x16xbf16>, vector<16x32xbf16>, vector<16x32xf32> -> vector<16x32xf32>
    %c0_5 = arith.constant 0 : index
    %c0_6 = arith.constant 0 : index
    %5 = vector.load %arg4[%c0_5, %c0_6] : memref<1x32xf32, #tpu.memory_space<vmem>>, vector<1x32xf32>
    %6 = vector.broadcast %5 : vector<1x32xf32> to vector<16x32xf32>
    %7 = arith.addf %4, %6 : vector<16x32xf32>
    %8 = vector.shape_cast %7 : vector<16x32xf32> to vector<4x4x32xf32>
    %9 = vector.extract_strided_slice %8 {offsets = [0, 0, 0], sizes = [4, 4, 8], strides = [1, 1, 1]} : vector<4x4x32xf32> to vector<4x4x8xf32>
    %10 = vector.extract_strided_slice %8 {offsets = [0, 0, 8], sizes = [4, 4, 8], strides = [1, 1, 1]} : vector<4x4x32xf32> to vector<4x4x8xf32>
    %11 = vector.extract_strided_slice %8 {offsets = [0, 0, 16], sizes = [4, 4, 8], strides = [1, 1, 1]} : vector<4x4x32xf32> to vector<4x4x8xf32>
    %12 = vector.extract_strided_slice %8 {offsets = [0, 0, 24], sizes = [4, 4, 8], strides = [1, 1, 1]} : vector<4x4x32xf32> to vector<4x4x8xf32>
    %13 = vector.shape_cast %9 : vector<4x4x8xf32> to vector<4x4x1x8xf32>
    %14 = vector.shape_cast %10 : vector<4x4x8xf32> to vector<4x4x1x8xf32>
    %15 = tpu.concatenate %13, %14 in 2 : vector<4x4x1x8xf32>, vector<4x4x1x8xf32> -> vector<4x4x2x8xf32>
    %16 = vector.shape_cast %15 : vector<4x4x2x8xf32> to vector<4x8x8xf32>
    %17 = vector.shape_cast %11 : vector<4x4x8xf32> to vector<4x4x1x8xf32>
    %18 = vector.shape_cast %12 : vector<4x4x8xf32> to vector<4x4x1x8xf32>
    %19 = tpu.concatenate %17, %18 in 2 : vector<4x4x1x8xf32>, vector<4x4x1x8xf32> -> vector<4x4x2x8xf32>
    %20 = vector.shape_cast %19 : vector<4x4x2x8xf32> to vector<4x8x8xf32>
    %21 = vector.shape_cast %16 : vector<4x8x8xf32> to vector<4x1x8x8xf32>
    %22 = vector.shape_cast %20 : vector<4x8x8xf32> to vector<4x1x8x8xf32>
    %23 = tpu.concatenate %21, %22 in 1 : vector<4x1x8x8xf32>, vector<4x1x8x8xf32> -> vector<4x2x8x8xf32>
    %24 = vector.shape_cast %23 : vector<4x2x8x8xf32> to vector<8x8x8xf32>
    %cst_7 = arith.constant 0.000000e+00 : f32
    %25 = vector.broadcast %cst_7 : f32 to vector<1x10x16xf32>
    %cst_8 = arith.constant 0.000000e+00 : f32
    %26 = vector.broadcast %cst_8 : f32 to vector<10x1x16xf32>
    %c0_9 = arith.constant 0 : index
    %c0_10 = arith.constant 0 : index
    %c0_11 = arith.constant 0 : index
    %27 = vector.load %arg15[%c0_9, %c0_10, %c0_11] : memref<10x10x16xf32, #tpu.memory_space<vmem>>, vector<1x10x16xf32>
    tpu.vector_store %arg15[%c0_9, %c0_10, %c0_11], %25 {strides = array<i32>} : memref<10x10x16xf32, #tpu.memory_space<vmem>>, vector<1x10x16xf32>,
    %c9 = arith.constant 9 : index
    %c0_12 = arith.constant 0 : index
    %c0_13 = arith.constant 0 : index
    %28 = vector.load %arg15[%c9, %c0_12, %c0_13] : memref<10x10x16xf32, #tpu.memory_space<vmem>>, vector<1x10x16xf32>
    tpu.vector_store %arg15[%c9, %c0_12, %c0_13], %25 {strides = array<i32>} : memref<10x10x16xf32, #tpu.memory_space<vmem>>, vector<1x10x16xf32>,
    %c0_14 = arith.constant 0 : index
    %c0_15 = arith.constant 0 : index
    %c0_16 = arith.constant 0 : index
    %29 = vector.load %arg15[%c0_14, %c0_15, %c0_16] : memref<10x10x16xf32, #tpu.memory_space<vmem>>, vector<10x1x16xf32>
    tpu.vector_store %arg15[%c0_14, %c0_15, %c0_16], %26 {strides = array<i32>} : memref<10x10x16xf32, #tpu.memory_space<vmem>>, vector<10x1x16xf32>,
    %c0_17 = arith.constant 0 : index
    %c9_18 = arith.constant 9 : index
    %c0_19 = arith.constant 0 : index
    %30 = vector.load %arg15[%c0_17, %c9_18, %c0_19] : memref<10x10x16xf32, #tpu.memory_space<vmem>>, vector<10x1x16xf32>
    tpu.vector_store %arg15[%c0_17, %c9_18, %c0_19], %26 {strides = array<i32>} : memref<10x10x16xf32, #tpu.memory_space<vmem>>, vector<10x1x16xf32>,
    %c1 = arith.constant 1 : index
    %c1_20 = arith.constant 1 : index
    %c0_21 = arith.constant 0 : index
    %31 = vector.load %arg15[%c1, %c1_20, %c0_21] : memref<10x10x16xf32, #tpu.memory_space<vmem>>, vector<8x8x8xf32>
    tpu.vector_store %arg15[%c1, %c1_20, %c0_21], %24 {strides = array<i32>} : memref<10x10x16xf32, #tpu.memory_space<vmem>>, vector<8x8x8xf32>,
    %c0_22 = arith.constant 0 : index
    %c0_23 = arith.constant 0 : index
    %c0_24 = arith.constant 0 : index
    %c0_25 = arith.constant 0 : index
    %32 = vector.load %arg2[%c0_22, %c0_23, %c0_24, %c0_25] : memref<1x8x8x8xf32, #tpu.memory_space<vmem>>, vector<1x8x8x8xf32>
    %33 = vector.shape_cast %32 : vector<1x8x8x8xf32> to vector<8x8x8xf32>
    %c1_26 = arith.constant 1 : index
    %c1_27 = arith.constant 1 : index
    %c8 = arith.constant 8 : index
    %34 = vector.load %arg15[%c1_26, %c1_27, %c8] : memref<10x10x16xf32, #tpu.memory_space<vmem>>, vector<8x8x8xf32>
    tpu.vector_store %arg15[%c1_26, %c1_27, %c8], %33 {strides = array<i32>} : memref<10x10x16xf32, #tpu.memory_space<vmem>>, vector<8x8x8xf32>,
    %cst_28 = arith.constant 0.000000e+00 : f32
    %35 = vector.broadcast %cst_28 : f32 to vector<64x8xf32>
    %c0_29 = arith.constant 0 : index
    %c0_30 = arith.constant 0 : index
    %36 = vector.load %arg6[%c0_29, %c0_30] : memref<1x8xf32, #tpu.memory_space<vmem>>, vector<1x8xf32>
    %37 = vector.broadcast %36 : vector<1x8xf32> to vector<64x8xf32>
    %38 = arith.addf %35, %37 : vector<64x8xf32>
    %c0_31 = arith.constant 0 : index
    %c0_32 = arith.constant 0 : index
    %c0_33 = arith.constant 0 : index
    %39 = vector.load %arg15[%c0_31, %c0_32, %c0_33] : memref<10x10x16xf32, #tpu.memory_space<vmem>>, vector<8x8x16xf32>
    %c0_34 = arith.constant 0 : index
    %c1_35 = arith.constant 1 : index
    %c0_36 = arith.constant 0 : index
    %40 = vector.load %arg15[%c0_34, %c1_35, %c0_36] : memref<10x10x16xf32, #tpu.memory_space<vmem>>, vector<8x8x16xf32>
    %c0_37 = arith.constant 0 : index
    %c2 = arith.constant 2 : index
    %c0_38 = arith.constant 0 : index
    %41 = vector.load %arg15[%c0_37, %c2, %c0_38] : memref<10x10x16xf32, #tpu.memory_space<vmem>>, vector<8x8x16xf32>
    %42 = tpu.concatenate %39, %40, %41 in 2 : vector<8x8x16xf32>, vector<8x8x16xf32>, vector<8x8x16xf32> -> vector<8x8x48xf32>
    %43 = vector.shape_cast %42 : vector<8x8x48xf32> to vector<64x48xf32>
    %44 = arith.truncf %43 : vector<64x48xf32> to vector<64x48xbf16>
    %c0_39 = arith.constant 0 : index
    %c0_40 = arith.constant 0 : index
    %c0_41 = arith.constant 0 : index
    %45 = vector.load %arg5[%c0_39, %c0_40, %c0_41] : memref<3x48x8xbf16, #tpu.memory_space<vmem>>, vector<1x48x8xbf16>
    %46 = vector.shape_cast %45 : vector<1x48x8xbf16> to vector<48x8xbf16>
    %cst_42 = arith.constant dense<0.000000e+00> : vector<64x8xf32>
    %47 = tpu.matmul %44, %46, %cst_42 {dimension_numbers = #tpu.dot_dimension_numbers<[1], [0], [0], [1], [0, 0, 1, 1], [], []>} : vector<64x48xbf16>, vector<48x8xbf16>, vector<64x8xf32> -> vector<64x8xf32>
    %48 = arith.addf %38, %47 : vector<64x8xf32>
    %c1_43 = arith.constant 1 : index
    %c0_44 = arith.constant 0 : index
    %c0_45 = arith.constant 0 : index
    %49 = vector.load %arg15[%c1_43, %c0_44, %c0_45] : memref<10x10x16xf32, #tpu.memory_space<vmem>>, vector<8x8x16xf32>
    %c1_46 = arith.constant 1 : index
    %c1_47 = arith.constant 1 : index
    %c0_48 = arith.constant 0 : index
    %50 = vector.load %arg15[%c1_46, %c1_47, %c0_48] : memref<10x10x16xf32, #tpu.memory_space<vmem>>, vector<8x8x16xf32>
    %c1_49 = arith.constant 1 : index
    %c2_50 = arith.constant 2 : index
    %c0_51 = arith.constant 0 : index
    %51 = vector.load %arg15[%c1_49, %c2_50, %c0_51] : memref<10x10x16xf32, #tpu.memory_space<vmem>>, vector<8x8x16xf32>
    %52 = tpu.concatenate %49, %50, %51 in 2 : vector<8x8x16xf32>, vector<8x8x16xf32>, vector<8x8x16xf32> -> vector<8x8x48xf32>
    %53 = vector.shape_cast %52 : vector<8x8x48xf32> to vector<64x48xf32>
    %54 = arith.truncf %53 : vector<64x48xf32> to vector<64x48xbf16>
    %c1_52 = arith.constant 1 : index
    %c0_53 = arith.constant 0 : index
    %c0_54 = arith.constant 0 : index
    %55 = vector.load %arg5[%c1_52, %c0_53, %c0_54] : memref<3x48x8xbf16, #tpu.memory_space<vmem>>, vector<1x48x8xbf16>
    %56 = vector.shape_cast %55 : vector<1x48x8xbf16> to vector<48x8xbf16>
    %cst_55 = arith.constant dense<0.000000e+00> : vector<64x8xf32>
    %57 = tpu.matmul %54, %56, %cst_55 {dimension_numbers = #tpu.dot_dimension_numbers<[1], [0], [0], [1], [0, 0, 1, 1], [], []>} : vector<64x48xbf16>, vector<48x8xbf16>, vector<64x8xf32> -> vector<64x8xf32>
    %58 = arith.addf %48, %57 : vector<64x8xf32>
    %c2_56 = arith.constant 2 : index
    %c0_57 = arith.constant 0 : index
    %c0_58 = arith.constant 0 : index
    %59 = vector.load %arg15[%c2_56, %c0_57, %c0_58] : memref<10x10x16xf32, #tpu.memory_space<vmem>>, vector<8x8x16xf32>
    %c2_59 = arith.constant 2 : index
    %c1_60 = arith.constant 1 : index
    %c0_61 = arith.constant 0 : index
    %60 = vector.load %arg15[%c2_59, %c1_60, %c0_61] : memref<10x10x16xf32, #tpu.memory_space<vmem>>, vector<8x8x16xf32>
    %c2_62 = arith.constant 2 : index
    %c2_63 = arith.constant 2 : index
    %c0_64 = arith.constant 0 : index
    %61 = vector.load %arg15[%c2_62, %c2_63, %c0_64] : memref<10x10x16xf32, #tpu.memory_space<vmem>>, vector<8x8x16xf32>
    %62 = tpu.concatenate %59, %60, %61 in 2 : vector<8x8x16xf32>, vector<8x8x16xf32>, vector<8x8x16xf32> -> vector<8x8x48xf32>
    %63 = vector.shape_cast %62 : vector<8x8x48xf32> to vector<64x48xf32>
    %64 = arith.truncf %63 : vector<64x48xf32> to vector<64x48xbf16>
    %c2_65 = arith.constant 2 : index
    %c0_66 = arith.constant 0 : index
    %c0_67 = arith.constant 0 : index
    %65 = vector.load %arg5[%c2_65, %c0_66, %c0_67] : memref<3x48x8xbf16, #tpu.memory_space<vmem>>, vector<1x48x8xbf16>
    %66 = vector.shape_cast %65 : vector<1x48x8xbf16> to vector<48x8xbf16>
    %cst_68 = arith.constant dense<0.000000e+00> : vector<64x8xf32>
    %67 = tpu.matmul %64, %66, %cst_68 {dimension_numbers = #tpu.dot_dimension_numbers<[1], [0], [0], [1], [0, 0, 1, 1], [], []>} : vector<64x48xbf16>, vector<48x8xbf16>, vector<64x8xf32> -> vector<64x8xf32>
    %68 = arith.addf %58, %67 : vector<64x8xf32>
    %cst_69 = arith.constant dense<0.000000e+00> : vector<8xf32>
    %69 = vector.multi_reduction <add>, %68, %cst_69 [0] : vector<64x8xf32> to vector<8xf32>
    %70 = vector.shape_cast %69 : vector<8xf32> to vector<1x8xf32>
    %cst_70 = arith.constant 6.400000e+01 : f32
    %71 = vector.broadcast %cst_70 : f32 to vector<1x8xf32>
    %72 = arith.divf %70, %71 : vector<1x8xf32>
    %73 = vector.broadcast %72 : vector<1x8xf32> to vector<64x8xf32>
    %74 = arith.subf %68, %73 : vector<64x8xf32>
    %75 = arith.mulf %74, %74 : vector<64x8xf32>
    %cst_71 = arith.constant dense<0.000000e+00> : vector<8xf32>
    %76 = vector.multi_reduction <add>, %75, %cst_71 [0] : vector<64x8xf32> to vector<8xf32>
    %77 = vector.shape_cast %76 : vector<8xf32> to vector<1x8xf32>
    %cst_72 = arith.constant 6.400000e+01 : f32
    %78 = vector.broadcast %cst_72 : f32 to vector<1x8xf32>
    %79 = arith.divf %77, %78 : vector<1x8xf32>
    %80 = vector.broadcast %72 : vector<1x8xf32> to vector<64x8xf32>
    %81 = arith.subf %68, %80 : vector<64x8xf32>
    %cst_73 = arith.constant 9.99999974E-6 : f32
    %82 = vector.broadcast %cst_73 : f32 to vector<1x8xf32>
    %83 = arith.addf %79, %82 : vector<1x8xf32>
    %84 = math.rsqrt %83 : vector<1x8xf32>
    %85 = vector.broadcast %84 : vector<1x8xf32> to vector<64x8xf32>
    %86 = arith.mulf %81, %85 : vector<64x8xf32>
    %c0_74 = arith.constant 0 : index
    %c0_75 = arith.constant 0 : index
    %87 = vector.load %arg7[%c0_74, %c0_75] : memref<1x8xf32, #tpu.memory_space<vmem>>, vector<1x8xf32>
    %88 = vector.broadcast %87 : vector<1x8xf32> to vector<64x8xf32>
    %89 = arith.mulf %86, %88 : vector<64x8xf32>
    %c0_76 = arith.constant 0 : index
    %c0_77 = arith.constant 0 : index
    %90 = vector.load %arg8[%c0_76, %c0_77] : memref<1x8xf32, #tpu.memory_space<vmem>>, vector<1x8xf32>
    %91 = vector.broadcast %90 : vector<1x8xf32> to vector<64x8xf32>
    %92 = arith.addf %89, %91 : vector<64x8xf32>
    %cst_78 = arith.constant 0.000000e+00 : f32
    %93 = vector.broadcast %cst_78 : f32 to vector<64x8xf32>
    %94 = arith.cmpf oge, %92, %93 : vector<64x8xf32>
    %cst_79 = arith.constant 0.00999999977 : f32
    %95 = vector.broadcast %cst_79 : f32 to vector<64x8xf32>
    %96 = arith.mulf %95, %92 : vector<64x8xf32>
    %97 = arith.select %94, %92, %96 : vector<64x8xi1>, vector<64x8xf32>
    %98 = vector.shape_cast %97 : vector<64x8xf32> to vector<1x8x8x8xf32>
    %c0_80 = arith.constant 0 : index
    %c0_81 = arith.constant 0 : index
    %c0_82 = arith.constant 0 : index
    %c0_83 = arith.constant 0 : index
    %99 = vector.load %arg13[%c0_80, %c0_81, %c0_82, %c0_83] : memref<1x8x8x8xf32, #tpu.memory_space<vmem>>, vector<1x8x8x8xf32>
    tpu.vector_store %arg13[%c0_80, %c0_81, %c0_82, %c0_83], %98 {strides = array<i32>} : memref<1x8x8x8xf32, #tpu.memory_space<vmem>>, vector<1x8x8x8xf32>,
    %c0_84 = arith.constant 0 : index
    %c0_85 = arith.constant 0 : index
    %100 = vector.load %arg9[%c0_84, %c0_85] : memref<8x2xf32, #tpu.memory_space<vmem>>, vector<8x2xf32>
    %cst_86 = arith.constant dense<0.000000e+00> : vector<64x2xf32>
    %101 = tpu.matmul %97, %100, %cst_86 {dimension_numbers = #tpu.dot_dimension_numbers<[1], [0], [0], [1], [0, 0, 1, 1], [], []>} : vector<64x8xf32>, vector<8x2xf32>, vector<64x2xf32> -> vector<64x2xf32>
    %102 = vector.shape_cast %101 : vector<64x2xf32> to vector<8x8x2xf32>
    %c0_87 = arith.constant 0 : index
    %c0_88 = arith.constant 0 : index
    %103 = vector.load %arg11[%c0_87, %c0_88] : memref<16x8xf32, #tpu.memory_space<vmem>>, vector<16x8xf32>
    %c0_89 = arith.constant 0 : index
    %c0_90 = arith.constant 0 : index
    %104 = vector.load %arg12[%c0_89, %c0_90] : memref<8x16xf32, #tpu.memory_space<vmem>>, vector<8x16xf32>
    %105 = vector.extract_strided_slice %102 {offsets = [0, 0, 0], sizes = [8, 8, 1], strides = [1, 1, 1]} : vector<8x8x2xf32> to vector<8x8x1xf32>
    %106 = vector.shape_cast %105 : vector<8x8x1xf32> to vector<8x8xf32>
    %cst_91 = arith.constant dense<0.000000e+00> : vector<16x8xf32>
    %107 = tpu.matmul %103, %106, %cst_91 {dimension_numbers = #tpu.dot_dimension_numbers<[1], [0], [0], [1], [0, 0, 1, 1], [], []>} : vector<16x8xf32>, vector<8x8xf32>, vector<16x8xf32> -> vector<16x8xf32>
    %cst_92 = arith.constant dense<0.000000e+00> : vector<16x16xf32>
    %108 = tpu.matmul %107, %104, %cst_92 {dimension_numbers = #tpu.dot_dimension_numbers<[1], [0], [0], [1], [0, 0, 1, 1], [], []>} : vector<16x8xf32>, vector<8x16xf32>, vector<16x16xf32> -> vector<16x16xf32>
    %c0_93 = arith.constant 0 : index
    %c0_94 = arith.constant 0 : index
    %c0_95 = arith.constant 0 : index
    %109 = vector.load %arg10[%c0_93, %c0_94, %c0_95] : memref<2x1x1xf32, #tpu.memory_space<vmem>>, vector<1x1x1xf32>
    %110 = vector.shape_cast %109 : vector<1x1x1xf32> to vector<1x1xf32>
    %111 = vector.broadcast %110 : vector<1x1xf32> to vector<16x16xf32>
    %112 = arith.addf %108, %111 : vector<16x16xf32>
    %c0_96 = arith.constant 0 : index
    %c0_97 = arith.constant 0 : index
    %c0_98 = arith.constant 0 : index
    %c0_99 = arith.constant 0 : index
    %113 = vector.load %arg14[%c0_96, %c0_97, %c0_98, %c0_99] : memref<1x2x16x16xf32, #tpu.memory_space<vmem>>, vector<1x1x16x16xf32>
    %114 = vector.shape_cast %113 : vector<1x1x16x16xf32> to vector<16x16xf32>
    %115 = vector.shape_cast %112 : vector<16x16xf32> to vector<1x1x16x16xf32>
    tpu.vector_store %arg14[%c0_96, %c0_97, %c0_98, %c0_99], %115 {strides = array<i32>} : memref<1x2x16x16xf32, #tpu.memory_space<vmem>>, vector<1x1x16x16xf32>,
    %116 = vector.extract_strided_slice %102 {offsets = [0, 0, 1], sizes = [8, 8, 1], strides = [1, 1, 1]} : vector<8x8x2xf32> to vector<8x8x1xf32>
    %117 = vector.shape_cast %116 : vector<8x8x1xf32> to vector<8x8xf32>
    %cst_100 = arith.constant dense<0.000000e+00> : vector<16x8xf32>
    %118 = tpu.matmul %103, %117, %cst_100 {dimension_numbers = #tpu.dot_dimension_numbers<[1], [0], [0], [1], [0, 0, 1, 1], [], []>} : vector<16x8xf32>, vector<8x8xf32>, vector<16x8xf32> -> vector<16x8xf32>
    %cst_101 = arith.constant dense<0.000000e+00> : vector<16x16xf32>
    %119 = tpu.matmul %118, %104, %cst_101 {dimension_numbers = #tpu.dot_dimension_numbers<[1], [0], [0], [1], [0, 0, 1, 1], [], []>} : vector<16x8xf32>, vector<8x16xf32>, vector<16x16xf32> -> vector<16x16xf32>
    %c1_102 = arith.constant 1 : index
    %c0_103 = arith.constant 0 : index
    %c0_104 = arith.constant 0 : index
    %120 = vector.load %arg10[%c1_102, %c0_103, %c0_104] : memref<2x1x1xf32, #tpu.memory_space<vmem>>, vector<1x1x1xf32>
    %121 = vector.shape_cast %120 : vector<1x1x1xf32> to vector<1x1xf32>
    %122 = vector.broadcast %121 : vector<1x1xf32> to vector<16x16xf32>
    %123 = arith.addf %119, %122 : vector<16x16xf32>
    %c0_105 = arith.constant 0 : index
    %c1_106 = arith.constant 1 : index
    %c0_107 = arith.constant 0 : index
    %c0_108 = arith.constant 0 : index
    %124 = vector.load %arg14[%c0_105, %c1_106, %c0_107, %c0_108] : memref<1x2x16x16xf32, #tpu.memory_space<vmem>>, vector<1x1x16x16xf32>
    %125 = vector.shape_cast %124 : vector<1x1x16x16xf32> to vector<16x16xf32>
    %126 = vector.shape_cast %123 : vector<16x16xf32> to vector<1x1x16x16xf32>
    tpu.vector_store %arg14[%c0_105, %c1_106, %c0_107, %c0_108], %126 {strides = array<i32>} : memref<1x2x16x16xf32, #tpu.memory_space<vmem>>, vector<1x1x16x16xf32>,
    return
  }
  func.func @transform_0(%arg0: i32) -> (i32, i32, i32, i32) {
    %c0_i32 = arith.constant 0 : i32
    %c0_i32_0 = arith.constant 0 : i32
    %c0_i32_1 = arith.constant 0 : i32
    %c0_i32_2 = arith.constant 0 : i32
    return %arg0, %c0_i32, %c0_i32_0, %c0_i32_1 : i32, i32, i32, i32
  }
  func.func @transform_1(%arg0: i32) -> (i32, i32, i32, i32) {
    %c0_i32 = arith.constant 0 : i32
    %c0_i32_0 = arith.constant 0 : i32
    %c0_i32_1 = arith.constant 0 : i32
    %c0_i32_2 = arith.constant 0 : i32
    return %arg0, %c0_i32, %c0_i32_0, %c0_i32_1 : i32, i32, i32, i32
  }
  func.func @transform_2(%arg0: i32) -> (i32, i32) {
    %c0_i32 = arith.constant 0 : i32
    %c0_i32_0 = arith.constant 0 : i32
    %c0_i32_1 = arith.constant 0 : i32
    return %c0_i32, %c0_i32_0 : i32, i32
  }
  func.func @transform_3(%arg0: i32) -> (i32, i32) {
    %c0_i32 = arith.constant 0 : i32
    %c0_i32_0 = arith.constant 0 : i32
    %c0_i32_1 = arith.constant 0 : i32
    return %c0_i32, %c0_i32_0 : i32, i32
  }
  func.func @transform_4(%arg0: i32) -> (i32, i32, i32) {
    %c0_i32 = arith.constant 0 : i32
    %c0_i32_0 = arith.constant 0 : i32
    %c0_i32_1 = arith.constant 0 : i32
    %c0_i32_2 = arith.constant 0 : i32
    return %c0_i32, %c0_i32_0, %c0_i32_1 : i32, i32, i32
  }
  func.func @transform_5(%arg0: i32) -> (i32, i32) {
    %c0_i32 = arith.constant 0 : i32
    %c0_i32_0 = arith.constant 0 : i32
    %c0_i32_1 = arith.constant 0 : i32
    return %c0_i32, %c0_i32_0 : i32, i32
  }
  func.func @transform_6(%arg0: i32) -> (i32, i32) {
    %c0_i32 = arith.constant 0 : i32
    %c0_i32_0 = arith.constant 0 : i32
    %c0_i32_1 = arith.constant 0 : i32
    return %c0_i32, %c0_i32_0 : i32, i32
  }
  func.func @transform_7(%arg0: i32) -> (i32, i32) {
    %c0_i32 = arith.constant 0 : i32
    %c0_i32_0 = arith.constant 0 : i32
    %c0_i32_1 = arith.constant 0 : i32
    return %c0_i32, %c0_i32_0 : i32, i32
  }
  func.func @transform_8(%arg0: i32) -> (i32, i32) {
    %c0_i32 = arith.constant 0 : i32
    %c0_i32_0 = arith.constant 0 : i32
    %c0_i32_1 = arith.constant 0 : i32
    return %c0_i32, %c0_i32_0 : i32, i32
  }
  func.func @transform_9(%arg0: i32) -> (i32, i32, i32) {
    %c0_i32 = arith.constant 0 : i32
    %c0_i32_0 = arith.constant 0 : i32
    %c0_i32_1 = arith.constant 0 : i32
    %c0_i32_2 = arith.constant 0 : i32
    return %c0_i32, %c0_i32_0, %c0_i32_1 : i32, i32, i32
  }
  func.func @transform_10(%arg0: i32) -> (i32, i32) {
    %c0_i32 = arith.constant 0 : i32
    %c0_i32_0 = arith.constant 0 : i32
    %c0_i32_1 = arith.constant 0 : i32
    return %c0_i32, %c0_i32_0 : i32, i32
  }
  func.func @transform_11(%arg0: i32) -> (i32, i32) {
    %c0_i32 = arith.constant 0 : i32
    %c0_i32_0 = arith.constant 0 : i32
    %c0_i32_1 = arith.constant 0 : i32
    return %c0_i32, %c0_i32_0 : i32, i32
  }
  func.func @transform_12(%arg0: i32) -> (i32, i32, i32, i32) {
    %c0_i32 = arith.constant 0 : i32
    %c0_i32_0 = arith.constant 0 : i32
    %c0_i32_1 = arith.constant 0 : i32
    %c0_i32_2 = arith.constant 0 : i32
    return %arg0, %c0_i32, %c0_i32_0, %c0_i32_1 : i32, i32, i32, i32
  }
  func.func @transform_13(%arg0: i32) -> (i32, i32, i32, i32) {
    %c0_i32 = arith.constant 0 : i32
    %c0_i32_0 = arith.constant 0 : i32
    %c0_i32_1 = arith.constant 0 : i32
    %c0_i32_2 = arith.constant 0 : i32
    return %arg0, %c0_i32, %c0_i32_0, %c0_i32_1 : i32, i32, i32, i32
  }
}

module attributes {stable_mosaic.version = 11 : i64} {
  func.func @_upblock_kernel(%arg0: i32, %arg1: memref<1x8x8x8xf32, #tpu.memory_space<vmem>>, %arg2: memref<1x16x16x4xf32, #tpu.memory_space<vmem>>, %arg3: memref<8x16xbf16, #tpu.memory_space<vmem>>, %arg4: memref<1x16xf32, #tpu.memory_space<vmem>>, %arg5: memref<3x24x4xbf16, #tpu.memory_space<vmem>>, %arg6: memref<1x4xf32, #tpu.memory_space<vmem>>, %arg7: memref<1x4xf32, #tpu.memory_space<vmem>>, %arg8: memref<1x4xf32, #tpu.memory_space<vmem>>, %arg9: memref<4x2xf32, #tpu.memory_space<vmem>>, %arg10: memref<2x1x1xf32, #tpu.memory_space<vmem>>, %arg11: memref<16x16xf32, #tpu.memory_space<vmem>>, %arg12: memref<16x16xf32, #tpu.memory_space<vmem>>, %arg13: memref<1x16x16x4xf32, #tpu.memory_space<vmem>>, %arg14: memref<1x2x16x16xf32, #tpu.memory_space<vmem>>, %arg15: memref<18x18x8xf32, #tpu.memory_space<vmem>>) attributes {dimension_semantics = [#tpu.dimension_semantics<parallel>], iteration_bounds = array<i64: 2>, scalar_prefetch = 0 : i64, scratch_operands = 1 : i64, tpu.core_type = #tpu.core_type<tc>, window_params = [{transform_indices = @transform_0, window_bounds = array<i64: 1, 8, 8, 8>}, {transform_indices = @transform_1, window_bounds = array<i64: 1, 16, 16, 4>}, {pipeline_mode = #tpu.pipeline_mode<synchronous>, transform_indices = @transform_2, window_bounds = array<i64: 8, 16>}, {pipeline_mode = #tpu.pipeline_mode<synchronous>, transform_indices = @transform_3, window_bounds = array<i64: 1, 16>}, {pipeline_mode = #tpu.pipeline_mode<synchronous>, transform_indices = @transform_4, window_bounds = array<i64: 3, 24, 4>}, {pipeline_mode = #tpu.pipeline_mode<synchronous>, transform_indices = @transform_5, window_bounds = array<i64: 1, 4>}, {pipeline_mode = #tpu.pipeline_mode<synchronous>, transform_indices = @transform_6, window_bounds = array<i64: 1, 4>}, {pipeline_mode = #tpu.pipeline_mode<synchronous>, transform_indices = @transform_7, window_bounds = array<i64: 1, 4>}, {pipeline_mode = #tpu.pipeline_mode<synchronous>, transform_indices = @transform_8, window_bounds = array<i64: 4, 2>}, {pipeline_mode = #tpu.pipeline_mode<synchronous>, transform_indices = @transform_9, window_bounds = array<i64: 2, 1, 1>}, {pipeline_mode = #tpu.pipeline_mode<synchronous>, transform_indices = @transform_10, window_bounds = array<i64: 16, 16>}, {pipeline_mode = #tpu.pipeline_mode<synchronous>, transform_indices = @transform_11, window_bounds = array<i64: 16, 16>}, {transform_indices = @transform_12, window_bounds = array<i64: 1, 16, 16, 4>}, {transform_indices = @transform_13, window_bounds = array<i64: 1, 2, 16, 16>}]} {
    %c0 = arith.constant 0 : index
    %c0_0 = arith.constant 0 : index
    %c0_1 = arith.constant 0 : index
    %c0_2 = arith.constant 0 : index
    %0 = vector.load %arg1[%c0, %c0_0, %c0_1, %c0_2] : memref<1x8x8x8xf32, #tpu.memory_space<vmem>>, vector<1x8x8x8xf32>
    %1 = vector.shape_cast %0 : vector<1x8x8x8xf32> to vector<64x8xf32>
    %2 = arith.truncf %1 : vector<64x8xf32> to vector<64x8xbf16>
    %c0_3 = arith.constant 0 : index
    %c0_4 = arith.constant 0 : index
    %3 = vector.load %arg3[%c0_3, %c0_4] : memref<8x16xbf16, #tpu.memory_space<vmem>>, vector<8x16xbf16>
    %cst = arith.constant dense<0.000000e+00> : vector<64x16xf32>
    %4 = tpu.matmul %2, %3, %cst {dimension_numbers = #tpu.dot_dimension_numbers<[1], [0], [0], [1], [0, 0, 1, 1], [], []>} : vector<64x8xbf16>, vector<8x16xbf16>, vector<64x16xf32> -> vector<64x16xf32>
    %c0_5 = arith.constant 0 : index
    %c0_6 = arith.constant 0 : index
    %5 = vector.load %arg4[%c0_5, %c0_6] : memref<1x16xf32, #tpu.memory_space<vmem>>, vector<1x16xf32>
    %6 = vector.broadcast %5 : vector<1x16xf32> to vector<64x16xf32>
    %7 = arith.addf %4, %6 : vector<64x16xf32>
    %8 = vector.shape_cast %7 : vector<64x16xf32> to vector<8x8x16xf32>
    %9 = vector.extract_strided_slice %8 {offsets = [0, 0, 0], sizes = [8, 8, 4], strides = [1, 1, 1]} : vector<8x8x16xf32> to vector<8x8x4xf32>
    %10 = vector.extract_strided_slice %8 {offsets = [0, 0, 4], sizes = [8, 8, 4], strides = [1, 1, 1]} : vector<8x8x16xf32> to vector<8x8x4xf32>
    %11 = vector.extract_strided_slice %8 {offsets = [0, 0, 8], sizes = [8, 8, 4], strides = [1, 1, 1]} : vector<8x8x16xf32> to vector<8x8x4xf32>
    %12 = vector.extract_strided_slice %8 {offsets = [0, 0, 12], sizes = [8, 8, 4], strides = [1, 1, 1]} : vector<8x8x16xf32> to vector<8x8x4xf32>
    %13 = vector.shape_cast %9 : vector<8x8x4xf32> to vector<8x8x1x4xf32>
    %14 = vector.shape_cast %10 : vector<8x8x4xf32> to vector<8x8x1x4xf32>
    %15 = tpu.concatenate %13, %14 in 2 : vector<8x8x1x4xf32>, vector<8x8x1x4xf32> -> vector<8x8x2x4xf32>
    %16 = vector.shape_cast %15 : vector<8x8x2x4xf32> to vector<8x16x4xf32>
    %17 = vector.shape_cast %11 : vector<8x8x4xf32> to vector<8x8x1x4xf32>
    %18 = vector.shape_cast %12 : vector<8x8x4xf32> to vector<8x8x1x4xf32>
    %19 = tpu.concatenate %17, %18 in 2 : vector<8x8x1x4xf32>, vector<8x8x1x4xf32> -> vector<8x8x2x4xf32>
    %20 = vector.shape_cast %19 : vector<8x8x2x4xf32> to vector<8x16x4xf32>
    %21 = vector.shape_cast %16 : vector<8x16x4xf32> to vector<8x1x16x4xf32>
    %22 = vector.shape_cast %20 : vector<8x16x4xf32> to vector<8x1x16x4xf32>
    %23 = tpu.concatenate %21, %22 in 1 : vector<8x1x16x4xf32>, vector<8x1x16x4xf32> -> vector<8x2x16x4xf32>
    %24 = vector.shape_cast %23 : vector<8x2x16x4xf32> to vector<16x16x4xf32>
    %cst_7 = arith.constant 0.000000e+00 : f32
    %25 = vector.broadcast %cst_7 : f32 to vector<1x18x8xf32>
    %cst_8 = arith.constant 0.000000e+00 : f32
    %26 = vector.broadcast %cst_8 : f32 to vector<18x1x8xf32>
    %c0_9 = arith.constant 0 : index
    %c0_10 = arith.constant 0 : index
    %c0_11 = arith.constant 0 : index
    %27 = vector.load %arg15[%c0_9, %c0_10, %c0_11] : memref<18x18x8xf32, #tpu.memory_space<vmem>>, vector<1x18x8xf32>
    tpu.vector_store %arg15[%c0_9, %c0_10, %c0_11], %25 {strides = array<i32>} : memref<18x18x8xf32, #tpu.memory_space<vmem>>, vector<1x18x8xf32>,
    %c17 = arith.constant 17 : index
    %c0_12 = arith.constant 0 : index
    %c0_13 = arith.constant 0 : index
    %28 = vector.load %arg15[%c17, %c0_12, %c0_13] : memref<18x18x8xf32, #tpu.memory_space<vmem>>, vector<1x18x8xf32>
    tpu.vector_store %arg15[%c17, %c0_12, %c0_13], %25 {strides = array<i32>} : memref<18x18x8xf32, #tpu.memory_space<vmem>>, vector<1x18x8xf32>,
    %c0_14 = arith.constant 0 : index
    %c0_15 = arith.constant 0 : index
    %c0_16 = arith.constant 0 : index
    %29 = vector.load %arg15[%c0_14, %c0_15, %c0_16] : memref<18x18x8xf32, #tpu.memory_space<vmem>>, vector<18x1x8xf32>
    tpu.vector_store %arg15[%c0_14, %c0_15, %c0_16], %26 {strides = array<i32>} : memref<18x18x8xf32, #tpu.memory_space<vmem>>, vector<18x1x8xf32>,
    %c0_17 = arith.constant 0 : index
    %c17_18 = arith.constant 17 : index
    %c0_19 = arith.constant 0 : index
    %30 = vector.load %arg15[%c0_17, %c17_18, %c0_19] : memref<18x18x8xf32, #tpu.memory_space<vmem>>, vector<18x1x8xf32>
    tpu.vector_store %arg15[%c0_17, %c17_18, %c0_19], %26 {strides = array<i32>} : memref<18x18x8xf32, #tpu.memory_space<vmem>>, vector<18x1x8xf32>,
    %c1 = arith.constant 1 : index
    %c1_20 = arith.constant 1 : index
    %c0_21 = arith.constant 0 : index
    %31 = vector.load %arg15[%c1, %c1_20, %c0_21] : memref<18x18x8xf32, #tpu.memory_space<vmem>>, vector<16x16x4xf32>
    tpu.vector_store %arg15[%c1, %c1_20, %c0_21], %24 {strides = array<i32>} : memref<18x18x8xf32, #tpu.memory_space<vmem>>, vector<16x16x4xf32>,
    %c0_22 = arith.constant 0 : index
    %c0_23 = arith.constant 0 : index
    %c0_24 = arith.constant 0 : index
    %c0_25 = arith.constant 0 : index
    %32 = vector.load %arg2[%c0_22, %c0_23, %c0_24, %c0_25] : memref<1x16x16x4xf32, #tpu.memory_space<vmem>>, vector<1x16x16x4xf32>
    %33 = vector.shape_cast %32 : vector<1x16x16x4xf32> to vector<16x16x4xf32>
    %c1_26 = arith.constant 1 : index
    %c1_27 = arith.constant 1 : index
    %c4 = arith.constant 4 : index
    %34 = vector.load %arg15[%c1_26, %c1_27, %c4] : memref<18x18x8xf32, #tpu.memory_space<vmem>>, vector<16x16x4xf32>
    tpu.vector_store %arg15[%c1_26, %c1_27, %c4], %33 {strides = array<i32>} : memref<18x18x8xf32, #tpu.memory_space<vmem>>, vector<16x16x4xf32>,
    %cst_28 = arith.constant 0.000000e+00 : f32
    %35 = vector.broadcast %cst_28 : f32 to vector<256x4xf32>
    %c0_29 = arith.constant 0 : index
    %c0_30 = arith.constant 0 : index
    %36 = vector.load %arg6[%c0_29, %c0_30] : memref<1x4xf32, #tpu.memory_space<vmem>>, vector<1x4xf32>
    %37 = vector.broadcast %36 : vector<1x4xf32> to vector<256x4xf32>
    %38 = arith.addf %35, %37 : vector<256x4xf32>
    %c0_31 = arith.constant 0 : index
    %c0_32 = arith.constant 0 : index
    %c0_33 = arith.constant 0 : index
    %39 = vector.load %arg15[%c0_31, %c0_32, %c0_33] : memref<18x18x8xf32, #tpu.memory_space<vmem>>, vector<16x16x8xf32>
    %c0_34 = arith.constant 0 : index
    %c1_35 = arith.constant 1 : index
    %c0_36 = arith.constant 0 : index
    %40 = vector.load %arg15[%c0_34, %c1_35, %c0_36] : memref<18x18x8xf32, #tpu.memory_space<vmem>>, vector<16x16x8xf32>
    %c0_37 = arith.constant 0 : index
    %c2 = arith.constant 2 : index
    %c0_38 = arith.constant 0 : index
    %41 = vector.load %arg15[%c0_37, %c2, %c0_38] : memref<18x18x8xf32, #tpu.memory_space<vmem>>, vector<16x16x8xf32>
    %42 = tpu.concatenate %39, %40, %41 in 2 : vector<16x16x8xf32>, vector<16x16x8xf32>, vector<16x16x8xf32> -> vector<16x16x24xf32>
    %43 = vector.shape_cast %42 : vector<16x16x24xf32> to vector<256x24xf32>
    %44 = arith.truncf %43 : vector<256x24xf32> to vector<256x24xbf16>
    %c0_39 = arith.constant 0 : index
    %c0_40 = arith.constant 0 : index
    %c0_41 = arith.constant 0 : index
    %45 = vector.load %arg5[%c0_39, %c0_40, %c0_41] : memref<3x24x4xbf16, #tpu.memory_space<vmem>>, vector<1x24x4xbf16>
    %46 = vector.shape_cast %45 : vector<1x24x4xbf16> to vector<24x4xbf16>
    %cst_42 = arith.constant dense<0.000000e+00> : vector<256x4xf32>
    %47 = tpu.matmul %44, %46, %cst_42 {dimension_numbers = #tpu.dot_dimension_numbers<[1], [0], [0], [1], [0, 0, 1, 1], [], []>} : vector<256x24xbf16>, vector<24x4xbf16>, vector<256x4xf32> -> vector<256x4xf32>
    %48 = arith.addf %38, %47 : vector<256x4xf32>
    %c1_43 = arith.constant 1 : index
    %c0_44 = arith.constant 0 : index
    %c0_45 = arith.constant 0 : index
    %49 = vector.load %arg15[%c1_43, %c0_44, %c0_45] : memref<18x18x8xf32, #tpu.memory_space<vmem>>, vector<16x16x8xf32>
    %c1_46 = arith.constant 1 : index
    %c1_47 = arith.constant 1 : index
    %c0_48 = arith.constant 0 : index
    %50 = vector.load %arg15[%c1_46, %c1_47, %c0_48] : memref<18x18x8xf32, #tpu.memory_space<vmem>>, vector<16x16x8xf32>
    %c1_49 = arith.constant 1 : index
    %c2_50 = arith.constant 2 : index
    %c0_51 = arith.constant 0 : index
    %51 = vector.load %arg15[%c1_49, %c2_50, %c0_51] : memref<18x18x8xf32, #tpu.memory_space<vmem>>, vector<16x16x8xf32>
    %52 = tpu.concatenate %49, %50, %51 in 2 : vector<16x16x8xf32>, vector<16x16x8xf32>, vector<16x16x8xf32> -> vector<16x16x24xf32>
    %53 = vector.shape_cast %52 : vector<16x16x24xf32> to vector<256x24xf32>
    %54 = arith.truncf %53 : vector<256x24xf32> to vector<256x24xbf16>
    %c1_52 = arith.constant 1 : index
    %c0_53 = arith.constant 0 : index
    %c0_54 = arith.constant 0 : index
    %55 = vector.load %arg5[%c1_52, %c0_53, %c0_54] : memref<3x24x4xbf16, #tpu.memory_space<vmem>>, vector<1x24x4xbf16>
    %56 = vector.shape_cast %55 : vector<1x24x4xbf16> to vector<24x4xbf16>
    %cst_55 = arith.constant dense<0.000000e+00> : vector<256x4xf32>
    %57 = tpu.matmul %54, %56, %cst_55 {dimension_numbers = #tpu.dot_dimension_numbers<[1], [0], [0], [1], [0, 0, 1, 1], [], []>} : vector<256x24xbf16>, vector<24x4xbf16>, vector<256x4xf32> -> vector<256x4xf32>
    %58 = arith.addf %48, %57 : vector<256x4xf32>
    %c2_56 = arith.constant 2 : index
    %c0_57 = arith.constant 0 : index
    %c0_58 = arith.constant 0 : index
    %59 = vector.load %arg15[%c2_56, %c0_57, %c0_58] : memref<18x18x8xf32, #tpu.memory_space<vmem>>, vector<16x16x8xf32>
    %c2_59 = arith.constant 2 : index
    %c1_60 = arith.constant 1 : index
    %c0_61 = arith.constant 0 : index
    %60 = vector.load %arg15[%c2_59, %c1_60, %c0_61] : memref<18x18x8xf32, #tpu.memory_space<vmem>>, vector<16x16x8xf32>
    %c2_62 = arith.constant 2 : index
    %c2_63 = arith.constant 2 : index
    %c0_64 = arith.constant 0 : index
    %61 = vector.load %arg15[%c2_62, %c2_63, %c0_64] : memref<18x18x8xf32, #tpu.memory_space<vmem>>, vector<16x16x8xf32>
    %62 = tpu.concatenate %59, %60, %61 in 2 : vector<16x16x8xf32>, vector<16x16x8xf32>, vector<16x16x8xf32> -> vector<16x16x24xf32>
    %63 = vector.shape_cast %62 : vector<16x16x24xf32> to vector<256x24xf32>
    %64 = arith.truncf %63 : vector<256x24xf32> to vector<256x24xbf16>
    %c2_65 = arith.constant 2 : index
    %c0_66 = arith.constant 0 : index
    %c0_67 = arith.constant 0 : index
    %65 = vector.load %arg5[%c2_65, %c0_66, %c0_67] : memref<3x24x4xbf16, #tpu.memory_space<vmem>>, vector<1x24x4xbf16>
    %66 = vector.shape_cast %65 : vector<1x24x4xbf16> to vector<24x4xbf16>
    %cst_68 = arith.constant dense<0.000000e+00> : vector<256x4xf32>
    %67 = tpu.matmul %64, %66, %cst_68 {dimension_numbers = #tpu.dot_dimension_numbers<[1], [0], [0], [1], [0, 0, 1, 1], [], []>} : vector<256x24xbf16>, vector<24x4xbf16>, vector<256x4xf32> -> vector<256x4xf32>
    %68 = arith.addf %58, %67 : vector<256x4xf32>
    %cst_69 = arith.constant dense<0.000000e+00> : vector<4xf32>
    %69 = vector.multi_reduction <add>, %68, %cst_69 [0] : vector<256x4xf32> to vector<4xf32>
    %70 = vector.shape_cast %69 : vector<4xf32> to vector<1x4xf32>
    %cst_70 = arith.constant 2.560000e+02 : f32
    %71 = vector.broadcast %cst_70 : f32 to vector<1x4xf32>
    %72 = arith.divf %70, %71 : vector<1x4xf32>
    %73 = vector.broadcast %72 : vector<1x4xf32> to vector<256x4xf32>
    %74 = arith.subf %68, %73 : vector<256x4xf32>
    %75 = arith.mulf %74, %74 : vector<256x4xf32>
    %cst_71 = arith.constant dense<0.000000e+00> : vector<4xf32>
    %76 = vector.multi_reduction <add>, %75, %cst_71 [0] : vector<256x4xf32> to vector<4xf32>
    %77 = vector.shape_cast %76 : vector<4xf32> to vector<1x4xf32>
    %cst_72 = arith.constant 2.560000e+02 : f32
    %78 = vector.broadcast %cst_72 : f32 to vector<1x4xf32>
    %79 = arith.divf %77, %78 : vector<1x4xf32>
    %80 = vector.broadcast %72 : vector<1x4xf32> to vector<256x4xf32>
    %81 = arith.subf %68, %80 : vector<256x4xf32>
    %cst_73 = arith.constant 9.99999974E-6 : f32
    %82 = vector.broadcast %cst_73 : f32 to vector<1x4xf32>
    %83 = arith.addf %79, %82 : vector<1x4xf32>
    %84 = math.rsqrt %83 : vector<1x4xf32>
    %85 = vector.broadcast %84 : vector<1x4xf32> to vector<256x4xf32>
    %86 = arith.mulf %81, %85 : vector<256x4xf32>
    %c0_74 = arith.constant 0 : index
    %c0_75 = arith.constant 0 : index
    %87 = vector.load %arg7[%c0_74, %c0_75] : memref<1x4xf32, #tpu.memory_space<vmem>>, vector<1x4xf32>
    %88 = vector.broadcast %87 : vector<1x4xf32> to vector<256x4xf32>
    %89 = arith.mulf %86, %88 : vector<256x4xf32>
    %c0_76 = arith.constant 0 : index
    %c0_77 = arith.constant 0 : index
    %90 = vector.load %arg8[%c0_76, %c0_77] : memref<1x4xf32, #tpu.memory_space<vmem>>, vector<1x4xf32>
    %91 = vector.broadcast %90 : vector<1x4xf32> to vector<256x4xf32>
    %92 = arith.addf %89, %91 : vector<256x4xf32>
    %cst_78 = arith.constant 0.000000e+00 : f32
    %93 = vector.broadcast %cst_78 : f32 to vector<256x4xf32>
    %94 = arith.cmpf oge, %92, %93 : vector<256x4xf32>
    %cst_79 = arith.constant 0.00999999977 : f32
    %95 = vector.broadcast %cst_79 : f32 to vector<256x4xf32>
    %96 = arith.mulf %95, %92 : vector<256x4xf32>
    %97 = arith.select %94, %92, %96 : vector<256x4xi1>, vector<256x4xf32>
    %98 = vector.shape_cast %97 : vector<256x4xf32> to vector<1x16x16x4xf32>
    %c0_80 = arith.constant 0 : index
    %c0_81 = arith.constant 0 : index
    %c0_82 = arith.constant 0 : index
    %c0_83 = arith.constant 0 : index
    %99 = vector.load %arg13[%c0_80, %c0_81, %c0_82, %c0_83] : memref<1x16x16x4xf32, #tpu.memory_space<vmem>>, vector<1x16x16x4xf32>
    tpu.vector_store %arg13[%c0_80, %c0_81, %c0_82, %c0_83], %98 {strides = array<i32>} : memref<1x16x16x4xf32, #tpu.memory_space<vmem>>, vector<1x16x16x4xf32>,
    %c0_84 = arith.constant 0 : index
    %c0_85 = arith.constant 0 : index
    %100 = vector.load %arg9[%c0_84, %c0_85] : memref<4x2xf32, #tpu.memory_space<vmem>>, vector<4x2xf32>
    %cst_86 = arith.constant dense<0.000000e+00> : vector<256x2xf32>
    %101 = tpu.matmul %97, %100, %cst_86 {dimension_numbers = #tpu.dot_dimension_numbers<[1], [0], [0], [1], [0, 0, 1, 1], [], []>} : vector<256x4xf32>, vector<4x2xf32>, vector<256x2xf32> -> vector<256x2xf32>
    %102 = vector.shape_cast %101 : vector<256x2xf32> to vector<16x16x2xf32>
    %c0_87 = arith.constant 0 : index
    %c0_88 = arith.constant 0 : index
    %103 = vector.load %arg11[%c0_87, %c0_88] : memref<16x16xf32, #tpu.memory_space<vmem>>, vector<16x16xf32>
    %c0_89 = arith.constant 0 : index
    %c0_90 = arith.constant 0 : index
    %104 = vector.load %arg12[%c0_89, %c0_90] : memref<16x16xf32, #tpu.memory_space<vmem>>, vector<16x16xf32>
    %105 = vector.extract_strided_slice %102 {offsets = [0, 0, 0], sizes = [16, 16, 1], strides = [1, 1, 1]} : vector<16x16x2xf32> to vector<16x16x1xf32>
    %106 = vector.shape_cast %105 : vector<16x16x1xf32> to vector<16x16xf32>
    %cst_91 = arith.constant dense<0.000000e+00> : vector<16x16xf32>
    %107 = tpu.matmul %103, %106, %cst_91 {dimension_numbers = #tpu.dot_dimension_numbers<[1], [0], [0], [1], [0, 0, 1, 1], [], []>} : vector<16x16xf32>, vector<16x16xf32>, vector<16x16xf32> -> vector<16x16xf32>
    %cst_92 = arith.constant dense<0.000000e+00> : vector<16x16xf32>
    %108 = tpu.matmul %107, %104, %cst_92 {dimension_numbers = #tpu.dot_dimension_numbers<[1], [0], [0], [1], [0, 0, 1, 1], [], []>} : vector<16x16xf32>, vector<16x16xf32>, vector<16x16xf32> -> vector<16x16xf32>
    %c0_93 = arith.constant 0 : index
    %c0_94 = arith.constant 0 : index
    %c0_95 = arith.constant 0 : index
    %109 = vector.load %arg10[%c0_93, %c0_94, %c0_95] : memref<2x1x1xf32, #tpu.memory_space<vmem>>, vector<1x1x1xf32>
    %110 = vector.shape_cast %109 : vector<1x1x1xf32> to vector<1x1xf32>
    %111 = vector.broadcast %110 : vector<1x1xf32> to vector<16x16xf32>
    %112 = arith.addf %108, %111 : vector<16x16xf32>
    %c0_96 = arith.constant 0 : index
    %c0_97 = arith.constant 0 : index
    %c0_98 = arith.constant 0 : index
    %c0_99 = arith.constant 0 : index
    %113 = vector.load %arg14[%c0_96, %c0_97, %c0_98, %c0_99] : memref<1x2x16x16xf32, #tpu.memory_space<vmem>>, vector<1x1x16x16xf32>
    %114 = vector.shape_cast %113 : vector<1x1x16x16xf32> to vector<16x16xf32>
    %115 = vector.shape_cast %112 : vector<16x16xf32> to vector<1x1x16x16xf32>
    tpu.vector_store %arg14[%c0_96, %c0_97, %c0_98, %c0_99], %115 {strides = array<i32>} : memref<1x2x16x16xf32, #tpu.memory_space<vmem>>, vector<1x1x16x16xf32>,
    %116 = vector.extract_strided_slice %102 {offsets = [0, 0, 1], sizes = [16, 16, 1], strides = [1, 1, 1]} : vector<16x16x2xf32> to vector<16x16x1xf32>
    %117 = vector.shape_cast %116 : vector<16x16x1xf32> to vector<16x16xf32>
    %cst_100 = arith.constant dense<0.000000e+00> : vector<16x16xf32>
    %118 = tpu.matmul %103, %117, %cst_100 {dimension_numbers = #tpu.dot_dimension_numbers<[1], [0], [0], [1], [0, 0, 1, 1], [], []>} : vector<16x16xf32>, vector<16x16xf32>, vector<16x16xf32> -> vector<16x16xf32>
    %cst_101 = arith.constant dense<0.000000e+00> : vector<16x16xf32>
    %119 = tpu.matmul %118, %104, %cst_101 {dimension_numbers = #tpu.dot_dimension_numbers<[1], [0], [0], [1], [0, 0, 1, 1], [], []>} : vector<16x16xf32>, vector<16x16xf32>, vector<16x16xf32> -> vector<16x16xf32>
    %c1_102 = arith.constant 1 : index
    %c0_103 = arith.constant 0 : index
    %c0_104 = arith.constant 0 : index
    %120 = vector.load %arg10[%c1_102, %c0_103, %c0_104] : memref<2x1x1xf32, #tpu.memory_space<vmem>>, vector<1x1x1xf32>
    %121 = vector.shape_cast %120 : vector<1x1x1xf32> to vector<1x1xf32>
    %122 = vector.broadcast %121 : vector<1x1xf32> to vector<16x16xf32>
    %123 = arith.addf %119, %122 : vector<16x16xf32>
    %c0_105 = arith.constant 0 : index
    %c1_106 = arith.constant 1 : index
    %c0_107 = arith.constant 0 : index
    %c0_108 = arith.constant 0 : index
    %124 = vector.load %arg14[%c0_105, %c1_106, %c0_107, %c0_108] : memref<1x2x16x16xf32, #tpu.memory_space<vmem>>, vector<1x1x16x16xf32>
    %125 = vector.shape_cast %124 : vector<1x1x16x16xf32> to vector<16x16xf32>
    %126 = vector.shape_cast %123 : vector<16x16xf32> to vector<1x1x16x16xf32>
    tpu.vector_store %arg14[%c0_105, %c1_106, %c0_107, %c0_108], %126 {strides = array<i32>} : memref<1x2x16x16xf32, #tpu.memory_space<vmem>>, vector<1x1x16x16xf32>,
    return
  }
  func.func @transform_0(%arg0: i32) -> (i32, i32, i32, i32) {
    %c0_i32 = arith.constant 0 : i32
    %c0_i32_0 = arith.constant 0 : i32
    %c0_i32_1 = arith.constant 0 : i32
    %c0_i32_2 = arith.constant 0 : i32
    return %arg0, %c0_i32, %c0_i32_0, %c0_i32_1 : i32, i32, i32, i32
  }
  func.func @transform_1(%arg0: i32) -> (i32, i32, i32, i32) {
    %c0_i32 = arith.constant 0 : i32
    %c0_i32_0 = arith.constant 0 : i32
    %c0_i32_1 = arith.constant 0 : i32
    %c0_i32_2 = arith.constant 0 : i32
    return %arg0, %c0_i32, %c0_i32_0, %c0_i32_1 : i32, i32, i32, i32
  }
  func.func @transform_2(%arg0: i32) -> (i32, i32) {
    %c0_i32 = arith.constant 0 : i32
    %c0_i32_0 = arith.constant 0 : i32
    %c0_i32_1 = arith.constant 0 : i32
    return %c0_i32, %c0_i32_0 : i32, i32
  }
  func.func @transform_3(%arg0: i32) -> (i32, i32) {
    %c0_i32 = arith.constant 0 : i32
    %c0_i32_0 = arith.constant 0 : i32
    %c0_i32_1 = arith.constant 0 : i32
    return %c0_i32, %c0_i32_0 : i32, i32
  }
  func.func @transform_4(%arg0: i32) -> (i32, i32, i32) {
    %c0_i32 = arith.constant 0 : i32
    %c0_i32_0 = arith.constant 0 : i32
    %c0_i32_1 = arith.constant 0 : i32
    %c0_i32_2 = arith.constant 0 : i32
    return %c0_i32, %c0_i32_0, %c0_i32_1 : i32, i32, i32
  }
  func.func @transform_5(%arg0: i32) -> (i32, i32) {
    %c0_i32 = arith.constant 0 : i32
    %c0_i32_0 = arith.constant 0 : i32
    %c0_i32_1 = arith.constant 0 : i32
    return %c0_i32, %c0_i32_0 : i32, i32
  }
  func.func @transform_6(%arg0: i32) -> (i32, i32) {
    %c0_i32 = arith.constant 0 : i32
    %c0_i32_0 = arith.constant 0 : i32
    %c0_i32_1 = arith.constant 0 : i32
    return %c0_i32, %c0_i32_0 : i32, i32
  }
  func.func @transform_7(%arg0: i32) -> (i32, i32) {
    %c0_i32 = arith.constant 0 : i32
    %c0_i32_0 = arith.constant 0 : i32
    %c0_i32_1 = arith.constant 0 : i32
    return %c0_i32, %c0_i32_0 : i32, i32
  }
  func.func @transform_8(%arg0: i32) -> (i32, i32) {
    %c0_i32 = arith.constant 0 : i32
    %c0_i32_0 = arith.constant 0 : i32
    %c0_i32_1 = arith.constant 0 : i32
    return %c0_i32, %c0_i32_0 : i32, i32
  }
  func.func @transform_9(%arg0: i32) -> (i32, i32, i32) {
    %c0_i32 = arith.constant 0 : i32
    %c0_i32_0 = arith.constant 0 : i32
    %c0_i32_1 = arith.constant 0 : i32
    %c0_i32_2 = arith.constant 0 : i32
    return %c0_i32, %c0_i32_0, %c0_i32_1 : i32, i32, i32
  }
  func.func @transform_10(%arg0: i32) -> (i32, i32) {
    %c0_i32 = arith.constant 0 : i32
    %c0_i32_0 = arith.constant 0 : i32
    %c0_i32_1 = arith.constant 0 : i32
    return %c0_i32, %c0_i32_0 : i32, i32
  }
  func.func @transform_11(%arg0: i32) -> (i32, i32) {
    %c0_i32 = arith.constant 0 : i32
    %c0_i32_0 = arith.constant 0 : i32
    %c0_i32_1 = arith.constant 0 : i32
    return %c0_i32, %c0_i32_0 : i32, i32
  }
  func.func @transform_12(%arg0: i32) -> (i32, i32, i32, i32) {
    %c0_i32 = arith.constant 0 : i32
    %c0_i32_0 = arith.constant 0 : i32
    %c0_i32_1 = arith.constant 0 : i32
    %c0_i32_2 = arith.constant 0 : i32
    return %arg0, %c0_i32, %c0_i32_0, %c0_i32_1 : i32, i32, i32, i32
  }
  func.func @transform_13(%arg0: i32) -> (i32, i32, i32, i32) {
    %c0_i32 = arith.constant 0 : i32
    %c0_i32_0 = arith.constant 0 : i32
    %c0_i32_1 = arith.constant 0 : i32
    %c0_i32_2 = arith.constant 0 : i32
    return %arg0, %c0_i32, %c0_i32_0, %c0_i32_1 : i32, i32, i32, i32
  }
}

</mosaic_0001>

<bundles_post_ra>
// kernel: decoder_forward.5
= control target key start
LH: loop header
LB: loop body
LE: loop exit
PB: predicated region body
PF: predicated region fallthrough
CT: control target
= control target key end

     0   :  { %8 = vsyncpa [#allocation3], 0  ;;  %s2158_s0 = inlined_call_operand.vmem [shape: f32[2,16,16,4], index: 0, kind: input, shape index: {}]   ;;  %s2159_s1 = inlined_call_operand.vmem [shape: f32[4,2], index: 1, kind: input, shape index: {}]   ;;  %s2160_s2 = inlined_call_operand.vmem [shape: f32[2,1,1], index: 2, kind: input, shape index: {}]   ;;  %s2161_s3 = inlined_call_operand.hbm [shape: f32[2,2,16,16], index: 3, kind: output, shape index: {}]  }
   0x1   :  { %10 = vsyncpa [#allocation3 + $0x1], 0  ;;  %s1674_s12 = smov 0   ;;  %s1676_s13 = smov 0  }
   0x2   :  { %s1678_s14 = smov 0   ;;  %s1680_s15 = smov 0  }
   0x3   :  { %s1682_s16 = smov 0   ;;  %s1684_s17 = smov 0  }
   0x4 LB: > { %s1338_s18 = sadd.s32 4294967295, %s1647_s17   ;;  %s1339_s19 = sadd.s32 4294967294, %s1647_s17   ;;  %s1647_s17 = sphi %s1684_s17, %s16_s17   ;;  %s1643_s16 = sphi %s1682_s16, %s2168_s16   ;;  %s1639_s15 = sphi %s1680_s15, %s2167_s15   ;;  %s1635_s14 = sphi %s1678_s14, %s2166_s14   ;;  %s1631_s13 = sphi %s1676_s13, %s2165_s13   ;;  %s1627_s12 = sphi %s1674_s12, %s2164_s12  }
   0x5   : > { %s28_s20 = sadd.s32 1, %s1643_s16  ;;  %s107_s21 = sadd.s32 1, %s1635_s14 }
   0x6   : > { %p30_p0 = scmp.ge.s32.totalorder %s28_s20, 2  ;;  %p117_p1 = scmp.ne.s32.totalorder %s1635_s14, %s1631_s13 }
   0x7   : > { %p118_p2 = scmp.eq.s32.totalorder %s1338_s18, 1  ;;  %p123_p3 = scmp.ne.s32.totalorder %s1631_s13, %s1627_s12 }
   0x8   : > { %s2170_s20 = smov (%p30_p0, %s28_s20), 0  ;;  %p124_p5 = scmp.eq.s32.totalorder %s1339_s19, 1 }
   0x9   : > { %p1714_p4 = por %p118_p2, %p117_p1  ;;  %s102_s23 = ssub.s32 %s1643_s16, %s2170_s20 }
   0xa   : > { %p1342_p6 = scmp.ge.s32.totalorder %s1647_s17, 1  ;;  %p105_p7 = scmp.eq.s32.totalorder %s102_s23, 0 }
   0xb   : > { %p1721_p8 = por %p124_p5, %p123_p3  ;;  %p162_p9 = scmp.lt.s32.totalorder %s1647_s17, 3 }
   0xc   : > { %s1727_s25 = scalar_select %p105_p7, %s1635_s14, %s107_s21  }
   0xd   : > { %p163_p10 = pnand %p1342_p6, %p162_p9 }
   0xe   : > { %p192_p11 = scmp.lt.s32.totalorder (!%p163_p10), %s1639_s15, 1  ;;  %s188_s10 = sand.u32 (!%p163_p10), 1, %s1631_s13  }
   0xf   : > { %166 = sbr.rel (%p163_p10) target bundleno = 508 (0x1fc), region = 32  ;;  %s1343_s11 = sshll.u32 (!%p163_p10), %s188_s10, 5 }
  0x10   : > { %s2053_s18 = scalar_lea.vmem (!%p163_p10), [#allocation2], %s1343_s11  ;;  %s1390_s19 = sshll.u32 (!%p163_p10), %s1639_s15, 9 }
  0x11   : > { %s1256_s21 = sshll.u32 (!%p163_p10), %s2053_s18, 4  ;;  %s2102_s26 = scalar_lea.hbm (!%p163_p10), %s2161_s3, %s1390_s19  ;;  %s2104_s21 = int_to_ptr.vmem [resolvable:$true] %s1256_s21 }
  0x12   : > { %s2113_s27 = scalar_lea.sflag (!%p163_p10), [#allocation3], %s188_s10  ;;  %s1571_s28 = scalar_lea.vmem (!%p163_p10), %s2104_s21, 512 }
  0x13   : > { %p1572_p12 = scmp.ne.s32.totalorder (!%p163_p10), %s2104_s21, %s1571_s28  ;;  %s1651_s29 = smov (!%p163_p10), [#allocation2]  }
  0x14   : > { %v235_v0 = vld [vmem:[%s2159_s1] sm:$0xf]  ;;  %vm333_vm0 = vcmask 1043456   ;;  %s193_s30 = scalar_select %p192_p11, %s1639_s15, 1  ;;  %v1649_v2 = vmov 0   ;;  %vm236_vm1 = vcmask 31744  }
  0x15   : > { %1424 = vmatprep.subr.msk.mxu0 %vm333_vm0, %v235_v0  ;;  %1474 = vmatprep.subr.msk.mxu1 %vm333_vm0, %v235_v0  ;;  %v1379_v1 = vld [vmem:[%s2160_s2] ss:$0 sm:$0xff]  ;;  %v1381_v3 = vld [vmem:[%s2160_s2 + $0x1] ss:$0 sm:$0xff]  ;;  %v1650_v44 = vmov 1   ;;  %vm743_vm2 = vcmask 130112   ;;  %p1573_p13 = pnand %p1572_p12, %p1714_p4 }
  0x16   : > { %1425 = vmatpush3.msk.msra.mxu0 %vm333_vm0, %v235_v0  ;;  %1475 = vmatpush3.msk.msra.mxu1 %vm333_vm0, %v235_v0  ;;  %s1389_s4 = sshll.u32 %s193_s30, 8  ;;  %vm880_vm3 = vcmask 1041409   ;;  %vm882_vm4 = vcmask 1042434   ;;  %vm884_vm5 = vcmask 1043459   ;;  %vm886_vm6 = vcmask 1044484   ;;  %s1575_s30 = sshll.u32 %s1651_s29, 4  ;;  %s1576_s30 = int_to_ptr.vmem [resolvable:$false] %s1575_s30 }
  0x17   : > { %1535 = vset.pattern.permute.xlu0 %v1649_v2  ;;  %1536 = vset.pattern.permute.xlu1 %v1649_v2  ;;  %s1742_s7 = scalar_lea.vmem %s2158_s0, %s1389_s4  ;;  %vm888_vm7 = vcmask 1045509   ;;  %vm890_vm8 = vcmask 1046534   ;;  %vm892_vm9 = vcmask 1047559   ;;  %vm903_vm10 = vcmask 130048   ;;  %p1574_p0 = pneg %p1573_p13 }
  0x18   : > { %569 = vperm.xlu0 %1535, %v1379_v1   ;;  %v203_v4 = vld [vmem:[%s1742_s7] sm:$0xff]  ;;  %v204_v6 = vld [vmem:[%s1742_s7 + $0x8] sm:$0xff]  ;;  %v205_v8 = vld [vmem:[%s1742_s7 + $0x10] sm:$0xff]  ;;  %s1577_s4 = scalar_lea.vmem %s1576_s30, 1024  ;;  %p1578_p1 = scmp.lt.s32.totalorder %s2104_s21, %s1576_s30 }
  0x19   : > { %v219_v5 = vld [vmem:[%s1742_s7 + $0x80] sm:$0xff]  ;;  %1426 = vmatprep.mubr.msk.f32.mxu0 %vm236_vm1, %v203_v4  ;;  %v220_v7 = vld [vmem:[%s1742_s7 + $0x88] sm:$0xff]  ;;  %v221_v9 = vld [vmem:[%s1742_s7 + $0x90] sm:$0xff]  ;;  %p1579_p2 = scmp.lt.s32.totalorder %s1577_s4, %s1571_s28 }
  0x1a   : > { %1450 = vmatprep.mubr.msk.f32.mxu1 %vm236_vm1, %v219_v5  ;;  %1427 = vmatmul.mubr.msk.f32.vlgmr.msra.gmra.mxu0 %vm236_vm1, %v204_v6  ;;  %v206_v10 = vld [vmem:[%s1742_s7 + $0x18] sm:$0xff]  ;;  %v207_v12 = vld [vmem:[%s1742_s7 + $0x20] sm:$0xff]  ;;  %v208_v14 = vld [vmem:[%s1742_s7 + $0x28] sm:$0xff] }
  0x1b   : > { %1451 = vmatmul.mubr.msk.f32.vlgmr.msra.gmra.mxu1 %vm236_vm1, %v220_v7  ;;  %1429 = vmatprep.mubr.msk.f32.mxu0 %vm236_vm1, %v205_v8  ;;  %v222_v11 = vld [vmem:[%s1742_s7 + $0x98] sm:$0xff]  ;;  %v223_v13 = vld [vmem:[%s1742_s7 + $0xa0] sm:$0xff]  ;;  %v224_v15 = vld [vmem:[%s1742_s7 + $0xa8] sm:$0xff]  ;;  %p1580_p3 = por %p1579_p2, %p1578_p1 }
  0x1c   : > { %1453 = vmatprep.mubr.msk.f32.mxu1 %vm236_vm1, %v221_v9  ;;  %914 = vperm.xlu0 %1535, %v1381_v3   ;;  %v209_v16 = vld [vmem:[%s1742_s7 + $0x30] sm:$0xff]  ;;  %v210_v18 = vld [vmem:[%s1742_s7 + $0x38] sm:$0xff]  ;;  %v211_v20 = vld [vmem:[%s1742_s7 + $0x40] sm:$0xff] }
  0x1d   : > { %v225_v17 = vld [vmem:[%s1742_s7 + $0xb0] sm:$0xff]  ;;  %v226_v19 = vld [vmem:[%s1742_s7 + $0xb8] sm:$0xff]  ;;  %v227_v21 = vld [vmem:[%s1742_s7 + $0xc0] sm:$0xff]  ;;  %p1581_p5 = pnand %p1580_p3, %p1574_p0 }
  0x1e   : > { %1430 = vmatmul.mubr.msk.f32.gmra.mxu0 %vm236_vm1, %v206_v10  ;;  %v212_v22 = vld [vmem:[%s1742_s7 + $0x48] sm:$0xff]  ;;  %v213_v24 = vld [vmem:[%s1742_s7 + $0x50] sm:$0xff]  ;;  %v214_v26 = vld [vmem:[%s1742_s7 + $0x58] sm:$0xff] }
  0x1f   : > { %1454 = vmatmul.mubr.msk.f32.gmra.mxu1 %vm236_vm1, %v222_v11  ;;  %1432 = vmatprep.mubr.msk.f32.mxu0 %vm236_vm1, %v207_v12  ;;  %v228_v23 = vld [vmem:[%s1742_s7 + $0xc8] sm:$0xff]  ;;  %v229_v25 = vld [vmem:[%s1742_s7 + $0xd0] sm:$0xff]  ;;  %v230_v27 = vld [vmem:[%s1742_s7 + $0xd8] sm:$0xff] }
  0x20   : > { %1456 = vmatprep.mubr.msk.f32.mxu1 %vm236_vm1, %v223_v13  ;;  %v215_v28 = vld [vmem:[%s1742_s7 + $0x60] sm:$0xff]  ;;  %v216_v30 = vld [vmem:[%s1742_s7 + $0x68] sm:$0xff]  ;;  %v217_v32 = vld [vmem:[%s1742_s7 + $0x70] sm:$0xff] }
  0x21   : > { %v231_v29 = vld [vmem:[%s1742_s7 + $0xe0] sm:$0xff]  ;;  %v232_v31 = vld [vmem:[%s1742_s7 + $0xe8] sm:$0xff]  ;;  %v233_v33 = vld [vmem:[%s1742_s7 + $0xf0] sm:$0xff] }
  0x22   : > { %1433 = vmatmul.mubr.msk.f32.gmra.mxu0 %vm236_vm1, %v208_v14  ;;  %v218_v34 = vld [vmem:[%s1742_s7 + $0x78] sm:$0xff] }
  0x23   : > { %1457 = vmatmul.mubr.msk.f32.gmra.mxu1 %vm236_vm1, %v224_v15  ;;  %1435 = vmatprep.mubr.msk.f32.mxu0 %vm236_vm1, %v209_v16  ;;  %v234_v35 = vld [vmem:[%s1742_s7 + $0xf8] sm:$0xff] }
  0x24   : > { %1459 = vmatprep.mubr.msk.f32.mxu1 %vm236_vm1, %v225_v17 }
  0x26   : > { %1436 = vmatmul.mubr.msk.f32.gmra.mxu0 %vm236_vm1, %v210_v18 }
  0x27   : > { %1460 = vmatmul.mubr.msk.f32.gmra.mxu1 %vm236_vm1, %v226_v19  ;;  %1438 = vmatprep.mubr.msk.f32.mxu0 %vm236_vm1, %v211_v20 }
  0x28   : > { %1462 = vmatprep.mubr.msk.f32.mxu1 %vm236_vm1, %v227_v21 }
  0x2a   : > { %1439 = vmatmul.mubr.msk.f32.gmra.mxu0 %vm236_vm1, %v212_v22 }
  0x2b   : > { %1463 = vmatmul.mubr.msk.f32.gmra.mxu1 %vm236_vm1, %v228_v23  ;;  %1441 = vmatprep.mubr.msk.f32.mxu0 %vm236_vm1, %v213_v24 }
  0x2c   : > { %1465 = vmatprep.mubr.msk.f32.mxu1 %vm236_vm1, %v229_v25 }
  0x2e   : > { %1442 = vmatmul.mubr.msk.f32.gmra.mxu0 %vm236_vm1, %v214_v26 }
  0x2f   : > { %1466 = vmatmul.mubr.msk.f32.gmra.mxu1 %vm236_vm1, %v230_v27  ;;  %1444 = vmatprep.mubr.msk.f32.mxu0 %vm236_vm1, %v215_v28 }
  0x30   : > { %1468 = vmatprep.mubr.msk.f32.mxu1 %vm236_vm1, %v231_v29 }
  0x32   : > { %1445 = vmatmul.mubr.msk.f32.gmra.mxu0 %vm236_vm1, %v216_v30 }
  0x33   : > { %1469 = vmatmul.mubr.msk.f32.gmra.mxu1 %vm236_vm1, %v232_v31  ;;  %1447 = vmatprep.mubr.msk.f32.mxu0 %vm236_vm1, %v217_v32 }
  0x34   : > { %1471 = vmatprep.mubr.msk.f32.mxu1 %vm236_vm1, %v233_v33 }
  0x36   : > { %1448 = vmatmul.mubr.msk.f32.gmra.mxu0 %vm236_vm1, %v218_v34 }
  0x37   : > { %1472 = vmatmul.mubr.msk.f32.gmra.mxu1 %vm236_vm1, %v234_v35 }
  0x93   : > { %v1811_v36 = vpop.permute.xlu0 %569 }
  0x97   : > { %v1815_v41 = vpop.permute.xlu0 %914 }
  0xda   : > { %v1428_v37 = vpop.f32.mrf.mxu0 }
  0xdb   : > { %v1452_v38 = vpop.f32.mrf.mxu1  ;;  %v573_v40 = vadd.f32 %v1428_v37, %v1811_v36  ;;  %v918_v43 = vadd.f32 %v1428_v37, %v1815_v41 }
  0xdc   : > { %v589_v39 = vadd.f32 %v1452_v38, %v1811_v36  ;;  %v934_v42 = vadd.f32 %v1452_v38, %v1815_v41  ;;  %v403_v45 = vpop.f32.mrf.mxu0 }
  0xdd   : > { %640 = vperm.xlu1 %1536, %v573_v40   ;;  %v483_v46 = vpop.f32.mrf.mxu1  ;;  %v572_v47 = vadd.f32 %v1811_v36, %v403_v45  ;;  %v917_v50 = vadd.f32 %v1815_v41, %v403_v45 }
  0xde   : > { %688 = vperm.xlu0 %1535, %v589_v39   ;;  %v588_v48 = vadd.f32 %v1811_v36, %v483_v46  ;;  %v1431_v49 = vpop.f32.mrf.mxu0  ;;  %v933_v51 = vadd.f32 %v1815_v41, %v483_v46 }
  0xdf   : > { %v1455_v52 = vpop.f32.mrf.mxu1  ;;  %v575_v54 = vadd.f32 %v1431_v49, %v1811_v36  ;;  %v920_v59 = vadd.f32 %v1431_v49, %v1815_v41 }
  0xe0   : > { %v413_v53 = vpop.f32.mrf.mxu0  ;;  %v591_v57 = vadd.f32 %v1455_v52, %v1811_v36  ;;  %v936_v62 = vadd.f32 %v1455_v52, %v1815_v41 }
  0xe1   : > { %1537 = vset.pattern.permute.xlu1 %v1650_v44  ;;  %v574_v55 = vadd.f32 %v1811_v36, %v413_v53  ;;  %v493_v56 = vpop.f32.mrf.mxu1  ;;  %v919_v60 = vadd.f32 %v1815_v41, %v413_v53 }
  0xe2   : > { %1538 = vset.pattern.permute.xlu0 %v1650_v44  ;;  %985 = vperm.xlu1 %1537, %v918_v43   ;;  %v590_v58 = vadd.f32 %v1811_v36, %v493_v56  ;;  %v1434_v61 = vpop.f32.mrf.mxu0  ;;  %v935_v63 = vadd.f32 %v1815_v41, %v493_v56 }
  0xe3   : > { %1033 = vperm.xlu0 %1538, %v934_v42   ;;  %v1458_v0 = vpop.f32.mrf.mxu1  ;;  %v577_v3 = vadd.f32 %v1434_v61, %v1811_v36  ;;  %v922_v8 = vadd.f32 %v1434_v61, %v1815_v41  ;;  %v732_v61 = vlaneseq }
  0xe4   : > { %v423_v1 = vpop.f32.mrf.mxu0  ;;  %v593_v6 = vadd.f32 %v1458_v0, %v1811_v36  ;;  %v938_v11 = vadd.f32 %v1458_v0, %v1815_v41 }
  0xe5   : > { %v576_v4 = vadd.f32 %v1811_v36, %v423_v1  ;;  %v503_v5 = vpop.f32.mrf.mxu1  ;;  %v921_v9 = vadd.f32 %v1815_v41, %v423_v1  ;;  %v733_v1 = vand.u32 127, %v732_v61 }
  0xe6   : > { %1540 = vset.pattern.permute.xlu1 %v1649_v2  ;;  %v592_v7 = vadd.f32 %v1811_v36, %v503_v5  ;;  %v1437_v10 = vpop.f32.mrf.mxu0  ;;  %v937_v12 = vadd.f32 %v1815_v41, %v503_v5 }
  0xe7   : > { %1539 = vset.pattern.permute.xlu0 %v1649_v2  ;;  %685 = vperm.xlu1 %1540, %v588_v48   ;;  %v1461_v13 = vpop.f32.mrf.mxu1  ;;  %v579_v15 = vadd.f32 %v1437_v10, %v1811_v36  ;;  %v924_v20 = vadd.f32 %v1437_v10, %v1815_v41 }
  0xe8   : > { %637 = vperm.xlu0 %1539, %v572_v47   ;;  %v433_v14 = vpop.f32.mrf.mxu0  ;;  %v595_v18 = vadd.f32 %v1461_v13, %v1811_v36  ;;  %v940_v23 = vadd.f32 %v1461_v13, %v1815_v41 }
  0xe9   : > { %v578_v16 = vadd.f32 %v1811_v36, %v433_v14  ;;  %v513_v17 = vpop.f32.mrf.mxu1  ;;  %v923_v21 = vadd.f32 %v1815_v41, %v433_v14 }
  0xea   : > { %v594_v19 = vadd.f32 %v1811_v36, %v513_v17  ;;  %v1440_v22 = vpop.f32.mrf.mxu0  ;;  %v939_v24 = vadd.f32 %v1815_v41, %v513_v17 }
  0xeb   : > { %1542 = vset.pattern.permute.xlu1 %v1650_v44  ;;  %v1464_v25 = vpop.f32.mrf.mxu1  ;;  %v581_v27 = vadd.f32 %v1440_v22, %v1811_v36  ;;  %v926_v32 = vadd.f32 %v1440_v22, %v1815_v41 }
  0xec   : > { %1541 = vset.pattern.permute.xlu0 %v1650_v44  ;;  %1030 = vperm.xlu1 %1542, %v933_v51   ;;  %v443_v26 = vpop.f32.mrf.mxu0  ;;  %v597_v30 = vadd.f32 %v1464_v25, %v1811_v36  ;;  %v942_v35 = vadd.f32 %v1464_v25, %v1815_v41 }
  0xed   : > { %982 = vperm.xlu0 %1541, %v917_v50   ;;  %v580_v28 = vadd.f32 %v1811_v36, %v443_v26  ;;  %v523_v29 = vpop.f32.mrf.mxu1  ;;  %v925_v33 = vadd.f32 %v1815_v41, %v443_v26 }
  0xee   : > { %v596_v31 = vadd.f32 %v1811_v36, %v523_v29  ;;  %v1443_v34 = vpop.f32.mrf.mxu0  ;;  %v941_v37 = vadd.f32 %v1815_v41, %v523_v29 }
  0xef   : > { %v1467_v38 = vpop.f32.mrf.mxu1  ;;  %v583_v40 = vadd.f32 %v1443_v34, %v1811_v36  ;;  %v928_v47 = vadd.f32 %v1443_v34, %v1815_v41 }
  0xf0   : > { %1545 = vset.pattern.permute.xlu1 %v1649_v2  ;;  %v453_v39 = vpop.f32.mrf.mxu0  ;;  %v599_v45 = vadd.f32 %v1467_v38, %v1811_v36  ;;  %v944_v50 = vadd.f32 %v1467_v38, %v1815_v41 }
  0xf1   : > { %1543 = vset.pattern.permute.xlu0 %v1649_v2  ;;  %643 = vperm.xlu1 %1545, %v574_v55   ;;  %v582_v42 = vadd.f32 %v1811_v36, %v453_v39  ;;  %v533_v43 = vpop.f32.mrf.mxu1  ;;  %v927_v48 = vadd.f32 %v1815_v41, %v453_v39 }
  0xf2   : > { %646 = vperm.xlu0 %1543, %v575_v54   ;;  %v598_v46 = vadd.f32 %v1811_v36, %v533_v43  ;;  %v1446_v49 = vpop.f32.mrf.mxu0  ;;  %v943_v51 = vadd.f32 %v1815_v41, %v533_v43 }
  0xf3   : > { %v1470_v52 = vpop.f32.mrf.mxu1  ;;  %v585_v54 = vadd.f32 %v1446_v49, %v1811_v36 }
  0xf4   : > { %v463_v53 = vpop.f32.mrf.mxu0 }
  0xf5   : > { %691 = vperm.xlu1 %1545, %v590_v58   ;;  %v584_v55 = vadd.f32 %v1811_v36, %v463_v53  ;;  %v543_v56 = vpop.f32.mrf.mxu1 }
  0xf6   : > { %694 = vperm.xlu0 %1543, %v591_v57   ;;  %v601_v57 = vadd.f32 %v1470_v52, %v1811_v36  ;;  %v600_v58 = vadd.f32 %v1811_v36, %v543_v56  ;;  %v1449_v0 = vpop.f32.mrf.mxu0 }
  0xf7   : > { %v932_v17 = vadd.f32 %v1449_v0, %v1815_v41 }
  0xf8   : > { %v473_v10 = vpop.f32.mrf.mxu0 }
  0xf9   : > { %1546 = vset.pattern.permute.xlu1 %v1650_v44  ;;  %v586_v13 = vadd.f32 %v1811_v36, %v473_v10 }
  0xfa   : > { %1544 = vset.pattern.permute.xlu0 %v1650_v44  ;;  %988 = vperm.xlu1 %1546, %v919_v60   ;;  %v929_v60 = vadd.f32 %v1815_v41, %v463_v53 }
  0xfb   : > { %991 = vperm.xlu0 %1544, %v920_v59   ;;  %v930_v59 = vadd.f32 %v1446_v49, %v1815_v41 }
  0xfe   : > { %1036 = vperm.xlu1 %1546, %v935_v63   ;;  %v945_v63 = vadd.f32 %v1815_v41, %v543_v56 }
  0xff   : > { %1039 = vperm.xlu0 %1544, %v936_v62   ;;  %v946_v62 = vadd.f32 %v1470_v52, %v1815_v41 }
 0x102   : > { %1549 = vset.pattern.permute.xlu1 %v1649_v2 }
 0x103   : > { %1547 = vset.pattern.permute.xlu0 %v1649_v2  ;;  %649 = vperm.xlu1 %1549, %v576_v4   ;;  %v1473_v4 = vpop.f32.mrf.mxu1 }
 0x104   : > { %652 = vperm.xlu0 %1547, %v577_v3  }
 0x105   : > { %v553_v14 = vpop.f32.mrf.mxu1 }
 0x107   : > { %697 = vperm.xlu1 %1549, %v592_v7   ;;  %v603_v7 = vadd.f32 %v1473_v4, %v1811_v36 }
 0x108   : > { %700 = vperm.xlu0 %1547, %v593_v6   ;;  %v587_v6 = vadd.f32 %v1449_v0, %v1811_v36 }
 0x10b   : > { %1550 = vset.pattern.permute.xlu1 %v1650_v44 }
 0x10c   : > { %1548 = vset.pattern.permute.xlu0 %v1650_v44  ;;  %994 = vperm.xlu1 %1550, %v921_v9   ;;  %v738_v9 = vadd.s32 4294967288, %v733_v1 }
 0x10d   : > { %997 = vperm.xlu0 %1548, %v922_v8   ;;  %v735_v8 = vshrl.u32 %v732_v61, 7 }
 0x110   : > { %1042 = vperm.xlu1 %1550, %v937_v12  }
 0x111   : > { %1045 = vperm.xlu0 %1548, %v938_v11  }
 0x114   : > { %1553 = vset.pattern.permute.xlu1 %v1649_v2 }
 0x115   : > { %1551 = vset.pattern.permute.xlu0 %v1649_v2  ;;  %655 = vperm.xlu1 %1553, %v578_v16   ;;  %v1908_v16 = vsub.s32 %v733_v1, %v735_v8 }
 0x116   : > { %658 = vperm.xlu0 %1551, %v579_v15   ;;  %v1906_v15 = vsub.s32 %v738_v9, %v735_v8 }
 0x119   : > { %703 = vperm.xlu1 %1553, %v594_v19  }
 0x11a   : > { %706 = vperm.xlu0 %1551, %v595_v18   ;;  %v602_v18 = vadd.f32 %v1811_v36, %v553_v14  ;;  %v931_v36 = vadd.f32 %v1815_v41, %v473_v10 }
 0x11d   : > { %1554 = vset.pattern.permute.xlu1 %v1650_v44 }
 0x11e   : > { %1552 = vset.pattern.permute.xlu0 %v1650_v44  ;;  %1000 = vperm.xlu1 %1554, %v923_v21  }
 0x11f   : > { %1003 = vperm.xlu0 %1552, %v924_v20  }
 0x122   : > { %1048 = vperm.xlu1 %1554, %v939_v24   ;;  %v948_v24 = vadd.f32 %v1473_v4, %v1815_v41 }
 0x123   : > { %1051 = vperm.xlu0 %1552, %v940_v23  }
 0x126   : > { %1557 = vset.pattern.permute.xlu1 %v1649_v2 }
 0x127   : > { %1555 = vset.pattern.permute.xlu0 %v1649_v2  ;;  %661 = vperm.xlu1 %1557, %v580_v28  }
 0x128   : > { %664 = vperm.xlu0 %1555, %v581_v27  }
 0x12b   : > { %709 = vperm.xlu1 %1557, %v596_v31  }
 0x12c   : > { %712 = vperm.xlu0 %1555, %v597_v30  }
 0x12f   : > { %1558 = vset.pattern.permute.xlu1 %v1650_v44 }
 0x130   : > { %1556 = vset.pattern.permute.xlu0 %v1650_v44  ;;  %1006 = vperm.xlu1 %1558, %v925_v33  }
 0x131   : > { %1009 = vperm.xlu0 %1556, %v926_v32  }
 0x134   : > { %1054 = vperm.xlu1 %1558, %v941_v37  }
 0x135   : > { %1057 = vperm.xlu0 %1556, %v942_v35   ;;  %v947_v35 = vadd.f32 %v1815_v41, %v553_v14 }
 0x138   : > { %1561 = vset.pattern.permute.xlu1 %v1649_v2 }
 0x139   : > { %1559 = vset.pattern.permute.xlu0 %v1649_v2  ;;  %667 = vperm.xlu1 %1561, %v582_v42  }
 0x13a   : > { %670 = vperm.xlu0 %1559, %v583_v40  }
 0x13d   : > { %715 = vperm.xlu1 %1561, %v598_v46  }
 0x13e   : > { %718 = vperm.xlu0 %1559, %v599_v45  }
 0x141   : > { %1562 = vset.pattern.permute.xlu1 %v1650_v44 }
 0x142   : > { %1560 = vset.pattern.permute.xlu0 %v1650_v44  ;;  %1012 = vperm.xlu1 %1562, %v927_v48  }
 0x143   : > { %1015 = vperm.xlu0 %1560, %v928_v47  }
 0x146   : > { %1060 = vperm.xlu1 %1562, %v943_v51  }
 0x147   : > { %1063 = vperm.xlu0 %1560, %v944_v50  }
 0x14a   : > { %1565 = vset.pattern.permute.xlu1 %v1649_v2 }
 0x14b   : > { %1563 = vset.pattern.permute.xlu0 %v1649_v2  ;;  %673 = vperm.xlu1 %1565, %v584_v55  }
 0x14c   : > { %676 = vperm.xlu0 %1563, %v585_v54  }
 0x14f   : > { %721 = vperm.xlu1 %1565, %v600_v58  }
 0x150   : > { %724 = vperm.xlu0 %1563, %v601_v57  }
 0x153   : > { %1566 = vset.pattern.permute.xlu1 %v1650_v44 }
 0x154   : > { %1564 = vset.pattern.permute.xlu0 %v1650_v44  ;;  %1018 = vperm.xlu1 %1566, %v929_v60  }
 0x155   : > { %1021 = vperm.xlu0 %1564, %v930_v59  }
 0x158   : > { %v641_v5 = vpop.permute.xlu1 %640  ;;  %1066 = vperm.xlu1 %1566, %v945_v63  }
 0x159   : > { %v689_v3 = vpop.permute.xlu0 %688  ;;  %1069 = vperm.xlu0 %1564, %v946_v62   ;;  %v742_v21 = vrot.slane %v641_v5, %v1906_v15 }
 0x15a   : > { %v815_v20 = vrot.slane %v689_v3, %v1906_v15 }
 0x15c   : > { %1568 = vset.pattern.permute.xlu1 %v1649_v2 }
 0x15d   : > { %1567 = vset.pattern.permute.xlu0 %v1649_v2  ;;  %v986_v12 = vpop.permute.xlu1 %985  ;;  %730 = vperm.xlu1 %1568, %v603_v7  }
 0x15e   : > { %v1034_v11 = vpop.permute.xlu0 %1033  ;;  %682 = vperm.xlu0 %1567, %v587_v6   ;;  %v1084_v30 = vrot.slane %v986_v12, %v1906_v15 }
 0x15f   : > { %v1156_v29 = vrot.slane %v1034_v11, %v1906_v15 }
 0x161   : > { %679 = vperm.xlu1 %1568, %v586_v13  }
 0x162   : > { %1569 = vset.pattern.permute.xlu0 %v1650_v44  ;;  %v686_v2 = vpop.permute.xlu1 %685 }
 0x163   : > { %v638_v19 = vpop.permute.xlu0 %637  ;;  %1027 = vperm.xlu0 %1569, %v932_v17   ;;  %v811_v22 = vrot.slane %v686_v2, %v1908_v16 }
 0x164   : > { %v737_v23 = vrot.slane %v638_v19, %v1908_v16 }
 0x165   : > { %v816_v25 = vsel %vm743_vm2, %v815_v20, %v811_v22  ;;  %727 = vperm.xlu1 %1568, %v602_v18  }
 0x166   : > { %v744_v26 = vsel %vm743_vm2, %v742_v21, %v737_v23 }
 0x167   : > { %1075 = vperm.xlu0 %1569, %v948_v24   ;;  %v1031_v27 = vpop.permute.xlu1 %1030 }
 0x168   : > { %v983_v28 = vpop.permute.xlu0 %982  ;;  %v1152_v31 = vrot.slane %v1031_v27, %v1908_v16 }
 0x169   : > { %v1080_v32 = vrot.slane %v983_v28, %v1908_v16  ;;  %1570 = vset.pattern.permute.xlu1 %v1650_v44 }
 0x16a   : > { %v1157_v33 = vsel %vm743_vm2, %v1156_v29, %v1152_v31  ;;  %1024 = vperm.xlu1 %1570, %v931_v36  }
 0x16b   : > { %v1085_v34 = vsel %vm743_vm2, %v1084_v30, %v1080_v32 }
 0x16c   : > { %v644_v38 = vpop.permute.xlu1 %643 }
 0x16d   : > { %v647_v37 = vpop.permute.xlu0 %646  ;;  %v748_v40 = vrot.slane %v644_v38, %v1908_v16 }
 0x16e   : > { %v752_v39 = vrot.slane %v647_v37, %v1906_v15  ;;  %1072 = vperm.xlu1 %1570, %v947_v35  }
 0x170   : > { %v753_v42 = vsel %vm743_vm2, %v752_v39, %v748_v40  ;;  %v692_v45 = vpop.permute.xlu1 %691 }
 0x171   : > { %v881_v43 = vsel %vm880_vm3, %v753_v42, %v744_v26  ;;  %v695_v44 = vpop.permute.xlu0 %694  ;;  %v820_v47 = vrot.slane %v692_v45, %v1908_v16 }
 0x172   : > { %v824_v46 = vrot.slane %v695_v44, %v1906_v15 }
 0x174   : > { %v825_v41 = vsel %vm743_vm2, %v824_v46, %v820_v47 }
 0x175   : > { %v894_v48 = vsel %vm880_vm3, %v825_v41, %v816_v25  ;;  %v989_v50 = vpop.permute.xlu1 %988 }
 0x176   : > { %v992_v49 = vpop.permute.xlu0 %991  ;;  %v1089_v52 = vrot.slane %v989_v50, %v1908_v16 }
 0x177   : > { %v1093_v51 = vrot.slane %v992_v49, %v1906_v15 }
 0x179   : > { %v1094_v53 = vsel %vm743_vm2, %v1093_v51, %v1089_v52  ;;  %v1037_v56 = vpop.permute.xlu1 %1036 }
 0x17a   : > { %v1221_v54 = vsel %vm880_vm3, %v1094_v53, %v1085_v34  ;;  %v1040_v55 = vpop.permute.xlu0 %1039  ;;  %v1161_v58 = vrot.slane %v1037_v56, %v1908_v16 }
 0x17b   : > { %v1165_v57 = vrot.slane %v1040_v55, %v1906_v15 }
 0x17d   : > { %v1166_v59 = vsel %vm743_vm2, %v1165_v57, %v1161_v58 }
 0x17e   : > { %v1228_v60 = vsel %vm880_vm3, %v1166_v59, %v1157_v33  ;;  %v650_v62 = vpop.permute.xlu1 %649 }
 0x17f   : > { %v653_v61 = vpop.permute.xlu0 %652  ;;  %v757_v0 = vrot.slane %v650_v62, %v1908_v16 }
 0x180   : > { %v761_v63 = vrot.slane %v653_v61, %v1906_v15 }
 0x182   : > { %v762_v1 = vsel %vm743_vm2, %v761_v63, %v757_v0  ;;  %v698_v5 = vpop.permute.xlu1 %697 }
 0x183   : > { %v883_v3 = vsel %vm882_vm4, %v762_v1, %v881_v43  ;;  %v701_v4 = vpop.permute.xlu0 %700  ;;  %v829_v7 = vrot.slane %v698_v5, %v1908_v16 }
 0x184   : > { %v833_v6 = vrot.slane %v701_v4, %v1906_v15 }
 0x186   : > { %v834_v8 = vsel %vm743_vm2, %v833_v6, %v829_v7 }
 0x187   : > { %v895_v9 = vsel %vm882_vm4, %v834_v8, %v894_v48  ;;  %v995_v11 = vpop.permute.xlu1 %994 }
 0x188   : > { %v998_v10 = vpop.permute.xlu0 %997  ;;  %v1098_v13 = vrot.slane %v995_v11, %v1908_v16 }
 0x189   : > { %v1102_v12 = vrot.slane %v998_v10, %v1906_v15 }
 0x18b   : > { %v1103_v14 = vsel %vm743_vm2, %v1102_v12, %v1098_v13  ;;  %v1043_v2 = vpop.permute.xlu1 %1042 }
 0x18c   : > { %v1222_v17 = vsel %vm882_vm4, %v1103_v14, %v1221_v54  ;;  %v1046_v18 = vpop.permute.xlu0 %1045  ;;  %v1170_v20 = vrot.slane %v1043_v2, %v1908_v16 }
 0x18d   : > { %v1174_v19 = vrot.slane %v1046_v18, %v1906_v15 }
 0x18f   : > { %v1175_v21 = vsel %vm743_vm2, %v1174_v19, %v1170_v20 }
 0x190   : > { %v1229_v22 = vsel %vm882_vm4, %v1175_v21, %v1228_v60  ;;  %v656_v24 = vpop.permute.xlu1 %655 }
 0x191   : > { %v659_v23 = vpop.permute.xlu0 %658  ;;  %v766_v26 = vrot.slane %v656_v24, %v1908_v16 }
 0x192   : > { %v770_v25 = vrot.slane %v659_v23, %v1906_v15 }
 0x194   : > { %v771_v36 = vsel %vm743_vm2, %v770_v25, %v766_v26  ;;  %v704_v29 = vpop.permute.xlu1 %703 }
 0x195   : > { %v1965_v27 = vsel %vm884_vm5, %v771_v36, %v883_v3  ;;  %v707_v28 = vpop.permute.xlu0 %706  ;;  %v838_v31 = vrot.slane %v704_v29, %v1908_v16 }
 0x196   : > { %v842_v30 = vrot.slane %v707_v28, %v1906_v15 }
 0x198   : > { %v843_v32 = vsel %vm743_vm2, %v842_v30, %v838_v31 }
 0x199   : > { %v1971_v33 = vsel %vm884_vm5, %v843_v32, %v895_v9  ;;  %v1001_v35 = vpop.permute.xlu1 %1000 }
 0x19a   : > { %v1004_v34 = vpop.permute.xlu0 %1003  ;;  %v1107_v38 = vrot.slane %v1001_v35, %v1908_v16 }
 0x19b   : > { %v1111_v37 = vrot.slane %v1004_v34, %v1906_v15 }
 0x19d   : > { %v1112_v39 = vsel %vm743_vm2, %v1111_v37, %v1107_v38  ;;  %v1049_v43 = vpop.permute.xlu1 %1048 }
 0x19e   : > { %v1977_v40 = vsel %vm884_vm5, %v1112_v39, %v1222_v17  ;;  %v1052_v42 = vpop.permute.xlu0 %1051  ;;  %v1179_v45 = vrot.slane %v1049_v43, %v1908_v16 }
 0x19f   : > { %v1183_v44 = vrot.slane %v1052_v42, %v1906_v15 }
 0x1a1   : > { %v1184_v46 = vsel %vm743_vm2, %v1183_v44, %v1179_v45 }
 0x1a2   : > { %v1983_v47 = vsel %vm884_vm5, %v1184_v46, %v1229_v22  ;;  %v662_v48 = vpop.permute.xlu1 %661 }
 0x1a3   : > { %v665_v41 = vpop.permute.xlu0 %664  ;;  %v775_v9 = vrot.slane %v662_v48, %v1908_v16 }
 0x1a4   : > { %v779_v8 = vrot.slane %v665_v41, %v1906_v15 }
 0x1a6   : > { %v710_v50 = vpop.permute.xlu1 %709  ;;  %v780_v2 = vsel %vm743_vm2, %v779_v8, %v775_v9 }
 0x1a7   : > { %v713_v49 = vpop.permute.xlu0 %712  ;;  %v847_v13 = vrot.slane %v710_v50, %v1908_v16  ;;  %v887_v28 = vsel %vm886_vm6, %v780_v2, %v1965_v27 }
 0x1a8   : > { %v851_v12 = vrot.slane %v713_v49, %v1906_v15 }
 0x1aa   : > { %v852_v23 = vsel %vm743_vm2, %v851_v12, %v847_v13 }
 0x1ab   : > { %v1987_v52 = vpop.permute.xlu1 %1006  ;;  %v897_v35 = vsel %vm886_vm6, %v852_v23, %v1971_v33 }
 0x1ac   : > { %v1985_v51 = vpop.permute.xlu0 %1009  ;;  %v1116_v32 = vrot.slane %v1987_v52, %v1908_v16 }
 0x1ad   : > { %v1120_v31 = vrot.slane %v1985_v51, %v1906_v15 }
 0x1af   : > { %v1991_v54 = vpop.permute.xlu1 %1054  ;;  %v1121_v50 = vsel %vm743_vm2, %v1120_v31, %v1116_v32 }
 0x1b0   : > { %v1989_v53 = vpop.permute.xlu0 %1057 }
 0x1b1   : > { %v1192_v52 = vrot.slane %v1989_v53, %v1906_v15 }
 0x1b4   : > { %v668_v56 = vpop.permute.xlu1 %667 }
 0x1b5   : > { %v671_v55 = vpop.permute.xlu0 %670  ;;  %v784_v11 = vrot.slane %v668_v56, %v1908_v16 }
 0x1b6   : > { %v788_v10 = vrot.slane %v671_v55, %v1906_v15  ;;  %v1188_v55 = vrot.slane %v1991_v54, %v1908_v16 }
 0x1b8   : > { %v716_v58 = vpop.permute.xlu1 %715  ;;  %v789_v20 = vsel %vm743_vm2, %v788_v10, %v784_v11 }
 0x1b9   : > { %v719_v57 = vpop.permute.xlu0 %718  ;;  %v856_v22 = vrot.slane %v716_v58, %v1908_v16  ;;  %v889_v34 = vsel %vm888_vm7, %v789_v20, %v887_v28 }
 0x1ba   : > { %v860_v21 = vrot.slane %v719_v57, %v1906_v15 }
 0x1bc   : > { %v861_v37 = vsel %vm743_vm2, %v860_v21, %v856_v22 }
 0x1bd   : > { %v1995_v60 = vpop.permute.xlu1 %1012  ;;  %v898_v51 = vsel %vm888_vm7, %v861_v37, %v897_v35 }
 0x1be   : > { %v1993_v59 = vpop.permute.xlu0 %1015  ;;  %v1125_v42 = vrot.slane %v1995_v60, %v1908_v16 }
 0x1bf   : > { %v1129_v39 = vrot.slane %v1993_v59, %v1906_v15 }
 0x1c1   : > { %v1999_v62 = vpop.permute.xlu1 %1060  ;;  %v1130_v58 = vsel %vm743_vm2, %v1129_v39, %v1125_v42 }
 0x1c2   : > { %v1997_v61 = vpop.permute.xlu0 %1063  ;;  %v1197_v60 = vrot.slane %v1999_v62, %v1908_v16 }
 0x1c3   : > { %v1201_v59 = vrot.slane %v1997_v61, %v1906_v15  ;;  %v1224_v61 = vsel %vm886_vm6, %v1121_v50, %v1977_v40 }
 0x1c6   : > { %v674_v0 = vpop.permute.xlu1 %673 }
 0x1c7   : > { %v677_v63 = vpop.permute.xlu0 %676  ;;  %v793_v17 = vrot.slane %v674_v0, %v1908_v16 }
 0x1c8   : > { %v797_v14 = vrot.slane %v677_v63, %v1906_v15 }
 0x1ca   : > { %v722_v3 = vpop.permute.xlu1 %721  ;;  %v798_v24 = vsel %vm743_vm2, %v797_v14, %v793_v17 }
 0x1cb   : > { %v725_v1 = vpop.permute.xlu0 %724  ;;  %v865_v26 = vrot.slane %v722_v3, %v1908_v16  ;;  %v891_v27 = vsel %vm890_vm8, %v798_v24, %v889_v34 }
 0x1cc   : > { %v869_v25 = vrot.slane %v725_v1, %v1906_v15 }
 0x1ce   : > { %v870_v43 = vsel %vm743_vm2, %v869_v25, %v865_v26 }
 0x1cf   : > { %v2003_v5 = vpop.permute.xlu1 %1018  ;;  %v899_v56 = vsel %vm890_vm8, %v870_v43, %v898_v51 }
 0x1d0   : > { %v2001_v4 = vpop.permute.xlu0 %1021  ;;  %v1134_v46 = vrot.slane %v2003_v5, %v1908_v16  ;;  %v1225_v5 = vsel %vm888_vm7, %v1130_v58, %v1224_v61 }
 0x1d1   : > { %v1138_v33 = vrot.slane %v2001_v4, %v1906_v15  ;;  %v1193_v4 = vsel %vm743_vm2, %v1192_v52, %v1188_v55 }
 0x1d2   : > { %v1231_v12 = vsel %vm886_vm6, %v1193_v4, %v1983_v47 }
 0x1d3   : > { %v2005_v6 = vpop.permute.xlu1 %1066  ;;  %v1139_v53 = vsel %vm743_vm2, %v1138_v33, %v1134_v46 }
 0x1d4   : > { %v2007_v7 = vpop.permute.xlu0 %1069  ;;  %v1206_v0 = vrot.slane %v2005_v6, %v1908_v16  ;;  %v1226_v6 = vsel %vm890_vm8, %v1139_v53, %v1225_v5 }
 0x1d5   : > { %v1210_v54 = vrot.slane %v2007_v7, %v1906_v15  ;;  %v1202_v7 = vsel %vm743_vm2, %v1201_v59, %v1197_v60 }
 0x1d6   : > { %v1232_v17 = vsel %vm888_vm7, %v1202_v7, %v1231_v12 }
 0x1d7   : > { %v1211_v40 = vsel %vm743_vm2, %v1210_v54, %v1206_v0 }
 0x1d8   : > { %v731_v18 = vpop.permute.xlu1 %730  ;;  %v1233_v47 = vsel %vm890_vm8, %v1211_v40, %v1232_v17 }
 0x1d9   : > { %v683_v19 = vpop.permute.xlu0 %682  ;;  %v878_v41 = vrot.slane %v731_v18, %v1906_v15 }
 0x1da   : > { %v806_v29 = vrot.slane %v683_v19, %v1906_v15 }
 0x1dc   : > { %v680_v36 = vpop.permute.xlu1 %679 }
 0x1dd   : > { %v802_v30 = vrot.slane %v680_v36, %v1908_v16 }
 0x1de   : > { %v1028_v48 = vpop.permute.xlu0 %1027 }
 0x1df   : > { %v807_v38 = vsel %vm743_vm2, %v806_v29, %v802_v30  ;;  %v1147_v62 = vrot.slane %v1028_v48, %v1906_v15 }
 0x1e0   : > { %v893_v44 = vsel %vm892_vm9, %v807_v38, %v891_v27  ;;  %v728_v45 = vpop.permute.xlu1 %727 }
 0x1e1   : > { %904 = vst.msk [vmem:[%s2053_s18] sm:$0xff] %vm903_vm10, %v893_v44  ;;  %v874_v49 = vrot.slane %v728_v45, %v1908_v16 }
 0x1e2   : > { %v1076_v8 = vpop.permute.xlu0 %1075 }
 0x1e3   : > { %v879_v57 = vsel %vm743_vm2, %v878_v41, %v874_v49  ;;  %v1219_v13 = vrot.slane %v1076_v8, %v1906_v15 }
 0x1e4   : > { %v900_v63 = vsel %vm892_vm9, %v879_v57, %v899_v56 }
 0x1e5   : > { %905 = vst.msk [vmem:[%s2053_s18 + $0x8] sm:$0xff] %vm903_vm10, %v900_v63  ;;  %v1025_v1 = vpop.permute.xlu1 %1024 }
 0x1e6   : > { %v1143_v3 = vrot.slane %v1025_v1, %v1908_v16 }
 0x1e8   : > { %v1148_v9 = vsel %vm743_vm2, %v1147_v62, %v1143_v3 }
 0x1e9   : > { %v1227_v10 = vsel %vm892_vm9, %v1148_v9, %v1226_v6  ;;  %v1073_v11 = vpop.permute.xlu1 %1072 }
 0x1ea   : > { %1382 = vst.msk [vmem:[%s2053_s18 + $0x10] sm:$0xff] %vm903_vm10, %v1227_v10  ;;  %v1215_v14 = vrot.slane %v1073_v11, %v1908_v16 }
 0x1ec   : > { %v1220_v15 = vsel %vm743_vm2, %v1219_v13, %v1215_v14 }
 0x1ed   : > { %v1234_v18 = vsel %vm892_vm9, %v1220_v15, %v1233_v47 }
 0x1ee   : > { %1383 = vst.msk [vmem:[%s2053_s18 + $0x18] sm:$0xff] %vm903_vm10, %v1234_v18 }
 0x1ef   : > { %1584 = shalt.err (!%p1581_p5)
}
 0x1f0   : > { %s1585_s5 = scalar_lea.hbm %s2102_s26, 512  ;;  %s1589_s8 = scalar_lea.hbm %s2161_s3, 1024 }
 0x1f1   : > { %p1586_p6 = scmp.ne.s32.totalorder %s2102_s26, %s1585_s5  ;;  %p1590_p10 = scmp.lt.s32.totalorder %s2102_s26, %s2161_s3 }
 0x1f2   : > { %p1591_p11 = scmp.lt.s32.totalorder %s1589_s8, %s1585_s5 }
 0x1f3   : > { %p1587_p7 = pnand %p1586_p6, %p1714_p4 }
 0x1f4   : > { %p1592_p12 = por %p1591_p11, %p1590_p10 }
 0x1f5   : > { %p1588_p9 = pneg %p1587_p7 }
 0x1f7   : > { %p1593_p13 = pnand %p1592_p12, %p1588_p9 }
 0x1f9   : > { %1596 = shalt.err (!%p1593_p13)
}
 0x1fa   : > { %s1652_s11 = smov 128   ;;  %s1653_s18 = smov 8  }
 0x1fb   : > { %1476 = dma.vmem_to_hbm [thread:$0]  (%p1714_p4), %s2104_s21, 512, %s2102_s26, %s2113_s27, %s1652_s11, %s1652_s11, %s1653_s18  }
 0x1fc PF: > { %p1482_p0 = scmp.ge.s32.totalorder %s1647_s17, 2  ;;  %s1271_s19 = sand.u32 1, %s1627_s12  }
 0x1fd   : > { %s1272_s15 = scalar_lea.sflag [#allocation3], %s1271_s19 }
 0x1fe   : > { %p1479_p1 = pnand %p1482_p0, %p1721_p8 }
 0x200   : > { %p1480_p2 = pneg %p1479_p1 }
 0x202   : > { %1622 = dma.done.wait (%p1480_p2), %s1272_s15, 512  }
 0x203   : > { %1624 = vsyncadd (%p1480_p2), %s1272_s15, 4294966784  ;;  %s16_s17 = sadd.s32 1, %s1647_s17   ;;  %s2164_s12 = smov %s1631_s13 }
 0x204   : > { %p13_p3 = scmp.ge.s32.totalorder %s16_s17, 4   ;;  %s2165_s13 = smov %s1635_s14 }
 0x205   : > { %s2166_s14 = smov %s1727_s25  ;;  %s2167_s15 = smov %s1643_s16 }
 0x206   : > { %s2168_s16 = smov %s2170_s20  ;;  %15 = sbr.rel (!%p13_p3) target bundleno = 4 (0x4), region = 69 }
 0x20b   :  { %1277 = vsyncpa [#allocation3], 1 }
 0x20c   :  { %1279 = vsyncpa [#allocation3 + $0x1], 1 }

// kernel: decoder_forward.3
= control target key start
LH: loop header
LB: loop body
LE: loop exit
PB: predicated region body
PF: predicated region fallthrough
CT: control target
= control target key end

     0   :  { %s3808_s0 = inlined_call_operand.vmem [shape: f32[2,4,4,16], index: 0, kind: input, shape index: {}]   ;;  %s3809_s1 = inlined_call_operand.vmem [shape: f32[2,8,8,8], index: 1, kind: input, shape index: {}]   ;;  %s3810_s2 = inlined_call_operand.vmem [shape: bf16[16,32], index: 2, kind: input, shape index: {}]   ;;  %s3811_s3 = inlined_call_operand.vmem [shape: f32[1,32], index: 3, kind: input, shape index: {}]   ;;  %s3812_s4 = inlined_call_operand.vmem [shape: bf16[3,48,8], index: 4, kind: input, shape index: {}]   ;;  %s3813_s5 = inlined_call_operand.vmem [shape: f32[1,8], index: 5, kind: input, shape index: {}]   ;;  %s3814_s6 = inlined_call_operand.vmem [shape: f32[1,8], index: 6, kind: input, shape index: {}]   ;;  %s3815_s7 = inlined_call_operand.vmem [shape: f32[1,8], index: 7, kind: input, shape index: {}]   ;;  %s3816_s8 = inlined_call_operand.vmem [shape: f32[8,2], index: 8, kind: input, shape index: {}]   ;;  %s3817_s9 = inlined_call_operand.vmem [shape: f32[2,1,1], index: 9, kind: input, shape index: {}]   ;;  %s3818_s10 = inlined_call_operand.vmem [shape: f32[16,8], index: 10, kind: input, shape index: {}]   ;;  %s3819_s11 = inlined_call_operand.vmem [shape: f32[8,16], index: 11, kind: input, shape index: {}]   ;;  %s3820_s12 = inlined_call_operand.vmem [shape: f32[2,8,8,8], index: 12, kind: output, shape index: {0}]   ;;  %s3821_s13 = inlined_call_operand.hbm [shape: f32[2,2,16,16], index: 13, kind: output, shape index: {1}]  }
   0x1   :  { %3826 = sst [smem:[#allocation6_spill]] %s3808_s0 }
   0x2   :  { %3827 = sst [smem:[#allocation7_spill]] %s3809_s1 }
   0x3   :  { %3828 = sst [smem:[#allocation8_spill]] %s3810_s2 }
   0x4   :  { %19 = vsyncpa [#allocation4], 0 }
   0x5   :  { %21 = vsyncpa [#allocation4 + $0x1], 0  ;;  %s3158_s25 = smov 0   ;;  %s3160_s26 = smov 0  }
   0x6   :  { %s3162_s27 = smov 0   ;;  %s3164_s28 = smov 0  }
   0x7 LB: > { %s3179_s29 = sadd.s32 4294967295, %s3073_s28   ;;  %s2609_s30 = sadd.s32 4294967294, %s3073_s28   ;;  %s3073_s28 = sphi %s3164_s28, %s3840_s28   ;;  %s3069_s27 = sphi %s3162_s27, %s3839_s27   ;;  %s3065_s26 = sphi %s3160_s26, %s3838_s26   ;;  %s3061_s25 = sphi %s3158_s25, %s3837_s25  }
   0x8   : > { %s3183_s14 = sadd.s32 1, %s3073_s28   ;;  %s322_s15 = sadd.s32 1, %s3069_s27 }
   0x9   : > { %s319_s16 = ssub.s32 %s3073_s28, %s3183_s14  ;;  %p332_p0 = scmp.ne.s32.totalorder %s3069_s27, %s3065_s26 }
   0xa   : > { %p320_p1 = scmp.eq.s32.totalorder %s319_s16, 0  ;;  %p333_p2 = scmp.eq.s32.totalorder %s3179_s29, 1 }
   0xb   : > { %p338_p3 = scmp.ne.s32.totalorder %s3065_s26, %s3061_s25  ;;  %p339_p4 = scmp.eq.s32.totalorder %s2609_s30, 1 }
   0xc   : > { %s3194_s17 = scalar_select %p320_p1, %s3069_s27, %s322_s15  }
   0xd   : > { %p3196_p5 = por %p333_p2, %p332_p0  ;;  %p3200_p6 = por %p339_p4, %p338_p3 }
   0xe   : > { %p2612_p7 = scmp.ge.s32.totalorder %s3073_s28, 1  ;;  %p403_p8 = scmp.lt.s32.totalorder %s3073_s28, 3 }
  0x10   : > { %p404_p9 = pnand %p2612_p7, %p403_p8 }
  0x11   : > { %s3831_s2 = sld [smem:[#allocation8_spill]] (!%p404_p9)  ;;  %p457_p10 = scmp.lt.s32.totalorder (!%p404_p9), %s3179_s29, 1 }
  0x12   : > { %407 = sbr.rel (%p404_p9) target bundleno = 1709 (0x6ad), region = 68  ;;  %s3832_s0 = sld [smem:[#allocation6_spill]] (!%p404_p9) }
  0x13   : > { %s3078_s21 = smov (!%p404_p9), 120   ;;  %s3833_s1 = sld [smem:[#allocation7_spill]] (!%p404_p9) }
  0x14   : > { %s3823_s16 = smov (!%p404_p9), 8   ;;  %s3081_s20 = smov (!%p404_p9), 112  }
  0x15   : > { %s3824_s24 = smov (!%p404_p9), 32  }
  0x17   : > { %v2999_v0 = vld [vmem:[%s3831_s2] sm:$0xff]   ;;  %v3075_v1 = vmov 0.0   ;;  %vm501_vm0 = vcmask 130048   ;;  %vm3076_vm1 = vmmov 0   ;;  %s3217_s22 = scalar_select %p457_p10, %s3179_s29, 1  ;;  %v553_v5 = vlaneseq }
  0x18   : > { %2733 = vmatprep.subr.bf16.mxu0 %v3075_v1  ;;  %2735 = vmatprep.mubr.msk.bf16.mxu0 %vm3076_vm1, %v3075_v1  ;;  %839 = vst.msk [vmem:[#allocation2] sm:$0xff] %vm501_vm0, %v3075_v1  ;;  %843 = vst.msk [vmem:[#allocation2 + $0x90] sm:$0xff] %vm501_vm0, %v3075_v1  ;;  %v3077_v9 = vmov 1966171168   ;;  %v2620_v12 = vld [vmem:[%s3811_s3] ss:$0 sm:$0xff] }
  0x19   : > { %2734 = vmatpush3.bf16.msra.mxu0 %v2999_v0  ;;  %s2685_s23 = sshll.u32 %s3217_s22, 4  ;;  %v3224_v6 = vshrl.u32 %v553_v5, 7  ;;  %v2032_v7 = vand.u32 127, %v553_v5  ;;  %v551_v10 = vunpack.c.l.s4 %v3077_v9  ;;  %vm840_vm2 = vcmask 123904   ;;  %s3835_s30 = sshll.u32 %s3217_s22, 6 }
  0x1a   : > { %s461_s15 = scalar_lea.vmem %s3832_s0, %s2685_s23  ;;  %841 = vst.msk [vmem:[#allocation2 + $0x8] sm:$0x3] %vm840_vm2, %v3075_v1  ;;  %844 = vst.msk [vmem:[#allocation2 + $0x98] sm:$0x3] %vm840_vm2, %v3075_v1  ;;  %s3822_s23 = sshll.u32 %s3217_s22, 6  ;;  %vm845_vm3 = vcmask 122880  }
  0x1b   : > { %v3000_v2 = vld [vmem:[%s461_s15] sm:$0xff]   ;;  %v3001_v3 = vld [vmem:[%s461_s15 + $0x8] sm:$0xff]   ;;  %v3227_v8 = vsub.s32 %v2032_v7, %v3224_v6  ;;  %v552_v11 = vunpack.c.0.s8 %v551_v10  ;;  %v3234_v19 = vsub.s32 0, %v3224_v6  ;;  %856 = vst.msk [vmem:[#allocation2 + $0x9] sm:$0x1] %vm845_vm3, %v3075_v1  ;;  %s3376_s15 = scalar_lea.vmem %s3833_s1, %s3822_s23  ;;  %vm774_vm4 = vcmask 1040384  }
  0x1c   : > { %v485_v4 = vpack.c.bf16 %v3001_v3, %v3000_v2  ;;  %857 = vst.msk [vmem:[#allocation2 + $0x19] sm:$0x1] %vm845_vm3, %v3075_v1  ;;  %846 = vst.msk [vmem:[#allocation2] sm:$0x1] %vm845_vm3, %v3075_v1  ;;  %v1020_v63 = vld [vmem:[%s3376_s15] sm:$0xff]  ;;  %v1021_v0 = vld [vmem:[%s3376_s15 + $0x8] sm:$0xff] }
  0x1d   : > { %v555_v13 = vsub.s32 %v552_v11, %v3224_v6  ;;  %847 = vst.msk [vmem:[#allocation2 + $0x10] sm:$0x1] %vm845_vm3, %v3075_v1  ;;  %848 = vst.msk [vmem:[#allocation2 + $0x20] sm:$0x1] %vm845_vm3, %v3075_v1  ;;  %v3080_v2 = vmov 1983009808  }
  0x1e   : > { %2736 = vmatmul.mubr.msk.bf16.vlgmr.msra.gmra.mxu0 %vm501_vm0, %v485_v4  ;;  %849 = vst.msk [vmem:[#allocation2 + $0x30] sm:$0x1] %vm845_vm3, %v3075_v1  ;;  %850 = vst.msk [vmem:[#allocation2 + $0x40] sm:$0x1] %vm845_vm3, %v3075_v1  ;;  %v869_v3 = vunpack.c.l.s4 %v3080_v2  ;;  %vm1011_vm5 = vcmask 64512   ;;  %vm1060_vm6 = vcmask 130112  }
  0x1f   : > { %851 = vst.msk [vmem:[#allocation2 + $0x50] sm:$0x1] %vm845_vm3, %v3075_v1  ;;  %852 = vst.msk [vmem:[#allocation2 + $0x60] sm:$0x1] %vm845_vm3, %v3075_v1  ;;  %vm1173_vm7 = vcmask 261120   ;;  %vm1210_vm8 = vcmask 392192  }
  0x20   : > { %853 = vst.msk [vmem:[#allocation2 + $0x70] sm:$0x1] %vm845_vm3, %v3075_v1  ;;  %854 = vst.msk [vmem:[#allocation2 + $0x80] sm:$0x1] %vm845_vm3, %v3075_v1  ;;  %v870_v7 = vunpack.c.0.s8 %v869_v3  ;;  %vm2065_vm2 = vcmask 1041409   ;;  %s3086_s0 = smov [#allocation3]  }
  0x21   : > { %855 = vst.msk [vmem:[#allocation2 + $0x90] sm:$0x1] %vm845_vm3, %v3075_v1  ;;  %858 = vst.msk [vmem:[#allocation2 + $0x29] sm:$0x1] %vm845_vm3, %v3075_v1  ;;  %s3017_s1 = sshll.u32 %s3086_s0, 4  ;;  %s3018_s1 = int_to_ptr.vmem [resolvable:$false] %s3017_s1 }
  0x22   : > { %859 = vst.msk [vmem:[#allocation2 + $0x39] sm:$0x1] %vm845_vm3, %v3075_v1  ;;  %860 = vst.msk [vmem:[#allocation2 + $0x49] sm:$0x1] %vm845_vm3, %v3075_v1  ;;  %s3019_s2 = scalar_lea.vmem %s3018_s1, 1024 }
  0x23   : > { %861 = vst.msk [vmem:[#allocation2 + $0x59] sm:$0x1] %vm845_vm3, %v3075_v1  ;;  %862 = vst.msk [vmem:[#allocation2 + $0x69] sm:$0x1] %vm845_vm3, %v3075_v1 }
  0x24   : > { %863 = vst.msk [vmem:[#allocation2 + $0x79] sm:$0x1] %vm845_vm3, %v3075_v1  ;;  %864 = vst.msk [vmem:[#allocation2 + $0x89] sm:$0x1] %vm845_vm3, %v3075_v1 }
  0x25   : > { %865 = vst.msk [vmem:[#allocation2 + $0x99] sm:$0x1] %vm845_vm3, %v3075_v1  ;;  %v1022_v1 = vld [vmem:[%s3376_s15 + $0x10] sm:$0xff]  ;;  %vm2067_vm3 = vcmask 1042434  }
  0xde   : > { %v539_v14 = vpop.f32.mrf.mxu0 }
  0xdf   : > { %v540_v15 = vadd.f32 %v2620_v12, %v539_v14 }
  0xe0   : > { %v2737_v16 = vpop.f32.mrf.mxu0 }
  0xe1   : > { %v548_v17 = vcombine.high %v540_v15, %v540_v15  ;;  %v556_v18 = vrot.slane %v540_v15, %v555_v13 }
  0xe2   : > { %v542_v20 = vpop.f32.mrf.mxu0 }
  0xe3   : > { %v557_v21 = vcombine.high %v556_v18, %v556_v18  ;;  %v3236_v22 = vrot.slane %v556_v18, %v555_v13  ;;  %v580_v23 = vrot.slane %v548_v17, %v555_v13  ;;  %v543_v29 = vadd.f32 %v2620_v12, %v542_v20 }
  0xe4   : > { %v2738_v24 = vpop.f32.mrf.mxu0 }
  0xe5   : > { %v3238_v25 = vrot.slane %v557_v21, %v555_v13  ;;  %v665_v26 = vrot.slane %v3236_v22, %v3234_v19  ;;  %v3244_v27 = vcombine.high %v3236_v22, %v3236_v22  ;;  %v581_v28 = vcombine.high %v580_v23, %v580_v23 }
  0xe6   : > { %v3253_v32 = vrot.slane %v580_v23, %v555_v13  ;;  %v604_v34 = vrot.slane %v543_v29, %v555_v13  ;;  %v549_v39 = vcombine.high %v543_v29, %v543_v29 }
  0xe7   : > { %726 = vrot.lane.b32.xlu0 %v665_v26, %s3078_s21  ;;  %v673_v30 = vrot.slane %v3244_v27, %v3234_v19  ;;  %v3251_v31 = vcombine.high %v3238_v25, %v3238_v25  ;;  %v669_v33 = vrot.slane %v3238_v25, %v3234_v19  ;;  %v3261_v36 = vrot.slane %v581_v28, %v555_v13 }
  0xe8   : > { %v681_v37 = vrot.slane %v3253_v32, %v3234_v19  ;;  %v3268_v38 = vcombine.high %v3253_v32, %v3253_v32  ;;  %v605_v40 = vcombine.high %v604_v34, %v604_v34  ;;  %v3277_v43 = vrot.slane %v604_v34, %v555_v13 }
  0xe9   : > { %730 = vrot.lane.b32.xlu1 %v673_v30, %s3078_s21  ;;  %v677_v35 = vrot.slane %v3251_v31, %v3234_v19  ;;  %v685_v41 = vrot.slane %v3261_v36, %v3234_v19  ;;  %v3275_v42 = vcombine.high %v3261_v36, %v3261_v36  ;;  %v628_v46 = vrot.slane %v549_v39, %v555_v13 }
  0xea   : > { %v689_v44 = vrot.slane %v3268_v38, %v3234_v19  ;;  %v3282_v45 = vrot.slane %v605_v40, %v555_v13  ;;  %v697_v48 = vrot.slane %v3277_v43, %v3234_v19  ;;  %v3292_v49 = vcombine.high %v3277_v43, %v3277_v43 }
  0xeb   : > { %728 = vrot.lane.b32.xlu0 %v669_v33, %s3078_s21  ;;  %v693_v47 = vrot.slane %v3275_v42, %v3234_v19  ;;  %v629_v50 = vcombine.high %v628_v46, %v628_v46  ;;  %v3301_v53 = vrot.slane %v628_v46, %v555_v13 }
  0xec   : > { %v701_v51 = vrot.slane %v3282_v45, %v3234_v19  ;;  %v3299_v52 = vcombine.high %v3282_v45, %v3282_v45  ;;  %v705_v54 = vrot.slane %v3292_v49, %v3234_v19 }
  0xed   : > { %732 = vrot.lane.b32.xlu1 %v677_v35, %s3078_s21  ;;  %v3309_v56 = vrot.slane %v629_v50, %v555_v13  ;;  %v713_v57 = vrot.slane %v3301_v53, %v3234_v19  ;;  %v3318_v58 = vcombine.high %v3301_v53, %v3301_v53  ;;  %v3396_v13 = vsub.s32 %v870_v7, %v3224_v6  ;;  %v1027_v7 = vld [vmem:[%s3376_s15 + $0x38] sm:$0xff] }
  0xee   : > { %v709_v55 = vrot.slane %v3299_v52, %v3234_v19 }
  0xef   : > { %734 = vrot.lane.b32.xlu0 %v681_v37, %s3078_s21  ;;  %v717_v59 = vrot.slane %v3309_v56, %v3234_v19  ;;  %v3326_v60 = vcombine.high %v3309_v56, %v3309_v56  ;;  %v721_v61 = vrot.slane %v3318_v58, %v3234_v19 }
  0xf1   : > { %736 = vrot.lane.b32.xlu1 %v685_v41, %s3078_s21  ;;  %v725_v62 = vrot.slane %v3326_v60, %v3234_v19 }
  0xf3   : > { %738 = vrot.lane.b32.xlu0 %v689_v44, %s3078_s21 }
  0xf5   : > { %740 = vrot.lane.b32.xlu1 %v693_v47, %s3078_s21 }
  0xf7   : > { %742 = vrot.lane.b32.xlu0 %v697_v48, %s3078_s21  ;;  %v1023_v48 = vld [vmem:[%s3376_s15 + $0x18] sm:$0xff] }
  0xf9   : > { %744 = vrot.lane.b32.xlu1 %v701_v51, %s3078_s21 }
  0xfb   : > { %746 = vrot.lane.b32.xlu0 %v705_v54, %s3078_s21 }
  0xfd   : > { %748 = vrot.lane.b32.xlu1 %v709_v55, %s3078_s21 }
  0xff   : > { %750 = vrot.lane.b32.xlu0 %v713_v57, %s3078_s21 }
 0x101   : > { %752 = vrot.lane.b32.xlu1 %v717_v59, %s3078_s21  ;;  %v1025_v59 = vld [vmem:[%s3376_s15 + $0x28] sm:$0xff] }
 0x103   : > { %754 = vrot.lane.b32.xlu0 %v721_v61, %s3078_s21 }
 0x105   : > { %756 = vrot.lane.b32.xlu1 %v725_v62, %s3078_s21  ;;  %s3082_s21 = smov 16  }
 0x107   : > { %1036 = vrot.lane.b32.xlu0 %v1020_v63, %s3823_s16 }
 0x109   : > { %1038 = vrot.lane.b32.xlu1 %v1021_v0, %s3823_s16 }
 0x10b   : > { %1040 = vrot.lane.b32.xlu0 %v1022_v1, %s3823_s16 }
 0x159   : > { %v727_v4 = vpop.permute.xlu0 %726 }
 0x15a   : > { %v775_v5 = vsel %vm774_vm4, %v3236_v22, %v727_v4  ;;  %v1093_v4 = vld [vmem:[#allocation2 + $0x2] sm:$0xff] }
 0x15b   : > { %v731_v9 = vpop.permute.xlu1 %730  ;;  %807 = vrot.lane.b32.xlu0 %v775_v5, %s3081_s20 }
 0x15c   : > { %v777_v11 = vsel %vm774_vm4, %v3244_v27, %v731_v9 }
 0x15d   : > { %v729_v10 = vpop.permute.xlu0 %728 }
 0x15e   : > { %v776_v12 = vsel %vm774_vm4, %v3238_v25, %v729_v10  ;;  %v3002_v10 = vld [vmem:[%s3812_s4 + $0x10] sm:$0xff]  }
 0x15f   : > { %v733_v14 = vpop.permute.xlu1 %732  ;;  %811 = vrot.lane.b32.xlu0 %v777_v11, %s3081_s20  ;;  %v866_v15 = vcombine.low %v775_v5, %v776_v12  ;;  %809 = vrot.lane.b32.xlu1 %v776_v12, %s3081_s20 }
 0x160   : > { %v778_v16 = vsel %vm774_vm4, %v3251_v31, %v733_v14  ;;  %2739 = vmatprep.subr.bf16.mxu1 %v3002_v10 }
 0x161   : > { %v735_v17 = vpop.permute.xlu0 %734  ;;  %v867_v18 = vcombine.low %v777_v11, %v778_v16  ;;  %v874_v20 = vrot.slane %v866_v15, %v3396_v13  ;;  %2740 = vmatpush3.bf16.msra.mxu1 %v3002_v10 }
 0x162   : > { %v779_v19 = vsel %vm774_vm4, %v3253_v32, %v735_v17 }
 0x163   : > { %v737_v21 = vpop.permute.xlu1 %736  ;;  %815 = vrot.lane.b32.xlu1 %v779_v19, %s3081_s20  ;;  %v881_v6 = vrot.slane %v867_v18, %v3396_v13 }
 0x164   : > { %v780_v22 = vsel %vm774_vm4, %v3261_v36, %v737_v21 }
 0x165   : > { %v739_v23 = vpop.permute.xlu0 %738  ;;  %817 = vrot.lane.b32.xlu0 %v780_v22, %s3081_s20  ;;  %v882_v24 = vcombine.low %v874_v20, %v881_v6  ;;  %v900_v25 = vcombine.low %v779_v19, %v780_v22 }
 0x166   : > { %v781_v28 = vsel %vm774_vm4, %v3268_v38, %v739_v23 }
 0x167   : > { %v741_v26 = vpop.permute.xlu1 %740  ;;  %813 = vrot.lane.b32.xlu1 %v778_v16, %s3081_s20  ;;  %1012 = vst.msk [vmem:[#allocation2 + $0x11] sm:$0xff] %vm1011_vm5, %v882_v24  ;;  %v908_v31 = vrot.slane %v900_v25, %v3396_v13 }
 0x168   : > { %v782_v27 = vsel %vm774_vm4, %v3275_v42, %v741_v26 }
 0x169   : > { %v743_v29 = vpop.permute.xlu0 %742  ;;  %821 = vrot.lane.b32.xlu0 %v782_v27, %s3081_s20  ;;  %v901_v30 = vcombine.low %v781_v28, %v782_v27  ;;  %v3003_v27 = vld [vmem:[%s3812_s4 + $0x8] sm:$0xff]  }
 0x16a   : > { %v783_v37 = vsel %vm774_vm4, %v3277_v43, %v743_v29  ;;  %2741 = vmatprep.subr.bf16.mxu1 %v3003_v27 }
 0x16b   : > { %v745_v32 = vpop.permute.xlu1 %744  ;;  %v915_v33 = vrot.slane %v901_v30, %v3396_v13  ;;  %819 = vrot.lane.b32.xlu1 %v781_v28, %s3081_s20  ;;  %2742 = vmatpush3.bf16.msra.mxu1 %v3003_v27 }
 0x16c   : > { %v784_v34 = vsel %vm774_vm4, %v3282_v45, %v745_v32  ;;  %v1024_v45 = vld [vmem:[%s3376_s15 + $0x20] sm:$0xff] }
 0x16d   : > { %v747_v35 = vpop.permute.xlu0 %746  ;;  %825 = vrot.lane.b32.xlu0 %v784_v34, %s3081_s20  ;;  %v916_v36 = vcombine.low %v908_v31, %v915_v33  ;;  %v934_v39 = vcombine.low %v783_v37, %v784_v34  ;;  %v3004_v33 = vld [vmem:[%s3812_s4] sm:$0xff]  }
 0x16e   : > { %v785_v41 = vsel %vm774_vm4, %v3292_v49, %v747_v35  ;;  %v3005_v35 = vld [vmem:[%s3812_s4 + $0x28] sm:$0xff]   ;;  %2743 = vmatprep.subr.bf16.mxu1 %v3004_v33 }
 0x16f   : > { %v749_v38 = vpop.permute.xlu1 %748  ;;  %823 = vrot.lane.b32.xlu1 %v783_v37, %s3081_s20  ;;  %1014 = vst.msk [vmem:[#allocation2 + $0x31] sm:$0xff] %vm1011_vm5, %v916_v36  ;;  %v942_v43 = vrot.slane %v934_v39, %v3396_v13  ;;  %2744 = vmatpush3.bf16.msra.mxu1 %v3004_v33 }
 0x170   : > { %v786_v40 = vsel %vm774_vm4, %v3299_v52, %v749_v38  ;;  %v1026_v52 = vld [vmem:[%s3376_s15 + $0x30] sm:$0xff]  ;;  %2753 = vmatprep.subr.bf16.mxu0 %v3005_v35  ;;  %s3658_s15 = scalar_lea.vmem %s3820_s12, %s3835_s30 }
 0x171   : > { %v751_v42 = vpop.permute.xlu0 %750  ;;  %829 = vrot.lane.b32.xlu0 %v786_v40, %s3081_s20  ;;  %v935_v44 = vcombine.low %v785_v41, %v786_v40  ;;  %2754 = vmatpush3.bf16.msra.mxu0 %v3005_v35  ;;  %v3006_v40 = vld [vmem:[%s3812_s4 + $0x20] sm:$0xff]  }
 0x172   : > { %v787_v54 = vsel %vm774_vm4, %v3301_v53, %v751_v42  ;;  %2755 = vmatprep.subr.bf16.mxu0 %v3006_v40 }
 0x173   : > { %v753_v46 = vpop.permute.xlu1 %752  ;;  %v949_v47 = vrot.slane %v935_v44, %v3396_v13  ;;  %827 = vrot.lane.b32.xlu1 %v785_v41, %s3081_s20 }
 0x174   : > { %v788_v50 = vsel %vm774_vm4, %v3309_v56, %v753_v46 }
 0x175   : > { %1044 = vrot.lane.b32.xlu0 %v1024_v45, %s3823_s16  ;;  %v755_v49 = vpop.permute.xlu0 %754  ;;  %v950_v51 = vcombine.low %v942_v43, %v949_v47  ;;  %v968_v57 = vcombine.low %v787_v54, %v788_v50  ;;  %2756 = vmatpush3.bf16.msra.mxu0 %v3006_v40 }
 0x176   : > { %v789_v56 = vsel %vm774_vm4, %v3318_v58, %v755_v49  ;;  %v1085_v58 = vld [vmem:[#allocation2 + $0x1] sm:$0xff] }
 0x177   : > { %1042 = vrot.lane.b32.xlu1 %v1023_v48, %s3823_s16  ;;  %v757_v55 = vpop.permute.xlu1 %756  ;;  %1016 = vst.msk [vmem:[#allocation2 + $0x51] sm:$0xff] %vm1011_vm5, %v950_v51  ;;  %v976_v53 = vrot.slane %v968_v57, %v3396_v13  ;;  %v3007_v51 = vld [vmem:[%s3812_s4 + $0x18] sm:$0xff]  }
 0x178   : > { %v790_v61 = vsel %vm774_vm4, %v3326_v60, %v757_v55  ;;  %2757 = vmatprep.subr.bf16.mxu0 %v3007_v51  ;;  %vm2069_vm4 = vcmask 1043459  }
 0x179   : > { %1048 = vrot.lane.b32.xlu0 %v1026_v52, %s3823_s16  ;;  %v1037_v62 = vpop.permute.xlu0 %1036  ;;  %v969_v63 = vcombine.low %v789_v56, %v790_v61  ;;  %2758 = vmatpush3.bf16.msra.mxu0 %v3007_v51 }
 0x17a   : > { %1061 = vst.msk [vmem:[#allocation2 + $0x11] sm:$0xff] %vm1060_vm6, %v1037_v62 }
 0x17b   : > { %1046 = vrot.lane.b32.xlu1 %v1025_v59, %s3823_s16  ;;  %v983_v0 = vrot.slane %v969_v63, %v3396_v13  ;;  %v1039_v11 = vpop.permute.xlu1 %1038 }
 0x17d   : > { %833 = vrot.lane.b32.xlu0 %v788_v50, %s3081_s20  ;;  %v1041_v1 = vpop.permute.xlu0 %1040  ;;  %v984_v60 = vcombine.low %v976_v53, %v983_v0 }
 0x17e   : > { %1063 = vst.msk [vmem:[#allocation2 + $0x31] sm:$0xff] %vm1060_vm6, %v1041_v1 }
 0x17f   : > { %831 = vrot.lane.b32.xlu1 %v787_v54, %s3081_s20  ;;  %1018 = vst.msk [vmem:[#allocation2 + $0x71] sm:$0xff] %vm1011_vm5, %v984_v60 }
 0x181   : > { %837 = vrot.lane.b32.xlu0 %v790_v61, %s3081_s20  ;;  %v3460_v2 = vld [vmem:[#allocation2 + $0x11] sm:$0xff] }
 0x182   : > { %v2866_v3 = vpack.i.bf16 %v3460_v2, %v1085_v58  ;;  %v3463_v5 = vld [vmem:[#allocation2 + $0x12] sm:$0xff] }
 0x183   : > { %835 = vrot.lane.b32.xlu1 %v789_v56, %s3081_s20  ;;  %v2871_v9 = vpack.i.bf16 %v3463_v5, %v1093_v4  ;;  %s3834_s20 = smov 32  }
 0x185   : > { %2867 = vrot.lane.b32.xlu0 %v2866_v3, %s3082_s21  ;;  %v1088_v45 = vld [vmem:[#allocation2 + $0x31] sm:$0xff] }
 0x186   : > { %v1096_v52 = vld [vmem:[#allocation2 + $0x32] sm:$0xff] }
 0x187   : > { %1050 = vrot.lane.b32.xlu1 %v1027_v7, %s3823_s16 }
 0x189   : > { %2872 = vrot.lane.b32.xlu0 %v2871_v9, %s3824_s24  ;;  %v1077_v9 = vld [vmem:[#allocation2] sm:$0xff]  ;;  %s454_s24 = sand.u32 1, %s3065_s26  }
 0x1cd   : > { %v808_v12 = vpop.permute.xlu0 %807 }
 0x1d1   : > { %v810_v14 = vpop.permute.xlu1 %809  ;;  %v812_v15 = vpop.permute.xlu0 %811 }
 0x1d2   : > { %v883_v18 = vcombine.low %v808_v12, %v810_v14 }
 0x1d4   : > { %v891_v6 = vrot.slane %v883_v18, %v3396_v13  ;;  %v3520_v18 = vld [vmem:[%s3812_s4 + $0x40] sm:$0xff]  }
 0x1d5   : > { %v816_v16 = vpop.permute.xlu1 %815  ;;  %2767 = vmatprep.subr.bf16.mxu1 %v3520_v18 }
 0x1d7   : > { %v818_v17 = vpop.permute.xlu0 %817 }
 0x1d8   : > { %v917_v22 = vcombine.low %v816_v16, %v818_v17 }
 0x1d9   : > { %v814_v19 = vpop.permute.xlu1 %813 }
 0x1da   : > { %v884_v20 = vcombine.low %v812_v15, %v814_v19  ;;  %v925_v29 = vrot.slane %v917_v22, %v3396_v13 }
 0x1db   : > { %v822_v21 = vpop.permute.xlu0 %821 }
 0x1dc   : > { %v898_v23 = vrot.slane %v884_v20, %v3396_v13  ;;  %v1078_v20 = vld [vmem:[#allocation2 + $0x10] sm:$0xff] }
 0x1dd   : > { %v820_v24 = vpop.permute.xlu1 %819 }
 0x1de   : > { %v899_v25 = vcombine.low %v891_v6, %v898_v23  ;;  %v918_v26 = vcombine.low %v820_v24, %v822_v21 }
 0x1df   : > { %v826_v28 = vpop.permute.xlu0 %825 }
 0x1e0   : > { %1013 = vst.msk [vmem:[#allocation2 + $0x21] sm:$0xff] %vm1011_vm5, %v899_v25  ;;  %v932_v30 = vrot.slane %v918_v26, %v3396_v13 }
 0x1e1   : > { %1062 = vst.msk [vmem:[#allocation2 + $0x21] sm:$0xff] %vm1060_vm6, %v1039_v11  ;;  %v824_v31 = vpop.permute.xlu1 %823 }
 0x1e2   : > { %v933_v32 = vcombine.low %v925_v29, %v932_v30  ;;  %v951_v36 = vcombine.low %v824_v31, %v826_v28 }
 0x1e3   : > { %v830_v34 = vpop.permute.xlu0 %829 }
 0x1e4   : > { %1015 = vst.msk [vmem:[#allocation2 + $0x41] sm:$0xff] %vm1011_vm5, %v933_v32  ;;  %v959_v41 = vrot.slane %v951_v36, %v3396_v13 }
 0x1e5   : > { %v828_v37 = vpop.permute.xlu1 %827 }
 0x1e6   : > { %v952_v38 = vcombine.low %v828_v37, %v830_v34  ;;  %v1530_v37 = vld [vmem:[#allocation2 + $0x91] sm:$0xff] }
 0x1e7   : > { %v1045_v39 = vpop.permute.xlu0 %1044 }
 0x1e8   : > { %v966_v42 = vrot.slane %v952_v38, %v3396_v13  ;;  %1065 = vst.msk [vmem:[#allocation2 + $0x51] sm:$0xff] %vm1060_vm6, %v1045_v39  ;;  %v1305_v44 = vld [vmem:[#allocation2 + $0x21] sm:$0xff]  ;;  %v1538_v39 = vld [vmem:[#allocation2 + $0x92] sm:$0xff] }
 0x1e9   : > { %v1043_v43 = vpop.permute.xlu1 %1042  ;;  %v2886_v46 = vpack.i.bf16 %v1305_v44, %v3460_v2  ;;  %v2876_v47 = vpack.i.bf16 %v1088_v45, %v1305_v44  ;;  %v1313_v50 = vld [vmem:[#allocation2 + $0x22] sm:$0xff] }
 0x1ea   : > { %v967_v48 = vcombine.low %v959_v41, %v966_v42  ;;  %1064 = vst.msk [vmem:[#allocation2 + $0x41] sm:$0xff] %vm1060_vm6, %v1043_v43  ;;  %v2891_v55 = vpack.i.bf16 %v1313_v50, %v3463_v5  ;;  %v2881_v57 = vpack.i.bf16 %v1096_v52, %v1313_v50  ;;  %v3542_v50 = vld [vmem:[#allocation2 + $0x20] sm:$0xff] }
 0x1eb   : > { %v1049_v49 = vpop.permute.xlu0 %1048  ;;  %2887 = vrot.lane.b32.xlu0 %v2886_v46, %s3082_s21  ;;  %2877 = vrot.lane.b32.xlu1 %v2876_v47, %s3082_s21 }
 0x1ec   : > { %1017 = vst.msk [vmem:[#allocation2 + $0x61] sm:$0xff] %vm1011_vm5, %v967_v48 }
 0x1ed   : > { %1067 = vst.msk [vmem:[#allocation2 + $0x71] sm:$0xff] %vm1060_vm6, %v1049_v49  ;;  %v1047_v54 = vpop.permute.xlu1 %1046  ;;  %v3544_v49 = vld [vmem:[#allocation2 + $0x30] sm:$0xff] }
 0x1ee   : > { %1066 = vst.msk [vmem:[#allocation2 + $0x61] sm:$0xff] %vm1060_vm6, %v1047_v54 }
 0x1ef   : > { %v834_v59 = vpop.permute.xlu0 %833  ;;  %2892 = vrot.lane.b32.xlu0 %v2891_v55, %s3834_s20  ;;  %2882 = vrot.lane.b32.xlu1 %v2881_v57, %s3834_s20  ;;  %v1090_v2 = vld [vmem:[#allocation2 + $0x51] sm:$0xff] }
 0x1f0   : > { %v1098_v15 = vld [vmem:[#allocation2 + $0x52] sm:$0xff] }
 0x1f1   : > { %v832_v61 = vpop.permute.xlu1 %831  ;;  %v1307_v56 = vld [vmem:[#allocation2 + $0x41] sm:$0xff] }
 0x1f2   : > { %v2916_v62 = vpack.i.bf16 %v1307_v56, %v1088_v45  ;;  %v1315_v53 = vld [vmem:[#allocation2 + $0x42] sm:$0xff]  ;;  %v985_v0 = vcombine.low %v832_v61, %v834_v59  ;;  %v2906_v11 = vpack.i.bf16 %v1090_v2, %v1307_v56 }
 0x1f3   : > { %v838_v63 = vpop.permute.xlu0 %837  ;;  %2897 = vrot.lane.b32.xlu0 %v2876_v47, %s3082_s21  ;;  %v2921_v58 = vpack.i.bf16 %v1315_v53, %v1096_v52  ;;  %v2911_v21 = vpack.i.bf16 %v1098_v15, %v1315_v53 }
 0x1f4   : > { %2917 = vrot.lane.b32.xlu1 %v2916_v62, %s3082_s21  ;;  %v993_v4 = vrot.slane %v985_v0, %v3396_v13  ;;  %v1092_v26 = vld [vmem:[#allocation2 + $0x71] sm:$0xff] }
 0x1f5   : > { %v836_v1 = vpop.permute.xlu1 %835  ;;  %v1309_v24 = vld [vmem:[#allocation2 + $0x61] sm:$0xff]  ;;  %v1100_v30 = vld [vmem:[#allocation2 + $0x72] sm:$0xff] }
 0x1f6   : > { %v986_v60 = vcombine.low %v836_v1, %v838_v63  ;;  %v2946_v27 = vpack.i.bf16 %v1309_v24, %v1090_v2  ;;  %v2936_v28 = vpack.i.bf16 %v1092_v26, %v1309_v24  ;;  %v1317_v29 = vld [vmem:[#allocation2 + $0x62] sm:$0xff]  ;;  %v3009_v2 = vld [vmem:[%s3812_s4 + $0x38] sm:$0xff]  }
 0x1f7   : > { %v2868_v3 = vpop.permute.xlu0 %2867  ;;  %2902 = vrot.lane.b32.xlu0 %v2881_v57, %s3834_s20  ;;  %v2951_v31 = vpack.i.bf16 %v1317_v29, %v1098_v15  ;;  %v2941_v32 = vpack.i.bf16 %v1100_v30, %v1317_v29 }
 0x1f8   : > { %v1000_v5 = vrot.slane %v986_v60, %v3396_v13  ;;  %v2869_v7 = vunpack.i.l.bf16 %v2868_v3  ;;  %2922 = vrot.lane.b32.xlu1 %v2921_v58, %s3834_s20  ;;  %v2870_v10 = vunpack.i.h.bf16 %v2868_v3 }
 0x1f9   : > { %v1051_v14 = vpop.permute.xlu1 %1050 }
 0x1fa   : > { %v1001_v12 = vcombine.low %v993_v4, %v1000_v5  ;;  %v1165_v17 = vsel %vm501_vm0, %v1077_v9, %v2869_v7  ;;  %v1166_v6 = vsel %vm501_vm0, %v1078_v20, %v2870_v10  ;;  %v3010_v9 = vld [vmem:[%s3812_s4 + $0x30] sm:$0xff]  }
 0x1fb   : > { %v2873_v16 = vpop.permute.xlu0 %2872  ;;  %2907 = vrot.lane.b32.xlu0 %v2906_v11, %s3082_s21 }
 0x1fc   : > { %1019 = vst.msk [vmem:[#allocation2 + $0x81] sm:$0xff] %vm1011_vm5, %v1001_v12  ;;  %v2875_v13 = vunpack.i.h.bf16 %v2873_v16  ;;  %v2874_v19 = vunpack.i.l.bf16 %v2873_v16  ;;  %2927 = vrot.lane.b32.xlu1 %v2906_v11, %s3082_s21  ;;  %v3566_v11 = vld [vmem:[#allocation2 + $0x40] sm:$0xff] }
 0x1fd   : > { %1068 = vst.msk [vmem:[#allocation2 + $0x81] sm:$0xff] %vm1060_vm6, %v1051_v14  ;;  %vm2071_vm6 = vcmask 1044484  }
 0x1fe   : > { %v1174_v22 = vsel %vm1173_vm7, %v1165_v17, %v2874_v19  ;;  %v1175_v23 = vsel %vm1173_vm7, %v1166_v6, %v2875_v13 }
 0x1ff   : > { %2912 = vrot.lane.b32.xlu0 %v2911_v21, %s3834_s20  ;;  %v1182_v25 = vpack.c.bf16 %v1175_v23, %v1174_v22  ;;  %v1082_v23 = vld [vmem:[#allocation2 + $0x50] sm:$0xff] }
 0x200   : > { %2932 = vrot.lane.b32.xlu1 %v2911_v21, %s3834_s20 }
 0x201   : > { %2745 = vmatprep.mubr.msk.bf16.mxu1 %vm1210_vm8, %v1182_v25 }
 0x203   : > { %2947 = vrot.lane.b32.xlu0 %v2946_v27, %s3082_s21 }
 0x204   : > { %2937 = vrot.lane.b32.xlu1 %v2936_v28, %s3082_s21  ;;  %v1311_v33 = vld [vmem:[#allocation2 + $0x81] sm:$0xff] }
 0x205   : > { %v2966_v34 = vpack.i.bf16 %v1311_v33, %v1092_v26  ;;  %v1319_v35 = vld [vmem:[#allocation2 + $0x82] sm:$0xff]  ;;  %v2976_v38 = vpack.i.bf16 %v1530_v37, %v1311_v33 }
 0x206   : > { %v2971_v36 = vpack.i.bf16 %v1319_v35, %v1100_v30  ;;  %v2981_v40 = vpack.i.bf16 %v1538_v39, %v1319_v35 }
 0x207   : > { %2952 = vrot.lane.b32.xlu0 %v2951_v31, %s3834_s20 }
 0x208   : > { %2942 = vrot.lane.b32.xlu1 %v2941_v32, %s3834_s20 }
 0x20b   : > { %2957 = vrot.lane.b32.xlu0 %v2936_v28, %s3082_s21 }
 0x20c   : > { %2967 = vrot.lane.b32.xlu1 %v2966_v34, %s3082_s21 }
 0x20f   : > { %2962 = vrot.lane.b32.xlu0 %v2941_v32, %s3834_s20 }
 0x210   : > { %2972 = vrot.lane.b32.xlu1 %v2971_v36, %s3834_s20 }
 0x214   : > { %2977 = vrot.lane.b32.xlu1 %v2976_v38, %s3082_s21  ;;  %s2688_s21 = sshll.u32 %s3179_s29, 9 }
 0x215   : > { %s3764_s16 = scalar_lea.hbm %s3821_s13, %s2688_s21 }
 0x218   : > { %2982 = vrot.lane.b32.xlu1 %v2981_v40, %s3834_s20  ;;  %s2613_s20 = sshll.u32 %s454_s24, 5 }
 0x219   : > { %s456_s30 = scalar_lea.vmem [#allocation3], %s2613_s20  ;;  %s3767_s20 = scalar_lea.sflag [#allocation4], %s454_s24 }
 0x21a   : > { %s2510_s23 = sshll.u32 %s456_s30, 4  ;;  %s3758_s23 = int_to_ptr.vmem [resolvable:$true] %s2510_s23 }
 0x21b   : > { %s3013_s29 = scalar_lea.vmem %s3758_s23, 512  ;;  %p3020_p0 = scmp.lt.s32.totalorder %s3758_s23, %s3018_s1 }
 0x21c   : > { %p3014_p11 = scmp.ne.s32.totalorder %s3758_s23, %s3013_s29  ;;  %p3021_p1 = scmp.lt.s32.totalorder %s3019_s2, %s3013_s29 }
 0x21e   : > { %p3015_p12 = pnand %p3014_p11, %p3196_p5  ;;  %p3022_p2 = por %p3021_p1, %p3020_p0 }
 0x220   : > { %p3016_p13 = pneg %p3015_p12 }
 0x222   : > { %p3023_p3 = pnand %p3022_p2, %p3016_p13 }
 0x25d   : > { %v2888_v41 = vpop.permute.xlu0 %2887  ;;  %v2878_v42 = vpop.permute.xlu1 %2877 }
 0x25e   : > { %v2890_v44 = vunpack.i.h.bf16 %v2888_v41  ;;  %v2889_v45 = vunpack.i.l.bf16 %v2888_v41  ;;  %v2880_v43 = vunpack.i.h.bf16 %v2878_v42  ;;  %v2879_v46 = vunpack.i.l.bf16 %v2878_v42 }
 0x260   : > { %v1384_v57 = vsel %vm501_vm0, %v1078_v20, %v2889_v45  ;;  %v1385_v59 = vsel %vm501_vm0, %v3542_v50, %v2890_v44  ;;  %v1168_v61 = vsel %vm501_vm0, %v3544_v49, %v2880_v43  ;;  %v1167_v56 = vsel %vm501_vm0, %v3542_v50, %v2879_v46 }
 0x261   : > { %v2893_v47 = vpop.permute.xlu0 %2892  ;;  %v2883_v48 = vpop.permute.xlu1 %2882 }
 0x262   : > { %v2895_v51 = vunpack.i.h.bf16 %v2893_v47  ;;  %v2894_v52 = vunpack.i.l.bf16 %v2893_v47  ;;  %v2885_v54 = vunpack.i.h.bf16 %v2883_v48  ;;  %v2884_v55 = vunpack.i.l.bf16 %v2883_v48  ;;  %v1301_v48 = vld [vmem:[#allocation2 + $0x60] sm:$0xff] }
 0x264   : > { %v1392_v62 = vsel %vm1173_vm7, %v1384_v57, %v2894_v52  ;;  %v1393_v63 = vsel %vm1173_vm7, %v1385_v59, %v2895_v51  ;;  %v1176_v53 = vsel %vm1173_vm7, %v1167_v56, %v2884_v55  ;;  %v1177_v0 = vsel %vm1173_vm7, %v1168_v61, %v2885_v54  ;;  %v1084_v57 = vld [vmem:[#allocation2 + $0x70] sm:$0xff] }
 0x265   : > { %v1400_v1 = vpack.c.bf16 %v1393_v63, %v1392_v62  ;;  %v1183_v60 = vpack.c.bf16 %v1177_v0, %v1176_v53  ;;  %v2898_v58 = vpop.permute.xlu0 %2897 }
 0x266   : > { %v2918_v3 = vpop.permute.xlu1 %2917  ;;  %v2899_v29 = vunpack.i.l.bf16 %v2898_v58  ;;  %v2900_v32 = vunpack.i.h.bf16 %v2898_v58 }
 0x267   : > { %2746 = vmatmul.mubr.msk.bf16.vlgmr.msra.gmra.mxu1 %vm1210_vm8, %v1183_v60  ;;  %2759 = vmatprep.mubr.msk.bf16.mxu0 %vm1210_vm8, %v1400_v1  ;;  %v2920_v4 = vunpack.i.h.bf16 %v2918_v3  ;;  %v2919_v5 = vunpack.i.l.bf16 %v2918_v3 }
 0x268   : > { %2768 = vmatpush3.bf16.msra.mxu1 %v3520_v18  ;;  %v1603_v40 = vsel %vm501_vm0, %v3542_v50, %v2899_v29  ;;  %v1604_v44 = vsel %vm501_vm0, %v3544_v49, %v2900_v32 }
 0x269   : > { %v2903_v7 = vpop.permute.xlu0 %2902  ;;  %2769 = vmatprep.subr.bf16.mxu1 %v3009_v2  ;;  %v1387_v15 = vsel %vm501_vm0, %v3566_v11, %v2920_v4  ;;  %v1386_v16 = vsel %vm501_vm0, %v3544_v49, %v2919_v5 }
 0x26a   : > { %v2923_v10 = vpop.permute.xlu1 %2922  ;;  %v2904_v33 = vunpack.i.l.bf16 %v2903_v7  ;;  %v2905_v36 = vunpack.i.h.bf16 %v2903_v7 }
 0x26b   : > { %v2925_v12 = vunpack.i.h.bf16 %v2923_v10  ;;  %v2924_v14 = vunpack.i.l.bf16 %v2923_v10 }
 0x26c   : > { %2770 = vmatpush3.bf16.msra.mxu1 %v3009_v2  ;;  %v1611_v45 = vsel %vm1173_vm7, %v1603_v40, %v2904_v33  ;;  %v1612_v46 = vsel %vm1173_vm7, %v1604_v44, %v2905_v36 }
 0x26d   : > { %v1394_v17 = vsel %vm1173_vm7, %v1386_v16, %v2924_v14  ;;  %v1395_v18 = vsel %vm1173_vm7, %v1387_v15, %v2925_v12  ;;  %v2908_v13 = vpop.permute.xlu0 %2907  ;;  %2771 = vmatprep.subr.bf16.mxu1 %v3010_v9  ;;  %v1619_v7 = vpack.c.bf16 %v1612_v46, %v1611_v45  ;;  %v1866_v46 = vld [vmem:[%s3816_s8] sm:$0xff] }
 0x26e   : > { %v1401_v19 = vpack.c.bf16 %v1395_v18, %v1394_v17  ;;  %v3574_v20 = vpop.permute.xlu1 %2927  ;;  %v2910_v21 = vunpack.i.h.bf16 %v2908_v13  ;;  %v2909_v6 = vunpack.i.l.bf16 %v2908_v13  ;;  %2781 = vmatprep.subr.mxu0 %v1866_v46 }
 0x26f   : > { %v2930_v47 = vunpack.i.h.bf16 %v3574_v20  ;;  %v2929_v53 = vunpack.i.l.bf16 %v3574_v20 }
 0x270   : > { %2760 = vmatmul.mubr.msk.bf16.vlgmr.msra.gmra.mxu0 %vm1210_vm8, %v1401_v19  ;;  %2772 = vmatpush3.bf16.msra.mxu1 %v3010_v9  ;;  %v1170_v27 = vsel %vm501_vm0, %v1082_v23, %v2910_v21  ;;  %v1169_v28 = vsel %vm501_vm0, %v3566_v11, %v2909_v6 }
 0x271   : > { %v2913_v22 = vpop.permute.xlu0 %2912  ;;  %v1606_v15 = vsel %vm501_vm0, %v1082_v23, %v2930_v47  ;;  %v1605_v16 = vsel %vm501_vm0, %v3566_v11, %v2929_v53  ;;  %2782 = vmatpush3.msra.mxu0 %v1866_v46  ;;  %v2623_v53 = vld [vmem:[%s3813_s5] ss:$0 sm:$0xff] }
 0x272   : > { %v2915_v24 = vunpack.i.h.bf16 %v2913_v22  ;;  %v2914_v25 = vunpack.i.l.bf16 %v2913_v22  ;;  %v2933_v26 = vpop.permute.xlu1 %2932 }
 0x273   : > { %v2935_v2 = vunpack.i.h.bf16 %v2933_v26  ;;  %v2934_v3 = vunpack.i.l.bf16 %v2933_v26 }
 0x274   : > { %v1178_v30 = vsel %vm1173_vm7, %v1169_v28, %v2914_v25  ;;  %v1179_v31 = vsel %vm1173_vm7, %v1170_v27, %v2915_v24  ;;  %v1303_v24 = vld [vmem:[#allocation2 + $0x80] sm:$0xff] }
 0x275   : > { %v1184_v34 = vpack.c.bf16 %v1179_v31, %v1178_v30  ;;  %v2948_v35 = vpop.permute.xlu0 %2947  ;;  %v1613_v18 = vsel %vm1173_vm7, %v1605_v16, %v2934_v3  ;;  %v1614_v13 = vsel %vm1173_vm7, %v1606_v15, %v2935_v2 }
 0x276   : > { %v2938_v37 = vpop.permute.xlu1 %2937  ;;  %v2950_v38 = vunpack.i.h.bf16 %v2948_v35  ;;  %v2949_v39 = vunpack.i.l.bf16 %v2948_v35  ;;  %v1620_v31 = vpack.c.bf16 %v1614_v13, %v1613_v18 }
 0x277   : > { %2749 = vmatprep.mubr.msk.bf16.mxu1 %vm1210_vm8, %v1184_v34  ;;  %v2940_v41 = vunpack.i.h.bf16 %v2938_v37  ;;  %v2939_v42 = vunpack.i.l.bf16 %v2938_v37  ;;  %v1522_v37 = vld [vmem:[#allocation2 + $0x90] sm:$0xff] }
 0x278   : > { %v1388_v55 = vsel %vm501_vm0, %v1082_v23, %v2949_v39  ;;  %v1389_v50 = vsel %vm501_vm0, %v1301_v48, %v2950_v38 }
 0x279   : > { %v2953_v43 = vpop.permute.xlu0 %2952  ;;  %v1172_v49 = vsel %vm501_vm0, %v1084_v57, %v2940_v41  ;;  %v1171_v56 = vsel %vm501_vm0, %v1301_v48, %v2939_v42 }
 0x27a   : > { %v2955_v51 = vunpack.i.h.bf16 %v2953_v43  ;;  %v2954_v52 = vunpack.i.l.bf16 %v2953_v43  ;;  %v2943_v54 = vpop.permute.xlu1 %2942 }
 0x27b   : > { %v2945_v59 = vunpack.i.h.bf16 %v2943_v54  ;;  %v2944_v61 = vunpack.i.l.bf16 %v2943_v54 }
 0x27c   : > { %v1396_v62 = vsel %vm1173_vm7, %v1388_v55, %v2954_v52  ;;  %v1397_v63 = vsel %vm1173_vm7, %v1389_v50, %v2955_v51  ;;  %v3084_v51 = vmov 1   ;;  %v3085_v52 = vmov 0  }
 0x27d   : > { %v1402_v0 = vpack.c.bf16 %v1397_v63, %v1396_v62  ;;  %v1180_v1 = vsel %vm1173_vm7, %v1171_v56, %v2944_v61  ;;  %v1181_v60 = vsel %vm1173_vm7, %v1172_v49, %v2945_v59  ;;  %v2958_v58 = vpop.permute.xlu0 %2957  ;;  %2987 = vset.pattern.permute.xlu0 %v3084_v51  ;;  %2986 = vset.pattern.permute.xlu1 %v3085_v52 }
 0x27e   : > { %v1185_v4 = vpack.c.bf16 %v1181_v60, %v1180_v1  ;;  %v2968_v5 = vpop.permute.xlu1 %2967  ;;  %v2960_v9 = vunpack.i.h.bf16 %v2958_v58  ;;  %v2959_v10 = vunpack.i.l.bf16 %v2958_v58 }
 0x27f   : > { %2763 = vmatprep.mubr.msk.bf16.mxu0 %vm1210_vm8, %v1402_v0  ;;  %v2970_v12 = vunpack.i.h.bf16 %v2968_v5  ;;  %v2969_v14 = vunpack.i.l.bf16 %v2968_v5 }
 0x280   : > { %2750 = vmatmul.mubr.msk.bf16.gmra.mxu1 %vm1210_vm8, %v1185_v4  ;;  %v1608_v6 = vsel %vm501_vm0, %v1084_v57, %v2960_v9  ;;  %v1607_v22 = vsel %vm501_vm0, %v1301_v48, %v2959_v10 }
 0x281   : > { %v2963_v17 = vpop.permute.xlu0 %2962  ;;  %2773 = vmatprep.mubr.msk.bf16.mxu1 %vm1210_vm8, %v1619_v7  ;;  %v1391_v26 = vsel %vm501_vm0, %v1303_v24, %v2970_v12  ;;  %v1390_v11 = vsel %vm501_vm0, %v1084_v57, %v2969_v14 }
 0x282   : > { %v2965_v19 = vunpack.i.h.bf16 %v2963_v17  ;;  %v2964_v20 = vunpack.i.l.bf16 %v2963_v17  ;;  %v2973_v21 = vpop.permute.xlu1 %2972 }
 0x283   : > { %v2975_v25 = vunpack.i.h.bf16 %v2973_v21  ;;  %v2974_v23 = vunpack.i.l.bf16 %v2973_v21 }
 0x284   : > { %v1615_v27 = vsel %vm1173_vm7, %v1607_v22, %v2964_v20  ;;  %v1616_v28 = vsel %vm1173_vm7, %v1608_v6, %v2965_v19 }
 0x285   : > { %v1398_v29 = vsel %vm1173_vm7, %v1390_v11, %v2974_v23  ;;  %v1399_v30 = vsel %vm1173_vm7, %v1391_v26, %v2975_v25  ;;  %v1621_v34 = vpack.c.bf16 %v1616_v28, %v1615_v27 }
 0x286   : > { %v1403_v32 = vpack.c.bf16 %v1399_v30, %v1398_v29  ;;  %v2978_v33 = vpop.permute.xlu1 %2977 }
 0x287   : > { %v2980_v35 = vunpack.i.h.bf16 %v2978_v33  ;;  %v2979_v36 = vunpack.i.l.bf16 %v2978_v33 }
 0x288   : > { %2764 = vmatmul.mubr.msk.bf16.gmra.mxu0 %vm1210_vm8, %v1403_v32  ;;  %2774 = vmatmul.mubr.msk.bf16.vlgmr.msra.gmra.mxu1 %vm1210_vm8, %v1620_v31 }
 0x289   : > { %2777 = vmatprep.mubr.msk.bf16.mxu1 %vm1210_vm8, %v1621_v34  ;;  %v1610_v41 = vsel %vm501_vm0, %v1522_v37, %v2980_v35  ;;  %v1609_v42 = vsel %vm501_vm0, %v1303_v24, %v2979_v36 }
 0x28a   : > { %v2983_v38 = vpop.permute.xlu1 %2982 }
 0x28b   : > { %v2985_v39 = vunpack.i.h.bf16 %v2983_v38  ;;  %v2984_v40 = vunpack.i.l.bf16 %v2983_v38 }
 0x28d   : > { %v1617_v44 = vsel %vm1173_vm7, %v1609_v42, %v2984_v40  ;;  %v1618_v45 = vsel %vm1173_vm7, %v1610_v41, %v2985_v39  ;;  %vm2073_vm7 = vcmask 1045509  }
 0x28e   : > { %v1622_v43 = vpack.c.bf16 %v1618_v45, %v1617_v44 }
 0x290   : > { %2778 = vmatmul.mubr.msk.bf16.gmra.mxu1 %vm1210_vm8, %v1622_v43  ;;  %vm2075_vm8 = vcmask 1046534  }
 0x327   : > { %v2747_v47 = vpop.f32.mrf.mxu1 }
 0x328   : > { %v1290_v3 = vadd.f32 %v2747_v47, %v2623_v53 }
 0x329   : > { %v1257_v48 = vpop.f32.mrf.mxu1 }
 0x32a   : > { %v1288_v60 = vadd.f32 %v2623_v53, %v1257_v48 }
 0x32b   : > { %v2748_v54 = vpop.f32.mrf.mxu1 }
 0x32c   : > { %v1291_v9 = vadd.f32 %v2748_v54, %v2623_v53 }
 0x32d   : > { %v1260_v50 = vpop.f32.mrf.mxu1 }
 0x32e   : > { %v1289_v4 = vadd.f32 %v2623_v53, %v1260_v50 }
 0x330   : > { %v2761_v55 = vpop.f32.mrf.mxu0 }
 0x331   : > { %v1508_v10 = vadd.f32 %v2761_v55, %v1290_v3 }
 0x332   : > { %v1475_v57 = vpop.f32.mrf.mxu0 }
 0x333   : > { %v1506_v5 = vadd.f32 %v1475_v57, %v1288_v60 }
 0x334   : > { %v2762_v61 = vpop.f32.mrf.mxu0 }
 0x335   : > { %v1509_v17 = vadd.f32 %v2762_v61, %v1291_v9 }
 0x336   : > { %v1478_v62 = vpop.f32.mrf.mxu0 }
 0x337   : > { %v1507_v12 = vadd.f32 %v1478_v62, %v1289_v4 }
 0x340   : > { %v2751_v59 = vpop.f32.mrf.mxu1 }
 0x341   : > { %v1294_v11 = vadd.f32 %v2751_v59, %v2623_v53 }
 0x342   : > { %v1273_v49 = vpop.f32.mrf.mxu1 }
 0x343   : > { %v1292_v18 = vadd.f32 %v2623_v53, %v1273_v49 }
 0x344   : > { %v2752_v56 = vpop.f32.mrf.mxu1 }
 0x345   : > { %v1295_v32 = vadd.f32 %v2752_v56, %v2623_v53 }
 0x346   : > { %v1276_v63 = vpop.f32.mrf.mxu1 }
 0x347   : > { %v1293_v27 = vadd.f32 %v2623_v53, %v1276_v63 }
 0x348   : > { %v2765_v0 = vpop.f32.mrf.mxu0  ;;  %v2775_v1 = vpop.f32.mrf.mxu1 }
 0x349   : > { %v1727_v13 = vadd.f32 %v2775_v1, %v1508_v10  ;;  %v1512_v33 = vadd.f32 %v2765_v0, %v1294_v11 }
 0x34a   : > { %v1491_v58 = vpop.f32.mrf.mxu0  ;;  %v1694_v2 = vpop.f32.mrf.mxu1 }
 0x34b   : > { %v1725_v14 = vadd.f32 %v1694_v2, %v1506_v5  ;;  %v1510_v21 = vadd.f32 %v1491_v58, %v1292_v18  ;;  %v1736_v28 = vsel %vm1011_vm5, %v1727_v13, 0.0 }
 0x34c   : > { %v2776_v7 = vpop.f32.mrf.mxu1  ;;  %v2766_v15 = vpop.f32.mrf.mxu0 }
 0x34d   : > { %v1733_v6 = vsel %vm1011_vm5, %v1725_v14, 0.0  ;;  %v1728_v22 = vadd.f32 %v2776_v7, %v1509_v17  ;;  %v1513_v38 = vadd.f32 %v2766_v15, %v1295_v32 }
 0x34e   : > { %v1697_v16 = vpop.f32.mrf.mxu1  ;;  %v1494_v25 = vpop.f32.mrf.mxu0 }
 0x34f   : > { %v1726_v19 = vadd.f32 %v1697_v16, %v1507_v12  ;;  %v1738_v34 = vsel %vm1011_vm5, %v1728_v22, 0.0  ;;  %v1511_v35 = vadd.f32 %v1494_v25, %v1293_v27 }
 0x350   : > { %v2779_v20 = vpop.f32.mrf.mxu1 }
 0x351   : > { %v1734_v24 = vsel %vm1011_vm5, %v1726_v19, 0.0  ;;  %v1731_v39 = vadd.f32 %v2779_v20, %v1512_v33 }
 0x352   : > { %v1735_v23 = vadd.f32 %v1734_v24, %v1733_v6  ;;  %v1710_v26 = vpop.f32.mrf.mxu1 }
 0x353   : > { %v1729_v29 = vadd.f32 %v1710_v26, %v1510_v21  ;;  %v1744_v46 = vsel %vm1011_vm5, %v1731_v39, 0.0 }
 0x354   : > { %v1737_v30 = vadd.f32 %v1736_v28, %v1735_v23  ;;  %v2780_v31 = vpop.f32.mrf.mxu1 }
 0x355   : > { %v1740_v40 = vsel %vm1011_vm5, %v1729_v29, 0.0  ;;  %v1732_v44 = vadd.f32 %v2780_v31, %v1513_v38 }
 0x356   : > { %v1739_v36 = vadd.f32 %v1738_v34, %v1737_v30  ;;  %v1713_v37 = vpop.f32.mrf.mxu1 }
 0x357   : > { %v1730_v41 = vadd.f32 %v1713_v37, %v1511_v35  ;;  %v1746_v48 = vsel %vm1011_vm5, %v1732_v44, 0.0 }
 0x358   : > { %v1741_v42 = vadd.f32 %v1740_v40, %v1739_v36  ;;  %v2657_v36 = vld [vmem:[%s3814_s6] ss:$0 sm:$0xff] }
 0x359   : > { %v1742_v45 = vsel %vm1011_vm5, %v1730_v41, 0.0 }
 0x35a   : > { %v1743_v43 = vadd.f32 %v1742_v45, %v1741_v42 }
 0x35c   : > { %v1745_v47 = vadd.f32 %v1744_v46, %v1743_v43 }
 0x35e   : > { %v1747_v54 = vadd.f32 %v1746_v48, %v1745_v47 }
 0x360   : > { %v1748_v55 = vrot.slane %v1747_v54, 4 }
 0x362   : > { %v1749_v50 = vadd.f32 %v1748_v55, %v1747_v54 }
 0x364   : > { %v1750_v57 = vrot.slane %v1749_v50, 2 }
 0x366   : > { %v1751_v59 = vadd.f32 %v1750_v57, %v1749_v50 }
 0x368   : > { %v1752_v61 = vrot.slane %v1751_v59, 1 }
 0x36a   : > { %v1753_v49 = vadd.f32 %v1752_v61, %v1751_v59 }
 0x36c   : > { %v1755_v56 = vmul.f32 0.015625, %v1753_v49 }
 0x36e   : > { %v1756_v62 = vsub.f32 %v1725_v14, %v1755_v56  ;;  %v1757_v63 = vsub.f32 %v1726_v19, %v1755_v56  ;;  %v1758_v53 = vsub.f32 %v1727_v13, %v1755_v56  ;;  %v1759_v0 = vsub.f32 %v1728_v22, %v1755_v56 }
 0x36f   : > { %v1760_v1 = vsub.f32 %v1729_v29, %v1755_v56  ;;  %v1761_v3 = vsub.f32 %v1730_v41, %v1755_v56  ;;  %v1762_v10 = vsub.f32 %v1731_v39, %v1755_v56  ;;  %v1763_v14 = vsub.f32 %v1732_v44, %v1755_v56  ;;  %v2658_v41 = vld [vmem:[%s3815_s7] ss:$0 sm:$0xff] }
 0x370   : > { %v1764_v60 = vmul.f32 %v1756_v62, %v1756_v62  ;;  %v1765_v58 = vmul.f32 %v1757_v63, %v1757_v63  ;;  %v1766_v2 = vmul.f32 %v1758_v53, %v1758_v53  ;;  %v1767_v4 = vmul.f32 %v1759_v0, %v1759_v0 }
 0x371   : > { %v1768_v12 = vmul.f32 %v1760_v1, %v1760_v1  ;;  %v1769_v17 = vmul.f32 %v1761_v3, %v1761_v3  ;;  %v1770_v19 = vmul.f32 %v1762_v10, %v1762_v10  ;;  %v1771_v6 = vmul.f32 %v1763_v14, %v1763_v14 }
 0x372   : > { %v1772_v5 = vsel %vm1011_vm5, %v1764_v60, 0.0  ;;  %v1773_v7 = vsel %vm1011_vm5, %v1765_v58, 0.0  ;;  %v1775_v15 = vsel %vm1011_vm5, %v1766_v2, 0.0  ;;  %v1777_v18 = vsel %vm1011_vm5, %v1767_v4, 0.0 }
 0x373   : > { %v1774_v9 = vadd.f32 %v1773_v7, %v1772_v5  ;;  %v1779_v20 = vsel %vm1011_vm5, %v1768_v12, 0.0  ;;  %v1781_v22 = vsel %vm1011_vm5, %v1769_v17, 0.0  ;;  %v1783_v25 = vsel %vm1011_vm5, %v1770_v19, 0.0 }
 0x374   : > { %v1785_v26 = vsel %vm1011_vm5, %v1771_v6, 0.0 }
 0x375   : > { %v1776_v16 = vadd.f32 %v1775_v15, %v1774_v9 }
 0x377   : > { %v1778_v13 = vadd.f32 %v1777_v18, %v1776_v16 }
 0x379   : > { %v1780_v21 = vadd.f32 %v1779_v20, %v1778_v13 }
 0x37b   : > { %v1782_v24 = vadd.f32 %v1781_v22, %v1780_v21 }
 0x37d   : > { %v1784_v23 = vadd.f32 %v1783_v25, %v1782_v24 }
 0x37f   : > { %v1786_v11 = vadd.f32 %v1785_v26, %v1784_v23  ;;  %v1996_v26 = vld [vmem:[%s3818_s10] sm:$0xff] }
 0x380   : > { %2797 = vmatprep.mubr.msk.f32.mxu1 %vm1011_vm5, %v1996_v26 }
 0x381   : > { %v1787_v27 = vrot.slane %v1786_v11, 4 }
 0x383   : > { %v1788_v28 = vadd.f32 %v1787_v27, %v1786_v11  ;;  %v3701_v11 = vld [vmem:[%s3819_s11] sm:$0xff] }
 0x384   : > { %2800 = vmatprep.subr.mxu0 %v3701_v11 }
 0x385   : > { %v1789_v29 = vrot.slane %v1788_v28, 2 }
 0x387   : > { %v1790_v30 = vadd.f32 %v1789_v29, %v1788_v28 }
 0x389   : > { %v1791_v31 = vrot.slane %v1790_v30, 1 }
 0x38b   : > { %v1792_v32 = vadd.f32 %v1791_v31, %v1790_v30 }
 0x38d   : > { %v1793_v33 = vmul.f32 0.015625, %v1792_v32 }
 0x38f   : > { %v1794_v34 = vadd.f32 1e-05, %v1793_v33 }
 0x391   : > { %3011 = vrsqrt.f32 %v1794_v34 }
 0x39e   : > { %v3012_v35 = vpop.eup %3011 }
 0x39f   : > { %v1801_v37 = vmul.f32 %v3012_v35, %v1761_v3  ;;  %v1796_v38 = vmul.f32 %v3012_v35, %v1756_v62  ;;  %v1797_v39 = vmul.f32 %v3012_v35, %v1757_v63  ;;  %v1798_v40 = vmul.f32 %v3012_v35, %v1758_v53 }
 0x3a0   : > { %v1799_v42 = vmul.f32 %v3012_v35, %v1759_v0  ;;  %v1800_v44 = vmul.f32 %v3012_v35, %v1760_v1  ;;  %v1802_v45 = vmul.f32 %v3012_v35, %v1762_v10  ;;  %v1803_v43 = vmul.f32 %v3012_v35, %v1763_v14 }
 0x3a1   : > { %v1816_v46 = vmul.f32 %v2657_v36, %v1801_v37  ;;  %v1811_v47 = vmul.f32 %v2657_v36, %v1796_v38  ;;  %v1812_v48 = vmul.f32 %v2657_v36, %v1797_v39  ;;  %v1813_v54 = vmul.f32 %v2657_v36, %v1798_v40 }
 0x3a2   : > { %v1814_v55 = vmul.f32 %v2657_v36, %v1799_v42  ;;  %v1815_v50 = vmul.f32 %v2657_v36, %v1800_v44  ;;  %v1817_v57 = vmul.f32 %v2657_v36, %v1802_v45  ;;  %v1818_v59 = vmul.f32 %v2657_v36, %v1803_v43 }
 0x3a3   : > { %v1826_v61 = vadd.f32 %v2658_v41, %v1811_v47  ;;  %v1827_v49 = vadd.f32 %v2658_v41, %v1812_v48  ;;  %v1828_v56 = vadd.f32 %v2658_v41, %v1813_v54  ;;  %v1831_v62 = vadd.f32 %v2658_v41, %v1816_v46 }
 0x3a4   : > { %v1829_v63 = vadd.f32 %v2658_v41, %v1814_v55  ;;  %v1830_v53 = vadd.f32 %v2658_v41, %v1815_v50  ;;  %v1832_v60 = vadd.f32 %v2658_v41, %v1817_v57  ;;  %v1833_v0 = vadd.f32 %v2658_v41, %v1818_v59 }
 0x3a5   : > { %vm1834_vm9 = vcmp.ge.f32.partialorder %v1826_v61, 0.0  ;;  %v1842_v1 = vmul.f32 0.01, %v1826_v61  ;;  %vm1835_vm10 = vcmp.ge.f32.partialorder %v1827_v49, 0.0  ;;  %v1843_v58 = vmul.f32 0.01, %v1827_v49 }
 0x3a6   : > { %vm1836_vm11 = vcmp.ge.f32.partialorder %v1828_v56, 0.0  ;;  %v1844_v2 = vmul.f32 0.01, %v1828_v56  ;;  %vm1837_vm12 = vcmp.ge.f32.partialorder %v1829_v63, 0.0  ;;  %v1845_v3 = vmul.f32 0.01, %v1829_v63 }
 0x3a7   : > { %v1850_v4 = vsel %vm1834_vm9, %v1826_v61, %v1842_v1  ;;  %v1851_v5 = vsel %vm1835_vm10, %v1827_v49, %v1843_v58  ;;  %vm1838_vm13 = vcmp.ge.f32.partialorder %v1830_v53, 0.0  ;;  %v1846_v7 = vmul.f32 0.01, %v1830_v53 }
 0x3a8   : > { %1858 = vst.msk [vmem:[%s3658_s15] sm:$0xff] %vm1011_vm5, %v1850_v4  ;;  %2783 = vmatprep.mubr.msk.f32.mxu0 %vm1011_vm5, %v1850_v4  ;;  %1859 = vst.msk [vmem:[%s3658_s15 + $0x8] sm:$0xff] %vm1011_vm5, %v1851_v5  ;;  %v1852_v9 = vsel %vm1836_vm11, %v1828_v56, %v1844_v2  ;;  %v1853_v10 = vsel %vm1837_vm12, %v1829_v63, %v1845_v3  ;;  %vm1839_vm14 = vcmp.ge.f32.partialorder %v1831_v62, 0.0  ;;  %v1847_v12 = vmul.f32 0.01, %v1831_v62 }
 0x3a9   : > { %2784 = vmatmul.mubr.msk.f32.vlgmr.msra.gmra.mxu0 %vm1011_vm5, %v1851_v5  ;;  %1860 = vst.msk [vmem:[%s3658_s15 + $0x10] sm:$0xff] %vm1011_vm5, %v1852_v9  ;;  %1861 = vst.msk [vmem:[%s3658_s15 + $0x18] sm:$0xff] %vm1011_vm5, %v1853_v10  ;;  %v1854_v15 = vsel %vm1838_vm13, %v1830_v53, %v1846_v7  ;;  %vm1840_vm15 = vcmp.ge.f32.partialorder %v1832_v60, 0.0  ;;  %v1848_v16 = vmul.f32 0.01, %v1832_v60  ;;  %vm1841_vm1 = vcmp.ge.f32.partialorder %v1833_v0, 0.0 }
 0x3aa   : > { %2786 = vmatprep.mubr.msk.f32.mxu0 %vm1011_vm5, %v1852_v9  ;;  %1862 = vst.msk [vmem:[%s3658_s15 + $0x20] sm:$0xff] %vm1011_vm5, %v1854_v15  ;;  %v1855_v14 = vsel %vm1839_vm14, %v1831_v62, %v1847_v12  ;;  %v1849_v17 = vmul.f32 0.01, %v1833_v0  ;;  %2801 = vmatpush3.msra.mxu0 %v3701_v11  ;;  %vm2077_vm9 = vcmask 1047559  }
 0x3ab   : > { %1863 = vst.msk [vmem:[%s3658_s15 + $0x28] sm:$0xff] %vm1011_vm5, %v1855_v14  ;;  %v1856_v18 = vsel %vm1840_vm15, %v1832_v60, %v1848_v16  ;;  %2810 = vmatprep.subr.mxu0 %v3701_v11  ;;  %v1997_v60 = vld [vmem:[%s3818_s10 + $0x8] sm:$0xff]  ;;  %v2675_v16 = vld [vmem:[%s3817_s9 + $0x1] ss:$0 sm:$0xff] }
 0x3ac   : > { %1864 = vst.msk [vmem:[%s3658_s15 + $0x30] sm:$0xff] %vm1011_vm5, %v1856_v18  ;;  %v1857_v13 = vsel %vm1841_vm1, %v1833_v0, %v1849_v17 }
 0x3ad   : > { %2787 = vmatmul.mubr.msk.f32.gmra.mxu0 %vm1011_vm5, %v1853_v10  ;;  %1865 = vst.msk [vmem:[%s3658_s15 + $0x38] sm:$0xff] %vm1011_vm5, %v1857_v13 }
 0x3ae   : > { %2789 = vmatprep.mubr.msk.f32.mxu0 %vm1011_vm5, %v1854_v15  ;;  %v2669_v15 = vld [vmem:[%s3817_s9] ss:$0 sm:$0xff] }
 0x3b1   : > { %2790 = vmatmul.mubr.msk.f32.gmra.mxu0 %vm1011_vm5, %v1855_v14 }
 0x3b2   : > { %2792 = vmatprep.mubr.msk.f32.mxu0 %vm1011_vm5, %v1856_v18 }
 0x3b5   : > { %2793 = vmatmul.mubr.msk.f32.gmra.mxu0 %vm1011_vm5, %v1857_v13 }
 0x469   : > { %v2785_v19 = vpop.f32.mrf.mxu0 }
 0x46a   : > { %2258 = vperm.xlu0 %2987, %v2785_v19   ;;  %2011 = vperm.xlu1 %2986, %v2785_v19  }
 0x46b   : > { %v1957_v20 = vpop.f32.mrf.mxu0 }
 0x46d   : > { %v2788_v21 = vpop.f32.mrf.mxu0 }
 0x46e   : > { %2988 = vset.pattern.permute.xlu0 %v3085_v52  ;;  %2989 = vset.pattern.permute.xlu1 %v3084_v51 }
 0x46f   : > { %2255 = vperm.xlu1 %2989, %v1957_v20   ;;  %2008 = vperm.xlu0 %2988, %v1957_v20   ;;  %v1967_v6 = vpop.f32.mrf.mxu0 }
 0x471   : > { %v2791_v22 = vpop.f32.mrf.mxu0 }
 0x473   : > { %2264 = vperm.xlu1 %2989, %v2788_v21   ;;  %2017 = vperm.xlu0 %2988, %v2788_v21   ;;  %v1977_v24 = vpop.f32.mrf.mxu0 }
 0x475   : > { %v2794_v25 = vpop.f32.mrf.mxu0 }
 0x477   : > { %2990 = vset.pattern.permute.xlu1 %v3085_v52  ;;  %2023 = vperm.xlu0 %2988, %v2791_v22   ;;  %v1987_v23 = vpop.f32.mrf.mxu0 }
 0x478   : > { %2014 = vperm.xlu1 %2990, %v1967_v6  }
 0x47b   : > { %2029 = vperm.xlu0 %2988, %v2794_v25  }
 0x47c   : > { %2991 = vset.pattern.permute.xlu1 %v3084_v51 }
 0x47d   : > { %2261 = vperm.xlu1 %2991, %v1967_v6  }
 0x47f   : > { %2994 = vset.pattern.permute.xlu0 %v3084_v51 }
 0x480   : > { %2270 = vperm.xlu0 %2994, %v2791_v22  }
 0x481   : > { %2992 = vset.pattern.permute.xlu1 %v3085_v52 }
 0x482   : > { %2020 = vperm.xlu1 %2992, %v1977_v24  }
 0x484   : > { %2997 = vset.pattern.permute.xlu0 %v3085_v52 }
 0x485   : > { %2168 = vperm.xlu0 %2997, %v2669_v15  }
 0x486   : > { %2993 = vset.pattern.permute.xlu1 %v3084_v51 }
 0x487   : > { %2267 = vperm.xlu1 %2993, %v1977_v24  }
 0x48b   : > { %2995 = vset.pattern.permute.xlu1 %v3085_v52 }
 0x48c   : > { %2026 = vperm.xlu1 %2995, %v1987_v23  }
 0x490   : > { %2996 = vset.pattern.permute.xlu1 %v3084_v51 }
 0x491   : > { %2273 = vperm.xlu1 %2996, %v1987_v23  }
 0x495   : > { %2276 = vperm.xlu1 %2996, %v2794_v25  }
 0x499   : > { %2998 = vset.pattern.permute.xlu1 %v3085_v52 }
 0x49a   : > { %2401 = vperm.xlu1 %2998, %v2675_v16  }
 0x4e5   : > { %v2012_v51 = vpop.permute.xlu1 %2011  ;;  %v2259_v28 = vpop.permute.xlu0 %2258 }
 0x4e6   : > { %v2040_v37 = vrot.slane %v2012_v51, %v3227_v8  ;;  %v2285_v48 = vrot.slane %v2259_v28, %v3227_v8 }
 0x4ea   : > { %v2256_v27 = vpop.permute.xlu1 %2255  ;;  %v2009_v31 = vpop.permute.xlu0 %2008 }
 0x4eb   : > { %v2036_v34 = vrot.slane %v2009_v31, %v3227_v8  ;;  %v2281_v44 = vrot.slane %v2256_v27, %v3227_v8 }
 0x4ed   : > { %v2066_v52 = vsel %vm2065_vm2, %v2040_v37, %v2036_v34  ;;  %v2310_v57 = vsel %vm2065_vm2, %v2285_v48, %v2281_v44 }
 0x4ee   : > { %v2265_v29 = vpop.permute.xlu1 %2264  ;;  %v2018_v33 = vpop.permute.xlu0 %2017 }
 0x4ef   : > { %v2048_v42 = vrot.slane %v2018_v33, %v3227_v8  ;;  %v2293_v63 = vrot.slane %v2265_v29, %v3227_v8 }
 0x4f2   : > { %v2024_v38 = vpop.permute.xlu0 %2023 }
 0x4f3   : > { %v2015_v30 = vpop.permute.xlu1 %2014  ;;  %v2056_v54 = vrot.slane %v2024_v38, %v3227_v8 }
 0x4f4   : > { %v2044_v36 = vrot.slane %v2015_v30, %v3227_v8 }
 0x4f6   : > { %v2068_v39 = vsel %vm2067_vm3, %v2044_v36, %v2066_v52  ;;  %v2030_v43 = vpop.permute.xlu0 %2029 }
 0x4f7   : > { %v2070_v45 = vsel %vm2069_vm4, %v2048_v42, %v2068_v39  ;;  %v2064_v59 = vrot.slane %v2030_v43, %v3227_v8 }
 0x4f8   : > { %v2262_v32 = vpop.permute.xlu1 %2261 }
 0x4f9   : > { %v2289_v46 = vrot.slane %v2262_v32, %v3227_v8 }
 0x4fb   : > { %v2311_v49 = vsel %vm2067_vm3, %v2289_v46, %v2310_v57  ;;  %v2271_v0 = vpop.permute.xlu0 %2270 }
 0x4fc   : > { %v2312_v58 = vsel %vm2069_vm4, %v2293_v63, %v2311_v49  ;;  %v2301_v4 = vrot.slane %v2271_v0, %v3227_v8 }
 0x4fd   : > { %v2021_v35 = vpop.permute.xlu1 %2020 }
 0x4fe   : > { %v2052_v40 = vrot.slane %v2021_v35, %v3227_v8 }
 0x500   : > { %v2072_v47 = vsel %vm2071_vm6, %v2052_v40, %v2070_v45  ;;  %v2169_v13 = vpop.permute.xlu0 %2168 }
 0x501   : > { %v2074_v61 = vsel %vm2073_vm7, %v2056_v54, %v2072_v47 }
 0x502   : > { %v2268_v41 = vpop.permute.xlu1 %2267 }
 0x503   : > { %v2297_v56 = vrot.slane %v2268_v41, %v3227_v8 }
 0x505   : > { %v2313_v2 = vsel %vm2071_vm6, %v2297_v56, %v2312_v58 }
 0x506   : > { %v2314_v9 = vsel %vm2073_vm7, %v2301_v4, %v2313_v2 }
 0x507   : > { %v2027_v55 = vpop.permute.xlu1 %2026 }
 0x508   : > { %v2060_v50 = vrot.slane %v2027_v55, %v3227_v8 }
 0x50a   : > { %v2076_v62 = vsel %vm2075_vm8, %v2060_v50, %v2074_v61 }
 0x50b   : > { %v2078_v53 = vsel %vm2077_vm9, %v2064_v59, %v2076_v62 }
 0x50c   : > { %2795 = vmatprep.subr.mxu1 %v2078_v53  ;;  %v2274_v1 = vpop.permute.xlu1 %2273 }
 0x50d   : > { %2796 = vmatpush3.msra.mxu1 %v2078_v53  ;;  %v2305_v3 = vrot.slane %v2274_v1, %v3227_v8 }
 0x50e   : > { %2798 = vmatmul.mubr.msk.f32.vlgmr.msra.gmra.mxu1 %vm1011_vm5, %v1997_v60 }
 0x50f   : > { %2807 = vmatprep.mubr.msk.f32.mxu1 %vm1011_vm5, %v1996_v26  ;;  %v2315_v10 = vsel %vm2075_vm8, %v2305_v3, %v2314_v9 }
 0x510   : > { %v2277_v5 = vpop.permute.xlu1 %2276 }
 0x511   : > { %v2309_v7 = vrot.slane %v2277_v5, %v3227_v8 }
 0x513   : > { %v2316_v12 = vsel %vm2077_vm9, %v2309_v7, %v2315_v10 }
 0x514   : > { %2805 = vmatprep.subr.mxu1 %v2316_v12 }
 0x515   : > { %2806 = vmatpush3.msra.mxu1 %v2316_v12  ;;  %v2402_v22 = vpop.permute.xlu1 %2401 }
 0x516   : > { %2808 = vmatmul.mubr.msk.f32.vlgmr.msra.gmra.mxu1 %vm1011_vm5, %v1997_v60 }
 0x5ce   : > { %v2799_v8 = vpop.f32.mrf.mxu1 }
 0x5d0   : > { %v2152_v14 = vpop.f32.mrf.mxu1 }
 0x5d1   : > { %2802 = vmatprep.mubr.msk.f32.mxu0 %vm1011_vm5, %v2152_v14 }
 0x5d2   : > { %2803 = vmatmul.mubr.msk.f32.vlgmr.msra.gmra.mxu0 %vm1011_vm5, %v2799_v8 }
 0x5d3   : > { %2811 = vmatpush3.msra.mxu0 %v3701_v11 }
 0x5d6   : > { %v2809_v17 = vpop.f32.mrf.mxu1 }
 0x5d8   : > { %v2384_v18 = vpop.f32.mrf.mxu1 }
 0x5d9   : > { %2812 = vmatprep.mubr.msk.f32.mxu0 %vm1011_vm5, %v2384_v18 }
 0x5da   : > { %2813 = vmatmul.mubr.msk.f32.vlgmr.msra.gmra.mxu0 %vm1011_vm5, %v2809_v17 }
 0x692   : > { %v2804_v19 = vpop.f32.mrf.mxu0 }
 0x693   : > { %v2249_v20 = vadd.f32 %v2804_v19, %v2169_v13 }
 0x694   : > { %v2243_v21 = vpop.f32.mrf.mxu0 }
 0x695   : > { %2253 = vst.msk [vmem:[%s456_s30 + $0x8] sm:$0xff] %vm501_vm0, %v2249_v20  ;;  %v2244_v6 = vadd.f32 %v2243_v21, %v2169_v13 }
 0x697   : > { %2252 = vst.msk [vmem:[%s456_s30] sm:$0xff] %vm501_vm0, %v2244_v6 }
 0x69a   : > { %v2814_v24 = vpop.f32.mrf.mxu0 }
 0x69b   : > { %v2482_v25 = vadd.f32 %v2814_v24, %v2402_v22 }
 0x69c   : > { %v2476_v23 = vpop.f32.mrf.mxu0 }
 0x69d   : > { %v2477_v26 = vadd.f32 %v2476_v23, %v2402_v22  ;;  %2679 = vst.msk [vmem:[%s456_s30 + $0x18] sm:$0xff] %vm501_vm0, %v2482_v25 }
 0x69f   : > { %2678 = vst.msk [vmem:[%s456_s30 + $0x10] sm:$0xff] %vm501_vm0, %v2477_v26 }
 0x6a0   : > { %3026 = shalt.err (!%p3023_p3)
}
 0x6a1   : > { %s3027_s24 = scalar_lea.hbm %s3764_s16, 512  ;;  %s3031_s0 = scalar_lea.hbm %s3821_s13, 1024 }
 0x6a2   : > { %p3028_p4 = scmp.ne.s32.totalorder %s3764_s16, %s3027_s24  ;;  %p3032_p9 = scmp.lt.s32.totalorder %s3764_s16, %s3821_s13 }
 0x6a3   : > { %p3033_p10 = scmp.lt.s32.totalorder %s3031_s0, %s3027_s24 }
 0x6a4   : > { %p3029_p7 = pnand %p3028_p4, %p3196_p5 }
 0x6a5   : > { %p3034_p11 = por %p3033_p10, %p3032_p9 }
 0x6a6   : > { %p3030_p8 = pneg %p3029_p7 }
 0x6a8   : > { %p3035_p12 = pnand %p3034_p11, %p3030_p8 }
 0x6aa   : > { %3038 = shalt.err (!%p3035_p12)
}
 0x6ab   : > { %s3087_s1 = smov 128   ;;  %s3836_s2 = smov 8  }
 0x6ac   : > { %2815 = dma.vmem_to_hbm [thread:$0]  (%p3196_p5), %s3758_s23, 512, %s3764_s16, %s3767_s20, %s3087_s1, %s3087_s1, %s3836_s2  }
 0x6ad PF: > { %p2821_p13 = scmp.ge.s32.totalorder %s3073_s28, 2  ;;  %s2533_s29 = sand.u32 1, %s3061_s25  }
 0x6ae   : > { %s2534_s24 = scalar_lea.sflag [#allocation4], %s2533_s29 }
 0x6af   : > { %p2818_p0 = pnand %p2821_p13, %p3200_p6 }
 0x6b1   : > { %p2819_p1 = pneg %p2818_p0 }
 0x6b3   : > { %3056 = dma.done.wait (%p2819_p1), %s2534_s24, 512  }
 0x6b4   : > { %3058 = vsyncadd (%p2819_p1), %s2534_s24, 4294966784  ;;  %p24_p2 = scmp.ge.s32.totalorder %s3183_s14, 4   ;;  %s3837_s25 = smov %s3065_s26 }
 0x6b5   : > { %s3838_s26 = smov %s3069_s27  ;;  %s3839_s27 = smov %s3194_s17 }
 0x6b6   : > { %s3840_s28 = smov %s3183_s14  ;;  %26 = sbr.rel (!%p24_p2) target bundleno = 7 (0x7), region = 125 }
 0x6bb   :  { %2539 = vsyncpa [#allocation4], 1 }
 0x6bc   :  { %2541 = vsyncpa [#allocation4 + $0x1], 1 }

// kernel: decoder_forward.4
= control target key start
LH: loop header
LB: loop body
LE: loop exit
PB: predicated region body
PF: predicated region fallthrough
CT: control target
= control target key end

     0   :  { %s10660_s0 = inlined_call_operand.vmem [shape: f32[2,8,8,8], index: 0, kind: input, shape index: {}]   ;;  %s10661_s1 = inlined_call_operand.vmem [shape: f32[2,16,16,4], index: 1, kind: input, shape index: {}]   ;;  %s10662_s2 = inlined_call_operand.vmem [shape: bf16[8,16], index: 2, kind: input, shape index: {}]   ;;  %s10663_s3 = inlined_call_operand.vmem [shape: f32[1,16], index: 3, kind: input, shape index: {}]   ;;  %s10664_s4 = inlined_call_operand.vmem [shape: bf16[3,24,4], index: 4, kind: input, shape index: {}]   ;;  %s10665_s5 = inlined_call_operand.vmem [shape: f32[1,4], index: 5, kind: input, shape index: {}]   ;;  %s10666_s6 = inlined_call_operand.vmem [shape: f32[1,4], index: 6, kind: input, shape index: {}]   ;;  %s10667_s7 = inlined_call_operand.vmem [shape: f32[1,4], index: 7, kind: input, shape index: {}]   ;;  %s10668_s8 = inlined_call_operand.vmem [shape: f32[4,2], index: 8, kind: input, shape index: {}]   ;;  %s10669_s9 = inlined_call_operand.vmem [shape: f32[2,1,1], index: 9, kind: input, shape index: {}]   ;;  %s10670_s10 = inlined_call_operand.vmem [shape: f32[16,16], index: 10, kind: input, shape index: {}, may-alias: {10,11}]   ;;  %s10671_s11 = inlined_call_operand.vmem [shape: f32[16,16], index: 11, kind: input, shape index: {}, may-alias: {10,11}]   ;;  %s10672_s12 = inlined_call_operand.vmem [shape: f32[2,16,16,4], index: 12, kind: output, shape index: {0}]   ;;  %s10673_s13 = inlined_call_operand.hbm [shape: f32[2,2,16,16], index: 13, kind: output, shape index: {1}]  }
   0x1   :  { %10704 = sst [smem:[#allocation54_spill]] %s10660_s0 }
   0x2   :  { %10705 = sst [smem:[#allocation55_spill]] %s10661_s1 }
   0x3   :  { %10706 = sst [smem:[#allocation56_spill]] %s10662_s2 }
   0x4   :  { %19 = vsyncpa [#allocation4], 0 }
   0x5   :  { %21 = vsyncpa [#allocation4 + $0x1], 0  ;;  %s7593_s25 = smov 0   ;;  %s7595_s26 = smov 0  }
   0x6   :  { %s7597_s27 = smov 0   ;;  %s7599_s28 = smov 0  }
   0x7 LB: > { %s7614_s29 = sadd.s32 4294967295, %s7509_s28   ;;  %s6463_s30 = sadd.s32 4294967294, %s7509_s28   ;;  %s7509_s28 = sphi %s7599_s28, %s10819_s28   ;;  %s7505_s27 = sphi %s7597_s27, %s10818_s27   ;;  %s7501_s26 = sphi %s7595_s26, %s10817_s26   ;;  %s7497_s25 = sphi %s7593_s25, %s10816_s25  }
   0x8   : > { %s7618_s14 = sadd.s32 1, %s7509_s28   ;;  %s322_s15 = sadd.s32 1, %s7505_s27 }
   0x9   : > { %s319_s16 = ssub.s32 %s7509_s28, %s7618_s14  ;;  %p332_p0 = scmp.ne.s32.totalorder %s7505_s27, %s7501_s26 }
   0xa   : > { %p320_p1 = scmp.eq.s32.totalorder %s319_s16, 0  ;;  %p333_p2 = scmp.eq.s32.totalorder %s7614_s29, 1 }
   0xb   : > { %p338_p3 = scmp.ne.s32.totalorder %s7501_s26, %s7497_s25  ;;  %p339_p4 = scmp.eq.s32.totalorder %s6463_s30, 1 }
   0xc   : > { %s7629_s17 = scalar_select %p320_p1, %s7505_s27, %s322_s15  }
   0xd   : > { %p7631_p5 = por %p333_p2, %p332_p0  ;;  %p7635_p6 = por %p339_p4, %p338_p3 }
   0xe   : > { %p6466_p7 = scmp.ge.s32.totalorder %s7509_s28, 1  ;;  %p403_p8 = scmp.lt.s32.totalorder %s7509_s28, 3 }
  0x10   : > { %p404_p9 = pnand %p6466_p7, %p403_p8 }
  0x12   : > { %407 = sbr.rel (%p404_p9) target bundleno = 2161 (0x871), region = 68 }
  0x17   : > { %s10709_s2 = sld [smem:[#allocation56_spill]]  ;;  %vm506_vm0 = vcmask 1043456   ;;  %p457_p10 = scmp.lt.s32.totalorder %s7614_s29, 1  ;;  %vm493_vm1 = vcmask 64512   ;;  %vm1746_vm2 = vcmask 58368   ;;  %v7511_v2 = vmov 0.0  }
  0x18   : > { %1744 = vst.msk [vmem:[#allocation2] sm:$0xff] %vm493_vm1, %v7511_v2  ;;  %1745 = vst.msk [vmem:[#allocation2 + $0x8] sm:$0xff] %vm493_vm1, %v7511_v2  ;;  %s10710_s0 = sld [smem:[#allocation54_spill]]  ;;  %vm1752_vm3 = vcmask 57344   ;;  %s10703_s30 = smov 8   ;;  %vm2984_vm4 = vcmask 130048  }
  0x19   : > { %s7648_s22 = scalar_select %p457_p10, %s7614_s29, 1  ;;  %1747 = vst.msk [vmem:[#allocation2 + $0x10] sm:$0x3] %vm1746_vm2, %v7511_v2  ;;  %1751 = vst.msk [vmem:[#allocation2 + $0x1a8] sm:$0x3] %vm1746_vm2, %v7511_v2  ;;  %vm3045_vm5 = vcmask 195584  }
  0x1a   : > { %1749 = vst.msk [vmem:[#allocation2 + $0x198] sm:$0xff] %vm493_vm1, %v7511_v2  ;;  %1750 = vst.msk [vmem:[#allocation2 + $0x1a0] sm:$0xff] %vm493_vm1, %v7511_v2  ;;  %s10711_s1 = sld [smem:[#allocation55_spill]]  ;;  %s7514_s15 = smov 16   ;;  %vm1487_vm6 = vcmask 1040384   ;;  %vm2366_vm7 = vcmask 31744  }
  0x1b   : > { %s6593_s23 = sshll.u32 %s7648_s22, 6  ;;  %s6594_s24 = sshll.u32 %s7648_s22, 8  ;;  %1771 = vst.msk [vmem:[#allocation2 + $0x11] sm:$0x1] %vm1752_vm3, %v7511_v2  ;;  %1753 = vst.msk [vmem:[#allocation2] sm:$0x1] %vm1752_vm3, %v7511_v2 }
  0x1c   : > { %1754 = vst.msk [vmem:[#allocation2 + $0x18] sm:$0x1] %vm1752_vm3, %v7511_v2  ;;  %1755 = vst.msk [vmem:[#allocation2 + $0x30] sm:$0x1] %vm1752_vm3, %v7511_v2  ;;  %s7516_s21 = smov 124   ;;  %vm2559_vm8 = vcmask 64544  }
  0x1d   : > { %v485_v0 = vld [vmem:[%s10709_s2] sm:$0xf]  ;;  %1756 = vst.msk [vmem:[#allocation2 + $0x48] sm:$0x1] %vm1752_vm3, %v7511_v2  ;;  %1757 = vst.msk [vmem:[#allocation2 + $0x60] sm:$0x1] %vm1752_vm3, %v7511_v2 }
  0x1e   : > { %6901 = vmatprep.subr.msk.bf16.mxu0 %vm506_vm0, %v485_v0  ;;  %v508_v1 = vsel %vm506_vm0, %v485_v0, 0  ;;  %s461_s16 = scalar_lea.vmem %s10710_s0, %s6593_s23  ;;  %s7512_s23 = smov 4   ;;  %1758 = vst.msk [vmem:[#allocation2 + $0x78] sm:$0x1] %vm1752_vm3, %v7511_v2  ;;  %1759 = vst.msk [vmem:[#allocation2 + $0x90] sm:$0x1] %vm1752_vm3, %v7511_v2 }
  0x1f   : > { %6706 = vmatpush3.bf16.msra.mxu0 %v508_v1  ;;  %v473_v3 = vld [vmem:[%s461_s16] sm:$0xff]  ;;  %v474_v4 = vld [vmem:[%s461_s16 + $0x8] sm:$0xff]  ;;  %v475_v5 = vld [vmem:[%s461_s16 + $0x10] sm:$0xff]  ;;  %1760 = vst.msk [vmem:[#allocation2 + $0xa8] sm:$0x1] %vm1752_vm3, %v7511_v2  ;;  %s6596_s22 = sshll.u32 %s7614_s29, 9 }
  0x20   : > { %s7670_s2 = scalar_lea.vmem %s10711_s1, %s6594_s24  ;;  %v481_v6 = vpack.c.bf16 %v474_v4, %v473_v3  ;;  %v476_v7 = vld [vmem:[%s461_s16 + $0x18] sm:$0xff]  ;;  %v477_v8 = vld [vmem:[%s461_s16 + $0x20] sm:$0xff]  ;;  %v478_v9 = vld [vmem:[%s461_s16 + $0x28] sm:$0xff]  ;;  %1761 = vst.msk [vmem:[#allocation2 + $0xc0] sm:$0x1] %vm1752_vm3, %v7511_v2 }
  0x21   : > { %v482_v10 = vpack.c.bf16 %v476_v7, %v475_v5  ;;  %v483_v11 = vpack.c.bf16 %v478_v9, %v477_v8  ;;  %v2399_v12 = vld [vmem:[%s7670_s2] sm:$0xff]  ;;  %v2400_v13 = vld [vmem:[%s7670_s2 + $0x8] sm:$0xff]  ;;  %v2401_v14 = vld [vmem:[%s7670_s2 + $0x10] sm:$0xff]  ;;  %1762 = vst.msk [vmem:[#allocation2 + $0xd8] sm:$0x1] %vm1752_vm3, %v7511_v2  ;;  %v10674_v5 = vlaneseq }
  0x22   : > { %6707 = vmatprep.mubr.msk.bf16.mxu0 %vm493_vm1, %v481_v6  ;;  %2463 = vrot.lane.b32.xlu0 %v2399_v12, %s7512_s23  ;;  %v479_v15 = vld [vmem:[%s461_s16 + $0x30] sm:$0xff]  ;;  %v480_v16 = vld [vmem:[%s461_s16 + $0x38] sm:$0xff]  ;;  %v2403_v19 = vld [vmem:[%s7670_s2 + $0x20] sm:$0xff]  ;;  %1763 = vst.msk [vmem:[#allocation2 + $0xf0] sm:$0x1] %vm1752_vm3, %v7511_v2  ;;  %s7518_s16 = smov 120  }
  0x23   : > { %6708 = vmatmul.mubr.msk.bf16.vlgmr.msra.gmra.mxu0 %vm493_vm1, %v482_v10  ;;  %2465 = vrot.lane.b32.xlu1 %v2400_v13, %s7512_s23  ;;  %v2402_v17 = vld [vmem:[%s7670_s2 + $0x18] sm:$0xff]  ;;  %v484_v18 = vpack.c.bf16 %v480_v16, %v479_v15  ;;  %v2404_v20 = vld [vmem:[%s7670_s2 + $0x28] sm:$0xff]  ;;  %v2405_v21 = vld [vmem:[%s7670_s2 + $0x30] sm:$0xff]  ;;  %1764 = vst.msk [vmem:[#allocation2 + $0x108] sm:$0x1] %vm1752_vm3, %v7511_v2  ;;  %v7841_v8 = vshrl.u32 %v10674_v5, 7 }
  0x24   : > { %6711 = vmatprep.mubr.msk.bf16.mxu0 %vm493_vm1, %v483_v11  ;;  %v2406_v22 = vld [vmem:[%s7670_s2 + $0x38] sm:$0xff]  ;;  %v2407_v23 = vld [vmem:[%s7670_s2 + $0x40] sm:$0xff]  ;;  %v2408_v24 = vld [vmem:[%s7670_s2 + $0x48] sm:$0xff]  ;;  %1765 = vst.msk [vmem:[#allocation2 + $0x120] sm:$0x1] %vm1752_vm3, %v7511_v2 }
  0x25   : > { %v2409_v25 = vld [vmem:[%s7670_s2 + $0x50] sm:$0xff]  ;;  %v2410_v26 = vld [vmem:[%s7670_s2 + $0x58] sm:$0xff]  ;;  %v2411_v27 = vld [vmem:[%s7670_s2 + $0x60] sm:$0xff]  ;;  %1766 = vst.msk [vmem:[#allocation2 + $0x138] sm:$0x1] %vm1752_vm3, %v7511_v2 }
  0x26   : > { %2467 = vrot.lane.b32.xlu0 %v2401_v14, %s7512_s23  ;;  %v2412_v28 = vld [vmem:[%s7670_s2 + $0x68] sm:$0xff]  ;;  %v2413_v29 = vld [vmem:[%s7670_s2 + $0x70] sm:$0xff]  ;;  %v2414_v30 = vld [vmem:[%s7670_s2 + $0x78] sm:$0xff]  ;;  %1767 = vst.msk [vmem:[#allocation2 + $0x150] sm:$0x1] %vm1752_vm3, %v7511_v2 }
  0x27   : > { %2469 = vrot.lane.b32.xlu1 %v2402_v17, %s7512_s23  ;;  %v2415_v31 = vld [vmem:[%s7670_s2 + $0x80] sm:$0xff]  ;;  %v2416_v32 = vld [vmem:[%s7670_s2 + $0x88] sm:$0xff]  ;;  %v2417_v33 = vld [vmem:[%s7670_s2 + $0x90] sm:$0xff]  ;;  %1768 = vst.msk [vmem:[#allocation2 + $0x168] sm:$0x1] %vm1752_vm3, %v7511_v2 }
  0x28   : > { %v2418_v34 = vld [vmem:[%s7670_s2 + $0x98] sm:$0xff]  ;;  %v2419_v35 = vld [vmem:[%s7670_s2 + $0xa0] sm:$0xff]  ;;  %v2420_v36 = vld [vmem:[%s7670_s2 + $0xa8] sm:$0xff]  ;;  %1769 = vst.msk [vmem:[#allocation2 + $0x180] sm:$0x1] %vm1752_vm3, %v7511_v2 }
  0x29   : > { %v2421_v37 = vld [vmem:[%s7670_s2 + $0xb0] sm:$0xff]  ;;  %v2422_v38 = vld [vmem:[%s7670_s2 + $0xb8] sm:$0xff]  ;;  %v2423_v39 = vld [vmem:[%s7670_s2 + $0xc0] sm:$0xff]  ;;  %1770 = vst.msk [vmem:[#allocation2 + $0x198] sm:$0x1] %vm1752_vm3, %v7511_v2 }
  0x2a   : > { %2471 = vrot.lane.b32.xlu0 %v2403_v19, %s7512_s23  ;;  %v2424_v40 = vld [vmem:[%s7670_s2 + $0xc8] sm:$0xff]  ;;  %v2425_v41 = vld [vmem:[%s7670_s2 + $0xd0] sm:$0xff]  ;;  %v2427_v42 = vld [vmem:[%s7670_s2 + $0xe0] sm:$0xff]  ;;  %1772 = vst.msk [vmem:[#allocation2 + $0x29] sm:$0x1] %vm1752_vm3, %v7511_v2 }
  0x2b   : > { %6712 = vmatmul.mubr.msk.bf16.gmra.mxu0 %vm493_vm1, %v484_v18  ;;  %2473 = vrot.lane.b32.xlu1 %v2404_v20, %s7512_s23  ;;  %v2632_v43 = vld [vmem:[#allocation2 + $0x1] sm:$0xff]  ;;  %v2633_v44 = vld [vmem:[#allocation2 + $0x9] sm:$0xff]  ;;  %1773 = vst.msk [vmem:[#allocation2 + $0x41] sm:$0x1] %vm1752_vm3, %v7511_v2  ;;  %1774 = vst.msk [vmem:[#allocation2 + $0x59] sm:$0x1] %vm1752_vm3, %v7511_v2 }
  0x2c   : > { %v6955_v45 = vpack.i.bf16 %v2633_v44, %v2632_v43  ;;  %1775 = vst.msk [vmem:[#allocation2 + $0x71] sm:$0x1] %vm1752_vm3, %v7511_v2  ;;  %1776 = vst.msk [vmem:[#allocation2 + $0x89] sm:$0x1] %vm1752_vm3, %v7511_v2  ;;  %v2664_v46 = vld [vmem:[#allocation2 + $0x2] sm:$0xff]  ;;  %v2665_v47 = vld [vmem:[#allocation2 + $0xa] sm:$0xff] }
  0x2d   : > { %1777 = vst.msk [vmem:[#allocation2 + $0xa1] sm:$0x1] %vm1752_vm3, %v7511_v2  ;;  %1778 = vst.msk [vmem:[#allocation2 + $0xb9] sm:$0x1] %vm1752_vm3, %v7511_v2  ;;  %v2426_v48 = vld [vmem:[%s7670_s2 + $0xd8] sm:$0xff]  ;;  %v6960_v49 = vpack.i.bf16 %v2665_v47, %v2664_v46  ;;  %v2428_v50 = vld [vmem:[%s7670_s2 + $0xe8] sm:$0xff] }
  0x2e   : > { %2475 = vrot.lane.b32.xlu0 %v2405_v21, %s7512_s23  ;;  %1779 = vst.msk [vmem:[#allocation2 + $0xd1] sm:$0x1] %vm1752_vm3, %v7511_v2  ;;  %1780 = vst.msk [vmem:[#allocation2 + $0xe9] sm:$0x1] %vm1752_vm3, %v7511_v2  ;;  %v7515_v3 = vmov 1966171168  }
  0x2f   : > { %2477 = vrot.lane.b32.xlu1 %v2406_v22, %s7512_s23  ;;  %1781 = vst.msk [vmem:[#allocation2 + $0x101] sm:$0x1] %vm1752_vm3, %v7511_v2  ;;  %1782 = vst.msk [vmem:[#allocation2 + $0x119] sm:$0x1] %vm1752_vm3, %v7511_v2  ;;  %v585_v4 = vunpack.c.l.s4 %v7515_v3  ;;  %v7846_v13 = vld [vmem:[%s10663_s3] ss:$0 sm:$0xff] }
  0x30   : > { %1783 = vst.msk [vmem:[#allocation2 + $0x131] sm:$0x1] %vm1752_vm3, %v7511_v2  ;;  %1784 = vst.msk [vmem:[#allocation2 + $0x149] sm:$0x1] %vm1752_vm3, %v7511_v2  ;;  %v2600_v14 = vld [vmem:[#allocation2] sm:$0xff]  ;;  %v2601_v15 = vld [vmem:[#allocation2 + $0x8] sm:$0xff] }
  0x31   : > { %1785 = vst.msk [vmem:[#allocation2 + $0x161] sm:$0x1] %vm1752_vm3, %v7511_v2  ;;  %1786 = vst.msk [vmem:[#allocation2 + $0x179] sm:$0x1] %vm1752_vm3, %v7511_v2  ;;  %v586_v7 = vunpack.c.0.s8 %v585_v4 }
  0x32   : > { %2479 = vrot.lane.b32.xlu0 %v2407_v23, %s7512_s23  ;;  %1787 = vst.msk [vmem:[#allocation2 + $0x191] sm:$0x1] %vm1752_vm3, %v7511_v2  ;;  %1788 = vst.msk [vmem:[#allocation2 + $0x1a9] sm:$0x1] %vm1752_vm3, %v7511_v2 }
  0x33   : > { %2481 = vrot.lane.b32.xlu1 %v2408_v24, %s7512_s23  ;;  %10723 = vst [vmem:[#allocation17_spill] sm:$0xff] %v7841_v8  ;;  %v7849_v16 = vsub.s32 %v586_v7, %v7841_v8 }
  0x36   : > { %2483 = vrot.lane.b32.xlu0 %v2409_v25, %s7512_s23 }
  0x37   : > { %2485 = vrot.lane.b32.xlu1 %v2410_v26, %s7512_s23 }
  0x3a   : > { %2487 = vrot.lane.b32.xlu0 %v2411_v27, %s7512_s23 }
  0x3b   : > { %2489 = vrot.lane.b32.xlu1 %v2412_v28, %s7512_s23 }
  0x3e   : > { %2491 = vrot.lane.b32.xlu0 %v2413_v29, %s7512_s23  ;;  %v7863_v29 = vsub.s32 0, %v7841_v8 }
  0x3f   : > { %2493 = vrot.lane.b32.xlu1 %v2414_v30, %s7512_s23 }
  0x42   : > { %2495 = vrot.lane.b32.xlu0 %v2415_v31, %s7512_s23 }
  0x43   : > { %2497 = vrot.lane.b32.xlu1 %v2416_v32, %s7512_s23 }
  0x46   : > { %2499 = vrot.lane.b32.xlu0 %v2417_v33, %s7512_s23 }
  0x47   : > { %2501 = vrot.lane.b32.xlu1 %v2418_v34, %s7512_s23 }
  0x4a   : > { %2503 = vrot.lane.b32.xlu0 %v2419_v35, %s7512_s23 }
  0x4b   : > { %2505 = vrot.lane.b32.xlu1 %v2420_v36, %s7512_s23 }
  0x4e   : > { %2507 = vrot.lane.b32.xlu0 %v2421_v37, %s7512_s23 }
  0x4f   : > { %2509 = vrot.lane.b32.xlu1 %v2422_v38, %s7512_s23 }
  0x52   : > { %2511 = vrot.lane.b32.xlu0 %v2423_v39, %s7512_s23 }
  0x53   : > { %2513 = vrot.lane.b32.xlu1 %v2424_v40, %s7512_s23 }
  0x56   : > { %2515 = vrot.lane.b32.xlu0 %v2425_v41, %s7512_s23 }
  0x57   : > { %2517 = vrot.lane.b32.xlu1 %v2426_v48, %s7512_s23 }
  0x5a   : > { %2519 = vrot.lane.b32.xlu0 %v2427_v42, %s7512_s23 }
  0x5b   : > { %2521 = vrot.lane.b32.xlu1 %v2428_v50, %s7512_s23 }
  0x5e   : > { %6956 = vrot.lane.b32.xlu0 %v6955_v45, %s10703_s30 }
  0x62   : > { %6961 = vrot.lane.b32.xlu0 %v6960_v49, %s7514_s15 }
  0x94   : > { %v7810_v51 = vpop.permute.xlu0 %2463 }
  0x98   : > { %v7812_v52 = vpop.permute.xlu0 %2467 }
  0x99   : > { %10712 = vst [vmem:[#allocation6_spill] sm:$0xff] %v7812_v52 }
  0x9c   : > { %v7814_v53 = vpop.permute.xlu0 %2471 }
  0xa0   : > { %v7816_v54 = vpop.permute.xlu0 %2475 }
  0xa1   : > { %10713 = vst [vmem:[#allocation7_spill] sm:$0xff] %v7816_v54 }
  0xa4   : > { %v7818_v55 = vpop.permute.xlu0 %2479 }
  0xa8   : > { %v7820_v56 = vpop.permute.xlu0 %2483 }
  0xa9   : > { %10714 = vst [vmem:[#allocation8_spill] sm:$0xff] %v7820_v56 }
  0xac   : > { %v7822_v57 = vpop.permute.xlu0 %2487 }
  0xb0   : > { %v7824_v58 = vpop.permute.xlu0 %2491 }
  0xb1   : > { %10715 = vst [vmem:[#allocation9_spill] sm:$0xff] %v7824_v58 }
  0xb4   : > { %v7826_v59 = vpop.permute.xlu0 %2495 }
  0xb5   : > { %10716 = vst [vmem:[#allocation10_spill] sm:$0xff] %v7826_v59 }
  0xb8   : > { %v7828_v60 = vpop.permute.xlu0 %2499 }
  0xb9   : > { %10717 = vst [vmem:[#allocation11_spill] sm:$0xff] %v7828_v60 }
  0xbc   : > { %v7830_v61 = vpop.permute.xlu0 %2503 }
  0xbd   : > { %10718 = vst [vmem:[#allocation12_spill] sm:$0xff] %v7830_v61 }
  0xc0   : > { %v7832_v62 = vpop.permute.xlu0 %2507 }
  0xc1   : > { %10719 = vst [vmem:[#allocation13_spill] sm:$0xff] %v7832_v62 }
  0xc4   : > { %v7834_v63 = vpop.permute.xlu0 %2511 }
  0xc5   : > { %10720 = vst [vmem:[#allocation14_spill] sm:$0xff] %v7834_v63 }
  0xc8   : > { %v7836_v0 = vpop.permute.xlu0 %2515 }
  0xc9   : > { %10721 = vst [vmem:[#allocation15_spill] sm:$0xff] %v7836_v0 }
  0xcc   : > { %v7838_v1 = vpop.permute.xlu0 %2519 }
  0xcd   : > { %10722 = vst [vmem:[#allocation16_spill] sm:$0xff] %v7838_v1 }
  0xd0   : > { %v6957_v2 = vpop.permute.xlu0 %6956 }
  0xd1   : > { %v6959_v9 = vunpack.i.h.bf16 %v6957_v2  ;;  %v6958_v10 = vunpack.i.l.bf16 %v6957_v2 }
  0xd3   : > { %v2952_v17 = vsel %vm493_vm1, %v2600_v14, %v6958_v10  ;;  %v2953_v18 = vsel %vm493_vm1, %v2601_v15, %v6959_v9 }
  0xd4   : > { %v6962_v6 = vpop.permute.xlu0 %6961 }
  0xd5   : > { %v6964_v11 = vunpack.i.h.bf16 %v6962_v6  ;;  %v6963_v12 = vunpack.i.l.bf16 %v6962_v6 }
  0xd7   : > { %v2985_v20 = vsel %vm2984_vm4, %v2952_v17, %v6963_v12  ;;  %v2986_v21 = vsel %vm2984_vm4, %v2953_v18, %v6964_v11 }
  0xd8   : > { %v3017_v23 = vpack.c.bf16 %v2986_v21, %v2985_v20 }
  0xda   : > { %6719 = vmatprep.mubr.msk.bf16.mxu1 %vm3045_vm5, %v3017_v23 }
  0xe3   : > { %v6709_v19 = vpop.f32.mrf.mxu0 }
  0xe4   : > { %v553_v22 = vadd.f32 %v6709_v19, %v7846_v13 }
  0xe5   : > { %v544_v24 = vpop.f32.mrf.mxu0 }
  0xe6   : > { %v688_v25 = vrot.slane %v553_v22, %v7849_v16  ;;  %v545_v26 = vadd.f32 %v7846_v13, %v544_v24  ;;  %v681_v31 = vcombine.high %v553_v22, %v553_v22 }
  0xe7   : > { %v6710_v34 = vpop.f32.mrf.mxu0 }
  0xe8   : > { %v696_v27 = vcombine.high %v688_v25, %v688_v25  ;;  %v7860_v28 = vrot.slane %v688_v25, %v7849_v16  ;;  %v590_v30 = vrot.slane %v545_v26, %v7849_v16  ;;  %v695_v36 = vrot.slane %v681_v31, %v7849_v16 }
  0xe9   : > { %v547_v38 = vpop.f32.mrf.mxu0  ;;  %v583_v42 = vcombine.high %v545_v26, %v545_v26  ;;  %v7918_v9 = vadd.f32 %v6710_v34, %v7846_v13 }
  0xea   : > { %v7867_v32 = vrot.slane %v696_v27, %v7849_v16  ;;  %v7870_v33 = vrot.slane %v590_v30, %v7849_v16  ;;  %v1106_v35 = vrot.slane %v7860_v28, %v7863_v29  ;;  %v7887_v41 = vcombine.high %v7860_v28, %v7860_v28 }
  0xeb   : > { %v7889_v43 = vpop.f32.mrf.mxu0  ;;  %v697_v44 = vcombine.high %v695_v36, %v695_v36  ;;  %v598_v45 = vcombine.high %v590_v30, %v590_v30  ;;  %v7899_v48 = vrot.slane %v695_v36, %v7849_v16  ;;  %v597_v2 = vrot.slane %v583_v42, %v7849_v16 }
  0xec   : > { %1327 = vrot.lane.b32.xlu0 %v1106_v35, %s7516_s21  ;;  %v1110_v37 = vrot.slane %v7867_v32, %v7863_v29  ;;  %v7880_v39 = vcombine.high %v7870_v33, %v7870_v33  ;;  %v1042_v40 = vrot.slane %v7870_v33, %v7863_v29  ;;  %v7896_v47 = vcombine.high %v7867_v32, %v7867_v32 }
  0xed   : > { %v1114_v49 = vrot.slane %v7887_v41, %v7863_v29  ;;  %v560_v50 = vpop.f32.mrf.mxu0  ;;  %v7906_v3 = vrot.slane %v598_v45, %v7849_v16  ;;  %v7912_v6 = vrot.slane %v697_v44, %v7849_v16  ;;  %v1122_v7 = vrot.slane %v7899_v48, %v7863_v29 }
  0xee   : > { %1329 = vrot.lane.b32.xlu1 %v1110_v37, %s7516_s21  ;;  %v1050_v46 = vrot.slane %v7880_v39, %v7863_v29  ;;  %v1118_v4 = vrot.slane %v7896_v47, %v7863_v29  ;;  %v561_v10 = vadd.f32 %v7846_v13, %v560_v50  ;;  %v599_v12 = vcombine.high %v597_v2, %v597_v2 }
  0xef   : > { %v6714_v11 = vpop.f32.mrf.mxu0  ;;  %v1126_v14 = vrot.slane %v7912_v6, %v7863_v29  ;;  %v7926_v15 = vcombine.high %v7906_v3, %v7906_v3  ;;  %v7931_v20 = vrot.slane %v597_v2, %v7849_v16  ;;  %v1046_v21 = vrot.slane %v7906_v3, %v7863_v29 }
  0xf0   : > { %1295 = vrot.lane.b32.xlu0 %v1042_v40, %s7516_s21  ;;  %v572_v17 = vadd.f32 %v6714_v11, %v7846_v13  ;;  %v779_v18 = vcombine.high %v561_v10, %v561_v10  ;;  %v786_v19 = vrot.slane %v561_v10, %v7849_v16  ;;  %v737_v27 = vrot.slane %v7918_v9, %v7849_v16 }
  0xf1   : > { %v1054_v30 = vrot.slane %v7926_v15, %v7863_v29  ;;  %v7947_v31 = vrot.slane %v599_v12, %v7849_v16  ;;  %v563_v35 = vpop.f32.mrf.mxu0  ;;  %v1058_v42 = vrot.slane %v7931_v20, %v7863_v29  ;;  %v7961_v44 = vcombine.high %v7899_v48, %v7899_v48 }
  0xf2   : > { %1299 = vrot.lane.b32.xlu1 %v1050_v46, %s7516_s21  ;;  %v926_v22 = vcombine.high %v572_v17, %v572_v17  ;;  %v793_v23 = vrot.slane %v779_v18, %v7849_v16  ;;  %v794_v24 = vcombine.high %v786_v19, %v786_v19  ;;  %v7938_v25 = vrot.slane %v786_v19, %v7849_v16 }
  0xf3   : > { %v933_v26 = vrot.slane %v572_v17, %v7849_v16  ;;  %v564_v50 = vadd.f32 %v7846_v13, %v563_v35  ;;  %v745_v2 = vcombine.high %v737_v27, %v737_v27  ;;  %v7979_v10 = vcombine.high %v7912_v6, %v7912_v6 }
  0xf4   : > { %1331 = vrot.lane.b32.xlu0 %v1114_v49, %s7516_s21  ;;  %10724 = vst [vmem:[#allocation18_spill] sm:$0xff] %v7938_v25  ;;  %v940_v34 = vrot.slane %v926_v22, %v7849_v16  ;;  %v7951_v36 = vrot.slane %v793_v23, %v7849_v16  ;;  %v7954_v37 = vrot.slane %v794_v24, %v7849_v16 }
  0xf5   : > { %v941_v40 = vcombine.high %v933_v26, %v933_v26  ;;  %v7964_v45 = vrot.slane %v933_v26, %v7849_v16  ;;  %v828_v11 = vcombine.high %v564_v50, %v564_v50  ;;  %v835_v12 = vrot.slane %v564_v50, %v7849_v16 }
  0xf6   : > { %1333 = vrot.lane.b32.xlu1 %v1118_v4, %s7516_s21  ;;  %10725 = vst [vmem:[#allocation19_spill] sm:$0xff] %v7951_v36  ;;  %v7967_v46 = vrot.slane %v940_v34, %v7849_v16  ;;  %v548_v4 = vadd.f32 %v7846_v13, %v547_v38  ;;  %v1130_v38 = vrot.slane %v7961_v44, %v7863_v29 }
  0xf7   : > { %10726 = vst [vmem:[#allocation20_spill] sm:$0xff] %v7964_v45  ;;  %v7970_v49 = vrot.slane %v941_v40, %v7849_v16  ;;  %v795_v17 = vcombine.high %v793_v23, %v793_v23  ;;  %v842_v18 = vrot.slane %v828_v11, %v7849_v16  ;;  %v843_v19 = vcombine.high %v835_v12, %v835_v12  ;;  %v8012_v40 = vpop.permute.xlu1 %2465 }
  0xf8   : > { %1335 = vrot.lane.b32.xlu0 %v1122_v7, %s7516_s21  ;;  %10727 = vst [vmem:[#allocation21_spill] sm:$0xff] %v7967_v46  ;;  %v1062_v7 = vrot.slane %v7947_v31, %v7863_v29  ;;  %v7993_v22 = vrot.slane %v745_v2, %v7849_v16  ;;  %v639_v24 = vrot.slane %v548_v4, %v7849_v16 }
  0xf9   : > { %10728 = vst [vmem:[#allocation22_spill] sm:$0xff] %v7970_v49  ;;  %v1134_v26 = vrot.slane %v7979_v10, %v7863_v29  ;;  %v8003_v23 = vrot.slane %v843_v19, %v7849_v16  ;;  %v8010_v35 = vcombine.high %v7931_v20, %v7931_v20  ;;  %v8017_v50 = vrot.slane %v795_v17, %v7849_v16 }
  0xfa   : > { %1337 = vrot.lane.b32.xlu1 %v1126_v14, %s7516_s21  ;;  %v7983_v14 = vrot.slane %v737_v27, %v7849_v16  ;;  %v8000_v27 = vrot.slane %v842_v18, %v7849_v16  ;;  %v647_v2 = vcombine.high %v639_v24, %v639_v24  ;;  %v8024_v11 = vcombine.high %v7947_v31, %v7947_v31 }
  0xfb   : > { %10731 = vst [vmem:[#allocation25_spill] sm:$0xff] %v8003_v23  ;;  %v844_v17 = vcombine.high %v842_v18, %v842_v18 }
  0xfc   : > { %1297 = vrot.lane.b32.xlu0 %v1046_v21, %s7516_s21  ;;  %v7990_v21 = vrot.slane %v835_v12, %v7849_v16  ;;  %10730 = vst [vmem:[#allocation24_spill] sm:$0xff] %v8000_v27  ;;  %v942_v12 = vcombine.high %v940_v34, %v940_v34  ;;  %v8039_v34 = vpop.permute.xlu1 %2469 }
  0xfd   : > { %10732 = vst [vmem:[#allocation26_spill] sm:$0xff] %v8039_v34 }
  0xfe   : > { %1301 = vrot.lane.b32.xlu1 %v1054_v30, %s7516_s21  ;;  %10729 = vst [vmem:[#allocation23_spill] sm:$0xff] %v7990_v21  ;;  %v1138_v30 = vrot.slane %v7983_v14, %v7863_v29 }
 0x100   : > { %1303 = vrot.lane.b32.xlu0 %v1058_v42, %s7516_s21  ;;  %v730_v42 = vcombine.high %v7918_v9, %v7918_v9  ;;  %v1066_v9 = vrot.slane %v8010_v35, %v7863_v29  ;;  %v8067_v62 = vpop.permute.xlu1 %2473 }
 0x101   : > { %10735 = vst [vmem:[#allocation29_spill] sm:$0xff] %v8067_v62 }
 0x102   : > { %1305 = vrot.lane.b32.xlu1 %v1062_v7, %s7516_s21  ;;  %v1142_v7 = vrot.slane %v7993_v22, %v7863_v29  ;;  %v744_v19 = vrot.slane %v730_v42, %v7849_v16  ;;  %v8049_v42 = vcombine.high %v7983_v14, %v7983_v14 }
 0x104   : > { %1339 = vrot.lane.b32.xlu0 %v1130_v38, %s7516_s21  ;;  %v8027_v38 = vrot.slane %v639_v24, %v7849_v16  ;;  %v8042_v24 = vrot.slane %v942_v12, %v7849_v16  ;;  %v8062_v5 = vrot.slane %v744_v19, %v7849_v16 }
 0x106   : > { %1341 = vrot.lane.b32.xlu1 %v1134_v26, %s7516_s21  ;;  %v8034_v26 = vrot.slane %v647_v2, %v7849_v16  ;;  %10733 = vst [vmem:[#allocation27_spill] sm:$0xff] %v8042_v24  ;;  %v1074_v18 = vrot.slane %v8027_v38, %v7863_v29  ;;  %v8052_v2 = vrot.slane %v844_v17, %v7849_v16 }
 0x107   : > { %v1146_v17 = vrot.slane %v8049_v42, %v7863_v29  ;;  %v8083_v0 = vcombine.high %v8027_v38, %v8027_v38 }
 0x108   : > { %1343 = vrot.lane.b32.xlu0 %v1138_v30, %s7516_s21  ;;  %v1070_v30 = vrot.slane %v8024_v11, %v7863_v29  ;;  %10734 = vst [vmem:[#allocation28_spill] sm:$0xff] %v8052_v2  ;;  %v1078_v12 = vrot.slane %v8034_v26, %v7863_v29 }
 0x10a   : > { %1345 = vrot.lane.b32.xlu1 %v1142_v7, %s7516_s21  ;;  %v746_v7 = vcombine.high %v744_v19, %v744_v19  ;;  %v1154_v19 = vrot.slane %v8062_v5, %v7863_v29 }
 0x10c   : > { %1307 = vrot.lane.b32.xlu0 %v1066_v9, %s7516_s21  ;;  %v632_v9 = vcombine.high %v548_v4, %v548_v4  ;;  %v8074_v60 = vrot.slane %v746_v7, %v7849_v16  ;;  %v8090_v7 = vcombine.high %v8034_v26, %v8034_v26 }
 0x10e   : > { %1309 = vrot.lane.b32.xlu1 %v1070_v30, %s7516_s21  ;;  %v8059_v30 = vcombine.high %v7993_v22, %v7993_v22  ;;  %v646_v4 = vrot.slane %v632_v9, %v7849_v16 }
 0x110   : > { %1311 = vrot.lane.b32.xlu0 %v1074_v18, %s7516_s21  ;;  %v1150_v18 = vrot.slane %v8059_v30, %v7863_v29  ;;  %v648_v9 = vcombine.high %v646_v4, %v646_v4  ;;  %v8095_v54 = vrot.slane %v646_v4, %v7849_v16 }
 0x112   : > { %1313 = vrot.lane.b32.xlu1 %v1078_v12, %s7516_s21  ;;  %v569_v12 = vadd.f32 %v7889_v43, %v7846_v13  ;;  %v1082_v43 = vrot.slane %v8083_v0, %v7863_v29  ;;  %v8105_v58 = vrot.slane %v648_v9, %v7849_v16  ;;  %v1090_v4 = vrot.slane %v8095_v54, %v7863_v29 }
 0x114   : > { %1347 = vrot.lane.b32.xlu0 %v1146_v17, %s7516_s21  ;;  %v1158_v17 = vrot.slane %v8074_v60, %v7863_v29  ;;  %v884_v13 = vrot.slane %v569_v12, %v7849_v16  ;;  %v1094_v9 = vrot.slane %v8105_v58, %v7863_v29  ;;  %v877_v1 = vcombine.high %v569_v12, %v569_v12 }
 0x116   : > { %1349 = vrot.lane.b32.xlu1 %v1150_v18, %s7516_s21  ;;  %v8092_v18 = vpop.permute.xlu1 %2477  ;;  %v892_v34 = vcombine.high %v884_v13, %v884_v13  ;;  %v891_v59 = vrot.slane %v877_v1, %v7849_v16  ;;  %v1174_v1 = vrot.slane %v7954_v37, %v7863_v29 }
 0x117   : > { %10736 = vst [vmem:[#allocation30_spill] sm:$0xff] %v8092_v18 }
 0x118   : > { %1351 = vrot.lane.b32.xlu0 %v1154_v19, %s7516_s21  ;;  %v1086_v19 = vrot.slane %v8090_v7, %v7863_v29  ;;  %v8127_v52 = vrot.slane %v892_v34, %v7849_v16  ;;  %v893_v63 = vcombine.high %v891_v59, %v891_v59 }
 0x11a   : > { %1353 = vrot.lane.b32.xlu1 %v1158_v17, %s7516_s21  ;;  %v8112_v17 = vcombine.high %v8062_v5, %v8062_v5  ;;  %v8114_v18 = vpop.permute.xlu1 %2481  ;;  %v1238_v34 = vrot.slane %v8127_v52, %v7863_v29 }
 0x11c   : > { %1315 = vrot.lane.b32.xlu0 %v1082_v43, %s7516_s21  ;;  %v8117_v43 = vrot.slane %v884_v13, %v7849_v16  ;;  %v1162_v56 = vrot.slane %v8112_v17, %v7863_v29 }
 0x11e   : > { %1317 = vrot.lane.b32.xlu1 %v1086_v19, %s7516_s21  ;;  %10737 = vst [vmem:[#allocation31_spill] sm:$0xff] %v8117_v43  ;;  %v8124_v19 = vcombine.high %v8074_v60, %v8074_v60  ;;  %v8137_v61 = vpop.permute.xlu1 %2485 }
 0x11f   : > { %10738 = vst [vmem:[#allocation32_spill] sm:$0xff] %v8137_v61 }
 0x120   : > { %1319 = vrot.lane.b32.xlu0 %v1090_v4, %s7516_s21  ;;  %v1166_v13 = vrot.slane %v8124_v19, %v7863_v29  ;;  %v1234_v4 = vrot.slane %v8117_v43, %v7863_v29 }
 0x122   : > { %1321 = vrot.lane.b32.xlu1 %v1094_v9, %s7516_s21  ;;  %v8144_v9 = vcombine.high %v8095_v54, %v8095_v54 }
 0x124   : > { %1355 = vrot.lane.b32.xlu0 %v1162_v56, %s7516_s21  ;;  %v8149_v56 = vcombine.high %v8105_v58, %v8105_v58  ;;  %v1098_v61 = vrot.slane %v8144_v9, %v7863_v29 }
 0x126   : > { %1357 = vrot.lane.b32.xlu1 %v1166_v13, %s7516_s21  ;;  %10739 = vst [vmem:[#allocation33_spill] sm:$0xff] %v8149_v56  ;;  %v8154_v13 = vpop.permute.xlu1 %2489  ;;  %v1102_v12 = vrot.slane %v8149_v56, %v7863_v29  ;;  %v8186_v56 = vrot.slane %v893_v63, %v7849_v16  ;;  %v8202_v63 = vcombine.high %v7954_v37, %v7954_v37 }
 0x128   : > { %1391 = vrot.lane.b32.xlu0 %v1234_v4, %s7516_s21  ;;  %v1170_v4 = vrot.slane %v7938_v25, %v7863_v29  ;;  %10742 = vst [vmem:[#allocation36_spill] sm:$0xff] %v8186_v56 }
 0x12a   : > { %1393 = vrot.lane.b32.xlu1 %v1238_v34, %s7516_s21  ;;  %v8165_v34 = vcombine.high %v8117_v43, %v8117_v43  ;;  %v8174_v62 = vpop.permute.xlu1 %2493 }
 0x12b   : > { %10740 = vst [vmem:[#allocation34_spill] sm:$0xff] %v8174_v62 }
 0x12c   : > { %1323 = vrot.lane.b32.xlu0 %v1098_v61, %s7516_s21  ;;  %v8172_v61 = vcombine.high %v8127_v52, %v8127_v52  ;;  %v1242_v43 = vrot.slane %v8165_v34, %v7863_v29 }
 0x12e   : > { %1325 = vrot.lane.b32.xlu1 %v1102_v12, %s7516_s21  ;;  %v8177_v12 = vrot.slane %v891_v59, %v7849_v16  ;;  %v8193_v59 = vcombine.high %v7938_v25, %v7938_v25 }
 0x130   : > { %1359 = vrot.lane.b32.xlu0 %v1170_v4, %s7516_s21  ;;  %10741 = vst [vmem:[#allocation35_spill] sm:$0xff] %v8177_v12  ;;  %v1246_v4 = vrot.slane %v8172_v61, %v7863_v29  ;;  %v1250_v62 = vrot.slane %v8177_v12, %v7863_v29  ;;  %v1178_v16 = vrot.slane %v8193_v59, %v7863_v29 }
 0x131   : > { %v8217_v25 = vcombine.high %v8177_v12, %v8177_v12 }
 0x132   : > { %1361 = vrot.lane.b32.xlu1 %v1174_v1, %s7516_s21  ;;  %v8195_v1 = vpop.permute.xlu1 %2497 }
 0x133   : > { %10743 = vst [vmem:[#allocation37_spill] sm:$0xff] %v8195_v1 }
 0x134   : > { %1395 = vrot.lane.b32.xlu0 %v1242_v43, %s7516_s21  ;;  %v1254_v43 = vrot.slane %v8186_v56, %v7863_v29 }
 0x136   : > { %1397 = vrot.lane.b32.xlu1 %v1246_v4, %s7516_s21  ;;  %v1182_v4 = vrot.slane %v8202_v63, %v7863_v29  ;;  %v8210_v1 = vpop.permute.xlu1 %2501 }
 0x137   : > { %10744 = vst [vmem:[#allocation38_spill] sm:$0xff] %v8210_v1 }
 0x138   : > { %1399 = vrot.lane.b32.xlu0 %v1250_v62, %s7516_s21  ;;  %v1186_v62 = vrot.slane %v7951_v36, %v7863_v29 }
 0x13a   : > { %1401 = vrot.lane.b32.xlu1 %v1254_v43, %s7516_s21  ;;  %v1190_v43 = vrot.slane %v8017_v50, %v7863_v29  ;;  %v8229_v1 = vpop.permute.xlu1 %2505 }
 0x13b   : > { %10746 = vst [vmem:[#allocation40_spill] sm:$0xff] %v8229_v1 }
 0x13c   : > { %1363 = vrot.lane.b32.xlu0 %v1178_v16, %s7516_s21  ;;  %v8224_v16 = vcombine.high %v8186_v56, %v8186_v56  ;;  %v8239_v56 = vcombine.high %v7951_v36, %v7951_v36 }
 0x13e   : > { %1365 = vrot.lane.b32.xlu1 %v1182_v4, %s7516_s21  ;;  %10745 = vst [vmem:[#allocation39_spill] sm:$0xff] %v8224_v16  ;;  %v1258_v4 = vrot.slane %v8217_v25, %v7863_v29  ;;  %v1262_v12 = vrot.slane %v8224_v16, %v7863_v29  ;;  %10747 = vst [vmem:[#allocation41_spill] sm:$0xff] %v8239_v56  ;;  %v8248_v1 = vpop.permute.xlu1 %2509 }
 0x13f   : > { %10749 = vst [vmem:[#allocation43_spill] sm:$0xff] %v8248_v1  ;;  %v8263_v1 = vcombine.high %v7964_v45, %v7964_v45 }
 0x140   : > { %1367 = vrot.lane.b32.xlu0 %v1186_v62, %s7516_s21  ;;  %v1266_v62 = vrot.slane %v7964_v45, %v7863_v29 }
 0x141   : > { %10751 = vst [vmem:[#allocation45_spill] sm:$0xff] %v8263_v1 }
 0x142   : > { %1369 = vrot.lane.b32.xlu1 %v1190_v43, %s7516_s21  ;;  %v1270_v43 = vrot.slane %v7970_v49, %v7863_v29  ;;  %v8259_v16 = vpop.permute.xlu1 %2513 }
 0x143   : > { %10750 = vst [vmem:[#allocation44_spill] sm:$0xff] %v8259_v16 }
 0x144   : > { %1403 = vrot.lane.b32.xlu0 %v1258_v4, %s7516_s21  ;;  %v8246_v4 = vcombine.high %v8017_v50, %v8017_v50 }
 0x146   : > { %1405 = vrot.lane.b32.xlu1 %v1262_v12, %s7516_s21  ;;  %10748 = vst [vmem:[#allocation42_spill] sm:$0xff] %v8246_v4  ;;  %v1194_v12 = vrot.slane %v8239_v56, %v7863_v29  ;;  %v1198_v36 = vrot.slane %v8246_v4, %v7863_v29  ;;  %v8278_v4 = vpop.permute.xlu1 %2517 }
 0x147   : > { %10753 = vst [vmem:[#allocation47_spill] sm:$0xff] %v8278_v4 }
 0x148   : > { %1407 = vrot.lane.b32.xlu0 %v1266_v62, %s7516_s21  ;;  %v1202_v62 = vrot.slane %v7990_v21, %v7863_v29 }
 0x14a   : > { %1409 = vrot.lane.b32.xlu1 %v1270_v43, %s7516_s21  ;;  %v1206_v43 = vrot.slane %v8003_v23, %v7863_v29  ;;  %v8295_v4 = vpop.permute.xlu1 %2521 }
 0x14b   : > { %10756 = vst [vmem:[#allocation50_spill] sm:$0xff] %v8295_v4 }
 0x14c   : > { %1371 = vrot.lane.b32.xlu0 %v1194_v12, %s7516_s21  ;;  %v8270_v12 = vcombine.high %v7970_v49, %v7970_v49  ;;  %v8285_v49 = vcombine.high %v7990_v21, %v7990_v21 }
 0x14e   : > { %1373 = vrot.lane.b32.xlu1 %v1198_v36, %s7516_s21  ;;  %10752 = vst [vmem:[#allocation46_spill] sm:$0xff] %v8270_v12  ;;  %v1274_v36 = vrot.slane %v8263_v1, %v7863_v29  ;;  %v1278_v45 = vrot.slane %v8270_v12, %v7863_v29  ;;  %10754 = vst [vmem:[#allocation48_spill] sm:$0xff] %v8285_v49  ;;  %v1218_v12 = vrot.slane %v8000_v27, %v7863_v29 }
 0x150   : > { %1375 = vrot.lane.b32.xlu0 %v1202_v62, %s7516_s21  ;;  %v1282_v62 = vrot.slane %v7967_v46, %v7863_v29 }
 0x152   : > { %1377 = vrot.lane.b32.xlu1 %v1206_v43, %s7516_s21  ;;  %v1286_v43 = vrot.slane %v8042_v24, %v7863_v29 }
 0x154   : > { %1411 = vrot.lane.b32.xlu0 %v1274_v36, %s7516_s21  ;;  %v8292_v36 = vcombine.high %v8003_v23, %v8003_v23  ;;  %v8307_v23 = vcombine.high %v7967_v46, %v7967_v46  ;;  %v8321_v46 = vcombine.high %v8000_v27, %v8000_v27 }
 0x156   : > { %1413 = vrot.lane.b32.xlu1 %v1278_v45, %s7516_s21  ;;  %10755 = vst [vmem:[#allocation49_spill] sm:$0xff] %v8292_v36  ;;  %v1210_v45 = vrot.slane %v8285_v49, %v7863_v29  ;;  %v1214_v21 = vrot.slane %v8292_v36, %v7863_v29  ;;  %10757 = vst [vmem:[#allocation51_spill] sm:$0xff] %v8307_v23  ;;  %v8314_v36 = vcombine.high %v8042_v24, %v8042_v24 }
 0x157   : > { %v1290_v49 = vrot.slane %v8307_v23, %v7863_v29  ;;  %10759 = vst [vmem:[#allocation53_spill] sm:$0xff] %v8321_v46  ;;  %v8328_v24 = vcombine.high %v8052_v2, %v8052_v2 }
 0x158   : > { %1415 = vrot.lane.b32.xlu0 %v1282_v62, %s7516_s21  ;;  %10758 = vst [vmem:[#allocation52_spill] sm:$0xff] %v8314_v36  ;;  %v1294_v56 = vrot.slane %v8314_v36, %v7863_v29 }
 0x15a   : > { %1417 = vrot.lane.b32.xlu1 %v1286_v43, %s7516_s21  ;;  %v7517_v43 = vmov 1983009808  }
 0x15b   : > { %v1792_v4 = vunpack.c.l.s4 %v7517_v43 }
 0x15c   : > { %1379 = vrot.lane.b32.xlu0 %v1210_v45, %s7516_s21  ;;  %v1222_v45 = vrot.slane %v8052_v2, %v7863_v29  ;;  %v1230_v2 = vrot.slane %v8328_v24, %v7863_v29 }
 0x15d   : > { %v1793_v43 = vunpack.c.0.s8 %v1792_v4  ;;  %v1226_v4 = vrot.slane %v8321_v46, %v7863_v29 }
 0x15e   : > { %v1328_v62 = vpop.permute.xlu0 %1327  ;;  %1381 = vrot.lane.b32.xlu1 %v1214_v21, %s7516_s21 }
 0x15f   : > { %v1504_v27 = vsel %vm1487_vm6, %v7860_v28, %v1328_v62 }
 0x160   : > { %v1330_v1 = vpop.permute.xlu1 %1329  ;;  %1383 = vrot.lane.b32.xlu0 %v1218_v12, %s7516_s21 }
 0x162   : > { %v1296_v21 = vpop.permute.xlu0 %1295  ;;  %1385 = vrot.lane.b32.xlu1 %v1222_v45, %s7516_s21  ;;  %v1505_v45 = vsel %vm1487_vm6, %v7867_v32, %v1330_v1 }
 0x163   : > { %v1925_v16 = vcombine.low %v1504_v27, %v1505_v45 }
 0x164   : > { %v1300_v12 = vpop.permute.xlu1 %1299  ;;  %1419 = vrot.lane.b32.xlu0 %v1290_v49, %s7516_s21  ;;  %v8338_v49 = vsub.s32 %v1793_v43, %v7841_v8 }
 0x166   : > { %v1332_v23 = vpop.permute.xlu0 %1331  ;;  %1421 = vrot.lane.b32.xlu1 %v1294_v56, %s7516_s21  ;;  %v1933_v43 = vrot.slane %v1925_v16, %v8338_v49 }
 0x167   : > { %v1506_v32 = vsel %vm1487_vm6, %v7887_v41, %v1332_v23  ;;  %v1488_v41 = vsel %vm1487_vm6, %v7870_v33, %v1296_v21 }
 0x168   : > { %v1334_v36 = vpop.permute.xlu1 %1333  ;;  %1387 = vrot.lane.b32.xlu0 %v1226_v4, %s7516_s21 }
 0x169   : > { %v1507_v56 = vsel %vm1487_vm6, %v7896_v47, %v1334_v36 }
 0x16a   : > { %v1926_v1 = vcombine.low %v1506_v32, %v1507_v56  ;;  %v1336_v46 = vpop.permute.xlu0 %1335  ;;  %1389 = vrot.lane.b32.xlu1 %v1230_v2, %s7516_s21  ;;  %v1490_v2 = vsel %vm1487_vm6, %v7880_v39, %v1300_v12 }
 0x16c   : > { %v1940_v28 = vrot.slane %v1926_v1, %v8338_v49  ;;  %v1338_v62 = vpop.permute.xlu1 %1337  ;;  %1648 = vrot.lane.b32.xlu0 %v1504_v27, %s7518_s16 }
 0x16d   : > { %v1509_v39 = vsel %vm1487_vm6, %v7912_v6, %v1338_v62 }
 0x16e   : > { %v1298_v29 = vpop.permute.xlu0 %1297  ;;  %v1941_v4 = vcombine.low %v1933_v43, %v1940_v28  ;;  %1650 = vrot.lane.b32.xlu1 %v1505_v45, %s7518_s16 }
 0x16f   : > { %v1489_v47 = vsel %vm1487_vm6, %v7906_v3, %v1298_v29 }
 0x170   : > { %2375 = vst.msk [vmem:[#allocation2 + $0x79] sm:$0xff] %vm2366_vm7, %v1941_v4  ;;  %v1302_v23 = vpop.permute.xlu1 %1301  ;;  %1616 = vrot.lane.b32.xlu0 %v1488_v41, %s7518_s16  ;;  %v1789_v27 = vcombine.low %v1488_v41, %v1489_v47 }
 0x171   : > { %2568 = vst.msk [vmem:[#allocation2 + $0x79] sm:$0xff] %vm2559_vm8, %v7818_v55  ;;  %v1491_v16 = vsel %vm1487_vm6, %v7926_v15, %v1302_v23  ;;  %v1508_v55 = vsel %vm1487_vm6, %v7899_v48, %v1336_v46 }
 0x172   : > { %v1790_v36 = vcombine.low %v1490_v2, %v1491_v16  ;;  %v1304_v33 = vpop.permute.xlu0 %1303  ;;  %1618 = vrot.lane.b32.xlu1 %v1489_v47, %s7518_s16  ;;  %v1797_v21 = vrot.slane %v1789_v27, %v8338_v49  ;;  %v1942_v15 = vcombine.low %v1508_v55, %v1509_v39 }
 0x174   : > { %v1804_v3 = vrot.slane %v1790_v36, %v8338_v49  ;;  %1652 = vrot.lane.b32.xlu0 %v1506_v32, %s7518_s16  ;;  %v1306_v45 = vpop.permute.xlu1 %1305  ;;  %v1950_v48 = vrot.slane %v1942_v15, %v8338_v49 }
 0x176   : > { %v1805_v12 = vcombine.low %v1797_v21, %v1804_v3  ;;  %v1340_v1 = vpop.permute.xlu0 %1339  ;;  %1654 = vrot.lane.b32.xlu1 %v1507_v56, %s7518_s16 }
 0x177   : > { %v1510_v32 = vsel %vm1487_vm6, %v7961_v44, %v1340_v1  ;;  %v1492_v44 = vsel %vm1487_vm6, %v7931_v20, %v1304_v33 }
 0x178   : > { %2367 = vst.msk [vmem:[#allocation2 + $0x19] sm:$0xff] %vm2366_vm7, %v1805_v12  ;;  %1656 = vrot.lane.b32.xlu0 %v1508_v55, %s7518_s16  ;;  %v1342_v28 = vpop.permute.xlu1 %1341 }
 0x179   : > { %2560 = vst.msk [vmem:[#allocation2 + $0x19] sm:$0xff] %vm2559_vm8, %v7810_v51  ;;  %v1511_v6 = vsel %vm1487_vm6, %v7979_v10, %v1342_v28  ;;  %v1493_v51 = vsel %vm1487_vm6, %v7947_v31, %v1306_v45 }
 0x17a   : > { %v1943_v62 = vcombine.low %v1510_v32, %v1511_v6  ;;  %v1344_v56 = vpop.permute.xlu0 %1343  ;;  %1658 = vrot.lane.b32.xlu1 %v1509_v39, %s7518_s16  ;;  %v1806_v10 = vcombine.low %v1492_v44, %v1493_v51 }
 0x17c   : > { %v1957_v46 = vrot.slane %v1943_v62, %v8338_v49  ;;  %1620 = vrot.lane.b32.xlu0 %v1490_v2, %s7518_s16  ;;  %v1346_v43 = vpop.permute.xlu1 %1345  ;;  %v1814_v20 = vrot.slane %v1806_v10, %v8338_v49 }
 0x17e   : > { %v1958_v29 = vcombine.low %v1950_v48, %v1957_v46  ;;  %v1308_v4 = vpop.permute.xlu0 %1307  ;;  %1622 = vrot.lane.b32.xlu1 %v1491_v16, %s7518_s16 }
 0x17f   : > { %v1494_v47 = vsel %vm1487_vm6, %v8010_v35, %v1308_v4  ;;  %v1512_v35 = vsel %vm1487_vm6, %v7983_v14, %v1344_v56 }
 0x180   : > { %2376 = vst.msk [vmem:[#allocation2 + $0x81] sm:$0xff] %vm2366_vm7, %v1958_v29  ;;  %1624 = vrot.lane.b32.xlu0 %v1492_v44, %s7518_s16  ;;  %v1310_v41 = vpop.permute.xlu1 %1309 }
 0x181   : > { %2569 = vst.msk [vmem:[#allocation2 + $0x81] sm:$0xff] %vm2559_vm8, %v8114_v18  ;;  %v1495_v31 = vsel %vm1487_vm6, %v8024_v11, %v1310_v41  ;;  %v1513_v18 = vsel %vm1487_vm6, %v7993_v22, %v1346_v43 }
 0x182   : > { %v1807_v23 = vcombine.low %v1494_v47, %v1495_v31  ;;  %v1312_v27 = vpop.permute.xlu0 %1311  ;;  %1626 = vrot.lane.b32.xlu1 %v1493_v51, %s7518_s16  ;;  %v1993_v11 = vcombine.low %v1512_v35, %v1513_v18 }
 0x184   : > { %v1821_v2 = vrot.slane %v1807_v23, %v8338_v49  ;;  %1660 = vrot.lane.b32.xlu0 %v1510_v32, %s7518_s16  ;;  %v1314_v16 = vpop.permute.xlu1 %1313  ;;  %v2001_v14 = vrot.slane %v1993_v11, %v8338_v49 }
 0x186   : > { %v1822_v36 = vcombine.low %v1814_v20, %v1821_v2  ;;  %v1348_v33 = vpop.permute.xlu0 %1347  ;;  %1662 = vrot.lane.b32.xlu1 %v1511_v6, %s7518_s16 }
 0x187   : > { %v1514_v21 = vsel %vm1487_vm6, %v8049_v42, %v1348_v33  ;;  %v1496_v42 = vsel %vm1487_vm6, %v8027_v38, %v1312_v27 }
 0x188   : > { %2368 = vst.msk [vmem:[#allocation2 + $0x21] sm:$0xff] %vm2366_vm7, %v1822_v36  ;;  %1664 = vrot.lane.b32.xlu0 %v1512_v35, %s7518_s16  ;;  %v1350_v3 = vpop.permute.xlu1 %1349 }
 0x189   : > { %2561 = vst.msk [vmem:[#allocation2 + $0x21] sm:$0xff] %vm2559_vm8, %v8012_v40  ;;  %v1515_v22 = vsel %vm1487_vm6, %v8059_v30, %v1350_v3  ;;  %v1497_v40 = vsel %vm1487_vm6, %v8034_v26, %v1314_v16 }
 0x18a   : > { %v1994_v45 = vcombine.low %v1514_v21, %v1515_v22  ;;  %v1352_v39 = vpop.permute.xlu0 %1351  ;;  %1666 = vrot.lane.b32.xlu1 %v1513_v18, %s7518_s16  ;;  %v1857_v30 = vcombine.low %v1496_v42, %v1497_v40 }
 0x18c   : > { %v2008_v12 = vrot.slane %v1994_v45, %v8338_v49  ;;  %1628 = vrot.lane.b32.xlu0 %v1494_v47, %s7518_s16  ;;  %v1354_v1 = vpop.permute.xlu1 %1353  ;;  %v1865_v38 = vrot.slane %v1857_v30, %v8338_v49 }
 0x18e   : > { %v2009_v55 = vcombine.low %v2001_v14, %v2008_v12  ;;  %v1316_v15 = vpop.permute.xlu0 %1315  ;;  %1630 = vrot.lane.b32.xlu1 %v1495_v31, %s7518_s16 }
 0x18f   : > { %v1498_v32 = vsel %vm1487_vm6, %v8083_v0, %v1316_v15  ;;  %v1516_v0 = vsel %vm1487_vm6, %v8062_v5, %v1352_v39 }
 0x190   : > { %2379 = vst.msk [vmem:[#allocation2 + $0xa9] sm:$0xff] %vm2366_vm7, %v2009_v55  ;;  %1632 = vrot.lane.b32.xlu0 %v1496_v42, %s7518_s16  ;;  %v1318_v28 = vpop.permute.xlu1 %1317 }
 0x191   : > { %2572 = vst.msk [vmem:[#allocation2 + $0xa9] sm:$0xff] %vm2559_vm8, %v7822_v57  ;;  %v1499_v26 = vsel %vm1487_vm6, %v8090_v7, %v1318_v28  ;;  %v1517_v57 = vsel %vm1487_vm6, %v8074_v60, %v1354_v1 }
 0x192   : > { %v1858_v6 = vcombine.low %v1498_v32, %v1499_v26  ;;  %v1320_v62 = vpop.permute.xlu0 %1319  ;;  %1634 = vrot.lane.b32.xlu1 %v1497_v40, %s7518_s16  ;;  %v2010_v7 = vcombine.low %v1516_v0, %v1517_v57 }
 0x194   : > { %v1872_v56 = vrot.slane %v1858_v6, %v8338_v49  ;;  %1668 = vrot.lane.b32.xlu0 %v1514_v21, %s7518_s16  ;;  %v1322_v48 = vpop.permute.xlu1 %1321  ;;  %v2018_v5 = vrot.slane %v2010_v7, %v8338_v49 }
 0x196   : > { %v1873_v46 = vcombine.low %v1865_v38, %v1872_v56  ;;  %v1356_v43 = vpop.permute.xlu0 %1355  ;;  %1670 = vrot.lane.b32.xlu1 %v1515_v22, %s7518_s16  ;;  %v10762_v22 = vld [vmem:[#allocation29_spill] sm:$0xff] }
 0x197   : > { %v1518_v29 = vsel %vm1487_vm6, %v8112_v17, %v1356_v43  ;;  %v1500_v17 = vsel %vm1487_vm6, %v8095_v54, %v1320_v62 }
 0x198   : > { %2371 = vst.msk [vmem:[#allocation2 + $0x49] sm:$0xff] %vm2366_vm7, %v1873_v46  ;;  %1672 = vrot.lane.b32.xlu0 %v1516_v0, %s7518_s16  ;;  %v1358_v51 = vpop.permute.xlu1 %1357 }
 0x199   : > { %2564 = vst.msk [vmem:[#allocation2 + $0x49] sm:$0xff] %vm2559_vm8, %v7814_v53  ;;  %v1519_v60 = vsel %vm1487_vm6, %v8124_v19, %v1358_v51  ;;  %v1501_v53 = vsel %vm1487_vm6, %v8105_v58, %v1322_v48  ;;  %v10760_v58 = vld [vmem:[#allocation33_spill] sm:$0xff] }
 0x19a   : > { %v2011_v4 = vcombine.low %v1518_v29, %v1519_v60  ;;  %v1392_v44 = vpop.permute.xlu0 %1391  ;;  %1674 = vrot.lane.b32.xlu1 %v1517_v57, %s7518_s16  ;;  %v1874_v19 = vcombine.low %v1500_v17, %v1501_v53  ;;  %v10765_v57 = vld [vmem:[#allocation36_spill] sm:$0xff] }
 0x19c   : > { %v2025_v10 = vrot.slane %v2011_v4, %v8338_v49  ;;  %1636 = vrot.lane.b32.xlu0 %v1498_v32, %s7518_s16  ;;  %v1394_v41 = vpop.permute.xlu1 %1393  ;;  %v1882_v54 = vrot.slane %v1874_v19, %v8338_v49  ;;  %v10764_v32 = vld [vmem:[#allocation14_spill] sm:$0xff]  ;;  %v10768_v4 = vld [vmem:[#allocation39_spill] sm:$0xff] }
 0x19e   : > { %v2026_v47 = vcombine.low %v2018_v5, %v2025_v10  ;;  %v1324_v31 = vpop.permute.xlu0 %1323  ;;  %1638 = vrot.lane.b32.xlu1 %v1499_v26, %s7518_s16 }
 0x19f   : > { %v1502_v27 = vsel %vm1487_vm6, %v8144_v9, %v1324_v31  ;;  %v10761_v9 = vld [vmem:[#allocation31_spill] sm:$0xff] }
 0x1a0   : > { %2380 = vst.msk [vmem:[#allocation2 + $0xb1] sm:$0xff] %vm2366_vm7, %v2026_v47  ;;  %1640 = vrot.lane.b32.xlu0 %v1500_v17, %s7518_s16  ;;  %v1326_v23 = vpop.permute.xlu1 %1325  ;;  %v1536_v11 = vsel %vm1487_vm6, %v10761_v9, %v1392_v44  ;;  %v10773_v9 = vld [vmem:[#allocation22_spill] sm:$0xff] }
 0x1a1   : > { %2573 = vst.msk [vmem:[#allocation2 + $0xb1] sm:$0xff] %vm2559_vm8, %v8154_v13  ;;  %v1503_v20 = vsel %vm1487_vm6, %v10760_v58, %v1326_v23  ;;  %v1537_v13 = vsel %vm1487_vm6, %v8127_v52, %v1394_v41 }
 0x1a2   : > { %v1875_v2 = vcombine.low %v1502_v27, %v1503_v20  ;;  %v1360_v16 = vpop.permute.xlu0 %1359  ;;  %1642 = vrot.lane.b32.xlu1 %v1501_v53, %s7518_s16  ;;  %v2197_v3 = vcombine.low %v1536_v11, %v1537_v13 }
 0x1a4   : > { %v1889_v18 = vrot.slane %v1875_v2, %v8338_v49  ;;  %1676 = vrot.lane.b32.xlu0 %v1518_v29, %s7518_s16  ;;  %v1362_v36 = vpop.permute.xlu1 %1361  ;;  %v2205_v12 = vrot.slane %v2197_v3, %v8338_v49  ;;  %v10767_v29 = vld [vmem:[#allocation10_spill] sm:$0xff]  ;;  %v10771_v2 = vld [vmem:[#allocation41_spill] sm:$0xff] }
 0x1a5   : > { %v1521_v55 = vsel %vm1487_vm6, %v7954_v37, %v1362_v36 }
 0x1a6   : > { %v1890_v33 = vcombine.low %v1882_v54, %v1889_v18  ;;  %v1396_v35 = vpop.permute.xlu0 %1395  ;;  %1678 = vrot.lane.b32.xlu1 %v1519_v60, %s7518_s16 }
 0x1a7   : > { %v1538_v45 = vsel %vm1487_vm6, %v8165_v34, %v1396_v35  ;;  %v10763_v34 = vld [vmem:[#allocation18_spill] sm:$0xff] }
 0x1a8   : > { %2372 = vst.msk [vmem:[#allocation2 + $0x51] sm:$0xff] %vm2366_vm7, %v1890_v33  ;;  %1712 = vrot.lane.b32.xlu0 %v1536_v11, %s7518_s16  ;;  %v1398_v21 = vpop.permute.xlu1 %1397 }
 0x1a9   : > { %2565 = vst.msk [vmem:[#allocation2 + $0x51] sm:$0xff] %vm2559_vm8, %v10762_v22  ;;  %v1539_v52 = vsel %vm1487_vm6, %v8172_v61, %v1398_v21  ;;  %v1520_v61 = vsel %vm1487_vm6, %v10763_v34, %v1360_v16  ;;  %v10774_v22 = vld [vmem:[#allocation20_spill] sm:$0xff] }
 0x1aa   : > { %v2198_v39 = vcombine.low %v1538_v45, %v1539_v52  ;;  %v1400_v14 = vpop.permute.xlu0 %1399  ;;  %1714 = vrot.lane.b32.xlu1 %v1537_v13, %s7518_s16  ;;  %v2061_v30 = vcombine.low %v1520_v61, %v1521_v55 }
 0x1ac   : > { %v2212_v1 = vrot.slane %v2198_v39, %v8338_v49  ;;  %1644 = vrot.lane.b32.xlu0 %v1502_v27, %s7518_s16  ;;  %v1402_v40 = vpop.permute.xlu1 %1401  ;;  %v2069_v38 = vrot.slane %v2061_v30, %v8338_v49 }
 0x1ad   : > { %v1541_v46 = vsel %vm1487_vm6, %v10765_v57, %v1402_v40  ;;  %v10777_v40 = vld [vmem:[#allocation46_spill] sm:$0xff]  ;;  %v10781_v57 = vld [vmem:[#allocation48_spill] sm:$0xff] }
 0x1ae   : > { %v2213_v15 = vcombine.low %v2205_v12, %v2212_v1  ;;  %v1364_v42 = vpop.permute.xlu0 %1363  ;;  %1646 = vrot.lane.b32.xlu1 %v1503_v20, %s7518_s16  ;;  %v10770_v20 = vld [vmem:[#allocation44_spill] sm:$0xff]  ;;  %v10776_v12 = vld [vmem:[#allocation45_spill] sm:$0xff] }
 0x1af   : > { %v1522_v26 = vsel %vm1487_vm6, %v8193_v59, %v1364_v42  ;;  %v10766_v59 = vld [vmem:[#allocation35_spill] sm:$0xff] }
 0x1b0   : > { %2391 = vst.msk [vmem:[#allocation2 + $0x139] sm:$0xff] %vm2366_vm7, %v2213_v15  ;;  %1680 = vrot.lane.b32.xlu0 %v1520_v61, %s7518_s16  ;;  %v1366_v28 = vpop.permute.xlu1 %1365 }
 0x1b1   : > { %2584 = vst.msk [vmem:[#allocation2 + $0x139] sm:$0xff] %vm2559_vm8, %v10764_v32  ;;  %v1523_v37 = vsel %vm1487_vm6, %v8202_v63, %v1366_v28  ;;  %v1540_v63 = vsel %vm1487_vm6, %v10766_v59, %v1400_v14  ;;  %v10775_v14 = vld [vmem:[#allocation37_spill] sm:$0xff] }
 0x1b2   : > { %v2062_v6 = vcombine.low %v1522_v26, %v1523_v37  ;;  %v1368_v62 = vpop.permute.xlu0 %1367  ;;  %1682 = vrot.lane.b32.xlu1 %v1521_v55, %s7518_s16  ;;  %v2214_v7 = vcombine.low %v1540_v63, %v1541_v46  ;;  %v10778_v28 = vld [vmem:[#allocation25_spill] sm:$0xff] }
 0x1b4   : > { %v2076_v56 = vrot.slane %v2062_v6, %v8338_v49  ;;  %1716 = vrot.lane.b32.xlu0 %v1538_v45, %s7518_s16  ;;  %v1370_v48 = vpop.permute.xlu1 %1369  ;;  %v2222_v41 = vrot.slane %v2214_v7, %v8338_v49  ;;  %v10779_v6 = vld [vmem:[#allocation23_spill] sm:$0xff] }
 0x1b5   : > { %v1525_v31 = vsel %vm1487_vm6, %v8017_v50, %v1370_v48  ;;  %v10772_v50 = vld [vmem:[#allocation42_spill] sm:$0xff]  ;;  %v10780_v48 = vld [vmem:[#allocation16_spill] sm:$0xff] }
 0x1b6   : > { %v2077_v43 = vcombine.low %v2069_v38, %v2076_v56  ;;  %v1404_v0 = vpop.permute.xlu0 %1403  ;;  %1718 = vrot.lane.b32.xlu1 %v1539_v52, %s7518_s16 }
 0x1b7   : > { %v1542_v60 = vsel %vm1487_vm6, %v8217_v25, %v1404_v0  ;;  %v10769_v25 = vld [vmem:[#allocation19_spill] sm:$0xff] }
 0x1b8   : > { %2383 = vst.msk [vmem:[#allocation2 + $0xd9] sm:$0xff] %vm2366_vm7, %v2077_v43  ;;  %1720 = vrot.lane.b32.xlu0 %v1540_v63, %s7518_s16  ;;  %v1406_v51 = vpop.permute.xlu1 %1405  ;;  %v1524_v23 = vsel %vm1487_vm6, %v10769_v25, %v1368_v62  ;;  %v10782_v43 = vld [vmem:[#allocation49_spill] sm:$0xff]  ;;  %v10787_v25 = vld [vmem:[#allocation51_spill] sm:$0xff] }
 0x1b9   : > { %2576 = vst.msk [vmem:[#allocation2 + $0xd9] sm:$0xff] %vm2559_vm8, %v10767_v29  ;;  %v1543_v44 = vsel %vm1487_vm6, %v10768_v4, %v1406_v51  ;;  %v2078_v27 = vcombine.low %v1524_v23, %v1525_v31 }
 0x1ba   : > { %v2215_v5 = vcombine.low %v1542_v60, %v1543_v44  ;;  %v1408_v10 = vpop.permute.xlu0 %1407  ;;  %1722 = vrot.lane.b32.xlu1 %v1541_v46, %s7518_s16 }
 0x1bb   : > { %v2086_v13 = vrot.slane %v2078_v27, %v8338_v49  ;;  %v1544_v45 = vsel %vm1487_vm6, %v10774_v22, %v1408_v10  ;;  %v10784_v10 = vld [vmem:[#allocation21_spill] sm:$0xff]  ;;  %v10788_v27 = vld [vmem:[#allocation52_spill] sm:$0xff] }
 0x1bc   : > { %v2229_v53 = vrot.slane %v2215_v5, %v8338_v49  ;;  %1684 = vrot.lane.b32.xlu0 %v1522_v26, %s7518_s16  ;;  %v1410_v47 = vpop.permute.xlu1 %1409 }
 0x1bd   : > { %v1545_v11 = vsel %vm1487_vm6, %v10773_v9, %v1410_v47 }
 0x1be   : > { %v2230_v17 = vcombine.low %v2222_v41, %v2229_v53  ;;  %v1372_v19 = vpop.permute.xlu0 %1371  ;;  %1686 = vrot.lane.b32.xlu1 %v1523_v37, %s7518_s16  ;;  %v2265_v52 = vcombine.low %v1544_v45, %v1545_v11 }
 0x1bf   : > { %v1526_v16 = vsel %vm1487_vm6, %v10771_v2, %v1372_v19 }
 0x1c0   : > { %2392 = vst.msk [vmem:[#allocation2 + $0x141] sm:$0xff] %vm2366_vm7, %v2230_v17  ;;  %1688 = vrot.lane.b32.xlu0 %v1524_v23, %s7518_s16  ;;  %v1374_v58 = vpop.permute.xlu1 %1373  ;;  %v2273_v34 = vrot.slane %v2265_v52, %v8338_v49  ;;  %v10786_v17 = vld [vmem:[#allocation28_spill] sm:$0xff] }
 0x1c1   : > { %2585 = vst.msk [vmem:[#allocation2 + $0x141] sm:$0xff] %vm2559_vm8, %v10770_v20  ;;  %v1527_v54 = vsel %vm1487_vm6, %v10772_v50, %v1374_v58 }
 0x1c2   : > { %v2079_v18 = vcombine.low %v1526_v16, %v1527_v54  ;;  %v1376_v36 = vpop.permute.xlu0 %1375  ;;  %1690 = vrot.lane.b32.xlu1 %v1525_v31, %s7518_s16  ;;  %v10785_v31 = vld [vmem:[#allocation12_spill] sm:$0xff] }
 0x1c3   : > { %v1528_v62 = vsel %vm1487_vm6, %v10779_v6, %v1376_v36  ;;  %v7441_v6 = vld [vmem:[%s10664_s4 + $0x8] ss:$0 sps:$4 sm:$0xff]  }
 0x1c4   : > { %v2093_v33 = vrot.slane %v2079_v18, %v8338_v49  ;;  %1724 = vrot.lane.b32.xlu0 %v1542_v60, %s7518_s16  ;;  %v1378_v35 = vpop.permute.xlu1 %1377  ;;  %v10783_v60 = vld [vmem:[#allocation27_spill] sm:$0xff]  ;;  %6902 = vmatprep.subr.msk.bf16.mxu1 %vm506_vm0, %v7441_v6 }
 0x1c5   : > { %v1529_v32 = vsel %vm1487_vm6, %v10778_v28, %v1378_v35 }
 0x1c6   : > { %v2094_v3 = vcombine.low %v2086_v13, %v2093_v33  ;;  %v1412_v21 = vpop.permute.xlu0 %1411  ;;  %1726 = vrot.lane.b32.xlu1 %v1543_v44, %s7518_s16  ;;  %v2129_v38 = vcombine.low %v1528_v62, %v1529_v32  ;;  %v10790_v33 = vld [vmem:[#allocation53_spill] sm:$0xff] }
 0x1c7   : > { %v1546_v1 = vsel %vm1487_vm6, %v10776_v12, %v1412_v21 }
 0x1c8   : > { %2384 = vst.msk [vmem:[#allocation2 + $0xe1] sm:$0xff] %vm2366_vm7, %v2094_v3  ;;  %1728 = vrot.lane.b32.xlu0 %v1544_v45, %s7518_s16  ;;  %v1414_v39 = vpop.permute.xlu1 %1413  ;;  %v2137_v7 = vrot.slane %v2129_v38, %v8338_v49 }
 0x1c9   : > { %2577 = vst.msk [vmem:[#allocation2 + $0xe1] sm:$0xff] %vm2559_vm8, %v10775_v14  ;;  %v1547_v55 = vsel %vm1487_vm6, %v10777_v40, %v1414_v39  ;;  %v10791_v39 = vld [vmem:[#allocation50_spill] sm:$0xff] }
 0x1ca   : > { %v2266_v15 = vcombine.low %v1546_v1, %v1547_v55  ;;  %v1416_v42 = vpop.permute.xlu0 %1415  ;;  %1730 = vrot.lane.b32.xlu1 %v1545_v11, %s7518_s16 }
 0x1cb   : > { %v1548_v41 = vsel %vm1487_vm6, %v10784_v10, %v1416_v42 }
 0x1cc   : > { %v2280_v61 = vrot.slane %v2266_v15, %v8338_v49  ;;  %1692 = vrot.lane.b32.xlu0 %v1526_v16, %s7518_s16  ;;  %v1418_v30 = vpop.permute.xlu1 %1417  ;;  %v10789_v16 = vld [vmem:[#allocation24_spill] sm:$0xff] }
 0x1cd   : > { %v1549_v4 = vsel %vm1487_vm6, %v10783_v60, %v1418_v30  ;;  %v10793_v60 = vld [vmem:[#allocation8_spill] sm:$0xff] }
 0x1ce   : > { %v2281_v26 = vcombine.low %v2273_v34, %v2280_v61  ;;  %v1380_v37 = vpop.permute.xlu0 %1379  ;;  %1694 = vrot.lane.b32.xlu1 %v1527_v54, %s7518_s16  ;;  %v2282_v53 = vcombine.low %v1548_v41, %v1549_v4  ;;  %v2429_v34 = vld [vmem:[%s7670_s2 + $0xf0] sm:$0xff]  ;;  %v2643_v61 = vld [vmem:[#allocation2 + $0x81] sm:$0xff] }
 0x1cf   : > { %v1530_v46 = vsel %vm1487_vm6, %v10781_v57, %v1380_v37  ;;  %v3323_v37 = vld [vmem:[#allocation2 + $0x21] sm:$0xff] }
 0x1d0   : > { %2395 = vst.msk [vmem:[#allocation2 + $0x169] sm:$0xff] %vm2366_vm7, %v2281_v26  ;;  %1696 = vrot.lane.b32.xlu0 %v1528_v62, %s7518_s16  ;;  %v1382_v56 = vpop.permute.xlu1 %1381  ;;  %v2290_v54 = vrot.slane %v2282_v53, %v8338_v49  ;;  %v2642_v26 = vld [vmem:[#allocation2 + $0x79] sm:$0xff] }
 0x1d1   : > { %2588 = vst.msk [vmem:[#allocation2 + $0x169] sm:$0xff] %vm2559_vm8, %v10780_v48  ;;  %v1531_v0 = vsel %vm1487_vm6, %v10782_v43, %v1382_v56  ;;  %v8619_v38 = vpack.i.bf16 %v2643_v61, %v2642_v26  ;;  %v3322_v48 = vld [vmem:[#allocation2 + $0x19] sm:$0xff] }
 0x1d2   : > { %v2130_v59 = vcombine.low %v1530_v46, %v1531_v0  ;;  %v1384_v63 = vpop.permute.xlu0 %1383  ;;  %1698 = vrot.lane.b32.xlu1 %v1529_v32, %s7518_s16  ;;  %v2674_v57 = vld [vmem:[#allocation2 + $0x7a] sm:$0xff] }
 0x1d3   : > { %v1532_v50 = vsel %vm1487_vm6, %v10789_v16, %v1384_v63  ;;  %v10794_v16 = vld [vmem:[#allocation6_spill] sm:$0xff] }
 0x1d4   : > { %v2144_v51 = vrot.slane %v2130_v59, %v8338_v49  ;;  %1732 = vrot.lane.b32.xlu0 %v1546_v1, %s7518_s16  ;;  %v1386_v29 = vpop.permute.xlu1 %1385  ;;  %v10792_v1 = vld [vmem:[#allocation40_spill] sm:$0xff]  ;;  %v3095_v59 = vsel %vm506_vm0, %v7441_v6, 0 }
 0x1d5   : > { %v1533_v19 = vsel %vm1487_vm6, %v10786_v17, %v1386_v29  ;;  %6716 = vmatpush3.bf16.msra.mxu1 %v3095_v59  ;;  %v7442_v29 = vld [vmem:[%s10664_s4] sm:$0xff]  }
 0x1d6   : > { %v2145_v44 = vcombine.low %v2137_v7, %v2144_v51  ;;  %v1420_v5 = vpop.permute.xlu0 %1419  ;;  %1734 = vrot.lane.b32.xlu1 %v1547_v55, %s7518_s16  ;;  %v2146_v18 = vcombine.low %v1532_v50, %v1533_v19  ;;  %v3354_v7 = vld [vmem:[#allocation2 + $0x1a] sm:$0xff]  ;;  %v3355_v51 = vld [vmem:[#allocation2 + $0x22] sm:$0xff]  ;;  %6717 = vmatprep.subr.bf16.mxu1 %v7442_v29 }
 0x1d7   : > { %v1550_v23 = vsel %vm1487_vm6, %v10787_v25, %v1420_v5  ;;  %v3326_v25 = vld [vmem:[#allocation2 + $0x49] sm:$0xff] }
 0x1d8   : > { %2387 = vst.msk [vmem:[#allocation2 + $0x109] sm:$0xff] %vm2366_vm7, %v2145_v44  ;;  %1736 = vrot.lane.b32.xlu0 %v1548_v41, %s7518_s16  ;;  %v1422_v47 = vpop.permute.xlu1 %1421  ;;  %v2154_v22 = vrot.slane %v2146_v18, %v8338_v49  ;;  %v7050_v41 = vpack.i.bf16 %v3355_v51, %v3354_v7  ;;  %v2647_v18 = vld [vmem:[#allocation2 + $0xb1] sm:$0xff]  ;;  %v2683_v7 = vld [vmem:[#allocation2 + $0xe2] sm:$0xff] }
 0x1d9   : > { %2580 = vst.msk [vmem:[#allocation2 + $0x109] sm:$0xff] %vm2559_vm8, %v10785_v31  ;;  %v1551_v58 = vsel %vm1487_vm6, %v10788_v27, %v1422_v47  ;;  %v3327_v31 = vld [vmem:[#allocation2 + $0x51] sm:$0xff]  ;;  %6718 = vmatpush3.bf16.msra.mxu1 %v7442_v29 }
 0x1da   : > { %v2283_v20 = vcombine.low %v1550_v23, %v1551_v58  ;;  %v1388_v2 = vpop.permute.xlu0 %1387  ;;  %1738 = vrot.lane.b32.xlu1 %v1549_v4, %s7518_s16  ;;  %v8640_v27 = vpack.i.bf16 %v3327_v31, %v3326_v25 }
 0x1db   : > { %v1534_v35 = vsel %vm1487_vm6, %v10790_v33, %v1388_v2  ;;  %v3359_v2 = vld [vmem:[#allocation2 + $0x52] sm:$0xff] }
 0x1dc   : > { %v2297_v36 = vrot.slane %v2283_v20, %v8338_v49  ;;  %1700 = vrot.lane.b32.xlu0 %v1530_v46, %s7518_s16  ;;  %v1390_v13 = vpop.permute.xlu1 %1389  ;;  %v2675_v46 = vld [vmem:[#allocation2 + $0x82] sm:$0xff]  ;;  %v3358_v20 = vld [vmem:[#allocation2 + $0x4a] sm:$0xff] }
 0x1dd   : > { %v1535_v9 = vsel %vm1487_vm6, %v8328_v24, %v1390_v13  ;;  %v8632_v44 = vpack.i.bf16 %v2675_v46, %v2674_v57  ;;  %v8648_v13 = vpack.i.bf16 %v3359_v2, %v3358_v20 }
 0x1de   : > { %v2298_v11 = vcombine.low %v2290_v54, %v2297_v36  ;;  %v2147_v3 = vcombine.low %v1534_v35, %v1535_v9  ;;  %v1649_v21 = vpop.permute.xlu0 %1648  ;;  %1702 = vrot.lane.b32.xlu1 %v1531_v0, %s7518_s16  ;;  %v7045_v0 = vpack.i.bf16 %v3323_v37, %v3322_v48  ;;  %v2651_v37 = vld [vmem:[#allocation2 + $0xe1] sm:$0xff]  ;;  %v2650_v48 = vld [vmem:[#allocation2 + $0xd9] sm:$0xff] }
 0x1e0   : > { %2396 = vst.msk [vmem:[#allocation2 + $0x171] sm:$0xff] %vm2366_vm7, %v2298_v11  ;;  %v2161_v45 = vrot.slane %v2147_v3, %v8338_v49  ;;  %1704 = vrot.lane.b32.xlu0 %v1532_v50, %s7518_s16  ;;  %v1651_v52 = vpop.permute.xlu1 %1650 }
 0x1e1   : > { %2589 = vst.msk [vmem:[#allocation2 + $0x171] sm:$0xff] %vm2559_vm8, %v10791_v39  ;;  %v1959_v55 = vcombine.low %v1649_v21, %v1651_v52 }
 0x1e2   : > { %v2162_v14 = vcombine.low %v2154_v22, %v2161_v45  ;;  %v1617_v24 = vpop.permute.xlu0 %1616  ;;  %1706 = vrot.lane.b32.xlu1 %v1533_v19, %s7518_s16  ;;  %v2678_v22 = vld [vmem:[#allocation2 + $0xaa] sm:$0xff]  ;;  %v2679_v45 = vld [vmem:[#allocation2 + $0xb2] sm:$0xff] }
 0x1e3   : > { %v1967_v28 = vrot.slane %v1959_v55, %v8338_v49 }
 0x1e4   : > { %2388 = vst.msk [vmem:[#allocation2 + $0x111] sm:$0xff] %vm2366_vm7, %v2162_v14  ;;  %1740 = vrot.lane.b32.xlu0 %v1550_v23, %s7518_s16  ;;  %v1619_v12 = vpop.permute.xlu1 %1618  ;;  %v10795_v14 = vld [vmem:[#allocation32_spill] sm:$0xff] }
 0x1e5   : > { %2581 = vst.msk [vmem:[#allocation2 + $0x111] sm:$0xff] %vm2559_vm8, %v10792_v1  ;;  %v1823_v63 = vcombine.low %v1617_v24, %v1619_v12  ;;  %v8663_v12 = vpack.i.bf16 %v2679_v45, %v2678_v22 }
 0x1e6   : > { %v1653_v40 = vpop.permute.xlu0 %1652  ;;  %1742 = vrot.lane.b32.xlu1 %v1551_v58, %s7518_s16 }
 0x1e7   : > { %v1831_v53 = vrot.slane %v1823_v63, %v8338_v49  ;;  %v2682_v63 = vld [vmem:[#allocation2 + $0xda] sm:$0xff] }
 0x1e8   : > { %1708 = vrot.lane.b32.xlu0 %v1534_v35, %s7518_s16  ;;  %v1655_v15 = vpop.permute.xlu1 %1654 }
 0x1e9   : > { %v1960_v42 = vcombine.low %v1653_v40, %v1655_v15 }
 0x1ea   : > { %v1657_v30 = vpop.permute.xlu0 %1656  ;;  %1710 = vrot.lane.b32.xlu1 %v1535_v9, %s7518_s16  ;;  %v2646_v9 = vld [vmem:[#allocation2 + $0xa9] sm:$0xff]  ;;  %s454_s16 = sand.u32 1, %s7501_s26  }
 0x1eb   : > { %v1974_v32 = vrot.slane %v1960_v42, %v8338_v49  ;;  %v8654_v3 = vpack.i.bf16 %v2647_v18, %v2646_v9  ;;  %s6467_s20 = sshll.u32 %s454_s16, 5 }
 0x1ec   : > { %2523 = vrot.lane.b32.xlu0 %v2429_v34, %s7512_s23  ;;  %v1659_v62 = vpop.permute.xlu1 %1658  ;;  %v2655_v31 = vld [vmem:[#allocation2 + $0x111] sm:$0xff] }
 0x1ed   : > { %v1975_v56 = vcombine.low %v1967_v28, %v1974_v32  ;;  %v1976_v58 = vcombine.low %v1657_v30, %v1659_v62  ;;  %v10796_v28 = vld [vmem:[#allocation26_spill] sm:$0xff] }
 0x1ee   : > { %v1621_v43 = vpop.permute.xlu0 %1620  ;;  %6966 = vrot.lane.b32.xlu1 %v8619_v38, %s10703_s30 }
 0x1ef   : > { %2377 = vst.msk [vmem:[#allocation2 + $0x91] sm:$0xff] %vm2366_vm7, %v1975_v56  ;;  %v1984_v33 = vrot.slane %v1976_v58, %v8338_v49  ;;  %v2654_v58 = vld [vmem:[#allocation2 + $0x109] sm:$0xff] }
 0x1f0   : > { %2570 = vst.msk [vmem:[#allocation2 + $0x91] sm:$0xff] %vm2559_vm8, %v10793_v60  ;;  %7046 = vrot.lane.b32.xlu0 %v7045_v0, %s10703_s30  ;;  %v1623_v4 = vpop.permute.xlu1 %1622  ;;  %v8705_v2 = vpack.i.bf16 %v2655_v31, %v2654_v58  ;;  %v2694_v31 = vld [vmem:[#allocation2 + $0x16a] sm:$0xff] }
 0x1f1   : > { %v1824_v5 = vcombine.low %v1621_v43, %v1623_v4  ;;  %v8684_v43 = vpack.i.bf16 %v2651_v37, %v2650_v48 }
 0x1f2   : > { %v1625_v10 = vpop.permute.xlu0 %1624  ;;  %6971 = vrot.lane.b32.xlu1 %v8632_v44, %s7514_s15 }
 0x1f3   : > { %v1838_v47 = vrot.slane %v1824_v5, %v8338_v49 }
 0x1f4   : > { %7051 = vrot.lane.b32.xlu0 %v7050_v41, %s7514_s15  ;;  %v1627_v17 = vpop.permute.xlu1 %1626 }
 0x1f5   : > { %v1839_v19 = vcombine.low %v1831_v53, %v1838_v47  ;;  %v1840_v39 = vcombine.low %v1625_v10, %v1627_v17  ;;  %v10797_v10 = vld [vmem:[#allocation9_spill] sm:$0xff]  ;;  %v8695_v53 = vpack.i.bf16 %v2683_v7, %v2682_v63  ;;  %v2663_v7 = vld [vmem:[#allocation2 + $0x171] sm:$0xff] }
 0x1f6   : > { %v1661_v23 = vpop.permute.xlu0 %1660  ;;  %6976 = vrot.lane.b32.xlu1 %v7045_v0, %s10703_s30 }
 0x1f7   : > { %2369 = vst.msk [vmem:[#allocation2 + $0x31] sm:$0xff] %vm2366_vm7, %v1839_v19  ;;  %v1848_v55 = vrot.slane %v1840_v39, %v8338_v49  ;;  %v2644_v59 = vld [vmem:[#allocation2 + $0x91] sm:$0xff]  ;;  %v2658_v39 = vld [vmem:[#allocation2 + $0x139] sm:$0xff] }
 0x1f8   : > { %2562 = vst.msk [vmem:[#allocation2 + $0x31] sm:$0xff] %vm2559_vm8, %v10794_v16  ;;  %7066 = vrot.lane.b32.xlu0 %v8640_v27, %s10703_s30  ;;  %v1663_v50 = vpop.permute.xlu1 %1662 }
 0x1f9   : > { %v1977_v54 = vcombine.low %v1661_v23, %v1663_v50  ;;  %v2686_v50 = vld [vmem:[#allocation2 + $0x10a] sm:$0xff] }
 0x1fa   : > { %v1665_v36 = vpop.permute.xlu0 %1664  ;;  %6981 = vrot.lane.b32.xlu1 %v7050_v41, %s7514_s15 }
 0x1fb   : > { %v1991_v35 = vrot.slane %v1977_v54, %v8338_v49  ;;  %v2687_v54 = vld [vmem:[#allocation2 + $0x112] sm:$0xff] }
 0x1fc   : > { %7071 = vrot.lane.b32.xlu0 %v8648_v13, %s7514_s15  ;;  %v1667_v11 = vpop.permute.xlu1 %1666  ;;  %v8714_v9 = vpack.i.bf16 %v2687_v54, %v2686_v50 }
 0x1fd   : > { %v1992_v21 = vcombine.low %v1984_v33, %v1991_v35  ;;  %v2027_v30 = vcombine.low %v1665_v36, %v1667_v11  ;;  %v10798_v33 = vld [vmem:[#allocation7_spill] sm:$0xff] }
 0x1fe   : > { %v1629_v52 = vpop.permute.xlu0 %1628  ;;  %6986 = vrot.lane.b32.xlu1 %v8654_v3, %s10703_s30 }
 0x1ff   : > { %2378 = vst.msk [vmem:[#allocation2 + $0x99] sm:$0xff] %vm2366_vm7, %v1992_v21  ;;  %v2035_v62 = vrot.slane %v2027_v30, %v8338_v49  ;;  %v2659_v21 = vld [vmem:[#allocation2 + $0x141] sm:$0xff] }
 0x200   : > { %2571 = vst.msk [vmem:[#allocation2 + $0x99] sm:$0xff] %vm2559_vm8, %v10795_v14  ;;  %7086 = vrot.lane.b32.xlu0 %v8619_v38, %s10703_s30  ;;  %v1631_v24 = vpop.permute.xlu1 %1630 }
 0x201   : > { %v1841_v1 = vcombine.low %v1629_v52, %v1631_v24 }
 0x202   : > { %v1633_v40 = vpop.permute.xlu0 %1632  ;;  %6991 = vrot.lane.b32.xlu1 %v8663_v12, %s7514_s15 }
 0x203   : > { %v1855_v15 = vrot.slane %v1841_v1, %v8338_v49  ;;  %v8722_v1 = vpack.i.bf16 %v2659_v21, %v2658_v39 }
 0x204   : > { %7091 = vrot.lane.b32.xlu0 %v8632_v44, %s7514_s15  ;;  %v1635_v42 = vpop.permute.xlu1 %1634 }
 0x205   : > { %v1856_v34 = vcombine.low %v1848_v55, %v1855_v15  ;;  %v1891_v60 = vcombine.low %v1633_v40, %v1635_v42  ;;  %v2636_v55 = vld [vmem:[#allocation2 + $0x31] sm:$0xff]  ;;  %v2690_v15 = vld [vmem:[#allocation2 + $0x13a] sm:$0xff]  ;;  %v2691_v42 = vld [vmem:[#allocation2 + $0x142] sm:$0xff] }
 0x206   : > { %v1669_v61 = vpop.permute.xlu0 %1668  ;;  %6996 = vrot.lane.b32.xlu1 %v8640_v27, %s10703_s30 }
 0x207   : > { %2370 = vst.msk [vmem:[#allocation2 + $0x39] sm:$0xff] %vm2366_vm7, %v1856_v34  ;;  %v2645_v57 = vld [vmem:[#allocation2 + $0x99] sm:$0xff]  ;;  %v1899_v25 = vrot.slane %v1891_v60, %v8338_v49 }
 0x208   : > { %2563 = vst.msk [vmem:[#allocation2 + $0x39] sm:$0xff] %vm2559_vm8, %v10796_v28  ;;  %7106 = vrot.lane.b32.xlu0 %v8654_v3, %s10703_s30  ;;  %v1671_v32 = vpop.permute.xlu1 %1670  ;;  %v8688_v29 = vpack.i.bf16 %v2645_v57, %v2644_v59  ;;  %v2676_v4 = vld [vmem:[#allocation2 + $0x92] sm:$0xff]  ;;  %v2677_v5 = vld [vmem:[#allocation2 + $0x9a] sm:$0xff] }
 0x209   : > { %v2028_v26 = vcombine.low %v1669_v61, %v1671_v32  ;;  %v8699_v19 = vpack.i.bf16 %v2677_v5, %v2676_v4  ;;  %v2662_v4 = vld [vmem:[#allocation2 + $0x169] sm:$0xff] }
 0x20a   : > { %v1673_v6 = vpop.permute.xlu0 %1672  ;;  %7001 = vrot.lane.b32.xlu1 %v8648_v13, %s7514_s15  ;;  %v10800_v5 = vld [vmem:[#allocation30_spill] sm:$0xff] }
 0x20b   : > { %v2042_v56 = vrot.slane %v2028_v26, %v8338_v49  ;;  %v10799_v26 = vld [vmem:[#allocation34_spill] sm:$0xff] }
 0x20c   : > { %7111 = vrot.lane.b32.xlu0 %v8663_v12, %s7514_s15  ;;  %v1675_v46 = vpop.permute.xlu1 %1674 }
 0x20d   : > { %v2043_v0 = vcombine.low %v2035_v62, %v2042_v56  ;;  %v2044_v36 = vcombine.low %v1673_v6, %v1675_v46  ;;  %v8733_v6 = vpack.i.bf16 %v2691_v42, %v2690_v15 }
 0x20e   : > { %v1637_v51 = vpop.permute.xlu0 %1636  ;;  %7006 = vrot.lane.b32.xlu1 %v8684_v43, %s10703_s30 }
 0x20f   : > { %2381 = vst.msk [vmem:[#allocation2 + $0xc1] sm:$0xff] %vm2366_vm7, %v2043_v0  ;;  %v2052_v45 = vrot.slane %v2044_v36, %v8338_v49  ;;  %v2637_v14 = vld [vmem:[#allocation2 + $0x39] sm:$0xff] }
 0x210   : > { %2574 = vst.msk [vmem:[#allocation2 + $0xc1] sm:$0xff] %vm2559_vm8, %v10797_v10  ;;  %7116 = vrot.lane.b32.xlu0 %v8688_v29, %s10703_s30  ;;  %v1639_v41 = vpop.permute.xlu1 %1638  ;;  %v8726_v61 = vpack.i.bf16 %v2637_v14, %v2636_v55  ;;  %v2668_v28 = vld [vmem:[#allocation2 + $0x32] sm:$0xff]  ;;  %v2669_v32 = vld [vmem:[#allocation2 + $0x3a] sm:$0xff] }
 0x211   : > { %v1892_v47 = vcombine.low %v1637_v51, %v1639_v41  ;;  %v8737_v48 = vpack.i.bf16 %v2669_v32, %v2668_v28  ;;  %v2430_v0 = vld [vmem:[%s7670_s2 + $0xf8] sm:$0xff]  ;;  %v8750_v41 = vpack.i.bf16 %v2663_v7, %v2662_v4  ;;  %s456_s2 = scalar_lea.vmem [#allocation3], %s6467_s20  ;;  %s10619_s20 = scalar_lea.sflag [#allocation4], %s454_s16 }
 0x212   : > { %v1641_v17 = vpop.permute.xlu0 %1640  ;;  %7011 = vrot.lane.b32.xlu1 %v8695_v53, %s7514_s15 }
 0x213   : > { %v1906_v23 = vrot.slane %v1892_v47, %v8338_v49 }
 0x214   : > { %7121 = vrot.lane.b32.xlu0 %v8699_v19, %s7514_s15  ;;  %v1643_v20 = vpop.permute.xlu1 %1642 }
 0x215   : > { %v1907_v16 = vcombine.low %v1899_v25, %v1906_v23  ;;  %v1908_v30 = vcombine.low %v1641_v17, %v1643_v20  ;;  %v2695_v17 = vld [vmem:[#allocation2 + $0x172] sm:$0xff] }
 0x216   : > { %v1677_v18 = vpop.permute.xlu0 %1676  ;;  %7016 = vrot.lane.b32.xlu1 %v8705_v2, %s10703_s30  ;;  %v8758_v50 = vpack.i.bf16 %v2695_v17, %v2694_v31 }
 0x217   : > { %2373 = vst.msk [vmem:[#allocation2 + $0x61] sm:$0xff] %vm2366_vm7, %v1907_v16  ;;  %v1916_v57 = vrot.slane %v1908_v30, %v8338_v49 }
 0x218   : > { %2566 = vst.msk [vmem:[#allocation2 + $0x61] sm:$0xff] %vm2559_vm8, %v10798_v33  ;;  %7136 = vrot.lane.b32.xlu0 %v8688_v29, %s10703_s30  ;;  %v1679_v35 = vpop.permute.xlu1 %1678 }
 0x219   : > { %v2045_v11 = vcombine.low %v1677_v18, %v1679_v35  ;;  %v2648_v18 = vld [vmem:[#allocation2 + $0xc1] sm:$0xff] }
 0x21a   : > { %v1713_v22 = vpop.permute.xlu0 %1712  ;;  %7021 = vrot.lane.b32.xlu1 %v8714_v9, %s7514_s15 }
 0x21b   : > { %v2059_v52 = vrot.slane %v2045_v11, %v8338_v49 }
 0x21c   : > { %7141 = vrot.lane.b32.xlu0 %v8699_v19, %s7514_s15  ;;  %v1715_v24 = vpop.permute.xlu1 %1714 }
 0x21d   : > { %v2060_v40 = vcombine.low %v2052_v45, %v2059_v52  ;;  %v2231_v60 = vcombine.low %v1713_v22, %v1715_v24  ;;  %v10801_v22 = vld [vmem:[#allocation15_spill] sm:$0xff] }
 0x21e   : > { %v1645_v34 = vpop.permute.xlu0 %1644  ;;  %7026 = vrot.lane.b32.xlu1 %v8722_v1, %s10703_s30 }
 0x21f   : > { %2382 = vst.msk [vmem:[#allocation2 + $0xc9] sm:$0xff] %vm2366_vm7, %v2060_v40  ;;  %v2239_v23 = vrot.slane %v2231_v60, %v8338_v49  ;;  %v10803_v60 = vld [vmem:[#allocation47_spill] sm:$0xff] }
 0x220   : > { %2575 = vst.msk [vmem:[#allocation2 + $0xc9] sm:$0xff] %vm2559_vm8, %v10799_v26  ;;  %7146 = vrot.lane.b32.xlu0 %v8726_v61, %s10703_s30  ;;  %v1647_v37 = vpop.permute.xlu1 %1646 }
 0x221   : > { %v1909_v62 = vcombine.low %v1645_v34, %v1647_v37  ;;  %v2640_v34 = vld [vmem:[#allocation2 + $0x61] sm:$0xff]  ;;  %v10802_v37 = vld [vmem:[#allocation11_spill] sm:$0xff] }
 0x222   : > { %v1681_v56 = vpop.permute.xlu0 %1680  ;;  %7031 = vrot.lane.b32.xlu1 %v8733_v6, %s7514_s15 }
 0x223   : > { %v1923_v46 = vrot.slane %v1909_v62, %v8338_v49 }
 0x224   : > { %7151 = vrot.lane.b32.xlu0 %v8737_v48, %s7514_s15  ;;  %v1683_v59 = vpop.permute.xlu1 %1682 }
 0x225   : > { %v1924_v63 = vcombine.low %v1916_v57, %v1923_v46  ;;  %v2095_v35 = vcombine.low %v1681_v56, %v1683_v59 }
 0x226   : > { %v1717_v51 = vpop.permute.xlu0 %1716  ;;  %2525 = vrot.lane.b32.xlu1 %v2430_v0, %s7512_s23  ;;  %s10138_s23 = scalar_lea.vmem %s10672_s12, %s6594_s24 }
 0x227   : > { %2374 = vst.msk [vmem:[#allocation2 + $0x69] sm:$0xff] %vm2366_vm7, %v1924_v63  ;;  %v2649_v20 = vld [vmem:[#allocation2 + $0xc9] sm:$0xff]  ;;  %v2103_v24 = vrot.slane %v2095_v35, %v8338_v49 }
 0x228   : > { %2567 = vst.msk [vmem:[#allocation2 + $0x69] sm:$0xff] %vm2559_vm8, %v10800_v5  ;;  %7166 = vrot.lane.b32.xlu0 %v8726_v61, %s10703_s30  ;;  %v1719_v10 = vpop.permute.xlu1 %1718  ;;  %v8762_v33 = vpack.i.bf16 %v2649_v20, %v2648_v18  ;;  %v2680_v11 = vld [vmem:[#allocation2 + $0xc2] sm:$0xff]  ;;  %v2681_v21 = vld [vmem:[#allocation2 + $0xca] sm:$0xff] }
 0x229   : > { %v2232_v47 = vcombine.low %v1717_v51, %v1719_v10  ;;  %v8771_v14 = vpack.i.bf16 %v2681_v21, %v2680_v11  ;;  %v10804_v20 = vld [vmem:[#allocation38_spill] sm:$0xff] }
 0x22a   : > { %v1721_v25 = vpop.permute.xlu0 %1720  ;;  %7036 = vrot.lane.b32.xlu1 %v8750_v41, %s10703_s30 }
 0x22b   : > { %v2246_v58 = vrot.slane %v2232_v47, %v8338_v49 }
 0x22c   : > { %7171 = vrot.lane.b32.xlu0 %v8737_v48, %s7514_s15  ;;  %v1723_v16 = vpop.permute.xlu1 %1722 }
 0x22d   : > { %v2247_v54 = vcombine.low %v2239_v23, %v2246_v58 }
 0x22e   : > { %v1685_v36 = vpop.permute.xlu0 %1684  ;;  %7041 = vrot.lane.b32.xlu1 %v8758_v50, %s7514_s15 }
 0x22f   : > { %2393 = vst.msk [vmem:[#allocation2 + $0x151] sm:$0xff] %vm2366_vm7, %v2247_v54  ;;  %v2641_v55 = vld [vmem:[#allocation2 + $0x69] sm:$0xff]  ;;  %v7443_v54 = vld [vmem:[%s10664_s4 + $0x14] ss:$0 sps:$4 sm:$0xff]  }
 0x230   : > { %2586 = vst.msk [vmem:[#allocation2 + $0x151] sm:$0xff] %vm2559_vm8, %v10801_v22  ;;  %7176 = vrot.lane.b32.xlu0 %v8762_v33, %s10703_s30  ;;  %v1687_v45 = vpop.permute.xlu1 %1686  ;;  %v8779_v28 = vpack.i.bf16 %v2641_v55, %v2640_v34  ;;  %v2672_v32 = vld [vmem:[#allocation2 + $0x62] sm:$0xff]  ;;  %v2673_v26 = vld [vmem:[#allocation2 + $0x6a] sm:$0xff]  ;;  %6903 = vmatprep.subr.msk.bf16.mxu0 %vm506_vm0, %v7443_v54 }
 0x231   : > { %v2096_v52 = vcombine.low %v1685_v36, %v1687_v45 }
 0x232   : > { %v1689_v39 = vpop.permute.xlu0 %1688  ;;  %7056 = vrot.lane.b32.xlu1 %v8640_v27, %s10703_s30  ;;  %v2248_v27 = vcombine.low %v1721_v25, %v1723_v16 }
 0x233   : > { %v2110_v40 = vrot.slane %v2096_v52, %v8338_v49 }
 0x234   : > { %7181 = vrot.lane.b32.xlu0 %v8771_v14, %s7514_s15  ;;  %v1691_v15 = vpop.permute.xlu1 %1690  ;;  %v2256_v46 = vrot.slane %v2248_v27, %v8338_v49 }
 0x235   : > { %v2111_v42 = vcombine.low %v2103_v24, %v2110_v40  ;;  %v2112_v51 = vcombine.low %v1689_v39, %v1691_v15  ;;  %v7444_v39 = vld [vmem:[%s10664_s4 + $0xc] sm:$0xff]  }
 0x236   : > { %v1725_v30 = vpop.permute.xlu0 %1724  ;;  %7061 = vrot.lane.b32.xlu1 %v8648_v13, %s7514_s15  ;;  %v8788_v13 = vpack.i.bf16 %v2673_v26, %v2672_v32 }
 0x237   : > { %2385 = vst.msk [vmem:[#allocation2 + $0xf1] sm:$0xff] %vm2366_vm7, %v2111_v42  ;;  %v2120_v10 = vrot.slane %v2112_v51, %v8338_v49  ;;  %v2660_v23 = vld [vmem:[#allocation2 + $0x151] sm:$0xff] }
 0x238   : > { %2578 = vst.msk [vmem:[#allocation2 + $0xf1] sm:$0xff] %vm2559_vm8, %v10802_v37  ;;  %7196 = vrot.lane.b32.xlu0 %v8779_v28, %s10703_s30  ;;  %v1727_v62 = vpop.permute.xlu1 %1726 }
 0x239   : > { %v2249_v56 = vcombine.low %v1725_v30, %v1727_v62 }
 0x23a   : > { %v1729_v57 = vpop.permute.xlu0 %1728  ;;  %7076 = vrot.lane.b32.xlu1 %v8619_v38, %s10703_s30 }
 0x23b   : > { %v2263_v0 = vrot.slane %v2249_v56, %v8338_v49 }
 0x23c   : > { %7201 = vrot.lane.b32.xlu0 %v8788_v13, %s7514_s15  ;;  %v1731_v59 = vpop.permute.xlu1 %1730 }
 0x23d   : > { %v2264_v63 = vcombine.low %v2256_v46, %v2263_v0  ;;  %v2299_v25 = vcombine.low %v1729_v57, %v1731_v59 }
 0x23e   : > { %v1693_v7 = vpop.permute.xlu0 %1692  ;;  %7081 = vrot.lane.b32.xlu1 %v8632_v44, %s7514_s15 }
 0x23f   : > { %2394 = vst.msk [vmem:[#allocation2 + $0x159] sm:$0xff] %vm2366_vm7, %v2264_v63  ;;  %v2307_v21 = vrot.slane %v2299_v25, %v8338_v49  ;;  %v2652_v55 = vld [vmem:[#allocation2 + $0xf1] sm:$0xff] }
 0x240   : > { %2587 = vst.msk [vmem:[#allocation2 + $0x159] sm:$0xff] %vm2559_vm8, %v10803_v60  ;;  %7216 = vrot.lane.b32.xlu0 %v8779_v28, %s10703_s30  ;;  %v1695_v38 = vpop.permute.xlu1 %1694 }
 0x241   : > { %v2113_v4 = vcombine.low %v1693_v7, %v1695_v38 }
 0x242   : > { %v1697_v5 = vpop.permute.xlu0 %1696  ;;  %7096 = vrot.lane.b32.xlu1 %v8654_v3, %s10703_s30 }
 0x243   : > { %v2127_v47 = vrot.slane %v2113_v4, %v8338_v49 }
 0x244   : > { %7221 = vrot.lane.b32.xlu0 %v8788_v13, %s7514_s15  ;;  %v1699_v44 = vpop.permute.xlu1 %1698 }
 0x245   : > { %v2128_v31 = vcombine.low %v2120_v10, %v2127_v47  ;;  %v2163_v40 = vcombine.low %v1697_v5, %v1699_v44 }
 0x246   : > { %v1733_v17 = vpop.permute.xlu0 %1732  ;;  %7101 = vrot.lane.b32.xlu1 %v8663_v12, %s7514_s15  ;;  %v3784_v12 = vsel %vm506_vm0, %v7443_v54, 0 }
 0x247   : > { %2386 = vst.msk [vmem:[#allocation2 + $0xf9] sm:$0xff] %vm2366_vm7, %v2128_v31  ;;  %v2661_v58 = vld [vmem:[#allocation2 + $0x159] sm:$0xff]  ;;  %6752 = vmatpush3.bf16.msra.mxu0 %v3784_v12 }
 0x248   : > { %2579 = vst.msk [vmem:[#allocation2 + $0xf9] sm:$0xff] %vm2559_vm8, %v10804_v20  ;;  %v1735_v3 = vpop.permute.xlu1 %1734  ;;  %v8812_v16 = vpack.i.bf16 %v2661_v58, %v2660_v23  ;;  %v2692_v36 = vld [vmem:[#allocation2 + $0x152] sm:$0xff]  ;;  %v2693_v35 = vld [vmem:[#allocation2 + $0x15a] sm:$0xff]  ;;  %6753 = vmatprep.subr.bf16.mxu0 %v7444_v39 }
 0x249   : > { %v2300_v18 = vcombine.low %v1733_v17, %v1735_v3  ;;  %v8825_v52 = vpack.i.bf16 %v2693_v35, %v2692_v36  ;;  %v10806_v23 = vld [vmem:[#allocation43_spill] sm:$0xff] }
 0x24a   : > { %v1737_v11 = vpop.permute.xlu0 %1736  ;;  %7126 = vrot.lane.b32.xlu1 %v8688_v29, %s10703_s30  ;;  %7226 = vrot.lane.b32.xlu0 %v8812_v16, %s10703_s30 }
 0x24b   : > { %v2314_v22 = vrot.slane %v2300_v18, %v8338_v49  ;;  %6754 = vmatpush3.bf16.msra.mxu0 %v7444_v39  ;;  %v3291_v18 = vld [vmem:[#allocation2 + $0x20] sm:$0xff] }
 0x24c   : > { %v1739_v45 = vpop.permute.xlu1 %1738 }
 0x24d   : > { %v2315_v29 = vcombine.low %v2307_v21, %v2314_v22  ;;  %v2316_v0 = vcombine.low %v1737_v11, %v1739_v45 }
 0x24e   : > { %v1701_v24 = vpop.permute.xlu0 %1700  ;;  %7131 = vrot.lane.b32.xlu1 %v8699_v19, %s7514_s15  ;;  %7231 = vrot.lane.b32.xlu0 %v8825_v52, %s7514_s15  ;;  %v2171_v19 = vrot.slane %v2163_v40, %v8338_v49 }
 0x24f   : > { %2397 = vst.msk [vmem:[#allocation2 + $0x181] sm:$0xff] %vm2366_vm7, %v2315_v29  ;;  %v2653_v15 = vld [vmem:[#allocation2 + $0xf9] sm:$0xff]  ;;  %v2324_v51 = vrot.slane %v2316_v0, %v8338_v49 }
 0x250   : > { %v1703_v42 = vpop.permute.xlu1 %1702  ;;  %v8835_v34 = vpack.i.bf16 %v2653_v15, %v2652_v55  ;;  %v2684_v27 = vld [vmem:[#allocation2 + $0xf2] sm:$0xff]  ;;  %v2685_v32 = vld [vmem:[#allocation2 + $0xfa] sm:$0xff] }
 0x251   : > { %v2164_v30 = vcombine.low %v1701_v24, %v1703_v42  ;;  %v8843_v56 = vpack.i.bf16 %v2685_v32, %v2684_v27 }
 0x252   : > { %v1705_v26 = vpop.permute.xlu0 %1704  ;;  %7156 = vrot.lane.b32.xlu1 %v8726_v61, %s10703_s30  ;;  %7236 = vrot.lane.b32.xlu0 %v8835_v34, %s10703_s30  ;;  %v10805_v61 = vld [vmem:[#allocation13_spill] sm:$0xff] }
 0x253   : > { %v2178_v37 = vrot.slane %v2164_v30, %v8338_v49 }
 0x254   : > { %v1707_v62 = vpop.permute.xlu1 %1706 }
 0x255   : > { %v2179_v57 = vcombine.low %v2171_v19, %v2178_v37  ;;  %v2180_v60 = vcombine.low %v1705_v26, %v1707_v62 }
 0x256   : > { %v1741_v46 = vpop.permute.xlu0 %1740  ;;  %7161 = vrot.lane.b32.xlu1 %v8737_v48, %s7514_s15  ;;  %7241 = vrot.lane.b32.xlu0 %v8843_v56, %s7514_s15 }
 0x257   : > { %2389 = vst.msk [vmem:[#allocation2 + $0x121] sm:$0xff] %vm2366_vm7, %v2179_v57  ;;  %v2188_v47 = vrot.slane %v2180_v60, %v8338_v49 }
 0x258   : > { %2582 = vst.msk [vmem:[#allocation2 + $0x121] sm:$0xff] %vm2559_vm8, %v10805_v61  ;;  %v1743_v59 = vpop.permute.xlu1 %1742 }
 0x259   : > { %v2317_v63 = vcombine.low %v1741_v46, %v1743_v59 }
 0x25a   : > { %v1709_v7 = vpop.permute.xlu0 %1708  ;;  %7186 = vrot.lane.b32.xlu1 %v8762_v33, %s10703_s30 }
 0x25b   : > { %v2331_v48 = vrot.slane %v2317_v63, %v8338_v49 }
 0x25c   : > { %v1711_v38 = vpop.permute.xlu1 %1710 }
 0x25d   : > { %v2332_v4 = vcombine.low %v2324_v51, %v2331_v48  ;;  %v2181_v5 = vcombine.low %v1709_v7, %v1711_v38  ;;  %v7445_v7 = vld [vmem:[%s10664_s4 + $0x20] ss:$0 sps:$4 sm:$0xff]   ;;  %v7446_v38 = vld [vmem:[%s10664_s4 + $0x18] sm:$0xff]  }
 0x25e   : > { %v2524_v10 = vpop.permute.xlu0 %2523  ;;  %7191 = vrot.lane.b32.xlu1 %v8771_v14, %s7514_s15  ;;  %6904 = vmatprep.subr.msk.bf16.mxu1 %vm506_vm0, %v7445_v7  ;;  %v4474_v48 = vsel %vm506_vm0, %v7445_v7, 0 }
 0x25f   : > { %2398 = vst.msk [vmem:[#allocation2 + $0x189] sm:$0xff] %vm2366_vm7, %v2332_v4  ;;  %v2195_v44 = vrot.slane %v2181_v5, %v8338_v49  ;;  %v3290_v49 = vld [vmem:[#allocation2 + $0x18] sm:$0xff]  ;;  %v2656_v24 = vld [vmem:[#allocation2 + $0x121] sm:$0xff] }
 0x260   : > { %2590 = vst.msk [vmem:[#allocation2 + $0x181] sm:$0xff] %vm2559_vm8, %v2524_v10  ;;  %v8862_v31 = vpop.permute.xlu1 %6966 }
 0x261   : > { %v2196_v17 = vcombine.low %v2188_v47, %v2195_v44 }
 0x262   : > { %v7047_v25 = vpop.permute.xlu0 %7046  ;;  %7206 = vrot.lane.b32.xlu1 %v8779_v28, %s10703_s30 }
 0x263   : > { %2390 = vst.msk [vmem:[#allocation2 + $0x129] sm:$0xff] %vm2366_vm7, %v2196_v17  ;;  %v7049_v58 = vunpack.i.h.bf16 %v7047_v25  ;;  %v7048_v20 = vunpack.i.l.bf16 %v7047_v25 }
 0x264   : > { %2583 = vst.msk [vmem:[#allocation2 + $0x129] sm:$0xff] %vm2559_vm8, %v10806_v23  ;;  %v8869_v3 = vpop.permute.xlu1 %6971 }
 0x265   : > { %v3642_v11 = vsel %vm493_vm1, %v3290_v49, %v7048_v20  ;;  %v3643_v28 = vsel %vm493_vm1, %v3291_v18, %v7049_v58 }
 0x266   : > { %v7052_v54 = vpop.permute.xlu0 %7051  ;;  %7211 = vrot.lane.b32.xlu1 %v8788_v13, %s7514_s15 }
 0x267   : > { %v7054_v36 = vunpack.i.h.bf16 %v7052_v54  ;;  %v7053_v35 = vunpack.i.l.bf16 %v7052_v54 }
 0x268   : > { %v6977_v12 = vpop.permute.xlu1 %6976 }
 0x269   : > { %v3674_v21 = vsel %vm2984_vm4, %v3642_v11, %v7053_v35  ;;  %v3675_v22 = vsel %vm2984_vm4, %v3643_v28, %v7054_v36  ;;  %v6979_v45 = vunpack.i.h.bf16 %v6977_v12  ;;  %v6978_v39 = vunpack.i.l.bf16 %v6977_v12 }
 0x26a   : > { %v8877_v29 = vpop.permute.xlu0 %7066  ;;  %7261 = vrot.lane.b32.xlu1 %v8684_v43, %s10703_s30  ;;  %v3706_v13 = vpack.c.bf16 %v3675_v22, %v3674_v21 }
 0x26b   : > { %v2657_v40 = vld [vmem:[#allocation2 + $0x129] sm:$0xff]  ;;  %v2955_v26 = vsel %vm493_vm1, %v3291_v18, %v6979_v45  ;;  %v2954_v19 = vsel %vm493_vm1, %v3290_v49, %v6978_v39 }
 0x26c   : > { %6755 = vmatprep.mubr.msk.bf16.mxu0 %vm3045_vm5, %v3706_v13  ;;  %v6982_v55 = vpop.permute.xlu1 %6981  ;;  %v8882_v15 = vpack.i.bf16 %v2657_v40, %v2656_v24  ;;  %v2688_v27 = vld [vmem:[#allocation2 + $0x122] sm:$0xff]  ;;  %v2689_v32 = vld [vmem:[#allocation2 + $0x12a] sm:$0xff] }
 0x26d   : > { %v6984_v42 = vunpack.i.h.bf16 %v6982_v55  ;;  %v6983_v30 = vunpack.i.l.bf16 %v6982_v55  ;;  %v8896_v0 = vpack.i.bf16 %v2689_v32, %v2688_v27  ;;  %v8985_v13 = vld [vmem:[#allocation2 + $0x48] sm:$0xff]  ;;  %v8987_v24 = vld [vmem:[#allocation2 + $0x50] sm:$0xff] }
 0x26e   : > { %v8886_v37 = vpop.permute.xlu0 %7071  ;;  %7271 = vrot.lane.b32.xlu1 %v8695_v53, %s7514_s15  ;;  %7246 = vrot.lane.b32.xlu0 %v8882_v15, %s10703_s30 }
 0x26f   : > { %v2987_v62 = vsel %vm2984_vm4, %v2954_v19, %v6983_v30  ;;  %v2988_v57 = vsel %vm2984_vm4, %v2955_v26, %v6984_v42  ;;  %v8997_v42 = vld [vmem:[#allocation2 + $0x30] sm:$0xff]  ;;  %v8999_v30 = vld [vmem:[#allocation2 + $0x38] sm:$0xff] }
 0x270   : > { %v8894_v46 = vpop.permute.xlu1 %6986  ;;  %v3018_v61 = vpack.c.bf16 %v2988_v57, %v2987_v62 }
 0x272   : > { %v8898_v59 = vpop.permute.xlu0 %7086  ;;  %7281 = vrot.lane.b32.xlu1 %v8835_v34, %s10703_s30  ;;  %7251 = vrot.lane.b32.xlu0 %v8896_v0, %s7514_s15 }
 0x273   : > { %6720 = vmatmul.mubr.msk.bf16.vlgmr.msra.gmra.mxu1 %vm3045_vm5, %v3018_v61 }
 0x274   : > { %v8905_v63 = vpop.permute.xlu1 %6991  ;;  %6788 = vmatpush3.bf16.msra.mxu1 %v4474_v48 }
 0x275   : > { %6789 = vmatprep.subr.bf16.mxu1 %v7446_v38 }
 0x276   : > { %v8910_v51 = vpop.permute.xlu0 %7091  ;;  %7291 = vrot.lane.b32.xlu1 %v8843_v56, %s7514_s15  ;;  %7256 = vrot.lane.b32.xlu0 %v8762_v33, %s10703_s30 }
 0x278   : > { %v6997_v60 = vpop.permute.xlu1 %6996  ;;  %6790 = vmatpush3.bf16.msra.mxu1 %v7446_v38 }
 0x279   : > { %v6999_v11 = vunpack.i.h.bf16 %v6997_v60  ;;  %v6998_v28 = vunpack.i.l.bf16 %v6997_v60  ;;  %v3347_v60 = vld [vmem:[#allocation2 + $0x141] sm:$0xff] }
 0x27a   : > { %v8921_v4 = vpop.permute.xlu0 %7106  ;;  %7301 = vrot.lane.b32.xlu1 %v8705_v2, %s10703_s30  ;;  %7266 = vrot.lane.b32.xlu0 %v8771_v14, %s7514_s15 }
 0x27b   : > { %v2958_v55 = vsel %vm493_vm1, %v8985_v13, %v6998_v28 }
 0x27c   : > { %v7002_v33 = vpop.permute.xlu1 %7001 }
 0x27d   : > { %v7004_v12 = vunpack.i.h.bf16 %v7002_v33  ;;  %v7003_v21 = vunpack.i.l.bf16 %v7002_v33 }
 0x27e   : > { %v8927_v5 = vpop.permute.xlu0 %7111  ;;  %7311 = vrot.lane.b32.xlu1 %v8714_v9, %s7514_s15  ;;  %7276 = vrot.lane.b32.xlu0 %v8684_v43, %s10703_s30 }
 0x27f   : > { %v2991_v26 = vsel %vm2984_vm4, %v2958_v55, %v7003_v21 }
 0x280   : > { %v8933_v10 = vpop.permute.xlu1 %7006 }
 0x282   : > { %v8935_v47 = vpop.permute.xlu0 %7116  ;;  %7326 = vrot.lane.b32.xlu1 %v8722_v1, %s10703_s30  ;;  %7286 = vrot.lane.b32.xlu0 %v8695_v53, %s7514_s15 }
 0x284   : > { %v8941_v14 = vpop.permute.xlu1 %7011 }
 0x286   : > { %v8943_v44 = vpop.permute.xlu0 %7121  ;;  %7331 = vrot.lane.b32.xlu1 %v8733_v6, %s7514_s15  ;;  %7296 = vrot.lane.b32.xlu0 %v8835_v34, %s10703_s30  ;;  %v8961_v6 = vld [vmem:[#allocation2 + $0x90] sm:$0xff]  ;;  %v8963_v34 = vld [vmem:[#allocation2 + $0x98] sm:$0xff] }
 0x288   : > { %v8949_v43 = vpop.permute.xlu1 %7016 }
 0x28a   : > { %v7137_v17 = vpop.permute.xlu0 %7136  ;;  %7336 = vrot.lane.b32.xlu1 %v8882_v15, %s10703_s30  ;;  %7306 = vrot.lane.b32.xlu0 %v8843_v56, %s7514_s15 }
 0x28b   : > { %v7139_v53 = vunpack.i.h.bf16 %v7137_v17  ;;  %v7138_v1 = vunpack.i.l.bf16 %v7137_v17  ;;  %v3346_v17 = vld [vmem:[#allocation2 + $0x139] sm:$0xff] }
 0x28c   : > { %v8955_v25 = vpop.permute.xlu1 %7021 }
 0x28d   : > { %v4341_v56 = vsel %vm493_vm1, %v8963_v34, %v7139_v53  ;;  %v4340_v54 = vsel %vm493_vm1, %v8961_v6, %v7138_v1 }
 0x28e   : > { %v7142_v23 = vpop.permute.xlu0 %7141  ;;  %7341 = vrot.lane.b32.xlu1 %v8896_v0, %s7514_s15  ;;  %7316 = vrot.lane.b32.xlu0 %v8705_v2, %s10703_s30 }
 0x28f   : > { %v7144_v58 = vunpack.i.h.bf16 %v7142_v23  ;;  %v7143_v20 = vunpack.i.l.bf16 %v7142_v23 }
 0x290   : > { %v8969_v49 = vpop.permute.xlu1 %7026 }
 0x291   : > { %v8972_v18 = vsel %vm2984_vm4, %v4340_v54, %v7143_v20  ;;  %v8975_v36 = vsel %vm2984_vm4, %v4341_v56, %v7144_v58  ;;  %v7355_v58 = vpack.i.bf16 %v3347_v60, %v3346_v17  ;;  %v3378_v20 = vld [vmem:[#allocation2 + $0x13a] sm:$0xff]  ;;  %v3379_v56 = vld [vmem:[#allocation2 + $0x142] sm:$0xff]  ;;  %v6969_v17 = vunpack.i.h.bf16 %v8862_v31 }
 0x292   : > { %v7147_v2 = vpop.permute.xlu0 %7146  ;;  %7361 = vrot.lane.b32.xlu1 %v8812_v16, %s10703_s30  ;;  %7321 = vrot.lane.b32.xlu0 %v8714_v9, %s7514_s15  ;;  %v2959_v9 = vsel %vm493_vm1, %v8987_v24, %v6999_v11 }
 0x293   : > { %v7149_v22 = vunpack.i.h.bf16 %v7147_v2  ;;  %v7148_v45 = vunpack.i.l.bf16 %v7147_v2  ;;  %v2992_v19 = vsel %vm2984_vm4, %v2959_v9, %v7004_v12  ;;  %v7365_v12 = vpack.i.bf16 %v3379_v56, %v3378_v20 }
 0x294   : > { %v8983_v39 = vpop.permute.xlu1 %7031  ;;  %v3020_v33 = vpack.c.bf16 %v2992_v19, %v2991_v26  ;;  %v3351_v19 = vld [vmem:[#allocation2 + $0x171] sm:$0xff]  ;;  %v6968_v56 = vunpack.i.l.bf16 %v8862_v31  ;;  %v7118_v31 = vunpack.i.l.bf16 %v8935_v47 }
 0x295   : > { %v2956_v62 = vsel %vm493_vm1, %v8997_v42, %v7148_v45 }
 0x296   : > { %v7152_v40 = vpop.permute.xlu0 %7151  ;;  %7371 = vrot.lane.b32.xlu1 %v8825_v52, %s7514_s15  ;;  %7346 = vrot.lane.b32.xlu0 %v8882_v15, %s10703_s30  ;;  %v2957_v15 = vsel %vm493_vm1, %v8999_v30, %v7149_v22 }
 0x297   : > { %v7154_v27 = vunpack.i.h.bf16 %v7152_v40  ;;  %v7153_v32 = vunpack.i.l.bf16 %v7152_v40 }
 0x298   : > { %v2526_v57 = vpop.permute.xlu1 %2525 }
 0x299   : > { %v2989_v61 = vsel %vm2984_vm4, %v2956_v62, %v7153_v32  ;;  %v2990_v7 = vsel %vm2984_vm4, %v2957_v15, %v7154_v27  ;;  %2591 = vst.msk [vmem:[#allocation2 + $0x189] sm:$0xff] %vm2559_vm8, %v2526_v57  ;;  %v4042_v62 = vld [vmem:[#allocation2 + $0x199] sm:$0xff]  ;;  %v4043_v15 = vld [vmem:[#allocation2 + $0x1a1] sm:$0xff] }
 0x29a   : > { %v7167_v48 = vpop.permute.xlu0 %7166  ;;  %7381 = vrot.lane.b32.xlu1 %v8750_v41, %s10703_s30  ;;  %7351 = vrot.lane.b32.xlu0 %v8896_v0, %s7514_s15  ;;  %v3019_v38 = vpack.c.bf16 %v2990_v7, %v2989_v61  ;;  %v4074_v57 = vld [vmem:[#allocation2 + $0x19a] sm:$0xff]  ;;  %v4075_v61 = vld [vmem:[#allocation2 + $0x1a2] sm:$0xff] }
 0x29b   : > { %v7169_v53 = vunpack.i.h.bf16 %v7167_v48  ;;  %v7168_v1 = vunpack.i.l.bf16 %v7167_v48  ;;  %v7430_v20 = vpack.i.bf16 %v4075_v61, %v4074_v57 }
 0x29c   : > { %v9014_v23 = vpop.permute.xlu1 %7036  ;;  %6723 = vmatprep.mubr.msk.bf16.mxu1 %vm3045_vm5, %v3019_v38 }
 0x29d   : > { %6724 = vmatmul.mubr.msk.bf16.gmra.mxu1 %vm3045_vm5, %v3020_v33  ;;  %v4333_v2 = vsel %vm493_vm1, %v8999_v30, %v7169_v53  ;;  %v4332_v11 = vsel %vm493_vm1, %v8997_v42, %v7168_v1  ;;  %v3350_v33 = vld [vmem:[#allocation2 + $0x169] sm:$0xff] }
 0x29e   : > { %v7172_v54 = vpop.permute.xlu0 %7171  ;;  %7391 = vrot.lane.b32.xlu1 %v8758_v50, %s7514_s15  ;;  %7356 = vrot.lane.b32.xlu0 %v7355_v58, %s10703_s30  ;;  %v3352_v50 = vld [vmem:[#allocation2 + $0x181] sm:$0xff]  ;;  %v7395_v1 = vpack.i.bf16 %v3351_v19, %v3350_v33  ;;  %v7420_v58 = vpack.i.bf16 %v4043_v15, %v4042_v62  ;;  %v9069_v19 = vld [vmem:[#allocation2 + $0x78] sm:$0xff]  ;;  %v7123_v15 = vunpack.i.l.bf16 %v8943_v44 }
 0x29f   : > { %v7174_v41 = vunpack.i.h.bf16 %v7172_v54  ;;  %v7173_v0 = vunpack.i.l.bf16 %v7172_v54  ;;  %v6974_v54 = vunpack.i.h.bf16 %v8869_v3  ;;  %v9071_v62 = vld [vmem:[#allocation2 + $0x80] sm:$0xff] }
 0x2a0   : > { %v9025_v28 = vpop.permute.xlu1 %7041  ;;  %v3353_v21 = vld [vmem:[#allocation2 + $0x189] sm:$0xff] }
 0x2a1   : > { %v9028_v22 = vsel %vm2984_vm4, %v4332_v11, %v7173_v0  ;;  %v9031_v45 = vsel %vm2984_vm4, %v4333_v2, %v7174_v41  ;;  %v9036_v9 = vpack.i.bf16 %v3353_v21, %v3352_v50  ;;  %v3384_v27 = vld [vmem:[#allocation2 + $0x182] sm:$0xff]  ;;  %v3385_v32 = vld [vmem:[#allocation2 + $0x18a] sm:$0xff]  ;;  %v7119_v2 = vunpack.i.h.bf16 %v8935_v47 }
 0x2a2   : > { %v9033_v40 = vpop.permute.xlu0 %7176  ;;  %7366 = vrot.lane.b32.xlu0 %v7365_v12, %s7514_s15  ;;  %v9046_v38 = vpack.i.bf16 %v3385_v32, %v3384_v27  ;;  %v7124_v50 = vunpack.i.h.bf16 %v8943_v44  ;;  %v3382_v32 = vld [vmem:[#allocation2 + $0x16a] sm:$0xff] }
 0x2a3   : > { %7401 = vrot.lane.b32.xlu1 %v9036_v9, %s10703_s30 }
 0x2a4   : > { %v7057_v26 = vpop.permute.xlu1 %7056 }
 0x2a5   : > { %v7059_v7 = vunpack.i.h.bf16 %v7057_v26  ;;  %v7058_v60 = vunpack.i.l.bf16 %v7057_v26  ;;  %v3383_v26 = vld [vmem:[#allocation2 + $0x172] sm:$0xff] }
 0x2a6   : > { %v9042_v48 = vpop.permute.xlu0 %7181  ;;  %7376 = vrot.lane.b32.xlu0 %v8812_v16, %s10703_s30  ;;  %v6973_v16 = vunpack.i.l.bf16 %v8869_v3 }
 0x2a7   : > { %7411 = vrot.lane.b32.xlu1 %v9046_v38, %s7514_s15  ;;  %v4335_v11 = vsel %vm493_vm1, %v8987_v24, %v7059_v7  ;;  %v4334_v12 = vsel %vm493_vm1, %v8985_v13, %v7058_v60  ;;  %v2963_v7 = vsel %vm493_vm1, %v9071_v62, %v6969_v17  ;;  %v2962_v60 = vsel %vm493_vm1, %v9069_v19, %v6968_v56  ;;  %v9092_v17 = vld [vmem:[#allocation2 + $0x68] sm:$0xff] }
 0x2a8   : > { %v7062_v53 = vpop.permute.xlu1 %7061  ;;  %v2995_v33 = vsel %vm2984_vm4, %v2962_v60, %v6973_v16 }
 0x2a9   : > { %v7064_v41 = vunpack.i.h.bf16 %v7062_v53  ;;  %v7063_v0 = vunpack.i.l.bf16 %v7062_v53  ;;  %v2996_v53 = vsel %vm2984_vm4, %v2963_v7, %v6974_v54 }
 0x2aa   : > { %v7197_v21 = vpop.permute.xlu0 %7196  ;;  %7386 = vrot.lane.b32.xlu0 %v8825_v52, %s7514_s15  ;;  %v3022_v60 = vpack.c.bf16 %v2996_v53, %v2995_v33 }
 0x2ab   : > { %v9064_v27 = vsel %vm2984_vm4, %v4334_v12, %v7063_v0  ;;  %v9067_v3 = vsel %vm2984_vm4, %v4335_v11, %v7064_v41  ;;  %v7199_v47 = vunpack.i.h.bf16 %v7197_v21  ;;  %v7198_v57 = vunpack.i.l.bf16 %v7197_v21  ;;  %7421 = vrot.lane.b32.xlu1 %v7420_v58, %s10703_s30  ;;  %v9090_v11 = vld [vmem:[#allocation2 + $0x60] sm:$0xff] }
 0x2ac   : > { %v9076_v61 = vpop.permute.xlu1 %7076  ;;  %v7405_v41 = vpack.i.bf16 %v3383_v26, %v3382_v32  ;;  %v2964_v0 = vsel %vm493_vm1, %v8961_v6, %v7118_v31  ;;  %v2965_v58 = vsel %vm493_vm1, %v8963_v34, %v7119_v2  ;;  %v6989_v26 = vunpack.i.h.bf16 %v8894_v46 }
 0x2ad   : > { %v2997_v16 = vsel %vm2984_vm4, %v2964_v0, %v7123_v15  ;;  %v2998_v54 = vsel %vm2984_vm4, %v2965_v58, %v7124_v50  ;;  %v2961_v21 = vsel %vm493_vm1, %v9092_v17, %v7199_v47  ;;  %v6988_v15 = vunpack.i.l.bf16 %v8894_v46  ;;  %v9115_v46 = vld [vmem:[#allocation2 + $0xa8] sm:$0xff] }
 0x2ae   : > { %v7202_v44 = vpop.permute.xlu0 %7201  ;;  %7396 = vrot.lane.b32.xlu0 %v7395_v1, %s10703_s30  ;;  %v2960_v1 = vsel %vm493_vm1, %v9090_v11, %v7198_v57  ;;  %v6994_v57 = vunpack.i.h.bf16 %v8905_v63  ;;  %v6993_v47 = vunpack.i.l.bf16 %v8905_v63  ;;  %v7178_v0 = vunpack.i.l.bf16 %v9033_v40 }
 0x2af   : > { %v7204_v12 = vunpack.i.h.bf16 %v7202_v44  ;;  %v7203_v56 = vunpack.i.l.bf16 %v7202_v44  ;;  %7431 = vrot.lane.b32.xlu1 %v7430_v20, %s7514_s15  ;;  %v3023_v44 = vpack.c.bf16 %v2998_v54, %v2997_v16  ;;  %v7179_v20 = vunpack.i.h.bf16 %v9033_v40 }
 0x2b0   : > { %v9100_v31 = vpop.permute.xlu1 %7081  ;;  %v7183_v63 = vunpack.i.l.bf16 %v9042_v48  ;;  %v2966_v40 = vsel %vm493_vm1, %v9115_v46, %v6988_v15 }
 0x2b1   : > { %v2993_v2 = vsel %vm2984_vm4, %v2960_v1, %v7203_v56  ;;  %v2994_v32 = vsel %vm2984_vm4, %v2961_v21, %v7204_v12  ;;  %v7184_v1 = vunpack.i.h.bf16 %v9042_v48  ;;  %v2999_v16 = vsel %vm2984_vm4, %v2966_v40, %v6993_v47  ;;  %v9131_v21 = vld [vmem:[#allocation2 + $0xc0] sm:$0xff]  ;;  %v9133_v48 = vld [vmem:[#allocation2 + $0xc8] sm:$0xff] }
 0x2b2   : > { %v7217_v7 = vpop.permute.xlu0 %7216  ;;  %7406 = vrot.lane.b32.xlu0 %v7405_v41, %s7514_s15  ;;  %v3021_v50 = vpack.c.bf16 %v2994_v32, %v2993_v2  ;;  %v9117_v41 = vld [vmem:[#allocation2 + $0xb0] sm:$0xff]  ;;  %v2969_v15 = vsel %vm493_vm1, %v9133_v48, %v7179_v20 }
 0x2b3   : > { %v7219_v58 = vunpack.i.h.bf16 %v7217_v7  ;;  %v7218_v12 = vunpack.i.l.bf16 %v7217_v7  ;;  %v2967_v33 = vsel %vm493_vm1, %v9117_v41, %v6989_v26  ;;  %v2968_v26 = vsel %vm493_vm1, %v9131_v21, %v7178_v0 }
 0x2b4   : > { %v9112_v56 = vpop.permute.xlu1 %7096  ;;  %6727 = vmatprep.mubr.msk.bf16.mxu1 %vm3045_vm5, %v3021_v50  ;;  %v3000_v54 = vsel %vm2984_vm4, %v2967_v33, %v6994_v57  ;;  %v3001_v57 = vsel %vm2984_vm4, %v2968_v26, %v7183_v63  ;;  %v3002_v47 = vsel %vm2984_vm4, %v2969_v15, %v7184_v1  ;;  %v7009_v0 = vunpack.i.h.bf16 %v8933_v10 }
 0x2b5   : > { %6728 = vmatmul.mubr.msk.bf16.gmra.mxu1 %vm3045_vm5, %v3022_v60  ;;  %v4336_v7 = vsel %vm493_vm1, %v9090_v11, %v7218_v12  ;;  %v3024_v12 = vpack.c.bf16 %v3000_v54, %v2999_v16  ;;  %v7014_v63 = vunpack.i.h.bf16 %v8941_v14  ;;  %v7013_v1 = vunpack.i.l.bf16 %v8941_v14 }
 0x2b6   : > { %v7222_v53 = vpop.permute.xlu0 %7221  ;;  %7416 = vrot.lane.b32.xlu0 %v9036_v9, %s10703_s30  ;;  %6731 = vmatprep.mubr.msk.bf16.mxu1 %vm3045_vm5, %v3023_v44  ;;  %v4337_v9 = vsel %vm493_vm1, %v9092_v17, %v7219_v58  ;;  %v7008_v58 = vunpack.i.l.bf16 %v8933_v10  ;;  %v7069_v15 = vunpack.i.h.bf16 %v8877_v29  ;;  %s7521_s30 = smov [#allocation3]  }
 0x2b7   : > { %v7224_v2 = vunpack.i.h.bf16 %v7222_v53  ;;  %v7223_v32 = vunpack.i.l.bf16 %v7222_v53  ;;  %v3025_v53 = vpack.c.bf16 %v3002_v47, %v3001_v57  ;;  %v7018_v57 = vunpack.i.l.bf16 %v8949_v43  ;;  %s7453_s0 = sshll.u32 %s7521_s30, 4  ;;  %s7454_s0 = int_to_ptr.vmem [resolvable:$false] %s7453_s0 }
 0x2b8   : > { %v9143_v50 = vpop.permute.xlu1 %7101  ;;  %s7455_s1 = scalar_lea.vmem %s7454_s0, 1024 }
 0x2b9   : > { %v9148_v60 = vsel %vm2984_vm4, %v4336_v7, %v7223_v32  ;;  %v9151_v44 = vsel %vm2984_vm4, %v4337_v9, %v7224_v2  ;;  %v9168_v2 = vld [vmem:[#allocation2 + $0xe0] sm:$0xff]  ;;  %v7068_v9 = vunpack.i.l.bf16 %v8877_v29  ;;  %v7019_v7 = vunpack.i.h.bf16 %v8949_v43  ;;  %v9192_v29 = vld [vmem:[#allocation2 + $0x110] sm:$0xff] }
 0x2ba   : > { %7426 = vrot.lane.b32.xlu0 %v9046_v38, %s7514_s15  ;;  %v9166_v38 = vld [vmem:[#allocation2 + $0xd8] sm:$0xff]  ;;  %v2971_v10 = vsel %vm493_vm1, %v9168_v2, %v7009_v0  ;;  %v7074_v0 = vunpack.i.h.bf16 %v8886_v37  ;;  %10807 = vst [vmem:[#allocation33_spill] sm:$0xff] %v9192_v29  ;;  %s10616_s15 = scalar_lea.hbm %s10673_s13, %s6596_s22 }
 0x2bb   : > { %v2970_v16 = vsel %vm493_vm1, %v9166_v38, %v7008_v58  ;;  %v3004_v54 = vsel %vm2984_vm4, %v2971_v10, %v7014_v63  ;;  %v7073_v58 = vunpack.i.l.bf16 %v8886_v37  ;;  %v7023_v63 = vunpack.i.l.bf16 %v8955_v25  ;;  %v9190_v10 = vld [vmem:[#allocation2 + $0x108] sm:$0xff] }
 0x2bc   : > { %v9161_v33 = vpop.permute.xlu0 %7226  ;;  %v9163_v40 = vpop.permute.xlu1 %7126  ;;  %v3003_v14 = vsel %vm2984_vm4, %v2970_v16, %v7013_v1  ;;  %v3647_v37 = vsel %vm493_vm1, %v8987_v24, %v7069_v15 }
 0x2bd   : > { %6732 = vmatmul.mubr.msk.bf16.gmra.mxu1 %vm3045_vm5, %v3024_v12  ;;  %v3026_v47 = vpack.c.bf16 %v3004_v54, %v3003_v14  ;;  %v7024_v12 = vunpack.i.h.bf16 %v8955_v25  ;;  %v3646_v54 = vsel %vm493_vm1, %v8985_v13, %v7068_v9  ;;  %v2975_v25 = vsel %vm493_vm1, %v9192_v29, %v7019_v7  ;;  %v9206_v13 = vld [vmem:[#allocation2 + $0xf0] sm:$0xff]  ;;  %v9208_v9 = vld [vmem:[#allocation2 + $0xf8] sm:$0xff] }
 0x2be   : > { %6735 = vmatprep.mubr.msk.bf16.mxu1 %vm3045_vm5, %v3025_v53  ;;  %v3678_v20 = vsel %vm2984_vm4, %v3646_v54, %v7073_v58  ;;  %v3679_v52 = vsel %vm2984_vm4, %v3647_v37, %v7074_v0 }
 0x2c0   : > { %v9177_v32 = vpop.permute.xlu0 %7231  ;;  %v9179_v26 = vpop.permute.xlu1 %7131 }
 0x2c4   : > { %v7237_v1 = vpop.permute.xlu0 %7236  ;;  %v7157_v53 = vpop.permute.xlu1 %7156 }
 0x2c5   : > { %6736 = vmatmul.mubr.msk.bf16.gmra.mxu1 %vm3045_vm5, %v3026_v47  ;;  %v7239_v16 = vunpack.i.h.bf16 %v7237_v1  ;;  %v7238_v35 = vunpack.i.l.bf16 %v7237_v1  ;;  %v7159_v43 = vunpack.i.h.bf16 %v7157_v53  ;;  %v7158_v14 = vunpack.i.l.bf16 %v7157_v53 }
 0x2c6   : > { %v2974_v47 = vsel %vm493_vm1, %v9190_v10, %v7018_v57  ;;  %v3008_v53 = vsel %vm2984_vm4, %v2975_v25, %v7024_v12 }
 0x2c7   : > { %v3007_v1 = vsel %vm2984_vm4, %v2974_v47, %v7023_v63  ;;  %v2972_v57 = vsel %vm493_vm1, %v9206_v13, %v7238_v35  ;;  %v2973_v0 = vsel %vm493_vm1, %v9208_v9, %v7239_v16  ;;  %v3645_v58 = vsel %vm493_vm1, %v8999_v30, %v7159_v43 }
 0x2c8   : > { %v7242_v55 = vpop.permute.xlu0 %7241  ;;  %v7162_v8 = vpop.permute.xlu1 %7161  ;;  %v3644_v12 = vsel %vm493_vm1, %v8997_v42, %v7158_v14  ;;  %v3028_v47 = vpack.c.bf16 %v3008_v53, %v3007_v1  ;;  %v3708_v16 = vpack.c.bf16 %v3679_v52, %v3678_v20  ;;  %v7089_v30 = vunpack.i.h.bf16 %v8898_v59 }
 0x2c9   : > { %v7244_v24 = vunpack.i.h.bf16 %v7242_v55  ;;  %v7243_v15 = vunpack.i.l.bf16 %v7242_v55  ;;  %v7164_v7 = vunpack.i.h.bf16 %v7162_v8  ;;  %v7163_v29 = vunpack.i.l.bf16 %v7162_v8 }
 0x2ca   : > { %v7094_v43 = vunpack.i.h.bf16 %v8910_v51  ;;  %v7093_v14 = vunpack.i.l.bf16 %v8910_v51  ;;  %v3651_v53 = vsel %vm493_vm1, %v9071_v62, %v7089_v30 }
 0x2cb   : > { %v3005_v63 = vsel %vm2984_vm4, %v2972_v57, %v7243_v15  ;;  %v3006_v54 = vsel %vm2984_vm4, %v2973_v0, %v7244_v24  ;;  %v3676_v55 = vsel %vm2984_vm4, %v3644_v12, %v7163_v29  ;;  %v3677_v8 = vsel %vm2984_vm4, %v3645_v58, %v7164_v7 }
 0x2cc   : > { %v3707_v37 = vpack.c.bf16 %v3677_v8, %v3676_v55  ;;  %v9222_v25 = vpop.permute.xlu1 %7186  ;;  %v3027_v35 = vpack.c.bf16 %v3006_v54, %v3005_v63  ;;  %v7088_v29 = vunpack.i.l.bf16 %v8898_v59  ;;  %v3683_v7 = vsel %vm2984_vm4, %v3651_v53, %v7094_v43 }
 0x2cd   : > { %v7109_v57 = vunpack.i.h.bf16 %v8921_v4  ;;  %v7108_v0 = vunpack.i.l.bf16 %v8921_v4  ;;  %v7114_v12 = vunpack.i.h.bf16 %v8927_v5  ;;  %v7113_v63 = vunpack.i.l.bf16 %v8927_v5 }
 0x2ce   : > { %6739 = vmatprep.mubr.msk.bf16.mxu1 %vm3045_vm5, %v3027_v35  ;;  %6756 = vmatmul.mubr.msk.bf16.vlgmr.msra.gmra.mxu0 %vm3045_vm5, %v3707_v37  ;;  %v3650_v24 = vsel %vm493_vm1, %v9069_v19, %v7088_v29  ;;  %v7134_v29 = vunpack.i.h.bf16 %v9179_v26  ;;  %v7133_v43 = vunpack.i.l.bf16 %v9179_v26  ;;  %v7034_v53 = vunpack.i.h.bf16 %v8983_v39 }
 0x2cf   : > { %6740 = vmatmul.mubr.msk.bf16.gmra.mxu1 %vm3045_vm5, %v3028_v47  ;;  %6759 = vmatprep.mubr.msk.bf16.mxu0 %vm3045_vm5, %v3708_v16  ;;  %v3682_v15 = vsel %vm2984_vm4, %v3650_v24, %v7093_v14  ;;  %v3655_v4 = vsel %vm493_vm1, %v9117_v41, %v7109_v57  ;;  %v7129_v47 = vunpack.i.h.bf16 %v9163_v40  ;;  %v7128_v16 = vunpack.i.l.bf16 %v9163_v40 }
 0x2d0   : > { %v9228_v42 = vpop.permute.xlu1 %7191  ;;  %v3710_v35 = vpack.c.bf16 %v3683_v7, %v3682_v15  ;;  %v7029_v40 = vunpack.i.h.bf16 %v8969_v49 }
 0x2d1   : > { %v3653_v24 = vsel %vm493_vm1, %v8963_v34, %v7129_v47  ;;  %v3652_v26 = vsel %vm493_vm1, %v8961_v6, %v7128_v16  ;;  %v7228_v34 = vunpack.i.l.bf16 %v9161_v33 }
 0x2d2   : > { %v3684_v57 = vsel %vm2984_vm4, %v3652_v26, %v7133_v43 }
 0x2d4   : > { %v7207_v1 = vpop.permute.xlu1 %7206 }
 0x2d5   : > { %v7209_v52 = vunpack.i.h.bf16 %v7207_v1  ;;  %v7208_v20 = vunpack.i.l.bf16 %v7207_v1  ;;  %v3687_v1 = vsel %vm2984_vm4, %v3655_v4, %v7114_v12  ;;  %v7188_v4 = vunpack.i.l.bf16 %v9222_v25 }
 0x2d7   : > { %v3649_v54 = vsel %vm493_vm1, %v9092_v17, %v7209_v52  ;;  %v3648_v55 = vsel %vm493_vm1, %v9090_v11, %v7208_v20  ;;  %v3654_v17 = vsel %vm493_vm1, %v9115_v46, %v7108_v0  ;;  %v7028_v11 = vunpack.i.l.bf16 %v8969_v49  ;;  %v9267_v20 = vld [vmem:[#allocation2 + $0x138] sm:$0xff] }
 0x2d8   : > { %v7212_v59 = vpop.permute.xlu1 %7211  ;;  %v3686_v14 = vsel %vm2984_vm4, %v3654_v17, %v7113_v63  ;;  %v7033_v52 = vunpack.i.l.bf16 %v8983_v39  ;;  %v7229_v39 = vunpack.i.h.bf16 %v9161_v33  ;;  %v7194_v17 = vunpack.i.h.bf16 %v9228_v42 }
 0x2d9   : > { %v7214_v58 = vunpack.i.h.bf16 %v7212_v59  ;;  %v7213_v51 = vunpack.i.l.bf16 %v7212_v59  ;;  %v2978_v49 = vsel %vm493_vm1, %v9267_v20, %v7028_v11  ;;  %v3685_v59 = vsel %vm2984_vm4, %v3653_v24, %v7134_v29  ;;  %v9298_v29 = vld [vmem:[#allocation2 + $0x120] sm:$0xff] }
 0x2da   : > { %v3712_v0 = vpack.c.bf16 %v3687_v1, %v3686_v14  ;;  %v3011_v63 = vsel %vm2984_vm4, %v2978_v49, %v7033_v52  ;;  %v3711_v16 = vpack.c.bf16 %v3685_v59, %v3684_v57  ;;  %v7193_v11 = vunpack.i.l.bf16 %v9228_v42 }
 0x2db   : > { %v3680_v8 = vsel %vm2984_vm4, %v3648_v55, %v7213_v51  ;;  %v3681_v37 = vsel %vm2984_vm4, %v3649_v54, %v7214_v58  ;;  %v9280_v58 = vld [vmem:[#allocation2 + $0x140] sm:$0xff]  ;;  %v7234_v54 = vunpack.i.h.bf16 %v9177_v32  ;;  %v7233_v55 = vunpack.i.l.bf16 %v9177_v32  ;;  %v9300_v32 = vld [vmem:[#allocation2 + $0x128] sm:$0xff] }
 0x2dc   : > { %v9254_v30 = vpop.permute.xlu1 %7261  ;;  %v3709_v5 = vpack.c.bf16 %v3681_v37, %v3680_v8  ;;  %v2979_v6 = vsel %vm493_vm1, %v9280_v58, %v7029_v40  ;;  %v9290_v37 = vld [vmem:[#allocation2 + $0x150] sm:$0xff]  ;;  %v3656_v49 = vsel %vm493_vm1, %v9131_v21, %v7188_v4  ;;  %v9330_v4 = vld [vmem:[#allocation2 + $0x168] sm:$0xff] }
 0x2dd   : > { %v3012_v8 = vsel %vm2984_vm4, %v2979_v6, %v7034_v53  ;;  %v2980_v1 = vsel %vm493_vm1, %v9290_v37, %v7228_v34  ;;  %v3688_v6 = vsel %vm2984_vm4, %v3656_v49, %v7193_v11  ;;  %v10808_v49 = vpack.c.bf16 %v9031_v45, %v9028_v22 }
 0x2de   : > { %6760 = vmatmul.mubr.msk.bf16.gmra.mxu0 %vm3045_vm5, %v3709_v5  ;;  %v9294_v5 = vld [vmem:[#allocation2 + $0x158] sm:$0xff]  ;;  %v3013_v42 = vsel %vm2984_vm4, %v2980_v1, %v7233_v55  ;;  %v3030_v34 = vpack.c.bf16 %v3012_v8, %v3011_v63  ;;  %v7043_v55 = vunpack.i.l.bf16 %v9025_v28  ;;  %v9332_v63 = vld [vmem:[#allocation2 + $0x170] sm:$0xff] }
 0x2df   : > { %6763 = vmatprep.mubr.msk.bf16.mxu0 %vm3045_vm5, %v3710_v35  ;;  %v7189_v35 = vunpack.i.h.bf16 %v9222_v25  ;;  %v2981_v25 = vsel %vm493_vm1, %v9294_v5, %v7229_v39 }
 0x2e0   : > { %v7247_v15 = vpop.permute.xlu0 %7246  ;;  %v9274_v7 = vpop.permute.xlu1 %7271  ;;  %v3014_v53 = vsel %vm2984_vm4, %v2981_v25, %v7234_v54 }
 0x2e1   : > { %v7249_v51 = vunpack.i.h.bf16 %v7247_v15  ;;  %v7248_v12 = vunpack.i.l.bf16 %v7247_v15  ;;  %v3657_v15 = vsel %vm493_vm1, %v9133_v48, %v7189_v35  ;;  %v3031_v35 = vpack.c.bf16 %v3014_v53, %v3013_v42 }
 0x2e2   : > { %v3689_v54 = vsel %vm2984_vm4, %v3657_v15, %v7194_v17 }
 0x2e3   : > { %v2976_v40 = vsel %vm493_vm1, %v9298_v29, %v7248_v12  ;;  %v2977_v52 = vsel %vm493_vm1, %v9300_v32, %v7249_v51  ;;  %v7039_v51 = vunpack.i.h.bf16 %v9014_v23  ;;  %v7038_v12 = vunpack.i.l.bf16 %v9014_v23 }
 0x2e4   : > { %v7252_v33 = vpop.permute.xlu0 %7251  ;;  %v7282_v47 = vpop.permute.xlu1 %7281 }
 0x2e5   : > { %v7254_v43 = vunpack.i.h.bf16 %v7252_v33  ;;  %v7253_v14 = vunpack.i.l.bf16 %v7252_v33  ;;  %v3713_v33 = vpack.c.bf16 %v3689_v54, %v3688_v6  ;;  %v7284_v1 = vunpack.i.h.bf16 %v7282_v47 }
 0x2e6   : > { %6764 = vmatmul.mubr.msk.bf16.gmra.mxu0 %vm3045_vm5, %v3711_v16  ;;  %v2983_v16 = vsel %vm493_vm1, %v9332_v63, %v7039_v51  ;;  %v7283_v25 = vunpack.i.l.bf16 %v7282_v47 }
 0x2e7   : > { %v3009_v24 = vsel %vm2984_vm4, %v2976_v40, %v7253_v14  ;;  %v3010_v26 = vsel %vm2984_vm4, %v2977_v52, %v7254_v43  ;;  %6767 = vmatprep.mubr.msk.bf16.mxu0 %vm3045_vm5, %v3712_v0  ;;  %v7044_v0 = vunpack.i.h.bf16 %v9025_v28  ;;  %v2982_v28 = vsel %vm493_vm1, %v9330_v4, %v7038_v12 }
 0x2e8   : > { %v9320_v57 = vpop.permute.xlu0 %7256  ;;  %v7292_v59 = vpop.permute.xlu1 %7291  ;;  %v3029_v39 = vpack.c.bf16 %v3010_v26, %v3009_v24  ;;  %v3015_v17 = vsel %vm2984_vm4, %v2982_v28, %v7043_v55  ;;  %v3660_v47 = vsel %vm493_vm1, %v9206_v13, %v7283_v25  ;;  %v10809_v25 = vpack.c.bf16 %v9067_v3, %v9064_v27 }
 0x2e9   : > { %v3016_v11 = vsel %vm2984_vm4, %v2983_v16, %v7044_v0  ;;  %v7294_v52 = vunpack.i.h.bf16 %v7292_v59  ;;  %v7293_v42 = vunpack.i.l.bf16 %v7292_v59  ;;  %v7078_v16 = vunpack.i.l.bf16 %v9076_v61 }
 0x2ea   : > { %6743 = vmatprep.mubr.msk.bf16.mxu1 %vm3045_vm5, %v3029_v39  ;;  %v3032_v40 = vpack.c.bf16 %v3016_v11, %v3015_v17  ;;  %v3661_v39 = vsel %vm493_vm1, %v9208_v9, %v7284_v1  ;;  %v7084_v17 = vunpack.i.h.bf16 %v9100_v31  ;;  %v7083_v11 = vunpack.i.l.bf16 %v9100_v31 }
 0x2eb   : > { %6744 = vmatmul.mubr.msk.bf16.gmra.mxu1 %vm3045_vm5, %v3030_v34  ;;  %v3692_v51 = vsel %vm2984_vm4, %v3660_v47, %v7293_v42  ;;  %v3693_v12 = vsel %vm2984_vm4, %v3661_v39, %v7294_v52  ;;  %v4338_v42 = vsel %vm493_vm1, %v9069_v19, %v7078_v16  ;;  %v7098_v19 = vunpack.i.l.bf16 %v9112_v56 }
 0x2ec   : > { %v9334_v8 = vpop.permute.xlu0 %7266  ;;  %v9336_v23 = vpop.permute.xlu1 %7301  ;;  %6747 = vmatprep.mubr.msk.bf16.mxu1 %vm3045_vm5, %v3031_v35  ;;  %v3715_v28 = vpack.c.bf16 %v3693_v12, %v3692_v51  ;;  %v7103_v47 = vunpack.i.l.bf16 %v9143_v50 }
 0x2ee   : > { %6768 = vmatmul.mubr.msk.bf16.gmra.mxu0 %vm3045_vm5, %v3713_v33  ;;  %v7079_v33 = vunpack.i.h.bf16 %v9076_v61 }
 0x2f0   : > { %v7277_v43 = vpop.permute.xlu0 %7276  ;;  %v9346_v14 = vpop.permute.xlu1 %7311  ;;  %v4339_v61 = vsel %vm493_vm1, %v9071_v62, %v7079_v33 }
 0x2f1   : > { %v7279_v53 = vunpack.i.h.bf16 %v7277_v43  ;;  %v7278_v24 = vunpack.i.l.bf16 %v7277_v43  ;;  %v4371_v27 = vsel %vm2984_vm4, %v4339_v61, %v7084_v17  ;;  %v7268_v17 = vunpack.i.l.bf16 %v9334_v8 }
 0x2f3   : > { %6748 = vmatmul.mubr.msk.bf16.gmra.mxu1 %vm3045_vm5, %v3032_v40  ;;  %v3659_v6 = vsel %vm493_vm1, %v9168_v2, %v7279_v53  ;;  %v3658_v22 = vsel %vm493_vm1, %v9166_v38, %v7278_v24  ;;  %v10810_v24 = vpack.c.bf16 %v9151_v44, %v9148_v60  ;;  %v7104_v44 = vunpack.i.h.bf16 %v9143_v50 }
 0x2f4   : > { %v7287_v26 = vpop.permute.xlu0 %7286  ;;  %v9349_v15 = vpop.permute.xlu1 %7326  ;;  %6791 = vmatprep.mubr.msk.bf16.mxu1 %vm3045_vm5, %v10808_v49  ;;  %v7099_v49 = vunpack.i.h.bf16 %v9112_v56  ;;  %v7259_v50 = vunpack.i.h.bf16 %v9320_v57 }
 0x2f5   : > { %v7289_v34 = vunpack.i.h.bf16 %v7287_v26  ;;  %v7288_v59 = vunpack.i.l.bf16 %v7287_v26  ;;  %v4370_v26 = vsel %vm2984_vm4, %v4338_v42, %v7083_v11 }
 0x2f6   : > { %v4399_v12 = vpack.c.bf16 %v4371_v27, %v4370_v26 }
 0x2f7   : > { %v3690_v45 = vsel %vm2984_vm4, %v3658_v22, %v7288_v59  ;;  %v3691_v54 = vsel %vm2984_vm4, %v3659_v6, %v7289_v34 }
 0x2f8   : > { %v3714_v0 = vpack.c.bf16 %v3691_v54, %v3690_v45  ;;  %v7297_v55 = vpop.permute.xlu0 %7296  ;;  %v9367_v35 = vpop.permute.xlu1 %7331  ;;  %v4343_v54 = vsel %vm493_vm1, %v9117_v41, %v7099_v49  ;;  %v7264_v49 = vunpack.i.h.bf16 %v9254_v30 }
 0x2f9   : > { %v7299_v43 = vunpack.i.h.bf16 %v7297_v55  ;;  %v7298_v1 = vunpack.i.l.bf16 %v7297_v55  ;;  %v7258_v55 = vunpack.i.l.bf16 %v9320_v57  ;;  %v4375_v16 = vsel %vm2984_vm4, %v4343_v54, %v7104_v44 }
 0x2fa   : > { %6771 = vmatprep.mubr.msk.bf16.mxu0 %vm3045_vm5, %v3714_v0  ;;  %v4342_v0 = vsel %vm493_vm1, %v9115_v46, %v7098_v19  ;;  %v7263_v19 = vunpack.i.l.bf16 %v9254_v30 }
 0x2fb   : > { %6772 = vmatmul.mubr.msk.bf16.gmra.mxu0 %vm3045_vm5, %v3715_v28  ;;  %6792 = vmatmul.mubr.msk.bf16.vlgmr.msra.gmra.mxu1 %vm3045_vm5, %v10809_v25  ;;  %v4349_v3 = vsel %vm493_vm1, %v9208_v9, %v7299_v43  ;;  %v4348_v62 = vsel %vm493_vm1, %v9206_v13, %v7298_v1  ;;  %v4374_v33 = vsel %vm2984_vm4, %v4342_v0, %v7103_v47  ;;  %v7269_v28 = vunpack.i.h.bf16 %v9334_v8 }
 0x2fc   : > { %v7307_v40 = vpop.permute.xlu0 %7306  ;;  %v7337_v52 = vpop.permute.xlu1 %7336  ;;  %6795 = vmatprep.mubr.msk.bf16.mxu1 %vm3045_vm5, %v10810_v24  ;;  %v10811_v25 = vpack.c.bf16 %v8975_v36, %v8972_v18  ;;  %v4401_v47 = vpack.c.bf16 %v4375_v16, %v4374_v33  ;;  %v4346_v30 = vsel %vm493_vm1, %v9166_v38, %v7263_v19  ;;  %v7334_v19 = vunpack.i.h.bf16 %v9367_v35 }
 0x2fd   : > { %v7309_v31 = vunpack.i.h.bf16 %v7307_v40  ;;  %v7308_v53 = vunpack.i.l.bf16 %v7307_v40  ;;  %v7339_v13 = vunpack.i.h.bf16 %v7337_v52  ;;  %v7338_v51 = vunpack.i.l.bf16 %v7337_v52  ;;  %v10812_v40 = vld [vmem:[#allocation33_spill] sm:$0xff] }
 0x2ff   : > { %v9396_v39 = vsel %vm2984_vm4, %v4348_v62, %v7308_v53  ;;  %v9399_v60 = vsel %vm2984_vm4, %v4349_v3, %v7309_v31  ;;  %v3665_v41 = vsel %vm493_vm1, %v9300_v32, %v7339_v13  ;;  %v3664_v46 = vsel %vm493_vm1, %v9298_v29, %v7338_v51 }
 0x300   : > { %v4404_v9 = vpack.c.bf16 %v9399_v60, %v9396_v39  ;;  %v7317_v34 = vpop.permute.xlu0 %7316  ;;  %v7342_v59 = vpop.permute.xlu1 %7341  ;;  %v4345_v31 = vsel %vm493_vm1, %v9133_v48, %v7259_v50  ;;  %v4344_v53 = vsel %vm493_vm1, %v9131_v21, %v7258_v55  ;;  %v7274_v48 = vunpack.i.h.bf16 %v9274_v7 }
 0x301   : > { %v7319_v6 = vunpack.i.h.bf16 %v7317_v34  ;;  %v7318_v56 = vunpack.i.l.bf16 %v7317_v34  ;;  %v7344_v22 = vunpack.i.h.bf16 %v7342_v59  ;;  %v7343_v45 = vunpack.i.l.bf16 %v7342_v59 }
 0x302   : > { %v4376_v24 = vsel %vm2984_vm4, %v4344_v53, %v7268_v17  ;;  %v4377_v26 = vsel %vm2984_vm4, %v4345_v31, %v7269_v28  ;;  %v7273_v21 = vunpack.i.l.bf16 %v9274_v7  ;;  %v4347_v51 = vsel %vm493_vm1, %v9168_v2, %v7264_v49 }
 0x303   : > { %6796 = vmatmul.mubr.msk.bf16.gmra.mxu1 %vm3045_vm5, %v4399_v12  ;;  %v3663_v8 = vsel %vm493_vm1, %v10812_v40, %v7319_v6  ;;  %v3662_v52 = vsel %vm493_vm1, %v9190_v10, %v7318_v56  ;;  %v3696_v61 = vsel %vm2984_vm4, %v3664_v46, %v7343_v45  ;;  %v3697_v42 = vsel %vm2984_vm4, %v3665_v41, %v7344_v22 }
 0x304   : > { %v7322_v11 = vpop.permute.xlu0 %7321  ;;  %v7362_v43 = vpop.permute.xlu1 %7361  ;;  %6799 = vmatprep.mubr.msk.bf16.mxu1 %vm3045_vm5, %v10811_v25  ;;  %v3717_v44 = vpack.c.bf16 %v3697_v42, %v3696_v61  ;;  %v4402_v34 = vpack.c.bf16 %v4377_v26, %v4376_v24  ;;  %v4378_v7 = vsel %vm2984_vm4, %v4346_v30, %v7273_v21  ;;  %v4379_v12 = vsel %vm2984_vm4, %v4347_v51, %v7274_v48 }
 0x305   : > { %v7324_v1 = vunpack.i.h.bf16 %v7322_v11  ;;  %v7323_v57 = vunpack.i.l.bf16 %v7322_v11  ;;  %v7304_v6 = vunpack.i.h.bf16 %v9336_v23  ;;  %v7303_v56 = vunpack.i.l.bf16 %v9336_v23 }
 0x306   : > { %v7314_v22 = vunpack.i.h.bf16 %v9346_v14  ;;  %v7313_v45 = vunpack.i.l.bf16 %v9346_v14  ;;  %v7364_v0 = vunpack.i.h.bf16 %v7362_v43  ;;  %v7363_v2 = vunpack.i.l.bf16 %v7362_v43 }
 0x307   : > { %v3694_v18 = vsel %vm2984_vm4, %v3662_v52, %v7323_v57  ;;  %v3695_v36 = vsel %vm2984_vm4, %v3663_v8, %v7324_v1  ;;  %v4403_v50 = vpack.c.bf16 %v4379_v12, %v4378_v7  ;;  %v4351_v17 = vsel %vm493_vm1, %v10812_v40, %v7304_v6 }
 0x308   : > { %v3716_v27 = vpack.c.bf16 %v3695_v36, %v3694_v18  ;;  %v7347_v3 = vpop.permute.xlu0 %7346  ;;  %v7372_v62 = vpop.permute.xlu1 %7371  ;;  %v4350_v23 = vsel %vm493_vm1, %v9190_v10, %v7303_v56  ;;  %v4383_v46 = vsel %vm2984_vm4, %v4351_v17, %v7314_v22  ;;  %v3669_v25 = vsel %vm493_vm1, %v9294_v5, %v7364_v0 }
 0x309   : > { %v7374_v55 = vunpack.i.h.bf16 %v7372_v62  ;;  %v7373_v38 = vunpack.i.l.bf16 %v7372_v62  ;;  %v7349_v11 = vunpack.i.h.bf16 %v7347_v3  ;;  %v7348_v41 = vunpack.i.l.bf16 %v7347_v3 }
 0x30a   : > { %6775 = vmatprep.mubr.msk.bf16.mxu0 %vm3045_vm5, %v3716_v27  ;;  %v4382_v14 = vsel %vm2984_vm4, %v4350_v23, %v7313_v45  ;;  %v3668_v40 = vsel %vm493_vm1, %v9290_v37, %v7363_v2  ;;  %v7329_v3 = vunpack.i.h.bf16 %v9349_v15  ;;  %v7328_v62 = vunpack.i.l.bf16 %v9349_v15 }
 0x30b   : > { %6776 = vmatmul.mubr.msk.bf16.gmra.mxu0 %vm3045_vm5, %v3717_v44  ;;  %6800 = vmatmul.mubr.msk.bf16.gmra.mxu1 %vm3045_vm5, %v4401_v47  ;;  %v3700_v10 = vsel %vm2984_vm4, %v3668_v40, %v7373_v38  ;;  %v3701_v61 = vsel %vm2984_vm4, %v3669_v25, %v7374_v55  ;;  %v4353_v53 = vsel %vm493_vm1, %v9300_v32, %v7349_v11  ;;  %v3320_v11 = vld [vmem:[#allocation2 + $0x180] sm:$0xff] }
 0x30c   : > { %v7352_v59 = vpop.permute.xlu0 %7351  ;;  %v9445_v13 = vpop.permute.xlu1 %7381  ;;  %6803 = vmatprep.mubr.msk.bf16.mxu1 %vm3045_vm5, %v4402_v34  ;;  %v4352_v18 = vsel %vm493_vm1, %v9298_v29, %v7348_v41  ;;  %v3719_v49 = vpack.c.bf16 %v3701_v61, %v3700_v10  ;;  %v4405_v32 = vpack.c.bf16 %v4383_v46, %v4382_v14  ;;  %v7333_v29 = vunpack.i.l.bf16 %v9367_v35  ;;  %v3321_v41 = vld [vmem:[#allocation2 + $0x188] sm:$0xff] }
 0x30d   : > { %v7354_v43 = vunpack.i.h.bf16 %v7352_v59  ;;  %v7353_v1 = vunpack.i.l.bf16 %v7352_v59  ;;  %v4355_v34 = vsel %vm493_vm1, %v9280_v58, %v7329_v3  ;;  %v4354_v15 = vsel %vm493_vm1, %v9267_v20, %v7328_v62 }
 0x30e   : > { %v4386_v35 = vsel %vm2984_vm4, %v4354_v15, %v7333_v29  ;;  %v4387_v30 = vsel %vm2984_vm4, %v4355_v34, %v7334_v19  ;;  %v7383_v56 = vunpack.i.l.bf16 %v9445_v13 }
 0x30f   : > { %v4385_v36 = vsel %vm2984_vm4, %v4353_v53, %v7354_v43 }
 0x310   : > { %v7357_v54 = vpop.permute.xlu0 %7356  ;;  %v9458_v28 = vpop.permute.xlu1 %7391  ;;  %v4358_v23 = vsel %vm493_vm1, %v9330_v4, %v7383_v56 }
 0x311   : > { %v7359_v33 = vunpack.i.h.bf16 %v7357_v54  ;;  %v7358_v16 = vunpack.i.l.bf16 %v7357_v54  ;;  %v4407_v54 = vpack.c.bf16 %v4387_v30, %v4386_v35 }
 0x313   : > { %6804 = vmatmul.mubr.msk.bf16.gmra.mxu1 %vm3045_vm5, %v4403_v50  ;;  %v3667_v42 = vsel %vm493_vm1, %v9280_v58, %v7359_v33  ;;  %v3666_v31 = vsel %vm493_vm1, %v9267_v20, %v7358_v16  ;;  %v7384_v58 = vunpack.i.h.bf16 %v9445_v13  ;;  %v7394_v16 = vunpack.i.h.bf16 %v9458_v28 }
 0x314   : > { %v7367_v57 = vpop.permute.xlu0 %7366  ;;  %6807 = vmatprep.mubr.msk.bf16.mxu1 %vm3045_vm5, %v4404_v9  ;;  %v4384_v9 = vsel %vm2984_vm4, %v4352_v18, %v7353_v1 }
 0x315   : > { %v7369_v8 = vunpack.i.h.bf16 %v7367_v57  ;;  %v7368_v52 = vunpack.i.l.bf16 %v7367_v57  ;;  %v7402_v26 = vpop.permute.xlu1 %7401  ;;  %v4406_v44 = vpack.c.bf16 %v4385_v36, %v4384_v9  ;;  %v4359_v13 = vsel %vm493_vm1, %v9332_v63, %v7384_v58  ;;  %v4010_v36 = vld [vmem:[#allocation2 + $0x198] sm:$0xff] }
 0x316   : > { %v7404_v0 = vunpack.i.h.bf16 %v7402_v26  ;;  %v7403_v2 = vunpack.i.l.bf16 %v7402_v26  ;;  %v4391_v10 = vsel %vm2984_vm4, %v4359_v13, %v7394_v16 }
 0x317   : > { %v3698_v39 = vsel %vm2984_vm4, %v3666_v31, %v7368_v52  ;;  %v3699_v60 = vsel %vm2984_vm4, %v3667_v42, %v7369_v8 }
 0x318   : > { %v3718_v24 = vpack.c.bf16 %v3699_v60, %v3698_v39  ;;  %v7377_v27 = vpop.permute.xlu0 %7376  ;;  %v3673_v46 = vsel %vm493_vm1, %v3321_v41, %v7404_v0  ;;  %v3672_v43 = vsel %vm493_vm1, %v3320_v11, %v7403_v2 }
 0x319   : > { %v7379_v48 = vunpack.i.h.bf16 %v7377_v27  ;;  %v7378_v21 = vunpack.i.l.bf16 %v7377_v27  ;;  %v7412_v7 = vpop.permute.xlu1 %7411 }
 0x31a   : > { %6779 = vmatprep.mubr.msk.bf16.mxu0 %vm3045_vm5, %v3718_v24  ;;  %v7414_v50 = vunpack.i.h.bf16 %v7412_v7  ;;  %v7413_v55 = vunpack.i.l.bf16 %v7412_v7  ;;  %v4011_v24 = vld [vmem:[#allocation2 + $0x1a0] sm:$0xff] }
 0x31b   : > { %6780 = vmatmul.mubr.msk.bf16.gmra.mxu0 %vm3045_vm5, %v3719_v49  ;;  %6808 = vmatmul.mubr.msk.bf16.gmra.mxu1 %vm3045_vm5, %v4405_v32  ;;  %v4357_v12 = vsel %vm493_vm1, %v9294_v5, %v7379_v48  ;;  %v4356_v6 = vsel %vm493_vm1, %v9290_v37, %v7378_v21  ;;  %v7393_v37 = vunpack.i.l.bf16 %v9458_v28 }
 0x31c   : > { %v7387_v47 = vpop.permute.xlu0 %7386  ;;  %6811 = vmatprep.mubr.msk.bf16.mxu1 %vm3045_vm5, %v4406_v44  ;;  %v3704_v28 = vsel %vm2984_vm4, %v3672_v43, %v7413_v55  ;;  %v3705_v25 = vsel %vm2984_vm4, %v3673_v46, %v7414_v50 }
 0x31d   : > { %v7389_v59 = vunpack.i.h.bf16 %v7387_v47  ;;  %v7388_v51 = vunpack.i.l.bf16 %v7387_v47  ;;  %v7422_v5 = vpop.permute.xlu1 %7421  ;;  %v4390_v52 = vsel %vm2984_vm4, %v4358_v23, %v7393_v37  ;;  %v3721_v9 = vpack.c.bf16 %v3705_v25, %v3704_v28 }
 0x31e   : > { %v7424_v53 = vunpack.i.h.bf16 %v7422_v5  ;;  %v7423_v18 = vunpack.i.l.bf16 %v7422_v5 }
 0x31f   : > { %v4388_v20 = vsel %vm2984_vm4, %v4356_v6, %v7388_v51  ;;  %v4389_v22 = vsel %vm2984_vm4, %v4357_v12, %v7389_v59 }
 0x320   : > { %v7397_v45 = vpop.permute.xlu0 %7396  ;;  %v4408_v17 = vpack.c.bf16 %v4389_v22, %v4388_v20  ;;  %v4363_v62 = vsel %vm493_vm1, %v4011_v24, %v7424_v53  ;;  %v4362_v49 = vsel %vm493_vm1, %v4010_v36, %v7423_v18 }
 0x321   : > { %v7399_v38 = vunpack.i.h.bf16 %v7397_v45  ;;  %v7398_v33 = vunpack.i.l.bf16 %v7397_v45  ;;  %v7432_v60 = vpop.permute.xlu1 %7431 }
 0x322   : > { %v7433_v3 = vunpack.i.l.bf16 %v7432_v60 }
 0x323   : > { %6812 = vmatmul.mubr.msk.bf16.gmra.mxu1 %vm3045_vm5, %v4407_v54  ;;  %v3671_v40 = vsel %vm493_vm1, %v9332_v63, %v7399_v38  ;;  %v3670_v8 = vsel %vm493_vm1, %v9330_v4, %v7398_v33  ;;  %v4409_v63 = vpack.c.bf16 %v4391_v10, %v4390_v52  ;;  %v7434_v4 = vunpack.i.h.bf16 %v7432_v60 }
 0x324   : > { %v7407_v14 = vpop.permute.xlu0 %7406  ;;  %6815 = vmatprep.mubr.msk.bf16.mxu1 %vm3045_vm5, %v4408_v17  ;;  %v4394_v21 = vsel %vm2984_vm4, %v4362_v49, %v7433_v3 }
 0x325   : > { %v7409_v1 = vunpack.i.h.bf16 %v7407_v14  ;;  %v7408_v57 = vunpack.i.l.bf16 %v7407_v14  ;;  %v4395_v47 = vsel %vm2984_vm4, %v4363_v62, %v7434_v4 }
 0x326   : > { %v4411_v51 = vpack.c.bf16 %v4395_v47, %v4394_v21 }
 0x327   : > { %v3702_v61 = vsel %vm2984_vm4, %v3670_v8, %v7408_v57  ;;  %v3703_v42 = vsel %vm2984_vm4, %v3671_v40, %v7409_v1 }
 0x328   : > { %v3720_v31 = vpack.c.bf16 %v3703_v42, %v3702_v61  ;;  %v7417_v39 = vpop.permute.xlu0 %7416 }
 0x329   : > { %v7419_v26 = vunpack.i.h.bf16 %v7417_v39  ;;  %v7418_v27 = vunpack.i.l.bf16 %v7417_v39 }
 0x32a   : > { %6783 = vmatprep.mubr.msk.bf16.mxu0 %vm3045_vm5, %v3720_v31 }
 0x32b   : > { %6784 = vmatmul.mubr.msk.bf16.gmra.mxu0 %vm3045_vm5, %v3721_v9  ;;  %6816 = vmatmul.mubr.msk.bf16.gmra.mxu1 %vm3045_vm5, %v4409_v63  ;;  %v4360_v44 = vsel %vm493_vm1, %v3320_v11, %v7418_v27  ;;  %v4361_v48 = vsel %vm493_vm1, %v3321_v41, %v7419_v26  ;;  %v9613_v26 = vld [vmem:[%s10665_s5] ss:$0 sm:$0xff] }
 0x32c   : > { %v7427_v32 = vpop.permute.xlu0 %7426 }
 0x32d   : > { %v7429_v19 = vunpack.i.h.bf16 %v7427_v32  ;;  %v7428_v29 = vunpack.i.l.bf16 %v7427_v32 }
 0x32f   : > { %v4392_v34 = vsel %vm2984_vm4, %v4360_v44, %v7428_v29  ;;  %v4393_v15 = vsel %vm2984_vm4, %v4361_v48, %v7429_v19 }
 0x330   : > { %v4410_v59 = vpack.c.bf16 %v4393_v15, %v4392_v34 }
 0x332   : > { %6819 = vmatprep.mubr.msk.bf16.mxu1 %vm3045_vm5, %v4410_v59 }
 0x333   : > { %6820 = vmatmul.mubr.msk.bf16.gmra.mxu1 %vm3045_vm5, %v4411_v51  ;;  %v6721_v35 = vpop.f32.mrf.mxu1 }
 0x334   : > { %v3260_v62 = vadd.f32 %v6721_v35, %v9613_v26 }
 0x335   : > { %v3131_v30 = vpop.f32.mrf.mxu1 }
 0x336   : > { %v3258_v4 = vadd.f32 %v9613_v26, %v3131_v30 }
 0x337   : > { %v6722_v7 = vpop.f32.mrf.mxu1 }
 0x338   : > { %v3261_v44 = vadd.f32 %v6722_v7, %v9613_v26 }
 0x339   : > { %v3134_v12 = vpop.f32.mrf.mxu1 }
 0x33a   : > { %v3259_v49 = vadd.f32 %v9613_v26, %v3134_v12 }
 0x35d   : > { %v9544_v6 = vpop.f32.mrf.mxu1 }
 0x35f   : > { %v3147_v58 = vpop.f32.mrf.mxu1 }
 0x360   : > { %v3262_v59 = vadd.f32 %v9613_v26, %v3147_v58  ;;  %v3264_v58 = vadd.f32 %v9544_v6, %v9613_v26 }
 0x361   : > { %v9546_v56 = vpop.f32.mrf.mxu1 }
 0x363   : > { %v9548_v20 = vpop.f32.mrf.mxu1 }
 0x375   : > { %v9550_v22 = vpop.f32.mrf.mxu1 }
 0x377   : > { %v9552_v45 = vpop.f32.mrf.mxu1 }
 0x379   : > { %v9554_v54 = vpop.f32.mrf.mxu1 }
 0x37b   : > { %v9556_v0 = vpop.f32.mrf.mxu1 }
 0x37d   : > { %v9558_v2 = vpop.f32.mrf.mxu1 }
 0x37f   : > { %v9560_v50 = vpop.f32.mrf.mxu1 }
 0x381   : > { %v9562_v55 = vpop.f32.mrf.mxu1 }
 0x383   : > { %v9564_v38 = vpop.f32.mrf.mxu1 }
 0x385   : > { %v9566_v33 = vpop.f32.mrf.mxu1 }
 0x387   : > { %v9568_v16 = vpop.f32.mrf.mxu1 }
 0x389   : > { %v9570_v17 = vpop.f32.mrf.mxu1 }
 0x38b   : > { %v9572_v23 = vpop.f32.mrf.mxu1 }
 0x38e   : > { %v6757_v5 = vpop.f32.mrf.mxu0 }
 0x38f   : > { %v9574_v41 = vpop.f32.mrf.mxu1  ;;  %v3949_v48 = vadd.f32 %v6757_v5, %v3260_v62 }
 0x390   : > { %v3820_v37 = vpop.f32.mrf.mxu0 }
 0x391   : > { %v9576_v43 = vpop.f32.mrf.mxu1  ;;  %v3947_v32 = vadd.f32 %v3820_v37, %v3258_v4 }
 0x392   : > { %v6758_v13 = vpop.f32.mrf.mxu0 }
 0x393   : > { %v9578_v28 = vpop.f32.mrf.mxu1  ;;  %v3950_v51 = vadd.f32 %v6758_v13, %v3261_v44  ;;  %v3263_v13 = vadd.f32 %v9613_v26, %v9548_v20  ;;  %v3266_v20 = vadd.f32 %v9613_v26, %v9552_v45 }
 0x394   : > { %v3823_v11 = vpop.f32.mrf.mxu0 }
 0x395   : > { %v9582_v8 = vpop.f32.mrf.mxu1  ;;  %v3948_v21 = vadd.f32 %v3823_v11, %v3259_v49 }
 0x39e   : > { %v6761_v14 = vpop.f32.mrf.mxu0 }
 0x39f   : > { %v3953_v44 = vadd.f32 %v6761_v14, %v3264_v58 }
 0x3a0   : > { %v3836_v46 = vpop.f32.mrf.mxu0 }
 0x3a1   : > { %v3951_v37 = vadd.f32 %v3836_v46, %v3262_v59 }
 0x3a2   : > { %v6762_v1 = vpop.f32.mrf.mxu0 }
 0x3a4   : > { %v3839_v57 = vpop.f32.mrf.mxu0 }
 0x3a6   : > { %v9580_v25 = vpop.f32.mrf.mxu0 }
 0x3a8   : > { %v3852_v40 = vpop.f32.mrf.mxu0 }
 0x3aa   : > { %v9584_v52 = vpop.f32.mrf.mxu0 }
 0x3ab   : > { %v9586_v10 = vpop.f32.mrf.mxu1 }
 0x3ac   : > { %v9590_v42 = vpop.f32.mrf.mxu0 }
 0x3ad   : > { %v9588_v61 = vpop.f32.mrf.mxu1 }
 0x3ae   : > { %v9596_v18 = vpop.f32.mrf.mxu0 }
 0x3af   : > { %v9592_v31 = vpop.f32.mrf.mxu1 }
 0x3b0   : > { %v9602_v9 = vpop.f32.mrf.mxu0 }
 0x3b1   : > { %v9594_v53 = vpop.f32.mrf.mxu1 }
 0x3b2   : > { %v9608_v63 = vpop.f32.mrf.mxu0 }
 0x3b3   : > { %v9598_v39 = vpop.f32.mrf.mxu1 }
 0x3b4   : > { %v9618_v19 = vpop.f32.mrf.mxu0 }
 0x3b5   : > { %v9600_v60 = vpop.f32.mrf.mxu1 }
 0x3b7   : > { %v9604_v36 = vpop.f32.mrf.mxu1 }
 0x3b9   : > { %v9606_v24 = vpop.f32.mrf.mxu1 }
 0x3bb   : > { %v6793_v27 = vpop.f32.mrf.mxu1  ;;  %v9621_v47 = vpop.f32.mrf.mxu0 }
 0x3bc   : > { %v9626_v30 = vadd.f32 %v6793_v27, %v3949_v48  ;;  %v3952_v48 = vadd.f32 %v3839_v57, %v3263_v13  ;;  %v3955_v57 = vadd.f32 %v3852_v40, %v3266_v20 }
 0x3bd   : > { %v4510_v3 = vpop.f32.mrf.mxu1  ;;  %v9630_v4 = vpop.f32.mrf.mxu0 }
 0x3be   : > { %v9623_v34 = vadd.f32 %v4510_v3, %v3947_v32  ;;  %v4672_v46 = vsel %vm2366_vm7, %v9626_v30, 0.0 }
 0x3bf   : > { %v6794_v29 = vpop.f32.mrf.mxu1 }
 0x3c0   : > { %v4669_v7 = vsel %vm2366_vm7, %v9623_v34, 0.0  ;;  %v9634_v5 = vadd.f32 %v6794_v29, %v3950_v51  ;;  %v3265_v29 = vadd.f32 %v9546_v56, %v9613_v26 }
 0x3c1   : > { %v4513_v15 = vpop.f32.mrf.mxu1 }
 0x3c2   : > { %v9628_v35 = vadd.f32 %v4513_v15, %v3948_v21  ;;  %v9648_v21 = vpop.f32.mrf.mxu0  ;;  %v4674_v6 = vsel %vm2366_vm7, %v9634_v5, 0.0  ;;  %v3954_v51 = vadd.f32 %v6762_v1, %v3265_v29  ;;  %v3268_v1 = vadd.f32 %v9550_v22, %v9613_v26 }
 0x3c3   : > { %v6797_v12 = vpop.f32.mrf.mxu1 }
 0x3c4   : > { %v4670_v11 = vsel %vm2366_vm7, %v9628_v35, 0.0 }
 0x3c5   : > { %v4671_v3 = vadd.f32 %v4670_v11, %v4669_v7  ;;  %v4526_v62 = vpop.f32.mrf.mxu1 }
 0x3c6   : > { %v9644_v27 = vadd.f32 %v4526_v62, %v3951_v37  ;;  %v9654_v37 = vadd.f32 %v6797_v12, %v3953_v44  ;;  %v3267_v12 = vadd.f32 %v9613_v26, %v9556_v0  ;;  %v3269_v44 = vadd.f32 %v9554_v54, %v9613_v26 }
 0x3c7   : > { %v4673_v49 = vadd.f32 %v4672_v46, %v4671_v3  ;;  %v6798_v32 = vpop.f32.mrf.mxu1  ;;  %v9660_v3 = vpop.f32.mrf.mxu0  ;;  %v3270_v0 = vadd.f32 %v9613_v26, %v9560_v50 }
 0x3c8   : > { %v4676_v7 = vsel %vm2366_vm7, %v9644_v27, 0.0  ;;  %v9662_v62 = vadd.f32 %v6798_v32, %v3954_v51  ;;  %v4680_v46 = vsel %vm2366_vm7, %v9654_v37, 0.0 }
 0x3c9   : > { %v4675_v15 = vadd.f32 %v4674_v6, %v4673_v49  ;;  %v4529_v59 = vpop.f32.mrf.mxu1  ;;  %v3956_v6 = vadd.f32 %v9590_v42, %v3267_v12 }
 0x3ca   : > { %v9658_v11 = vadd.f32 %v4529_v59, %v3952_v48  ;;  %v3957_v48 = vadd.f32 %v9580_v25, %v3268_v1  ;;  %v4682_v22 = vsel %vm2366_vm7, %v9662_v62, 0.0  ;;  %v3958_v59 = vadd.f32 %v9584_v52, %v3269_v44 }
 0x3cb   : > { %v4677_v56 = vadd.f32 %v4676_v7, %v4675_v15  ;;  %v6801_v14 = vpop.f32.mrf.mxu1  ;;  %v9672_v49 = vpop.f32.mrf.mxu0  ;;  %v3272_v52 = vadd.f32 %v9558_v2, %v9613_v26 }
 0x3cc   : > { %v4678_v45 = vsel %vm2366_vm7, %v9658_v11, 0.0  ;;  %v9685_v51 = vadd.f32 %v6801_v14, %v3957_v48  ;;  %v3271_v14 = vadd.f32 %v9613_v26, %v9564_v38  ;;  %v3274_v38 = vadd.f32 %v9613_v26, %v9568_v16 }
 0x3cd   : > { %v4679_v58 = vadd.f32 %v4678_v45, %v4677_v56  ;;  %v4542_v13 = vpop.f32.mrf.mxu1  ;;  %v3900_v7 = vpop.f32.mrf.mxu0  ;;  %v3961_v44 = vadd.f32 %v9596_v18, %v3272_v52 }
 0x3ce   : > { %v9674_v40 = vadd.f32 %v4542_v13, %v3955_v57  ;;  %v3959_v57 = vadd.f32 %v9602_v9, %v3270_v0  ;;  %v4688_v1 = vsel %vm2366_vm7, %v9685_v51, 0.0  ;;  %v3960_v48 = vadd.f32 %v9618_v19, %v3271_v14 }
 0x3cf   : > { %v4681_v32 = vadd.f32 %v4680_v46, %v4679_v58  ;;  %v6802_v29 = vpop.f32.mrf.mxu1  ;;  %v9702_v12 = vpop.f32.mrf.mxu0 }
 0x3d0   : > { %v4684_v54 = vsel %vm2366_vm7, %v9674_v40, 0.0  ;;  %v9692_v45 = vadd.f32 %v6802_v29, %v3958_v59  ;;  %v3273_v29 = vadd.f32 %v9562_v55, %v9613_v26 }
 0x3d1   : > { %v4683_v20 = vadd.f32 %v4682_v22, %v4681_v32  ;;  %v4545_v15 = vpop.f32.mrf.mxu1 }
 0x3d2   : > { %v9689_v56 = vadd.f32 %v4545_v15, %v3956_v6  ;;  %v4690_v2 = vsel %vm2366_vm7, %v9692_v45, 0.0  ;;  %v3962_v0 = vadd.f32 %v9608_v63, %v3273_v29 }
 0x3d3   : > { %v4685_v25 = vadd.f32 %v4684_v54, %v4683_v20  ;;  %v6805_v42 = vpop.f32.mrf.mxu1  ;;  %v3903_v20 = vpop.f32.mrf.mxu0  ;;  %v3963_v54 = vadd.f32 %v9630_v4, %v3274_v38 }
 0x3d4   : > { %v4686_v50 = vsel %vm2366_vm7, %v9689_v56, 0.0  ;;  %v9715_v15 = vadd.f32 %v6805_v42, %v3961_v44  ;;  %v3276_v42 = vadd.f32 %v9566_v33, %v9613_v26 }
 0x3d5   : > { %v4687_v58 = vadd.f32 %v4686_v50, %v4685_v25  ;;  %v4558_v13 = vpop.f32.mrf.mxu1 }
 0x3d6   : > { %v9704_v46 = vadd.f32 %v4558_v13, %v3959_v57  ;;  %v4696_v13 = vsel %vm2366_vm7, %v9715_v15, 0.0 }
 0x3d7   : > { %v4689_v9 = vadd.f32 %v4688_v1, %v4687_v58  ;;  %v6806_v32 = vpop.f32.mrf.mxu1  ;;  %v3275_v58 = vadd.f32 %v9613_v26, %v9572_v23  ;;  %v3277_v1 = vadd.f32 %v9570_v17, %v9613_v26  ;;  %v3278_v23 = vadd.f32 %v9613_v26, %v9576_v43 }
 0x3d8   : > { %v4692_v55 = vsel %vm2366_vm7, %v9704_v46, 0.0  ;;  %v9722_v25 = vadd.f32 %v6806_v32, %v3962_v0 }
 0x3d9   : > { %v4691_v6 = vadd.f32 %v4690_v2, %v4689_v9  ;;  %v4561_v22 = vpop.f32.mrf.mxu1  ;;  %v3965_v9 = vadd.f32 %v9621_v47, %v3276_v42  ;;  %v3964_v32 = vadd.f32 %v9660_v3, %v3275_v58  ;;  %v3966_v2 = vadd.f32 %v9648_v21, %v3277_v1 }
 0x3da   : > { %v9719_v59 = vadd.f32 %v4561_v22, %v3960_v48  ;;  %v4698_v33 = vsel %vm2366_vm7, %v9722_v25, 0.0  ;;  %v3967_v22 = vadd.f32 %v3900_v7, %v3278_v23  ;;  %v3280_v21 = vadd.f32 %v9574_v41, %v9613_v26 }
 0x3db   : > { %v4693_v18 = vadd.f32 %v4692_v55, %v4691_v6  ;;  %v6809_v19 = vpop.f32.mrf.mxu1  ;;  %v9726_v57 = vpop.f32.mrf.mxu0  ;;  %v3281_v42 = vadd.f32 %v9578_v28, %v9613_v26 }
 0x3dc   : > { %v4694_v16 = vsel %vm2366_vm7, %v9719_v59, 0.0  ;;  %v9745_v38 = vadd.f32 %v6809_v19, %v3965_v9  ;;  %v3279_v19 = vadd.f32 %v9613_v26, %v9582_v8  ;;  %v3969_v58 = vadd.f32 %v9672_v49, %v3280_v21 }
 0x3dd   : > { %v4695_v63 = vadd.f32 %v4694_v16, %v4693_v18  ;;  %v4574_v50 = vpop.f32.mrf.mxu1  ;;  %v3916_v29 = vpop.f32.mrf.mxu0  ;;  %v3282_v8 = vadd.f32 %v9613_v26, %v9588_v61  ;;  %v3970_v9 = vadd.f32 %v9702_v12, %v3281_v42  ;;  %v3284_v12 = vadd.f32 %v9586_v10, %v9613_v26 }
 0x3de   : > { %v9734_v52 = vadd.f32 %v4574_v50, %v3963_v54  ;;  %v4704_v16 = vsel %vm2366_vm7, %v9745_v38, 0.0  ;;  %v3286_v10 = vadd.f32 %v9613_v26, %v9600_v60  ;;  %v3288_v60 = vadd.f32 %v9598_v39, %v9613_v26 }
 0x3df   : > { %v4697_v4 = vadd.f32 %v4696_v13, %v4695_v63  ;;  %v6810_v14 = vpop.f32.mrf.mxu1  ;;  %v6782_v0 = vpop.f32.mrf.mxu0  ;;  %v3968_v13 = vadd.f32 %v3903_v20, %v3279_v19  ;;  %v3973_v21 = vadd.f32 %v9726_v57, %v3284_v12 }
 0x3e0   : > { %v4700_v17 = vsel %vm2366_vm7, %v9734_v52, 0.0  ;;  %v9751_v55 = vadd.f32 %v6810_v14, %v3966_v2 }
 0x3e1   : > { %v4699_v44 = vadd.f32 %v4698_v33, %v4697_v4  ;;  %v4577_v48 = vpop.f32.mrf.mxu1  ;;  %v3919_v41 = vpop.f32.mrf.mxu0 }
 0x3e2   : > { %v9749_v6 = vadd.f32 %v4577_v48, %v3964_v32  ;;  %v4706_v4 = vsel %vm2366_vm7, %v9751_v55, 0.0 }
 0x3e3   : > { %v4701_v47 = vadd.f32 %v4700_v17, %v4699_v44  ;;  %v6813_v3 = vpop.f32.mrf.mxu1  ;;  %v3971_v44 = vadd.f32 %v3916_v29, %v3282_v8 }
 0x3e4   : > { %v4702_v43 = vsel %vm2366_vm7, %v9749_v6, 0.0  ;;  %v9771_v32 = vadd.f32 %v6813_v3, %v3969_v58  ;;  %v3283_v3 = vadd.f32 %v9613_v26, %v9594_v53 }
 0x3e5   : > { %v4703_v18 = vadd.f32 %v4702_v43, %v4701_v47  ;;  %v4590_v54 = vpop.f32.mrf.mxu1 }
 0x3e6   : > { %v9761_v63 = vadd.f32 %v4590_v54, %v3967_v22  ;;  %v4712_v22 = vsel %vm2366_vm7, %v9771_v32, 0.0  ;;  %v3285_v54 = vadd.f32 %v9592_v31, %v9613_v26  ;;  %v3972_v19 = vadd.f32 %v3919_v41, %v3283_v3 }
 0x3e7   : > { %v4705_v7 = vadd.f32 %v4704_v16, %v4703_v18  ;;  %v6814_v50 = vpop.f32.mrf.mxu1 }
 0x3e8   : > { %v4708_v33 = vsel %vm2366_vm7, %v9761_v63, 0.0  ;;  %v9777_v48 = vadd.f32 %v6814_v50, %v3970_v9  ;;  %v3974_v42 = vadd.f32 %v6782_v0, %v3285_v54  ;;  %v3287_v0 = vadd.f32 %v9613_v26, %v9606_v24 }
 0x3e9   : > { %v4707_v14 = vadd.f32 %v4706_v4, %v4705_v7  ;;  %v4593_v1 = vpop.f32.mrf.mxu1 }
 0x3ea   : > { %v9775_v28 = vadd.f32 %v4593_v1, %v3968_v13  ;;  %v4714_v16 = vsel %vm2366_vm7, %v9777_v48, 0.0 }
 0x3eb   : > { %v6785_v49 = vpop.f32.mrf.mxu0  ;;  %v4709_v20 = vadd.f32 %v4708_v33, %v4707_v14  ;;  %v6817_v23 = vpop.f32.mrf.mxu1 }
 0x3ec   : > { %v4710_v61 = vsel %vm2366_vm7, %v9775_v28, 0.0  ;;  %v4663_v58 = vadd.f32 %v6817_v23, %v3973_v21 }
 0x3ed   : > { %v4711_v2 = vadd.f32 %v4710_v61, %v4709_v20  ;;  %v3932_v17 = vpop.f32.mrf.mxu0  ;;  %v4606_v47 = vpop.f32.mrf.mxu1 }
 0x3ee   : > { %v9787_v43 = vadd.f32 %v4606_v47, %v3971_v44  ;;  %v3975_v14 = vadd.f32 %v3932_v17, %v3286_v10  ;;  %v4720_v20 = vsel %vm2366_vm7, %v4663_v58, 0.0  ;;  %v3977_v17 = vadd.f32 %v6785_v49, %v3288_v60 }
 0x3ef   : > { %v4713_v29 = vadd.f32 %v4712_v22, %v4711_v2  ;;  %v6818_v18 = vpop.f32.mrf.mxu1  ;;  %v6786_v7 = vpop.f32.mrf.mxu0  ;;  %v3289_v2 = vadd.f32 %v9604_v36, %v9613_v26 }
 0x3f0   : > { %v4716_v13 = vsel %vm2366_vm7, %v9787_v43, 0.0  ;;  %v4664_v57 = vadd.f32 %v6818_v18, %v3974_v42 }
 0x3f1   : > { %v4715_v53 = vadd.f32 %v4714_v16, %v4713_v29  ;;  %v4609_v50 = vpop.f32.mrf.mxu1  ;;  %v3935_v1 = vpop.f32.mrf.mxu0  ;;  %v3978_v29 = vadd.f32 %v6786_v7, %v3289_v2 }
 0x3f2   : > { %v4662_v4 = vadd.f32 %v4609_v50, %v3972_v19  ;;  %v4722_v47 = vsel %vm2366_vm7, %v4664_v57, 0.0  ;;  %v3976_v12 = vadd.f32 %v3935_v1, %v3287_v0 }
 0x3f3   : > { %v4717_v8 = vadd.f32 %v4716_v13, %v4715_v53  ;;  %v6821_v31 = vpop.f32.mrf.mxu1 }
 0x3f4   : > { %v4718_v41 = vsel %vm2366_vm7, %v4662_v4, 0.0  ;;  %v4667_v18 = vadd.f32 %v6821_v31, %v3977_v17  ;;  %v5114_v31 = vld [vmem:[%s10668_s8] sm:$0xf] }
 0x3f5   : > { %v4719_v9 = vadd.f32 %v4718_v41, %v4717_v8  ;;  %v4622_v33 = vpop.f32.mrf.mxu1  ;;  %6823 = vmatprep.subr.msk.mxu0 %vm506_vm0, %v5114_v31 }
 0x3f6   : > { %v4665_v23 = vadd.f32 %v4622_v33, %v3975_v14  ;;  %v4728_v10 = vsel %vm2366_vm7, %v4667_v18, 0.0  ;;  %6824 = vmatpush3.msk.msra.mxu0 %vm506_vm0, %v5114_v31 }
 0x3f7   : > { %v4721_v44 = vadd.f32 %v4720_v20, %v4719_v9  ;;  %v6822_v61 = vpop.f32.mrf.mxu1 }
 0x3f8   : > { %v4724_v39 = vsel %vm2366_vm7, %v4665_v23, 0.0  ;;  %v4668_v21 = vadd.f32 %v6822_v61, %v3978_v29 }
 0x3f9   : > { %v4723_v3 = vadd.f32 %v4722_v47, %v4721_v44  ;;  %v4625_v22 = vpop.f32.mrf.mxu1 }
 0x3fa   : > { %v4666_v54 = vadd.f32 %v4625_v22, %v3976_v12  ;;  %v4730_v36 = vsel %vm2366_vm7, %v4668_v21, 0.0 }
 0x3fb   : > { %v4725_v24 = vadd.f32 %v4724_v39, %v4723_v3 }
 0x3fc   : > { %v4726_v19 = vsel %vm2366_vm7, %v4666_v54, 0.0 }
 0x3fd   : > { %v4727_v16 = vadd.f32 %v4726_v19, %v4725_v24 }
 0x3ff   : > { %v4729_v53 = vadd.f32 %v4728_v10, %v4727_v16 }
 0x401   : > { %v4731_v26 = vadd.f32 %v4730_v36, %v4729_v53 }
 0x403   : > { %v4732_v49 = vrot.slane %v4731_v26, 4 }
 0x405   : > { %v4733_v50 = vadd.f32 %v4732_v49, %v4731_v26 }
 0x407   : > { %v4734_v42 = vrot.slane %v4733_v50, 2 }
 0x409   : > { %v4735_v13 = vadd.f32 %v4734_v42, %v4733_v50 }
 0x40b   : > { %v4736_v7 = vrot.slane %v4735_v13, 1 }
 0x40d   : > { %v4737_v8 = vadd.f32 %v4736_v7, %v4735_v13 }
 0x40f   : > { %v4739_v14 = vmul.f32 0.00390625, %v4737_v8 }
 0x411   : > { %v9817_v41 = vsub.f32 %v9689_v56, %v4739_v14  ;;  %v9820_v1 = vsub.f32 %v9704_v46, %v4739_v14  ;;  %v9823_v9 = vsub.f32 %v9719_v59, %v4739_v14  ;;  %v9826_v33 = vsub.f32 %v9715_v15, %v4739_v14 }
 0x412   : > { %v9829_v60 = vsub.f32 %v9722_v25, %v4739_v14  ;;  %v9832_v0 = vsub.f32 %v9734_v52, %v4739_v14  ;;  %v9835_v20 = vsub.f32 %v9749_v6, %v4739_v14  ;;  %v9838_v56 = vsub.f32 %v9745_v38, %v4739_v14 }
 0x413   : > { %v9841_v46 = vsub.f32 %v9751_v55, %v4739_v14  ;;  %v9844_v59 = vsub.f32 %v9761_v63, %v4739_v14  ;;  %v9847_v15 = vsub.f32 %v9775_v28, %v4739_v14  ;;  %v9850_v25 = vsub.f32 %v9771_v32, %v4739_v14 }
 0x414   : > { %v9853_v52 = vsub.f32 %v9777_v48, %v4739_v14  ;;  %v9856_v6 = vsub.f32 %v9787_v43, %v4739_v14  ;;  %v9858_v38 = vsub.f32 %v4662_v4, %v4739_v14  ;;  %v9860_v44 = vsub.f32 %v4663_v58, %v4739_v14 }
 0x415   : > { %v9862_v55 = vsub.f32 %v4664_v57, %v4739_v14  ;;  %v9864_v63 = vsub.f32 %v4665_v23, %v4739_v14  ;;  %v9866_v61 = vsub.f32 %v4666_v54, %v4739_v14  ;;  %v9868_v28 = vsub.f32 %v4667_v18, %v4739_v14 }
 0x416   : > { %v9870_v32 = vsub.f32 %v4668_v21, %v4739_v14  ;;  %v9873_v48 = vsub.f32 %v9623_v34, %v4739_v14  ;;  %v9876_v43 = vsub.f32 %v9628_v35, %v4739_v14  ;;  %v9879_v4 = vsub.f32 %v9626_v30, %v4739_v14 }
 0x417   : > { %v9882_v58 = vsub.f32 %v9634_v5, %v4739_v14  ;;  %v9889_v2 = vsub.f32 %v9644_v27, %v4739_v14  ;;  %v9894_v35 = vsub.f32 %v9658_v11, %v4739_v14  ;;  %v9901_v12 = vsub.f32 %v9654_v37, %v4739_v14 }
 0x418   : > { %v4772_v57 = vmul.f32 %v9873_v48, %v9873_v48  ;;  %v4773_v23 = vmul.f32 %v9876_v43, %v9876_v43  ;;  %v4774_v34 = vmul.f32 %v9879_v4, %v9879_v4  ;;  %v9907_v11 = vsub.f32 %v9662_v62, %v4739_v14 }
 0x419   : > { %v4775_v30 = vmul.f32 %v9882_v58, %v9882_v58  ;;  %v4776_v27 = vmul.f32 %v9889_v2, %v9889_v2  ;;  %v4777_v29 = vmul.f32 %v9894_v35, %v9894_v35  ;;  %v9913_v54 = vsub.f32 %v9674_v40, %v4739_v14 }
 0x41a   : > { %v4804_v5 = vsel %vm2366_vm7, %v4772_v57, 0.0  ;;  %v4805_v17 = vsel %vm2366_vm7, %v4773_v23, 0.0  ;;  %v4807_v3 = vsel %vm2366_vm7, %v4774_v34, 0.0  ;;  %v4778_v37 = vmul.f32 %v9901_v12, %v9901_v12 }
 0x41b   : > { %v4806_v47 = vadd.f32 %v4805_v17, %v4804_v5  ;;  %v4809_v18 = vsel %vm2366_vm7, %v4775_v30, 0.0  ;;  %v4811_v24 = vsel %vm2366_vm7, %v4776_v27, 0.0  ;;  %v4779_v19 = vmul.f32 %v9907_v11, %v9907_v11 }
 0x41c   : > { %v4813_v62 = vsel %vm2366_vm7, %v4777_v29, 0.0  ;;  %v9922_v10 = vsub.f32 %v9685_v51, %v4739_v14  ;;  %v4780_v53 = vmul.f32 %v9913_v54, %v9913_v54  ;;  %v4815_v40 = vsel %vm2366_vm7, %v4778_v37, 0.0 }
 0x41d   : > { %v4808_v22 = vadd.f32 %v4807_v3, %v4806_v47  ;;  %v9928_v26 = vsub.f32 %v9692_v45, %v4739_v14  ;;  %v4781_v49 = vmul.f32 %v9817_v41, %v9817_v41  ;;  %v4817_v50 = vsel %vm2366_vm7, %v4779_v19, 0.0 }
 0x41e   : > { %v4782_v13 = vmul.f32 %v9922_v10, %v9922_v10  ;;  %v4819_v51 = vsel %vm2366_vm7, %v4780_v53, 0.0  ;;  %v4784_v45 = vmul.f32 %v9820_v1, %v9820_v1  ;;  %v4785_v34 = vmul.f32 %v9823_v9, %v9823_v9 }
 0x41f   : > { %v4810_v39 = vadd.f32 %v4809_v18, %v4808_v22  ;;  %v4783_v8 = vmul.f32 %v9928_v26, %v9928_v26  ;;  %v4821_v31 = vsel %vm2366_vm7, %v4781_v49, 0.0  ;;  %v4786_v17 = vmul.f32 %v9826_v33, %v9826_v33 }
 0x420   : > { %v4823_v14 = vsel %vm2366_vm7, %v4782_v13, 0.0  ;;  %v4827_v47 = vsel %vm2366_vm7, %v4784_v45, 0.0  ;;  %v4787_v3 = vmul.f32 %v9829_v60, %v9829_v60  ;;  %v4829_v22 = vsel %vm2366_vm7, %v4785_v34, 0.0 }
 0x421   : > { %v4812_v21 = vadd.f32 %v4811_v24, %v4810_v39  ;;  %v4825_v30 = vsel %vm2366_vm7, %v4783_v8, 0.0  ;;  %v4788_v18 = vmul.f32 %v9832_v0, %v9832_v0  ;;  %v4831_v39 = vsel %vm2366_vm7, %v4786_v17, 0.0 }
 0x422   : > { %v4789_v24 = vmul.f32 %v9835_v20, %v9835_v20 }
 0x423   : > { %v4814_v16 = vadd.f32 %v4813_v62, %v4812_v21  ;;  %v4833_v21 = vsel %vm2366_vm7, %v4787_v3, 0.0  ;;  %v4790_v62 = vmul.f32 %v9838_v56, %v9838_v56 }
 0x425   : > { %v4816_v36 = vadd.f32 %v4815_v40, %v4814_v16  ;;  %v4835_v16 = vsel %vm2366_vm7, %v4788_v18, 0.0  ;;  %v4791_v40 = vmul.f32 %v9841_v46, %v9841_v46 }
 0x427   : > { %v4818_v42 = vadd.f32 %v4817_v50, %v4816_v36  ;;  %v4837_v36 = vsel %vm2366_vm7, %v4789_v24, 0.0  ;;  %v4792_v50 = vmul.f32 %v9844_v59, %v9844_v59  ;;  %v7519_v24 = vmov 0  }
 0x428   : > { %7435 = vset.pattern.permute.xlu0 %v7519_v24  ;;  %7436 = vset.pattern.permute.xlu1 %v7519_v24 }
 0x429   : > { %v4820_v7 = vadd.f32 %v4819_v51, %v4818_v42  ;;  %v4839_v42 = vsel %vm2366_vm7, %v4790_v62, 0.0  ;;  %v4793_v51 = vmul.f32 %v9847_v15, %v9847_v15 }
 0x42b   : > { %v4822_v57 = vadd.f32 %v4821_v31, %v4820_v7  ;;  %v4841_v7 = vsel %vm2366_vm7, %v4791_v40, 0.0  ;;  %v4794_v31 = vmul.f32 %v9850_v25, %v9850_v25 }
 0x42d   : > { %v4824_v23 = vadd.f32 %v4823_v14, %v4822_v57  ;;  %v4843_v57 = vsel %vm2366_vm7, %v4792_v50, 0.0  ;;  %v4795_v14 = vmul.f32 %v9853_v52, %v9853_v52 }
 0x42f   : > { %v4826_v5 = vadd.f32 %v4825_v30, %v4824_v23  ;;  %v4845_v23 = vsel %vm2366_vm7, %v4793_v51, 0.0  ;;  %v4796_v30 = vmul.f32 %v9856_v6, %v9856_v6 }
 0x431   : > { %v4828_v27 = vadd.f32 %v4827_v47, %v4826_v5  ;;  %v4847_v5 = vsel %vm2366_vm7, %v4794_v31, 0.0  ;;  %v4797_v47 = vmul.f32 %v9858_v38, %v9858_v38 }
 0x433   : > { %v4830_v29 = vadd.f32 %v4829_v22, %v4828_v27  ;;  %v4849_v27 = vsel %vm2366_vm7, %v4795_v14, 0.0  ;;  %v4798_v22 = vmul.f32 %v9860_v44, %v9860_v44 }
 0x435   : > { %v4832_v37 = vadd.f32 %v4831_v39, %v4830_v29  ;;  %v4851_v29 = vsel %vm2366_vm7, %v4796_v30, 0.0  ;;  %v4799_v39 = vmul.f32 %v9862_v55, %v9862_v55  ;;  %v4855_v62 = vsel %vm2366_vm7, %v4798_v22, 0.0  ;;  %v10006_v22 = vld [vmem:[%s10666_s6] ss:$0 sm:$0xff] }
 0x437   : > { %v4834_v19 = vadd.f32 %v4833_v21, %v4832_v37  ;;  %v4853_v37 = vsel %vm2366_vm7, %v4797_v47, 0.0  ;;  %v4857_v40 = vsel %vm2366_vm7, %v4799_v39, 0.0 }
 0x439   : > { %v4836_v53 = vadd.f32 %v4835_v16, %v4834_v19  ;;  %v4800_v19 = vmul.f32 %v9864_v63, %v9864_v63 }
 0x43b   : > { %v4838_v49 = vadd.f32 %v4837_v36, %v4836_v53  ;;  %v4801_v53 = vmul.f32 %v9866_v61, %v9866_v61  ;;  %v4859_v50 = vsel %vm2366_vm7, %v4800_v19, 0.0 }
 0x43d   : > { %v4840_v13 = vadd.f32 %v4839_v42, %v4838_v49  ;;  %v4802_v49 = vmul.f32 %v9868_v28, %v9868_v28  ;;  %v4861_v51 = vsel %vm2366_vm7, %v4801_v53, 0.0 }
 0x43f   : > { %v4842_v8 = vadd.f32 %v4841_v7, %v4840_v13  ;;  %v4803_v13 = vmul.f32 %v9870_v32, %v9870_v32 }
 0x441   : > { %v4844_v45 = vadd.f32 %v4843_v57, %v4842_v8  ;;  %v4863_v8 = vsel %vm2366_vm7, %v4802_v49, 0.0  ;;  %v4865_v57 = vsel %vm2366_vm7, %v4803_v13, 0.0 }
 0x443   : > { %v4846_v34 = vadd.f32 %v4845_v23, %v4844_v45 }
 0x445   : > { %v4848_v17 = vadd.f32 %v4847_v5, %v4846_v34 }
 0x447   : > { %v4850_v3 = vadd.f32 %v4849_v27, %v4848_v17 }
 0x449   : > { %v4852_v18 = vadd.f32 %v4851_v29, %v4850_v3 }
 0x44b   : > { %v4854_v21 = vadd.f32 %v4853_v37, %v4852_v18 }
 0x44d   : > { %v4856_v16 = vadd.f32 %v4855_v62, %v4854_v21 }
 0x44f   : > { %v4858_v36 = vadd.f32 %v4857_v40, %v4856_v16 }
 0x451   : > { %v4860_v42 = vadd.f32 %v4859_v50, %v4858_v36 }
 0x453   : > { %v4862_v7 = vadd.f32 %v4861_v51, %v4860_v42 }
 0x455   : > { %v4864_v31 = vadd.f32 %v4863_v8, %v4862_v7 }
 0x457   : > { %v4866_v45 = vadd.f32 %v4865_v57, %v4864_v31 }
 0x459   : > { %v4867_v14 = vrot.slane %v4866_v45, 4 }
 0x45b   : > { %v4868_v23 = vadd.f32 %v4867_v14, %v4866_v45  ;;  %v10087_v45 = vld [vmem:[%s10667_s7] ss:$0 sm:$0xff] }
 0x45d   : > { %v4869_v34 = vrot.slane %v4868_v23, 2 }
 0x45f   : > { %v4870_v30 = vadd.f32 %v4869_v34, %v4868_v23 }
 0x461   : > { %v4871_v5 = vrot.slane %v4870_v30, 1 }
 0x463   : > { %v4872_v17 = vadd.f32 %v4871_v5, %v4870_v30 }
 0x465   : > { %v4873_v47 = vmul.f32 0.00390625, %v4872_v17 }
 0x467   : > { %v4874_v27 = vadd.f32 1e-05, %v4873_v47 }
 0x469   : > { %7447 = vrsqrt.f32 %v4874_v27 }
 0x476   : > { %v7448_v3 = vpop.eup %7447 }
 0x477   : > { %v4905_v29 = vmul.f32 %v7448_v3, %v9866_v61  ;;  %v4876_v18 = vmul.f32 %v7448_v3, %v9873_v48  ;;  %v4877_v39 = vmul.f32 %v7448_v3, %v9876_v43  ;;  %v4878_v37 = vmul.f32 %v7448_v3, %v9879_v4 }
 0x478   : > { %v4879_v21 = vmul.f32 %v7448_v3, %v9882_v58  ;;  %v4880_v19 = vmul.f32 %v7448_v3, %v9889_v2  ;;  %v4881_v62 = vmul.f32 %v7448_v3, %v9894_v35  ;;  %v4882_v16 = vmul.f32 %v7448_v3, %v9901_v12 }
 0x479   : > { %v10017_v53 = vmul.f32 %v10006_v22, %v4905_v29  ;;  %v4883_v40 = vmul.f32 %v7448_v3, %v9907_v11  ;;  %v4884_v61 = vmul.f32 %v7448_v3, %v9913_v54  ;;  %v4885_v48 = vmul.f32 %v7448_v3, %v9817_v41 }
 0x47a   : > { %v4886_v43 = vmul.f32 %v7448_v3, %v9922_v10  ;;  %v4887_v4 = vmul.f32 %v7448_v3, %v9928_v26  ;;  %v4888_v58 = vmul.f32 %v7448_v3, %v9820_v1  ;;  %v4889_v2 = vmul.f32 %v7448_v3, %v9823_v9 }
 0x47b   : > { %v4890_v35 = vmul.f32 %v7448_v3, %v9826_v33  ;;  %v4891_v12 = vmul.f32 %v7448_v3, %v9829_v60  ;;  %v4892_v36 = vmul.f32 %v7448_v3, %v9832_v0  ;;  %v4893_v11 = vmul.f32 %v7448_v3, %v9835_v20 }
 0x47c   : > { %v4894_v54 = vmul.f32 %v7448_v3, %v9838_v56  ;;  %v4895_v41 = vmul.f32 %v7448_v3, %v9841_v46  ;;  %v4896_v10 = vmul.f32 %v7448_v3, %v9844_v59  ;;  %v4897_v26 = vmul.f32 %v7448_v3, %v9847_v15 }
 0x47d   : > { %v4898_v1 = vmul.f32 %v7448_v3, %v9850_v25  ;;  %v4899_v9 = vmul.f32 %v7448_v3, %v9853_v52  ;;  %v4900_v33 = vmul.f32 %v7448_v3, %v9856_v6  ;;  %v4901_v60 = vmul.f32 %v7448_v3, %v9858_v38 }
 0x47e   : > { %v4902_v0 = vmul.f32 %v7448_v3, %v9860_v44  ;;  %v4903_v20 = vmul.f32 %v7448_v3, %v9862_v55  ;;  %v4904_v56 = vmul.f32 %v7448_v3, %v9864_v63  ;;  %v4906_v46 = vmul.f32 %v7448_v3, %v9868_v28 }
 0x47f   : > { %v4907_v59 = vmul.f32 %v7448_v3, %v9870_v32  ;;  %v4915_v15 = vmul.f32 %v10006_v22, %v4876_v18  ;;  %v4916_v25 = vmul.f32 %v10006_v22, %v4877_v39  ;;  %v4917_v52 = vmul.f32 %v10006_v22, %v4878_v37 }
 0x480   : > { %v4918_v6 = vmul.f32 %v10006_v22, %v4879_v21  ;;  %v4919_v38 = vmul.f32 %v10006_v22, %v4880_v19  ;;  %v4920_v44 = vmul.f32 %v10006_v22, %v4881_v62  ;;  %v4921_v55 = vmul.f32 %v10006_v22, %v4882_v16 }
 0x481   : > { %v4922_v63 = vmul.f32 %v10006_v22, %v4883_v40  ;;  %v10052_v28 = vmul.f32 %v10006_v22, %v4884_v61  ;;  %v10055_v32 = vmul.f32 %v10006_v22, %v4885_v48  ;;  %v10058_v49 = vmul.f32 %v10006_v22, %v4886_v43 }
 0x482   : > { %v10061_v50 = vmul.f32 %v10006_v22, %v4887_v4  ;;  %v10064_v42 = vmul.f32 %v10006_v22, %v4888_v58  ;;  %v10067_v13 = vmul.f32 %v10006_v22, %v4889_v2  ;;  %v10070_v51 = vmul.f32 %v10006_v22, %v4890_v35 }
 0x483   : > { %v10073_v7 = vmul.f32 %v10006_v22, %v4891_v12  ;;  %v10076_v8 = vmul.f32 %v10006_v22, %v4892_v36  ;;  %v10079_v31 = vmul.f32 %v10006_v22, %v4893_v11  ;;  %v10082_v57 = vmul.f32 %v10006_v22, %v4894_v54 }
 0x484   : > { %v10090_v14 = vmul.f32 %v10006_v22, %v4895_v41  ;;  %v10093_v23 = vmul.f32 %v10006_v22, %v4896_v10  ;;  %v10096_v34 = vmul.f32 %v10006_v22, %v4897_v26  ;;  %v10099_v30 = vmul.f32 %v10006_v22, %v4898_v1 }
 0x485   : > { %v10102_v5 = vmul.f32 %v10006_v22, %v4899_v9  ;;  %v10105_v17 = vmul.f32 %v10006_v22, %v4900_v33  ;;  %v10108_v47 = vmul.f32 %v10006_v22, %v4901_v60  ;;  %v10111_v27 = vmul.f32 %v10006_v22, %v4902_v0 }
 0x486   : > { %v10114_v3 = vmul.f32 %v10006_v22, %v4903_v20  ;;  %v10117_v29 = vmul.f32 %v10006_v22, %v4904_v56  ;;  %v10120_v18 = vmul.f32 %v10006_v22, %v4906_v46  ;;  %v10123_v39 = vmul.f32 %v10006_v22, %v4907_v59 }
 0x487   : > { %v4955_v37 = vadd.f32 %v10087_v45, %v4916_v25  ;;  %v4954_v21 = vadd.f32 %v10087_v45, %v4915_v15  ;;  %v4956_v19 = vadd.f32 %v10087_v45, %v4917_v52  ;;  %v4957_v62 = vadd.f32 %v10087_v45, %v4918_v6 }
 0x488   : > { %v4958_v16 = vadd.f32 %v10087_v45, %v4919_v38  ;;  %v4959_v40 = vadd.f32 %v10087_v45, %v4920_v44  ;;  %v4960_v61 = vadd.f32 %v10087_v45, %v4921_v55  ;;  %v4961_v48 = vadd.f32 %v10087_v45, %v4922_v63 }
 0x489   : > { %vm4986_vm9 = vcmp.ge.f32.partialorder %v4954_v21, 0.0  ;;  %v5018_v22 = vmul.f32 0.01, %v4954_v21  ;;  %vm4987_vm10 = vcmp.ge.f32.partialorder %v4955_v37, 0.0  ;;  %v5019_v43 = vmul.f32 0.01, %v4955_v37 }
 0x48a   : > { %vm4988_vm11 = vcmp.ge.f32.partialorder %v4956_v19, 0.0  ;;  %v5020_v4 = vmul.f32 0.01, %v4956_v19  ;;  %vm4989_vm12 = vcmp.ge.f32.partialorder %v4957_v62, 0.0  ;;  %v5021_v58 = vmul.f32 0.01, %v4957_v62 }
 0x48b   : > { %v5050_v2 = vsel %vm4986_vm9, %v4954_v21, %v5018_v22  ;;  %v5051_v35 = vsel %vm4987_vm10, %v4955_v37, %v5019_v43  ;;  %vm4990_vm13 = vcmp.ge.f32.partialorder %v4958_v16, 0.0  ;;  %v5022_v12 = vmul.f32 0.01, %v4958_v16 }
 0x48c   : > { %5082 = vst.msk [vmem:[%s10138_s23] sm:$0xff] %vm2366_vm7, %v5050_v2  ;;  %6825 = vmatprep.mubr.msk.f32.mxu0 %vm2366_vm7, %v5050_v2  ;;  %5083 = vst.msk [vmem:[%s10138_s23 + $0x8] sm:$0xff] %vm2366_vm7, %v5051_v35  ;;  %v5052_v36 = vsel %vm4988_vm11, %v4956_v19, %v5020_v4  ;;  %v5053_v11 = vsel %vm4989_vm12, %v4957_v62, %v5021_v58  ;;  %vm4991_vm14 = vcmp.ge.f32.partialorder %v4959_v40, 0.0  ;;  %v5023_v54 = vmul.f32 0.01, %v4959_v40 }
 0x48d   : > { %6826 = vmatmul.mubr.msk.f32.vlgmr.msra.gmra.mxu0 %vm2366_vm7, %v5051_v35  ;;  %5084 = vst.msk [vmem:[%s10138_s23 + $0x10] sm:$0xff] %vm2366_vm7, %v5052_v36  ;;  %5085 = vst.msk [vmem:[%s10138_s23 + $0x18] sm:$0xff] %vm2366_vm7, %v5053_v11  ;;  %v5054_v41 = vsel %vm4990_vm13, %v4958_v16, %v5022_v12  ;;  %vm4992_vm15 = vcmp.ge.f32.partialorder %v4960_v61, 0.0  ;;  %v5024_v10 = vmul.f32 0.01, %v4960_v61  ;;  %vm4993_vm0 = vcmp.ge.f32.partialorder %v4961_v48, 0.0 }
 0x48e   : > { %6828 = vmatprep.mubr.msk.f32.mxu0 %vm2366_vm7, %v5052_v36  ;;  %5086 = vst.msk [vmem:[%s10138_s23 + $0x20] sm:$0xff] %vm2366_vm7, %v5054_v41  ;;  %v5055_v26 = vsel %vm4991_vm14, %v4959_v40, %v5023_v54  ;;  %v5025_v1 = vmul.f32 0.01, %v4961_v48  ;;  %v4962_v9 = vadd.f32 %v10087_v45, %v10052_v28  ;;  %v4963_v33 = vadd.f32 %v10087_v45, %v10055_v32 }
 0x48f   : > { %5087 = vst.msk [vmem:[%s10138_s23 + $0x28] sm:$0xff] %vm2366_vm7, %v5055_v26  ;;  %v5056_v60 = vsel %vm4992_vm15, %v4960_v61, %v5024_v10  ;;  %v4964_v0 = vadd.f32 %v10087_v45, %v10058_v49  ;;  %v4965_v20 = vadd.f32 %v10087_v45, %v10061_v50  ;;  %v4966_v56 = vadd.f32 %v10087_v45, %v10064_v42 }
 0x490   : > { %5088 = vst.msk [vmem:[%s10138_s23 + $0x30] sm:$0xff] %vm2366_vm7, %v5056_v60  ;;  %v5057_v46 = vsel %vm4993_vm0, %v4961_v48, %v5025_v1  ;;  %vm4994_vm1 = vcmp.ge.f32.partialorder %v4962_v9, 0.0  ;;  %v5026_v59 = vmul.f32 0.01, %v4962_v9  ;;  %vm4995_vm2 = vcmp.ge.f32.partialorder %v4963_v33, 0.0 }
 0x491   : > { %6829 = vmatmul.mubr.msk.f32.gmra.mxu0 %vm2366_vm7, %v5053_v11  ;;  %5089 = vst.msk [vmem:[%s10138_s23 + $0x38] sm:$0xff] %vm2366_vm7, %v5057_v46  ;;  %v5027_v15 = vmul.f32 0.01, %v4963_v33  ;;  %vm4996_vm3 = vcmp.ge.f32.partialorder %v4964_v0, 0.0  ;;  %v5028_v25 = vmul.f32 0.01, %v4964_v0  ;;  %v4967_v63 = vadd.f32 %v10087_v45, %v10067_v13 }
 0x492   : > { %vm4997_vm5 = vcmp.ge.f32.partialorder %v4965_v20, 0.0  ;;  %6831 = vmatprep.mubr.msk.f32.mxu0 %vm2366_vm7, %v5054_v41  ;;  %v5058_v52 = vsel %vm4994_vm1, %v4962_v9, %v5026_v59  ;;  %v5029_v6 = vmul.f32 0.01, %v4965_v20  ;;  %vm4998_vm6 = vcmp.ge.f32.partialorder %v4966_v56, 0.0 }
 0x493   : > { %v5030_v38 = vmul.f32 0.01, %v4966_v56  ;;  %5090 = vst.msk [vmem:[%s10138_s23 + $0x40] sm:$0xff] %vm2366_vm7, %v5058_v52  ;;  %v5059_v44 = vsel %vm4995_vm2, %v4963_v33, %v5027_v15  ;;  %v5060_v55 = vsel %vm4996_vm3, %v4964_v0, %v5028_v25  ;;  %v4968_v28 = vadd.f32 %v10087_v45, %v10070_v51 }
 0x494   : > { %5091 = vst.msk [vmem:[%s10138_s23 + $0x48] sm:$0xff] %vm2366_vm7, %v5059_v44  ;;  %5092 = vst.msk [vmem:[%s10138_s23 + $0x50] sm:$0xff] %vm2366_vm7, %v5060_v55  ;;  %v10181_v32 = vsel %vm4997_vm5, %v4965_v20, %v5029_v6  ;;  %v4969_v50 = vadd.f32 %v10087_v45, %v10073_v7  ;;  %v4970_v42 = vadd.f32 %v10087_v45, %v10076_v8  ;;  %vm4999_vm8 = vcmp.ge.f32.partialorder %v4967_v63, 0.0 }
 0x495   : > { %v10183_v49 = vsel %vm4998_vm6, %v4966_v56, %v5030_v38  ;;  %6832 = vmatmul.mubr.msk.f32.gmra.mxu0 %vm2366_vm7, %v5055_v26  ;;  %5093 = vst.msk [vmem:[%s10138_s23 + $0x58] sm:$0xff] %vm2366_vm7, %v10181_v32  ;;  %v5031_v13 = vmul.f32 0.01, %v4967_v63  ;;  %vm5000_vm9 = vcmp.ge.f32.partialorder %v4968_v28, 0.0  ;;  %v5032_v51 = vmul.f32 0.01, %v4968_v28 }
 0x496   : > { %5094 = vst.msk [vmem:[%s10138_s23 + $0x60] sm:$0xff] %vm2366_vm7, %v10183_v49  ;;  %6834 = vmatprep.mubr.msk.f32.mxu0 %vm2366_vm7, %v5056_v60  ;;  %vm5001_vm10 = vcmp.ge.f32.partialorder %v4969_v50, 0.0  ;;  %v5033_v7 = vmul.f32 0.01, %v4969_v50  ;;  %vm5002_vm11 = vcmp.ge.f32.partialorder %v4970_v42, 0.0  ;;  %v4971_v19 = vadd.f32 %v10087_v45, %v10079_v31 }
 0x497   : > { %v5034_v8 = vmul.f32 0.01, %v4970_v42  ;;  %v10197_v37 = vsel %vm4999_vm8, %v4967_v63, %v5031_v13  ;;  %v10199_v21 = vsel %vm5000_vm9, %v4968_v28, %v5032_v51  ;;  %v4972_v62 = vadd.f32 %v10087_v45, %v10082_v57 }
 0x498   : > { %5095 = vst.msk [vmem:[%s10138_s23 + $0x68] sm:$0xff] %vm2366_vm7, %v10197_v37  ;;  %5096 = vst.msk [vmem:[%s10138_s23 + $0x70] sm:$0xff] %vm2366_vm7, %v10199_v21  ;;  %v10211_v16 = vsel %vm5001_vm10, %v4969_v50, %v5033_v7  ;;  %v4973_v61 = vadd.f32 %v10087_v45, %v10090_v14  ;;  %v4974_v48 = vadd.f32 %v10087_v45, %v10093_v23  ;;  %vm5003_vm12 = vcmp.ge.f32.partialorder %v4971_v19, 0.0 }
 0x499   : > { %v10213_v40 = vsel %vm5002_vm11, %v4970_v42, %v5034_v8  ;;  %6835 = vmatmul.mubr.msk.f32.gmra.mxu0 %vm2366_vm7, %v5057_v46  ;;  %5097 = vst.msk [vmem:[%s10138_s23 + $0x78] sm:$0xff] %vm2366_vm7, %v10211_v16  ;;  %v5035_v31 = vmul.f32 0.01, %v4971_v19  ;;  %vm5004_vm13 = vcmp.ge.f32.partialorder %v4972_v62, 0.0  ;;  %v5036_v57 = vmul.f32 0.01, %v4972_v62 }
 0x49a   : > { %5098 = vst.msk [vmem:[%s10138_s23 + $0x80] sm:$0xff] %vm2366_vm7, %v10213_v40  ;;  %6837 = vmatprep.mubr.msk.f32.mxu0 %vm2366_vm7, %v5058_v52  ;;  %vm5005_vm14 = vcmp.ge.f32.partialorder %v4973_v61, 0.0  ;;  %v5037_v14 = vmul.f32 0.01, %v4973_v61  ;;  %vm5006_vm15 = vcmp.ge.f32.partialorder %v4974_v48, 0.0  ;;  %v4975_v4 = vadd.f32 %v10087_v45, %v10096_v34 }
 0x49b   : > { %v5038_v23 = vmul.f32 0.01, %v4974_v48  ;;  %v10227_v22 = vsel %vm5003_vm12, %v4971_v19, %v5035_v31  ;;  %v10229_v43 = vsel %vm5004_vm13, %v4972_v62, %v5036_v57  ;;  %v4976_v58 = vadd.f32 %v10087_v45, %v10099_v30 }
 0x49c   : > { %5099 = vst.msk [vmem:[%s10138_s23 + $0x88] sm:$0xff] %vm2366_vm7, %v10227_v22  ;;  %5100 = vst.msk [vmem:[%s10138_s23 + $0x90] sm:$0xff] %vm2366_vm7, %v10229_v43  ;;  %v10241_v2 = vsel %vm5005_vm14, %v4973_v61, %v5037_v14  ;;  %v4977_v12 = vadd.f32 %v10087_v45, %v10102_v5  ;;  %v4978_v36 = vadd.f32 %v10087_v45, %v10105_v17  ;;  %vm5007_vm0 = vcmp.ge.f32.partialorder %v4975_v4, 0.0 }
 0x49d   : > { %v10243_v35 = vsel %vm5006_vm15, %v4974_v48, %v5038_v23  ;;  %6838 = vmatmul.mubr.msk.f32.gmra.mxu0 %vm2366_vm7, %v5059_v44  ;;  %5101 = vst.msk [vmem:[%s10138_s23 + $0x98] sm:$0xff] %vm2366_vm7, %v10241_v2  ;;  %v5039_v34 = vmul.f32 0.01, %v4975_v4  ;;  %vm5008_vm1 = vcmp.ge.f32.partialorder %v4976_v58, 0.0  ;;  %v5040_v30 = vmul.f32 0.01, %v4976_v58 }
 0x49e   : > { %5102 = vst.msk [vmem:[%s10138_s23 + $0xa0] sm:$0xff] %vm2366_vm7, %v10243_v35  ;;  %6840 = vmatprep.mubr.msk.f32.mxu0 %vm2366_vm7, %v5060_v55  ;;  %vm5009_vm2 = vcmp.ge.f32.partialorder %v4977_v12, 0.0  ;;  %v5041_v5 = vmul.f32 0.01, %v4977_v12  ;;  %vm5010_vm3 = vcmp.ge.f32.partialorder %v4978_v36, 0.0  ;;  %v4979_v41 = vadd.f32 %v10087_v45, %v10108_v47 }
 0x49f   : > { %v5042_v17 = vmul.f32 0.01, %v4978_v36  ;;  %v5071_v11 = vsel %vm5007_vm0, %v4975_v4, %v5039_v34  ;;  %v5072_v54 = vsel %vm5008_vm1, %v4976_v58, %v5040_v30  ;;  %v4980_v10 = vadd.f32 %v10087_v45, %v10111_v27  ;;  %v10395_v30 = vld [vmem:[%s10671_s11 + $0x8] sm:$0xff] }
 0x4a0   : > { %5103 = vst.msk [vmem:[%s10138_s23 + $0xa8] sm:$0xff] %vm2366_vm7, %v5071_v11  ;;  %5104 = vst.msk [vmem:[%s10138_s23 + $0xb0] sm:$0xff] %vm2366_vm7, %v5072_v54  ;;  %v5073_v26 = vsel %vm5009_vm2, %v4977_v12, %v5041_v5  ;;  %v4981_v9 = vadd.f32 %v10087_v45, %v10114_v3  ;;  %v4982_v33 = vadd.f32 %v10087_v45, %v10117_v29  ;;  %vm5011_vm5 = vcmp.ge.f32.partialorder %v4979_v41, 0.0  ;;  %v10375_v12 = vld [vmem:[%s10670_s10] sm:$0xff] }
 0x4a1   : > { %v5074_v1 = vsel %vm5010_vm3, %v4978_v36, %v5042_v17  ;;  %6841 = vmatmul.mubr.msk.f32.gmra.mxu0 %vm2366_vm7, %v10181_v32  ;;  %5105 = vst.msk [vmem:[%s10138_s23 + $0xb8] sm:$0xff] %vm2366_vm7, %v5073_v26  ;;  %v5043_v47 = vmul.f32 0.01, %v4979_v41  ;;  %vm5012_vm6 = vcmp.ge.f32.partialorder %v4980_v10, 0.0  ;;  %v5044_v27 = vmul.f32 0.01, %v4980_v10  ;;  %6877 = vmatprep.mubr.msk.f32.mxu1 %vm2984_vm4, %v10375_v12 }
 0x4a2   : > { %5106 = vst.msk [vmem:[%s10138_s23 + $0xc0] sm:$0xff] %vm2366_vm7, %v5074_v1  ;;  %6843 = vmatprep.mubr.msk.f32.mxu0 %vm2366_vm7, %v10183_v49  ;;  %vm5013_vm8 = vcmp.ge.f32.partialorder %v4981_v9, 0.0  ;;  %v5045_v3 = vmul.f32 0.01, %v4981_v9  ;;  %vm5014_vm9 = vcmp.ge.f32.partialorder %v4982_v33, 0.0  ;;  %v4983_v20 = vadd.f32 %v10087_v45, %v10017_v53  ;;  %6894 = vmatprep.subr.mxu0 %v10395_v30  ;;  %v10401_v17 = vld [vmem:[%s10671_s11] sm:$0xff] }
 0x4a3   : > { %v5046_v29 = vmul.f32 0.01, %v4982_v33  ;;  %v5075_v60 = vsel %vm5011_vm5, %v4979_v41, %v5043_v47  ;;  %v5076_v0 = vsel %vm5012_vm6, %v4980_v10, %v5044_v27  ;;  %v4984_v56 = vadd.f32 %v10087_v45, %v10120_v18  ;;  %6895 = vmatpush3.msra.mxu0 %v10395_v30 }
 0x4a4   : > { %5107 = vst.msk [vmem:[%s10138_s23 + $0xc8] sm:$0xff] %vm2366_vm7, %v5075_v60  ;;  %5108 = vst.msk [vmem:[%s10138_s23 + $0xd0] sm:$0xff] %vm2366_vm7, %v5076_v0  ;;  %v5077_v46 = vsel %vm5013_vm8, %v4981_v9, %v5045_v3  ;;  %v4985_v15 = vadd.f32 %v10087_v45, %v10123_v39  ;;  %vm5015_vm10 = vcmp.ge.f32.partialorder %v4983_v20, 0.0  ;;  %v5047_v53 = vmul.f32 0.01, %v4983_v20  ;;  %6896 = vmatprep.subr.mxu0 %v10401_v17 }
 0x4a5   : > { %v5078_v59 = vsel %vm5014_vm9, %v4982_v33, %v5046_v29  ;;  %6844 = vmatmul.mubr.msk.f32.gmra.mxu0 %vm2366_vm7, %v10197_v37  ;;  %5109 = vst.msk [vmem:[%s10138_s23 + $0xd8] sm:$0xff] %vm2366_vm7, %v5077_v46  ;;  %vm5016_vm11 = vcmp.ge.f32.partialorder %v4984_v56, 0.0  ;;  %v5048_v18 = vmul.f32 0.01, %v4984_v56  ;;  %v7520_v36 = vmov 1  }
 0x4a6   : > { %5110 = vst.msk [vmem:[%s10138_s23 + $0xe0] sm:$0xff] %vm2366_vm7, %v5078_v59  ;;  %6846 = vmatprep.mubr.msk.f32.mxu0 %vm2366_vm7, %v10199_v21  ;;  %vm5017_vm12 = vcmp.ge.f32.partialorder %v4985_v15, 0.0  ;;  %v5049_v25 = vmul.f32 0.01, %v4985_v15  ;;  %v5079_v52 = vsel %vm5015_vm10, %v4983_v20, %v5047_v53  ;;  %6897 = vmatpush3.msra.mxu0 %v10401_v17  ;;  %vm5719_vm13 = vcmask 1041409  }
 0x4a7   : > { %v5080_v6 = vsel %vm5016_vm11, %v4984_v56, %v5048_v18  ;;  %5111 = vst.msk [vmem:[%s10138_s23 + $0xe8] sm:$0xff] %vm2366_vm7, %v5079_v52  ;;  %v10814_v18 = vld [vmem:[#allocation17_spill] sm:$0xff]  ;;  %vm5721_vm14 = vcmask 1042434   ;;  %vm5723_vm15 = vcmask 1043459   ;;  %vm5725_vm0 = vcmask 1044484  }
 0x4a8   : > { %5112 = vst.msk [vmem:[%s10138_s23 + $0xf0] sm:$0xff] %vm2366_vm7, %v5080_v6  ;;  %v5081_v45 = vsel %vm5017_vm12, %v4985_v15, %v5049_v25  ;;  %vm5727_vm1 = vcmask 1045509   ;;  %vm5731_vm2 = vcmask 1047559   ;;  %vm5729_vm3 = vcmask 1046534  }
 0x4a9   : > { %6847 = vmatmul.mubr.msk.f32.gmra.mxu0 %vm2366_vm7, %v10211_v16  ;;  %5113 = vst.msk [vmem:[%s10138_s23 + $0xf8] sm:$0xff] %vm2366_vm7, %v5081_v45  ;;  %s6364_s23 = sshll.u32 %s456_s2, 4  ;;  %s10610_s23 = int_to_ptr.vmem [resolvable:$true] %s6364_s23 }
 0x4aa   : > { %6849 = vmatprep.mubr.msk.f32.mxu0 %vm2366_vm7, %v10213_v40  ;;  %s7449_s29 = scalar_lea.vmem %s10610_s23, 512  ;;  %p7456_p0 = scmp.lt.s32.totalorder %s10610_s23, %s7454_s0 }
 0x4ab   : > { %p7450_p11 = scmp.ne.s32.totalorder %s10610_s23, %s7449_s29  ;;  %p7457_p1 = scmp.lt.s32.totalorder %s7455_s1, %s7449_s29 }
 0x4ad   : > { %6850 = vmatmul.mubr.msk.f32.gmra.mxu0 %vm2366_vm7, %v10227_v22  ;;  %p7451_p12 = pnand %p7450_p11, %p7631_p5  ;;  %p7458_p2 = por %p7457_p1, %p7456_p0 }
 0x4ae   : > { %6852 = vmatprep.mubr.msk.f32.mxu0 %vm2366_vm7, %v10229_v43 }
 0x4af   : > { %p7452_p13 = pneg %p7451_p12 }
 0x4b1   : > { %6853 = vmatmul.mubr.msk.f32.gmra.mxu0 %vm2366_vm7, %v10241_v2  ;;  %p7459_p3 = pnand %p7458_p2, %p7452_p13 }
 0x4b2   : > { %6855 = vmatprep.mubr.msk.f32.mxu0 %vm2366_vm7, %v10243_v35 }
 0x4b5   : > { %6856 = vmatmul.mubr.msk.f32.gmra.mxu0 %vm2366_vm7, %v5071_v11 }
 0x4b6   : > { %6858 = vmatprep.mubr.msk.f32.mxu0 %vm2366_vm7, %v5072_v54 }
 0x4b9   : > { %6859 = vmatmul.mubr.msk.f32.gmra.mxu0 %vm2366_vm7, %v5073_v26 }
 0x4ba   : > { %6861 = vmatprep.mubr.msk.f32.mxu0 %vm2366_vm7, %v5074_v1 }
 0x4bd   : > { %6862 = vmatmul.mubr.msk.f32.gmra.mxu0 %vm2366_vm7, %v5075_v60 }
 0x4be   : > { %6864 = vmatprep.mubr.msk.f32.mxu0 %vm2366_vm7, %v5076_v0 }
 0x4c1   : > { %6865 = vmatmul.mubr.msk.f32.gmra.mxu0 %vm2366_vm7, %v5077_v46  ;;  %v10813_v46 = vlaneseq }
 0x4c2   : > { %6867 = vmatprep.mubr.msk.f32.mxu0 %vm2366_vm7, %v5078_v59 }
 0x4c3   : > { %v5572_v59 = vand.u32 127, %v10813_v46 }
 0x4c5   : > { %6868 = vmatmul.mubr.msk.f32.gmra.mxu0 %vm2366_vm7, %v5079_v52  ;;  %v5577_v53 = vadd.s32 4294967288, %v5572_v59  ;;  %v10435_v25 = vsub.s32 %v5572_v59, %v10814_v18 }
 0x4c6   : > { %6870 = vmatprep.mubr.msk.f32.mxu0 %vm2366_vm7, %v5080_v6 }
 0x4c9   : > { %6871 = vmatmul.mubr.msk.f32.gmra.mxu0 %vm2366_vm7, %v5081_v45  ;;  %v10438_v45 = vsub.s32 %v5577_v53, %v10814_v18  ;;  %vm5582_vm7 = vcmask 130112  }
 0x54d   : > { %v10324_v39 = vpop.f32.mrf.mxu0 }
 0x54e   : > { %5479 = vperm.xlu0 %7435, %v10324_v39  }
 0x54f   : > { %v10327_v38 = vpop.f32.mrf.mxu0 }
 0x550   : > { %5476 = vperm.xlu1 %7436, %v10327_v38  }
 0x551   : > { %v10330_v44 = vpop.f32.mrf.mxu0 }
 0x552   : > { %5485 = vperm.xlu0 %7435, %v10330_v44  }
 0x553   : > { %v10333_v55 = vpop.f32.mrf.mxu0 }
 0x554   : > { %5482 = vperm.xlu1 %7436, %v10333_v55  }
 0x555   : > { %v10336_v63 = vpop.f32.mrf.mxu0 }
 0x556   : > { %5491 = vperm.xlu0 %7435, %v10336_v63  }
 0x557   : > { %v10339_v28 = vpop.f32.mrf.mxu0 }
 0x558   : > { %5488 = vperm.xlu1 %7436, %v10339_v28  }
 0x559   : > { %v10342_v32 = vpop.f32.mrf.mxu0 }
 0x55a   : > { %5497 = vperm.xlu0 %7435, %v10342_v32  }
 0x55b   : > { %v10345_v49 = vpop.f32.mrf.mxu0 }
 0x55c   : > { %5494 = vperm.xlu1 %7436, %v10345_v49  }
 0x55d   : > { %v10348_v50 = vpop.f32.mrf.mxu0 }
 0x55e   : > { %5503 = vperm.xlu0 %7435, %v10348_v50  }
 0x55f   : > { %v10351_v42 = vpop.f32.mrf.mxu0 }
 0x560   : > { %5500 = vperm.xlu1 %7436, %v10351_v42  }
 0x561   : > { %v10354_v13 = vpop.f32.mrf.mxu0 }
 0x562   : > { %5509 = vperm.xlu0 %7435, %v10354_v13  }
 0x563   : > { %v10357_v51 = vpop.f32.mrf.mxu0 }
 0x564   : > { %5506 = vperm.xlu1 %7436, %v10357_v51  }
 0x565   : > { %v10360_v7 = vpop.f32.mrf.mxu0 }
 0x566   : > { %5515 = vperm.xlu0 %7435, %v10360_v7  }
 0x567   : > { %v10363_v8 = vpop.f32.mrf.mxu0 }
 0x568   : > { %5512 = vperm.xlu1 %7436, %v10363_v8  }
 0x569   : > { %v10366_v37 = vpop.f32.mrf.mxu0 }
 0x56b   : > { %v10368_v21 = vpop.f32.mrf.mxu0 }
 0x56d   : > { %v6851_v19 = vpop.f32.mrf.mxu0 }
 0x56e   : > { %5527 = vperm.xlu1 %7436, %v6851_v19  }
 0x56f   : > { %v5360_v62 = vpop.f32.mrf.mxu0 }
 0x570   : > { %5524 = vperm.xlu0 %7435, %v5360_v62  }
 0x571   : > { %v6854_v16 = vpop.f32.mrf.mxu0 }
 0x573   : > { %v5370_v40 = vpop.f32.mrf.mxu0 }
 0x574   : > { %5533 = vperm.xlu0 %7435, %v6854_v16   ;;  %5530 = vperm.xlu1 %7436, %v5370_v40  }
 0x575   : > { %v6857_v61 = vpop.f32.mrf.mxu0 }
 0x577   : > { %v5380_v48 = vpop.f32.mrf.mxu0 }
 0x578   : > { %5539 = vperm.xlu0 %7435, %v6857_v61   ;;  %5536 = vperm.xlu1 %7436, %v5380_v48  }
 0x579   : > { %v6860_v31 = vpop.f32.mrf.mxu0 }
 0x57b   : > { %v5390_v57 = vpop.f32.mrf.mxu0 }
 0x57c   : > { %5545 = vperm.xlu0 %7435, %v6860_v31   ;;  %5542 = vperm.xlu1 %7436, %v5390_v57  }
 0x57d   : > { %v6863_v14 = vpop.f32.mrf.mxu0 }
 0x57f   : > { %v5400_v23 = vpop.f32.mrf.mxu0 }
 0x580   : > { %5551 = vperm.xlu0 %7435, %v6863_v14   ;;  %5548 = vperm.xlu1 %7436, %v5400_v23  }
 0x581   : > { %v6866_v22 = vpop.f32.mrf.mxu0 }
 0x583   : > { %v5410_v43 = vpop.f32.mrf.mxu0 }
 0x584   : > { %5557 = vperm.xlu0 %7435, %v6866_v22   ;;  %5554 = vperm.xlu1 %7436, %v5410_v43  }
 0x585   : > { %v6869_v4 = vpop.f32.mrf.mxu0 }
 0x587   : > { %v5420_v58 = vpop.f32.mrf.mxu0 }
 0x588   : > { %5563 = vperm.xlu0 %7435, %v6869_v4   ;;  %5560 = vperm.xlu1 %7436, %v5420_v58  }
 0x589   : > { %v6872_v2 = vpop.f32.mrf.mxu0 }
 0x58b   : > { %v5430_v35 = vpop.f32.mrf.mxu0 }
 0x58c   : > { %5569 = vperm.xlu0 %7435, %v6872_v2   ;;  %5566 = vperm.xlu1 %7436, %v5430_v35  }
 0x590   : > { %5521 = vperm.xlu0 %7435, %v10366_v37   ;;  %5518 = vperm.xlu1 %7436, %v10368_v21  }
 0x594   : > { %7438 = vset.pattern.permute.xlu0 %v7520_v36  ;;  %7437 = vset.pattern.permute.xlu1 %v7520_v36 }
 0x595   : > { %5968 = vperm.xlu0 %7438, %v6851_v19   ;;  %5965 = vperm.xlu1 %7437, %v5360_v62  }
 0x599   : > { %5977 = vperm.xlu0 %7438, %v5380_v48   ;;  %5971 = vperm.xlu1 %7437, %v5370_v40  }
 0x59d   : > { %5917 = vperm.xlu0 %7438, %v10327_v38   ;;  %5974 = vperm.xlu1 %7437, %v6854_v16  }
 0x5a1   : > { %5923 = vperm.xlu0 %7438, %v10333_v55   ;;  %5980 = vperm.xlu1 %7437, %v6857_v61  }
 0x5a5   : > { %5983 = vperm.xlu0 %7438, %v5390_v57   ;;  %5920 = vperm.xlu1 %7437, %v10324_v39  }
 0x5a9   : > { %5929 = vperm.xlu0 %7438, %v10339_v28   ;;  %5926 = vperm.xlu1 %7437, %v10330_v44  }
 0x5ad   : > { %5989 = vperm.xlu0 %7438, %v5400_v23   ;;  %5986 = vperm.xlu1 %7437, %v6860_v31  }
 0x5b1   : > { %5935 = vperm.xlu0 %7438, %v10345_v49   ;;  %5932 = vperm.xlu1 %7437, %v10336_v63  }
 0x5b5   : > { %5995 = vperm.xlu0 %7438, %v5410_v43   ;;  %5992 = vperm.xlu1 %7437, %v6863_v14  }
 0x5b9   : > { %5941 = vperm.xlu0 %7438, %v10351_v42   ;;  %5938 = vperm.xlu1 %7437, %v10342_v32  }
 0x5bd   : > { %6001 = vperm.xlu0 %7438, %v5420_v58   ;;  %5998 = vperm.xlu1 %7437, %v6866_v22  }
 0x5c1   : > { %5947 = vperm.xlu0 %7438, %v10357_v51   ;;  %5944 = vperm.xlu1 %7437, %v10348_v50  }
 0x5c5   : > { %5953 = vperm.xlu0 %7438, %v10363_v8   ;;  %6004 = vperm.xlu1 %7437, %v6869_v4  }
 0x5c9   : > { %v5480_v34 = vpop.permute.xlu0 %5479  ;;  %6007 = vperm.xlu0 %7438, %v5430_v35   ;;  %5950 = vperm.xlu1 %7437, %v10354_v13  }
 0x5ca   : > { %v5581_v55 = vrot.slane %v5480_v34, %v10438_v45 }
 0x5cb   : > { %v5477_v5 = vpop.permute.xlu1 %5476 }
 0x5cc   : > { %v5576_v39 = vrot.slane %v5477_v5, %v10435_v25 }
 0x5cd   : > { %v10405_v11 = vpop.permute.xlu0 %5485  ;;  %5959 = vperm.xlu0 %7438, %v10368_v21   ;;  %6010 = vperm.xlu1 %7437, %v6872_v2  }
 0x5ce   : > { %v5583_v32 = vsel %vm5582_vm7, %v5581_v55, %v5576_v39 }
 0x5cf   : > { %v5483_v54 = vpop.permute.xlu1 %5482 }
 0x5d0   : > { %v5587_v49 = vrot.slane %v5483_v54, %v10435_v25 }
 0x5d1   : > { %v10409_v41 = vpop.permute.xlu0 %5491  ;;  %5956 = vperm.xlu1 %7437, %v10360_v7   ;;  %7439 = vset.pattern.permute.xlu0 %v7519_v24  ;;  %v5591_v7 = vrot.slane %v10405_v11, %v10438_v45 }
 0x5d2   : > { %v5600_v23 = vrot.slane %v10409_v41, %v10438_v45 }
 0x5d3   : > { %v10413_v10 = vpop.permute.xlu1 %5488  ;;  %v5592_v14 = vsel %vm5582_vm7, %v5591_v7, %v5587_v49 }
 0x5d4   : > { %v5596_v19 = vrot.slane %v10413_v10, %v10435_v25 }
 0x5d5   : > { %v10415_v26 = vpop.permute.xlu0 %5497  ;;  %5962 = vperm.xlu1 %7437, %v10366_v37  }
 0x5d6   : > { %v5609_v22 = vrot.slane %v10415_v26, %v10438_v45  ;;  %v5601_v5 = vsel %vm5582_vm7, %v5600_v23, %v5596_v19 }
 0x5d7   : > { %v10418_v1 = vpop.permute.xlu1 %5494 }
 0x5d8   : > { %v5605_v62 = vrot.slane %v10418_v1, %v10435_v25 }
 0x5d9   : > { %7440 = vset.pattern.permute.xlu1 %v7519_v24  ;;  %v10421_v9 = vpop.permute.xlu0 %5503 }
 0x5da   : > { %v5610_v10 = vsel %vm5582_vm7, %v5609_v22, %v5605_v62 }
 0x5db   : > { %v10423_v33 = vpop.permute.xlu1 %5500 }
 0x5dc   : > { %v5614_v11 = vrot.slane %v10423_v33, %v10435_v25 }
 0x5dd   : > { %v10425_v47 = vpop.permute.xlu0 %5509 }
 0x5df   : > { %v10427_v27 = vpop.permute.xlu1 %5506 }
 0x5e0   : > { %v5623_v26 = vrot.slane %v10427_v27, %v10435_v25 }
 0x5e1   : > { %v10429_v3 = vpop.permute.xlu0 %5515 }
 0x5e3   : > { %v10431_v29 = vpop.permute.xlu1 %5512 }
 0x5e9   : > { %v5528_v60 = vpop.permute.xlu1 %5527 }
 0x5ea   : > { %v5654_v61 = vrot.slane %v5528_v60, %v10438_v45 }
 0x5eb   : > { %v5525_v0 = vpop.permute.xlu0 %5524 }
 0x5ec   : > { %v5650_v8 = vrot.slane %v5525_v0, %v10435_v25  ;;  %v5618_v0 = vrot.slane %v10421_v9, %v10438_v45  ;;  %v5720_v9 = vsel %vm5719_vm13, %v5592_v14, %v5583_v32 }
 0x5ee   : > { %v5655_v2 = vsel %vm5582_vm7, %v5654_v61, %v5650_v8  ;;  %v5619_v18 = vsel %vm5582_vm7, %v5618_v0, %v5614_v11  ;;  %v10516_v8 = vld [vmem:[%s10670_s10 + $0x8] sm:$0xff] }
 0x5ef   : > { %v5534_v20 = vpop.permute.xlu0 %5533  ;;  %v5531_v56 = vpop.permute.xlu1 %5530 }
 0x5f0   : > { %v5663_v63 = vrot.slane %v5534_v20, %v10438_v45  ;;  %v5659_v28 = vrot.slane %v5531_v56, %v10435_v25  ;;  %v5632_v20 = vrot.slane %v10431_v29, %v10435_v25  ;;  %v5636_v29 = vrot.slane %v10429_v3, %v10438_v45 }
 0x5f2   : > { %v5664_v48 = vsel %vm5582_vm7, %v5663_v63, %v5659_v28  ;;  %v5637_v55 = vsel %vm5582_vm7, %v5636_v29, %v5632_v20 }
 0x5f3   : > { %v5540_v15 = vpop.permute.xlu0 %5539  ;;  %v5537_v24 = vpop.permute.xlu1 %5536  ;;  %v5733_v54 = vsel %vm5719_vm13, %v5664_v48, %v5655_v2 }
 0x5f4   : > { %v5672_v50 = vrot.slane %v5540_v15, %v10438_v45  ;;  %v5668_v42 = vrot.slane %v5537_v24, %v10435_v25  ;;  %v5627_v15 = vrot.slane %v10425_v47, %v10438_v45 }
 0x5f6   : > { %v5673_v43 = vsel %vm5582_vm7, %v5672_v50, %v5668_v42  ;;  %v5628_v39 = vsel %vm5582_vm7, %v5627_v15, %v5623_v26 }
 0x5f7   : > { %v5546_v52 = vpop.permute.xlu0 %5545  ;;  %v5543_v6 = vpop.permute.xlu1 %5542  ;;  %v5734_v1 = vsel %vm5721_vm14, %v5673_v43, %v5733_v54 }
 0x5f8   : > { %v5681_v37 = vrot.slane %v5546_v52, %v10438_v45  ;;  %v5677_v21 = vrot.slane %v5543_v6, %v10435_v25  ;;  %v5722_v6 = vsel %vm5721_vm14, %v5601_v5, %v5720_v9 }
 0x5fa   : > { %v5682_v35 = vsel %vm5582_vm7, %v5681_v37, %v5677_v21 }
 0x5fb   : > { %v5552_v38 = vpop.permute.xlu0 %5551  ;;  %v5549_v44 = vpop.permute.xlu1 %5548  ;;  %v5735_v33 = vsel %vm5723_vm15, %v5682_v35, %v5734_v1 }
 0x5fc   : > { %v5690_v16 = vrot.slane %v5552_v38, %v10438_v45  ;;  %v5686_v40 = vrot.slane %v5549_v44, %v10435_v25  ;;  %v5724_v44 = vsel %vm5723_vm15, %v5610_v10, %v5722_v6 }
 0x5fd   : > { %v5726_v3 = vsel %vm5725_vm0, %v5619_v18, %v5724_v44 }
 0x5fe   : > { %v5691_v41 = vsel %vm5582_vm7, %v5690_v16, %v5686_v40  ;;  %v5728_v42 = vsel %vm5727_vm1, %v5628_v39, %v5726_v3 }
 0x5ff   : > { %v5558_v13 = vpop.permute.xlu0 %5557  ;;  %v5555_v51 = vpop.permute.xlu1 %5554  ;;  %v5736_v27 = vsel %vm5725_vm0, %v5691_v41, %v5735_v33 }
 0x600   : > { %v5699_v31 = vrot.slane %v5558_v13, %v10438_v45  ;;  %v5695_v57 = vrot.slane %v5555_v51, %v10435_v25  ;;  %v5730_v51 = vsel %vm5729_vm3, %v5637_v55, %v5728_v42 }
 0x602   : > { %v5700_v60 = vsel %vm5582_vm7, %v5699_v31, %v5695_v57 }
 0x603   : > { %v5564_v4 = vpop.permute.xlu0 %5563  ;;  %v5561_v58 = vpop.permute.xlu1 %5560  ;;  %v5737_v52 = vsel %vm5727_vm1, %v5700_v60, %v5736_v27 }
 0x604   : > { %v5708_v36 = vrot.slane %v5564_v4, %v10438_v45  ;;  %v5704_v34 = vrot.slane %v5561_v58, %v10435_v25 }
 0x606   : > { %v5709_v56 = vsel %vm5582_vm7, %v5708_v36, %v5704_v34 }
 0x607   : > { %v5570_v46 = vpop.permute.xlu0 %5569  ;;  %v5567_v59 = vpop.permute.xlu1 %5566  ;;  %v5738_v38 = vsel %vm5729_vm3, %v5709_v56, %v5737_v52 }
 0x608   : > { %v5717_v24 = vrot.slane %v5570_v46, %v10438_v45  ;;  %v5713_v53 = vrot.slane %v5567_v59, %v10435_v25 }
 0x60a   : > { %v5718_v47 = vsel %vm5582_vm7, %v5717_v24, %v5713_v53 }
 0x60b   : > { %v5522_v63 = vpop.permute.xlu0 %5521  ;;  %v5519_v28 = vpop.permute.xlu1 %5518  ;;  %v5739_v32 = vsel %vm5731_vm2, %v5718_v47, %v5738_v38 }
 0x60c   : > { %v5645_v49 = vrot.slane %v5522_v63, %v10438_v45  ;;  %v5641_v50 = vrot.slane %v5519_v28, %v10435_v25  ;;  %6873 = vmatprep.subr.mxu1 %v5739_v32 }
 0x60d   : > { %6874 = vmatpush3.msra.mxu1 %v5739_v32 }
 0x60e   : > { %v5646_v13 = vsel %vm5582_vm7, %v5645_v49, %v5641_v50 }
 0x60f   : > { %v5732_v7 = vsel %vm5731_vm2, %v5646_v13, %v5730_v51 }
 0x610   : > { %v10518_v37 = vpop.permute.xlu0 %5968  ;;  %6875 = vmatprep.subr.mxu1 %v5732_v7  ;;  %v10520_v21 = vpop.permute.xlu1 %5965 }
 0x611   : > { %6876 = vmatpush3.msra.mxu1 %v5732_v7  ;;  %v6091_v52 = vrot.slane %v10518_v37, %v10438_v45  ;;  %v6087_v6 = vrot.slane %v10520_v21, %v10435_v25 }
 0x612   : > { %6878 = vmatmul.mubr.msk.f32.vlgmr.msra.gmra.mxu1 %vm2984_vm4, %v10516_v8  ;;  %6880 = vmatprep.subr.mxu1 %v10395_v30 }
 0x613   : > { %6881 = vmatpush3.msra.mxu1 %v10395_v30  ;;  %v6092_v42 = vsel %vm5582_vm7, %v6091_v52, %v6087_v6 }
 0x614   : > { %v5978_v19 = vpop.permute.xlu0 %5977  ;;  %v5972_v62 = vpop.permute.xlu1 %5971  ;;  %6882 = vmatprep.subr.mxu1 %v10401_v17 }
 0x615   : > { %6883 = vmatpush3.msra.mxu1 %v10401_v17  ;;  %v6096_v55 = vrot.slane %v5972_v62, %v10435_v25  ;;  %v6105_v28 = vrot.slane %v5978_v19, %v10435_v25 }
 0x618   : > { %v5918_v16 = vpop.permute.xlu0 %5917  ;;  %v5975_v40 = vpop.permute.xlu1 %5974 }
 0x619   : > { %v6015_v14 = vrot.slane %v5918_v16, %v10435_v25  ;;  %v6100_v18 = vrot.slane %v5975_v40, %v10438_v45 }
 0x61b   : > { %v6101_v3 = vsel %vm5582_vm7, %v6100_v18, %v6096_v55 }
 0x61c   : > { %v5924_v61 = vpop.permute.xlu0 %5923  ;;  %v5981_v48 = vpop.permute.xlu1 %5980  ;;  %v6163_v40 = vsel %vm5719_vm13, %v6101_v3, %v6092_v42 }
 0x61d   : > { %v6024_v4 = vrot.slane %v5924_v61, %v10435_v25  ;;  %v6109_v39 = vrot.slane %v5981_v48, %v10438_v45 }
 0x61f   : > { %v6110_v13 = vsel %vm5582_vm7, %v6109_v39, %v6105_v28 }
 0x620   : > { %v5984_v31 = vpop.permute.xlu0 %5983  ;;  %v5921_v57 = vpop.permute.xlu1 %5920 }
 0x621   : > { %v6019_v23 = vrot.slane %v5921_v57, %v10438_v45  ;;  %v6114_v49 = vrot.slane %v5984_v31, %v10435_v25  ;;  %v6164_v57 = vsel %vm5721_vm14, %v6110_v13, %v6163_v40 }
 0x623   : > { %v6020_v22 = vsel %vm5582_vm7, %v6019_v23, %v6015_v14 }
 0x624   : > { %v5930_v43 = vpop.permute.xlu0 %5929  ;;  %v5927_v30 = vpop.permute.xlu1 %5926 }
 0x625   : > { %v6028_v58 = vrot.slane %v5927_v30, %v10438_v45  ;;  %v6033_v11 = vrot.slane %v5930_v43, %v10435_v25 }
 0x627   : > { %v6029_v17 = vsel %vm5582_vm7, %v6028_v58, %v6024_v4 }
 0x628   : > { %v6156_v2 = vsel %vm5719_vm13, %v6029_v17, %v6020_v22  ;;  %v5990_v35 = vpop.permute.xlu0 %5989  ;;  %v5987_v36 = vpop.permute.xlu1 %5986 }
 0x629   : > { %v6118_v63 = vrot.slane %v5987_v36, %v10438_v45  ;;  %v6123_v51 = vrot.slane %v5990_v35, %v10435_v25 }
 0x62b   : > { %v6119_v21 = vsel %vm5582_vm7, %v6118_v63, %v6114_v49 }
 0x62c   : > { %v5936_v34 = vpop.permute.xlu0 %5935  ;;  %v5933_v5 = vpop.permute.xlu1 %5932  ;;  %v6165_v22 = vsel %vm5723_vm15, %v6119_v21, %v6164_v57 }
 0x62d   : > { %v6037_v54 = vrot.slane %v5933_v5, %v10438_v45  ;;  %v6042_v20 = vrot.slane %v5936_v34, %v10435_v25 }
 0x62f   : > { %v6038_v41 = vsel %vm5582_vm7, %v6037_v54, %v6033_v11 }
 0x630   : > { %v6157_v10 = vsel %vm5721_vm14, %v6038_v41, %v6156_v2  ;;  %v5996_v26 = vpop.permute.xlu0 %5995  ;;  %v5993_v1 = vpop.permute.xlu1 %5992 }
 0x631   : > { %v6127_v32 = vrot.slane %v5993_v1, %v10438_v45  ;;  %v6132_v19 = vrot.slane %v5996_v26, %v10435_v25  ;;  %v6577_v1 = vld [vmem:[%s10669_s9] ss:$0 sm:$0xff] }
 0x632   : > { %5830 = vperm.xlu0 %7439, %v6577_v1  }
 0x633   : > { %v6128_v61 = vsel %vm5582_vm7, %v6127_v32, %v6123_v51 }
 0x634   : > { %v5942_v60 = vpop.permute.xlu0 %5941  ;;  %v5939_v0 = vpop.permute.xlu1 %5938  ;;  %v6166_v58 = vsel %vm5725_vm0, %v6128_v61, %v6165_v22 }
 0x635   : > { %v6046_v33 = vrot.slane %v5939_v0, %v10438_v45  ;;  %v6051_v53 = vrot.slane %v5942_v60, %v10435_v25 }
 0x637   : > { %v6047_v56 = vsel %vm5582_vm7, %v6046_v33, %v6042_v20 }
 0x638   : > { %v6158_v46 = vsel %vm5723_vm15, %v6047_v56, %v6157_v10  ;;  %v6002_v59 = vpop.permute.xlu0 %6001  ;;  %v5999_v15 = vpop.permute.xlu1 %5998 }
 0x639   : > { %v6136_v50 = vrot.slane %v5999_v15, %v10438_v45  ;;  %v6141_v48 = vrot.slane %v6002_v59, %v10435_v25 }
 0x63b   : > { %v6137_v14 = vsel %vm5582_vm7, %v6136_v50, %v6132_v19 }
 0x63c   : > { %v5948_v27 = vpop.permute.xlu0 %5947  ;;  %v5945_v24 = vpop.permute.xlu1 %5944  ;;  %v6167_v35 = vsel %vm5727_vm1, %v6137_v14, %v6166_v58 }
 0x63d   : > { %v6055_v9 = vrot.slane %v5945_v24, %v10438_v45  ;;  %v6060_v62 = vrot.slane %v5948_v27, %v10435_v25 }
 0x63f   : > { %v6056_v29 = vsel %vm5582_vm7, %v6055_v9, %v6051_v53 }
 0x640   : > { %v6159_v47 = vsel %vm5725_vm0, %v6056_v29, %v6158_v46  ;;  %v5954_v38 = vpop.permute.xlu0 %5953  ;;  %v6005_v44 = vpop.permute.xlu1 %6004 }
 0x641   : > { %v6145_v7 = vrot.slane %v6005_v44, %v10438_v45  ;;  %v6069_v54 = vrot.slane %v5954_v38, %v10435_v25 }
 0x643   : > { %v6146_v43 = vsel %vm5582_vm7, %v6145_v7, %v6141_v48 }
 0x644   : > { %v5951_v37 = vpop.permute.xlu1 %5950  ;;  %v6008_v31 = vpop.permute.xlu0 %6007  ;;  %v6168_v34 = vsel %vm5729_vm3, %v6146_v43, %v6167_v35 }
 0x645   : > { %v6064_v16 = vrot.slane %v5951_v37, %v10438_v45  ;;  %v6150_v17 = vrot.slane %v6008_v31, %v10435_v25 }
 0x647   : > { %v6065_v23 = vsel %vm5582_vm7, %v6064_v16, %v6060_v62 }
 0x648   : > { %v6011_v30 = vpop.permute.xlu1 %6010  ;;  %v6160_v4 = vsel %vm5727_vm1, %v6065_v23, %v6159_v47  ;;  %v5960_v0 = vpop.permute.xlu0 %5959 }
 0x649   : > { %v6154_v2 = vrot.slane %v6011_v30, %v10438_v45  ;;  %v6078_v33 = vrot.slane %v5960_v0, %v10435_v25  ;;  %v6583_v25 = vld [vmem:[%s10669_s9 + $0x1] ss:$0 sm:$0xff] }
 0x64a   : > { %6255 = vperm.xlu1 %7440, %v6583_v25  }
 0x64b   : > { %v6155_v36 = vsel %vm5582_vm7, %v6154_v2, %v6150_v17 }
 0x64c   : > { %v5957_v5 = vpop.permute.xlu1 %5956  ;;  %v6169_v11 = vsel %vm5731_vm2, %v6155_v36, %v6168_v34 }
 0x64d   : > { %v6073_v41 = vrot.slane %v5957_v5, %v10438_v45  ;;  %6887 = vmatprep.subr.mxu1 %v6169_v11 }
 0x64f   : > { %v6074_v10 = vsel %vm5582_vm7, %v6073_v41, %v6069_v54 }
 0x650   : > { %v6161_v26 = vsel %vm5729_vm3, %v6074_v10, %v6160_v4  ;;  %v5963_v60 = vpop.permute.xlu1 %5962 }
 0x651   : > { %v6082_v20 = vrot.slane %v5963_v60, %v10438_v45 }
 0x653   : > { %v6083_v59 = vsel %vm5582_vm7, %v6082_v20, %v6078_v33 }
 0x654   : > { %v6162_v15 = vsel %vm5731_vm2, %v6083_v59, %v6161_v26 }
 0x6ad   : > { %v5831_v45 = vpop.permute.xlu0 %5830 }
 0x6c5   : > { %v6256_v18 = vpop.permute.xlu1 %6255 }
 0x6d2   : > { %v6879_v56 = vpop.f32.mrf.mxu1 }
 0x6d4   : > { %v5814_v46 = vpop.f32.mrf.mxu1 }
 0x6d5   : > { %6884 = vmatprep.mubr.msk.f32.mxu1 %vm2984_vm4, %v5814_v46 }
 0x6d6   : > { %6885 = vmatmul.mubr.msk.f32.vlgmr.msra.gmra.mxu1 %vm2984_vm4, %v6879_v56 }
 0x6d7   : > { %6888 = vmatpush3.msra.mxu1 %v6169_v11  ;;  %6891 = vmatprep.mubr.msk.f32.mxu1 %vm2984_vm4, %v10375_v12 }
 0x6d8   : > { %6889 = vmatprep.subr.mxu1 %v6162_v15 }
 0x6d9   : > { %6890 = vmatpush3.msra.mxu1 %v6162_v15 }
 0x6da   : > { %6892 = vmatmul.mubr.msk.f32.vlgmr.msra.gmra.mxu1 %vm2984_vm4, %v10516_v8 }
 0x796   : > { %v6886_v27 = vpop.f32.mrf.mxu1 }
 0x797   : > { %v5911_v24 = vadd.f32 %v6886_v27, %v5831_v45 }
 0x798   : > { %v5905_v53 = vpop.f32.mrf.mxu1 }
 0x799   : > { %5915 = vst.msk [vmem:[%s456_s2 + $0x8] sm:$0xff] %vm2984_vm4, %v5911_v24  ;;  %v5906_v12 = vadd.f32 %v5905_v53, %v5831_v45 }
 0x79a   : > { %v6893_v9 = vpop.f32.mrf.mxu1 }
 0x79b   : > { %5914 = vst.msk [vmem:[%s456_s2] sm:$0xff] %vm2984_vm4, %v5906_v12 }
 0x79c   : > { %v6238_v8 = vpop.f32.mrf.mxu1 }
 0x79d   : > { %6898 = vmatprep.mubr.msk.f32.mxu0 %vm2984_vm4, %v6238_v8 }
 0x79e   : > { %6899 = vmatmul.mubr.msk.f32.vlgmr.msra.gmra.mxu0 %vm2984_vm4, %v6893_v9 }
 0x85e   : > { %v6900_v29 = vpop.f32.mrf.mxu0 }
 0x85f   : > { %v6336_v52 = vadd.f32 %v6900_v29, %v6256_v18 }
 0x860   : > { %v6330_v6 = vpop.f32.mrf.mxu0 }
 0x861   : > { %v6331_v39 = vadd.f32 %v6330_v6, %v6256_v18  ;;  %6587 = vst.msk [vmem:[%s456_s2 + $0x18] sm:$0xff] %vm2984_vm4, %v6336_v52 }
 0x863   : > { %6586 = vst.msk [vmem:[%s456_s2 + $0x10] sm:$0xff] %vm2984_vm4, %v6331_v39 }
 0x864   : > { %7462 = shalt.err (!%p7459_p3)
}
 0x865   : > { %s7463_s16 = scalar_lea.hbm %s10616_s15, 512  ;;  %s7467_s30 = scalar_lea.hbm %s10673_s13, 1024 }
 0x866   : > { %p7464_p4 = scmp.ne.s32.totalorder %s10616_s15, %s7463_s16  ;;  %p7468_p9 = scmp.lt.s32.totalorder %s10616_s15, %s10673_s13 }
 0x867   : > { %p7469_p10 = scmp.lt.s32.totalorder %s7467_s30, %s7463_s16 }
 0x868   : > { %p7465_p7 = pnand %p7464_p4, %p7631_p5 }
 0x869   : > { %p7470_p11 = por %p7469_p10, %p7468_p9 }
 0x86a   : > { %p7466_p8 = pneg %p7465_p7 }
 0x86c   : > { %p7471_p12 = pnand %p7470_p11, %p7466_p8 }
 0x86e   : > { %7474 = shalt.err (!%p7471_p12)
}
 0x86f   : > { %s7522_s0 = smov 128   ;;  %s10815_s1 = smov 8  }
 0x870   : > { %6905 = dma.vmem_to_hbm [thread:$0]  (%p7631_p5), %s10610_s23, 512, %s10616_s15, %s10619_s20, %s7522_s0, %s7522_s0, %s10815_s1  }
 0x871 PF: > { %p6911_p13 = scmp.ge.s32.totalorder %s7509_s28, 2  ;;  %s6387_s29 = sand.u32 1, %s7497_s25  }
 0x872   : > { %s6388_s16 = scalar_lea.sflag [#allocation4], %s6387_s29 }
 0x873   : > { %p6908_p0 = pnand %p6911_p13, %p7635_p6 }
 0x875   : > { %p6909_p1 = pneg %p6908_p0 }
 0x877   : > { %7492 = dma.done.wait (%p6909_p1), %s6388_s16, 512  }
 0x878   : > { %7494 = vsyncadd (%p6909_p1), %s6388_s16, 4294966784  ;;  %p24_p2 = scmp.ge.s32.totalorder %s7618_s14, 4   ;;  %s10816_s25 = smov %s7501_s26 }
 0x879   : > { %s10817_s26 = smov %s7505_s27  ;;  %s10818_s27 = smov %s7629_s17 }
 0x87a   : > { %s10819_s28 = smov %s7618_s14  ;;  %26 = sbr.rel (!%p24_p2) target bundleno = 7 (0x7), region = 125 }
 0x87f   :  { %6393 = vsyncpa [#allocation4], 1 }
 0x880   :  { %6395 = vsyncpa [#allocation4 + $0x1], 1 }

</bundles_post_ra>
